<compile_context>
chip_gen: v7x
topology: tpu7x:2x2x1
jax: 0.10.0
libtpu: 0.0.40
codegen_flags: <defaults>
</compile_context>

<pallas_src>
import math
from functools import partial

import jax
import jax.numpy as jnp
from jax import lax
from jax.experimental import pallas as pl
from jax.experimental.pallas import tpu as pltpu


def _round_up(x, m):
    return ((x + m - 1) // m) * m


# ----------------------------- Pallas kernel --------------------------------

def _disc_block_kernel(*args, H, W, has_sc, downsample, emit_feat):
    """One fused DiscBlock:
       relu -> conv3x3 -> relu -> conv3x3 (+ 1x1/identity shortcut)
       then either avg_pool2 (strided VPU reads) + placement into the next padded
       pitch layout, or (last block) the fused head: relu, spatial sum, projection."""
    Wp = W + 2
    L_in = (H + 2) * Wp
    Lc = H * Wp - 2
    lead = (-(Wp + 1)) % 8          # dead-row pad -> interior store is 8-row aligned

    it = iter(args)
    x_ref = next(it)
    w1_ref = next(it); b1_ref = next(it)
    w2_ref = next(it); b2_ref = next(it)
    wsc_ref = bsc_ref = None
    if has_sc:
        wsc_ref = next(it); bsc_ref = next(it)
    w6_ref = wy_ref = None
    if emit_feat:
        w6_ref = next(it); wy_ref = next(it)
    o_ref = next(it)
    xr_s = next(it)
    h1r_s = next(it)
    tot_s = next(it) if downsample else None

    ch_p = h1r_s.shape[-1]

    # Rim rows of the conv2 input scratch must be zero.  Zero only the rim
    # (2*(Wp+1) rows, ~KBs) -- the interior is fully overwritten each step.  Done
    # every step (not once under program_id==0): the batch axis is "parallel", so on
    # a multi-TC chip a core may never see program_id==0.
    zrim = jnp.zeros((Wp + 1, ch_p), h1r_s.dtype)
    h1r_s[lead:lead + Wp + 1, :] = zrim
    h1r_s[lead + Wp + 1 + Lc:lead + L_in, :] = zrim

    # Pre-activation ReLU of the input, stored bf16 MXU-ready (zero halo stays zero).
    xr_s[...] = jnp.maximum(x_ref[0], 0)

    def conv3x3(src, base, w_ref, b_ref):
        # Taps paired along the contraction: 4 GEMMs with K = 2*Cp plus 1 with K = Cp.
        cin = src.shape[-1]
        acc = None
        for i in range(4):
            t0, t1 = 2 * i, 2 * i + 1
            off0 = (t0 // 3) * Wp + (t0 % 3)
            off1 = (t1 // 3) * Wp + (t1 % 3)
            patch = jnp.concatenate(
                [src[pl.ds(base + off0, Lc), :], src[pl.ds(base + off1, Lc), :]],
                axis=1)                                            # (Lc, 2*Cp) bf16
            d = jnp.dot(patch, w_ref[i], preferred_element_type=jnp.float32)
            acc = d if acc is None else acc + d
        d = jnp.dot(src[pl.ds(base + 2 * Wp + 2, Lc), :], w_ref[4, :cin, :],
                    preferred_element_type=jnp.float32)            # ninth tap
        return acc + d + b_ref[...]                                # (Lc, Cout) f32

    h1 = conv3x3(xr_s, 0, w1_ref, b1_ref)                          # (Lc, Ch_p) f32

    # Valid-column mask of the pitch layout, generated in-kernel (no DMA'd mask).
    col = lax.broadcasted_iota(jnp.int32, (Lc, 1), 0) % Wp
    valid = col < W

    # ReLU + mask, placed into the padded pitch scratch conv2 reads (rim stays zero).
    h1r_s[lead + Wp + 1:lead + Wp + 1 + Lc, :] = jnp.where(
        valid, jnp.maximum(h1, 0.0), 0.0).astype(h1r_s.dtype)

    h2 = conv3x3(h1r_s, lead, w2_ref, b2_ref)                      # (Lc, Cout_p) f32

    # Shortcut: 1x1 conv (or identity) on the raw interior rows of x (bf16 in).
    x_int = x_ref[0, Wp + 1:Wp + 1 + Lc, :]
    if has_sc:
        sc = jnp.dot(x_int, wsc_ref[...],
                     preferred_element_type=jnp.float32) + bsc_ref[...]
    else:
        sc = x_int.astype(jnp.float32)
    total = h2 + sc                                                # (Lc, Cout_p) f32
    cp = total.shape[-1]

    if downsample:
        Ho, Wo = H // 2, W // 2
        Wop = Wo + 2
        # avg_pool2 commutes with the 1x1 shortcut, so pooling `total` is exact.
        # Pool in f32 via strided VPU reads from a small staging scratch.
        tot_s[0:Lc, :] = total

        def pooled_row(ho):
            base = 2 * ho * Wp
            return 0.25 * (tot_s[pl.ds(base, Wo, stride=2), :]
                           + tot_s[pl.ds(base + 1, Wo, stride=2), :]
                           + tot_s[pl.ds(base + Wp, Wo, stride=2), :]
                           + tot_s[pl.ds(base + Wp + 1, Wo, stride=2), :])

        if emit_feat:
            # fused head: ReLU + spatial sum + <feat, w6 + emb(y)>
            feat = jnp.zeros((1, cp), jnp.float32)
            for ho in range(Ho):
                feat = feat + jnp.sum(jnp.maximum(pooled_row(ho), 0.0),
                                      axis=0, keepdims=True)
            logit = jnp.sum(feat * (w6_ref[...] + wy_ref[...]),
                            axis=1, keepdims=True)                 # (1, 1)
            o_ref[...] = jnp.broadcast_to(logit, o_ref.shape)
        else:
            zrow = jnp.zeros((Wop, cp), o_ref.dtype)
            o_ref[0, 0:Wop, :] = zrow
            o_ref[0, (Ho + 1) * Wop:(Ho + 2) * Wop, :] = zrow
            zc = jnp.zeros((1, cp), jnp.float32)
            for ho in range(Ho):
                row = jnp.concatenate([zc, pooled_row(ho), zc], axis=0)
                o_ref[0, (ho + 1) * Wop:(ho + 2) * Wop, :] = row.astype(o_ref.dtype)
    else:
        masked = jnp.where(valid, total, 0.0)
        if emit_feat:
            feat = jnp.sum(jnp.maximum(masked, 0.0), axis=0, keepdims=True)
            logit = jnp.sum(feat * (w6_ref[...] + wy_ref[...]),
                            axis=1, keepdims=True)
            o_ref[...] = jnp.broadcast_to(logit, o_ref.shape)
        else:
            zrow = jnp.zeros((Wp + 1, cp), o_ref.dtype)
            o_ref[0, 0:Wp + 1, :] = zrow
            o_ref[0, Wp + 1:Wp + 1 + Lc, :] = masked.astype(o_ref.dtype)
            o_ref[0, Wp + 1 + Lc:L_in, :] = zrow


# ----------------------------- Pallas wrapper --------------------------------

def disc_block(x_pad, p, H, W, emit_feat=False, w6=None, wy=None):
    """x_pad: (N, (H+2)*(W+2), Cin_p) bf16 in the zero-padded pitch layout."""
    N = x_pad.shape[0]
    cin_p, ch_p, cout_p = p["cin_p"], p["ch_p"], p["cout_p"]
    downsample = p["downsample"]
    if downsample:
        assert H % 2 == 0 and W % 2 == 0, "avg_pool2d(2) requires even H, W"
    Wp = W + 2
    L_in = (H + 2) * Wp
    lead = (-(Wp + 1)) % 8
    Ho, Wo = (H // 2, W // 2) if downsample else (H, W)
    L_out = (Ho + 2) * (Wo + 2)
    has_sc = p["learnable_sc"]

    args = [x_pad, p["w1"], p["b1"], p["w2"], p["b2"]]
    in_specs = [
        pl.BlockSpec((1, L_in, cin_p), lambda n: (n, 0, 0)),
        pl.BlockSpec((5, 2 * cin_p, ch_p), lambda n: (0, 0, 0)),
        pl.BlockSpec((1, ch_p), lambda n: (0, 0)),
        pl.BlockSpec((5, 2 * ch_p, cout_p), lambda n: (0, 0, 0)),
        pl.BlockSpec((1, cout_p), lambda n: (0, 0)),
    ]
    if has_sc:
        args += [p["wsc"], p["bsc"]]
        in_specs += [pl.BlockSpec((cin_p, cout_p), lambda n: (0, 0)),
                     pl.BlockSpec((1, cout_p), lambda n: (0, 0))]
    if emit_feat:
        assert w6 is not None and wy is not None
        args += [w6, wy]
        in_specs += [pl.BlockSpec((1, cout_p), lambda n: (0, 0)),
                     pl.BlockSpec((1, cout_p), lambda n: (n, 0))]
        # lane-broadcast logit; caller slices [:, :1]
        out_shape = jax.ShapeDtypeStruct((N, 128), jnp.float32)
        out_spec = pl.BlockSpec((1, 128), lambda n: (n, 0))
    else:
        out_shape = jax.ShapeDtypeStruct((N, L_out, cout_p), jnp.bfloat16)
        out_spec = pl.BlockSpec((1, L_out, cout_p), lambda n: (n, 0, 0))

    scratch = [pltpu.VMEM((L_in, cin_p), jnp.bfloat16),            # relu(x), bf16
               pltpu.VMEM((lead + L_in, ch_p), jnp.bfloat16)]      # padded relu(h1)
    if downsample:
        scratch.append(pltpu.VMEM((H * Wp, cout_p), jnp.float32))  # f32 pool staging

    # rough VMEM budget: scratch + resident (double-buffered) weights + I/O blocks.
    est = (L_in * cin_p * 2 + (lead + L_in) * ch_p * 2
           + (H * Wp * cout_p * 4 if downsample else 0)
           + 2 * L_in * cin_p * 2
           + 2 * (128 * 4 if emit_feat else L_out * cout_p * 2)
           + 2 * 2 * (10 * cin_p * ch_p + 10 * ch_p * cout_p + cin_p * cout_p)
           + 8 * 4 * cout_p)
    vmem_limit = int(min(max(4 * est, 32 * 1024 * 1024), 64 * 1024 * 1024))

    # TODO(synk): fold the batch into the GEMM M dimension on single-TC v5e/v6e and
    # add a row-band (halo) spatial grid axis for large images on v7x's 64 MiB VMEM.
    kernel = partial(_disc_block_kernel, H=H, W=W, has_sc=has_sc,
                     downsample=downsample, emit_feat=emit_feat)
    return pl.pallas_call(
        kernel,
        grid=(N,),
        in_specs=in_specs,
        out_specs=out_spec,
        out_shape=out_shape,
        scratch_shapes=scratch,
        compiler_params=pltpu.CompilerParams(
            dimension_semantics=("parallel",),        # batch sharded across TCs
            vmem_limit_bytes=vmem_limit),
    )(*args)


# ----------------------------- parameter setup (plain JAX glue) --------------

def _xavier(key, shape, fan_in, fan_out, gain=1.0):
    bound = gain * math.sqrt(6.0 / (fan_in + fan_out))
    return jax.random.uniform(key, shape, jnp.float32, -bound, bound)


def _sn_sigma(mat, key, eps=1e-12):
    # One power-iteration spectral-norm estimate (mirrors torch spectral_norm at
    # init), applied once at parameter setup time.
    u = jax.random.normal(key, (mat.shape[0],), jnp.float32)
    u = u / (jnp.linalg.norm(u) + eps)
    v = mat.T @ u
    v = v / (jnp.linalg.norm(v) + eps)
    u = mat @ v
    u = u / (jnp.linalg.norm(u) + eps)
    return u @ (mat @ v)


def _sn_conv(w, key):
    # w stored as (kh, kw, cin, cout); torch groups weights as (cout, cin*kh*kw).
    cout = w.shape[-1]
    mat = jnp.transpose(w, (3, 2, 0, 1)).reshape(cout, -1)
    return w / _sn_sigma(mat, key)


def _pack_conv3x3_pairs(w, cin_p, cout_p):
    # (3,3,cin,cout) -> (5, 2*cin_p, cout_p) bf16: taps (2i, 2i+1) stacked along the
    # contraction so each MXU push sees K = 2*cin_p; the 9th tap occupies the first
    # half of slab 4 (its zero second half is skipped in-kernel).
    # TODO(synk): im2col-lite packing (all 9 taps in one K=128 slab) when the real
    # input channel count is tiny (e.g. the first block's cin=1).
    _, _, cin, cout = w.shape
    w9 = jnp.pad(w.reshape(9, cin, cout),
                 ((0, 0), (0, cin_p - cin), (0, cout_p - cout)))
    w10 = jnp.concatenate([w9, jnp.zeros((1, cin_p, cout_p), w9.dtype)], axis=0)
    return w10.reshape(5, 2 * cin_p, cout_p).astype(jnp.bfloat16)


def _pack_mat(w, rp, cp):
    return jnp.pad(w, ((0, rp - w.shape[0]), (0, cp - w.shape[1]))).astype(jnp.bfloat16)


def _pack_bias(b, cp):
    return jnp.pad(b, (0, cp - b.shape[0])).reshape(1, cp).astype(jnp.float32)


def _make_block(key, cin, cout, hidden, downsample, downsample_first, sn=True):
    ks = jax.random.split(key, 6)
    g = math.sqrt(2.0)
    w1 = _xavier(ks[0], (3, 3, cin, hidden), cin * 9, hidden * 9, gain=g)
    w2 = _xavier(ks[1], (3, 3, hidden, cout), hidden * 9, cout * 9, gain=g)
    if sn:
        w1 = _sn_conv(w1, ks[2])
        w2 = _sn_conv(w2, ks[3])
    cin_p, ch_p, cout_p = (_round_up(c, 128) for c in (cin, hidden, cout))
    p = dict(
        w1=_pack_conv3x3_pairs(w1, cin_p, ch_p),
        b1=_pack_bias(jnp.zeros((hidden,), jnp.float32), ch_p),
        w2=_pack_conv3x3_pairs(w2, ch_p, cout_p),
        b2=_pack_bias(jnp.zeros((cout,), jnp.float32), cout_p),
        cin_p=cin_p, ch_p=ch_p, cout_p=cout_p,
        downsample=bool(downsample),
        # avg_pool2 and the 1x1 shortcut conv commute exactly (pool of the bias is
        # the bias), so downsample_first does not change the math; kept for record.
        downsample_first=bool(downsample_first) and bool(downsample),
        learnable_sc=(cin != cout) or bool(downsample),
    )
    if p["learnable_sc"]:
        wsc = _xavier(ks[4], (cin, cout), cin, cout, gain=1.0)
        if sn:
            wsc = wsc / _sn_sigma(wsc.T, ks[5])       # torch layout (cout, cin)
        p["wsc"] = _pack_mat(wsc, cin_p, cout_p)
        p["bsc"] = _pack_bias(jnp.zeros((cout,), jnp.float32), cout_p)
    return p


def build_params(key, ch=8, n_classes=5, mult_fact=2, ch_input=1,
                 downsamples=(1, 1, 1, 1)):
    mf = lambda p: mult_fact ** p
    cfgs = [
        dict(cin=ch_input, cout=ch, hidden=ch,
             downsample=downsamples[0], downsample_first=True),
        dict(cin=ch, cout=ch * mult_fact, hidden=ch,
             downsample=downsamples[1], downsample_first=False),
        dict(cin=ch * mult_fact, cout=ch * mult_fact, hidden=ch * mult_fact,
             downsample=downsamples[2], downsample_first=False),
        dict(cin=ch * mult_fact, cout=ch * mf(2), hidden=ch * mult_fact,
             downsample=downsamples[3], downsample_first=False),
    ]
    curr = mf(2)
    for i in range(len(downsamples) - 4):
        cfgs.append(dict(cin=ch * curr, cout=ch * mf(3), hidden=ch * curr,
                         downsample=downsamples[4 + i], downsample_first=False))
        curr = mf(3)
    n_out = ch * curr
    cp_out = _round_up(n_out, 128)

    keys = jax.random.split(key, len(cfgs) + 4)
    blocks = [_make_block(keys[i], **cfgs[i]) for i in range(len(cfgs))]

    w6 = _xavier(keys[-4], (n_out, 1), n_out, 1, gain=1.0)       # Linear(n_out,1), no bias
    w6 = w6 / _sn_sigma(w6.T, keys[-3])                          # SNLinear
    w6_row = jnp.pad(w6[:, 0], (0, cp_out - n_out)).reshape(1, cp_out).astype(jnp.float32)

    emb = _xavier(keys[-2], (n_classes, n_out), n_out, n_classes, gain=1.0)
    emb = emb / _sn_sigma(emb, keys[-1])                         # spectral_norm(l_y)
    emb_p = jnp.pad(emb, ((0, 0), (0, cp_out - n_out))).astype(jnp.float32)

    return dict(blocks=blocks, w6_row=w6_row, emb_p=emb_p,
                n_out=n_out, cp_out=cp_out)


# ----------------------------- model forward ---------------------------------

def forward(params, x_nchw, y=None):
    x = jnp.transpose(x_nchw, (0, 2, 3, 1)).astype(jnp.float32)  # NCHW -> NHWC
    N, H, W, cin = x.shape
    cin_p = params["blocks"][0]["cin_p"]
    # One-time entry glue: pad channels to the 128-lane layout, add the zero
    # spatial halo, flatten to the pitch layout all block kernels use, cast bf16.
    x = jnp.pad(x, ((0, 0), (1, 1), (1, 1), (0, cin_p - cin)))
    h = x.reshape(N, (H + 2) * (W + 2), cin_p).astype(jnp.bfloat16)

    cp_out = params["cp_out"]
    if y is not None:
        wy = params["emb_p"][y]                       # embedding gather (XLA glue)
    else:
        wy = jnp.zeros((N, cp_out), jnp.float32)      # projection term = 0

    nb = len(params["blocks"])
    out = None
    for i, p in enumerate(params["blocks"]):
        if i == nb - 1:
            out = disc_block(h, p, H, W, emit_feat=True,
                             w6=params["w6_row"], wy=wy)          # (N, 128) broadcast
        else:
            h = disc_block(h, p, H, W)
        if p["downsample"]:
            H, W = H // 2, W // 2
    return out[:, :1]                                 # (N, 1) logits


# ----------------------------- demo ------------------------------------------

if __name__ == "__main__":
    key = jax.random.PRNGKey(0)
    kp, kx, ky = jax.random.split(key, 3)

    # Small-but-faithful config: ch=8, mult_fact=2, ch_input=1, 4 blocks
    # (downsamples=[1,1,1,1]), n_classes=5  ->  n_out = ch * mult_fact**2 = 32.
    params = build_params(kp, ch=8, n_classes=5, mult_fact=2, ch_input=1,
                          downsamples=(1, 1, 1, 1))

    x = jax.random.normal(kx, (2, 1, 16, 16), jnp.float32)   # NCHW, like PyTorch
    y = jax.random.randint(ky, (2,), 0, 5)

    out = forward(params, x, y)
    out = jax.block_until_ready(out)
    assert out.shape == (2, 1) and out.dtype == jnp.float32
    assert bool(jnp.all(jnp.isfinite(out)))
    print("KERNEL_OK")
</pallas_src>

<mosaic_0001>
module attributes {stable_mosaic.version = 11 : i64} {
  func.func @_disc_block_kernel(%arg0: i32, %arg1: memref<1x324x128xbf16, #tpu.memory_space<vmem>>, %arg2: memref<5x256x128xbf16, #tpu.memory_space<vmem>>, %arg3: memref<1x128xf32, #tpu.memory_space<vmem>>, %arg4: memref<5x256x128xbf16, #tpu.memory_space<vmem>>, %arg5: memref<1x128xf32, #tpu.memory_space<vmem>>, %arg6: memref<128x128xbf16, #tpu.memory_space<vmem>>, %arg7: memref<1x128xf32, #tpu.memory_space<vmem>>, %arg8: memref<1x100x128xbf16, #tpu.memory_space<vmem>>, %arg9: memref<324x128xbf16, #tpu.memory_space<vmem>>, %arg10: memref<329x128xbf16, #tpu.memory_space<vmem>>, %arg11: memref<288x128xf32, #tpu.memory_space<vmem>>) attributes {dimension_semantics = [#tpu.dimension_semantics<parallel>], iteration_bounds = array<i64: 2>, scalar_prefetch = 0 : i64, scratch_operands = 3 : i64, tpu.core_type = #tpu.core_type<tc>, window_params = [{transform_indices = @transform_0, window_bounds = array<i64: 1, 324, 128>}, {pipeline_mode = #tpu.pipeline_mode<synchronous>, transform_indices = @transform_1, window_bounds = array<i64: 5, 256, 128>}, {pipeline_mode = #tpu.pipeline_mode<synchronous>, transform_indices = @transform_2, window_bounds = array<i64: 1, 128>}, {pipeline_mode = #tpu.pipeline_mode<synchronous>, transform_indices = @transform_3, window_bounds = array<i64: 5, 256, 128>}, {pipeline_mode = #tpu.pipeline_mode<synchronous>, transform_indices = @transform_4, window_bounds = array<i64: 1, 128>}, {pipeline_mode = #tpu.pipeline_mode<synchronous>, transform_indices = @transform_5, window_bounds = array<i64: 128, 128>}, {pipeline_mode = #tpu.pipeline_mode<synchronous>, transform_indices = @transform_6, window_bounds = array<i64: 1, 128>}, {transform_indices = @transform_7, window_bounds = array<i64: 1, 100, 128>}]} {
    %cst = arith.constant 0.000000e+00 : bf16
    %0 = vector.broadcast %cst : bf16 to vector<19x128xbf16>
    %c5 = arith.constant 5 : index
    %c0 = arith.constant 0 : index
    %1 = vector.load %arg10[%c5, %c0] : memref<329x128xbf16, #tpu.memory_space<vmem>>, vector<19x128xbf16>
    tpu.vector_store %arg10[%c5, %c0], %0 {strides = array<i32>} : memref<329x128xbf16, #tpu.memory_space<vmem>>, vector<19x128xbf16>,
    %c310 = arith.constant 310 : index
    %c0_0 = arith.constant 0 : index
    %2 = vector.load %arg10[%c310, %c0_0] : memref<329x128xbf16, #tpu.memory_space<vmem>>, vector<19x128xbf16>
    tpu.vector_store %arg10[%c310, %c0_0], %0 {strides = array<i32>} : memref<329x128xbf16, #tpu.memory_space<vmem>>, vector<19x128xbf16>,
    %c0_1 = arith.constant 0 : index
    %c0_2 = arith.constant 0 : index
    %c0_3 = arith.constant 0 : index
    %3 = vector.load %arg1[%c0_1, %c0_2, %c0_3] : memref<1x324x128xbf16, #tpu.memory_space<vmem>>, vector<1x324x128xbf16>
    %4 = vector.shape_cast %3 : vector<1x324x128xbf16> to vector<324x128xbf16>
    %cst_4 = arith.constant 0.000000e+00 : bf16
    %5 = vector.broadcast %cst_4 : bf16 to vector<324x128xbf16>
    %6 = arith.maximumf %4, %5 : vector<324x128xbf16>
    %c0_5 = arith.constant 0 : index
    %c0_6 = arith.constant 0 : index
    %7 = vector.load %arg9[%c0_5, %c0_6] : memref<324x128xbf16, #tpu.memory_space<vmem>>, vector<324x128xbf16>
    tpu.vector_store %arg9[%c0_5, %c0_6], %6 {strides = array<i32>} : memref<324x128xbf16, #tpu.memory_space<vmem>>, vector<324x128xbf16>,
    %c0_7 = arith.constant 0 : index
    %c0_8 = arith.constant 0 : index
    %8 = vector.load %arg9[%c0_7, %c0_8] : memref<324x128xbf16, #tpu.memory_space<vmem>>, vector<286x128xbf16>
    %c1 = arith.constant 1 : index
    %c0_9 = arith.constant 0 : index
    %9 = vector.load %arg9[%c1, %c0_9] : memref<324x128xbf16, #tpu.memory_space<vmem>>, vector<286x128xbf16>
    %10 = tpu.concatenate %8, %9 in 1 : vector<286x128xbf16>, vector<286x128xbf16> -> vector<286x256xbf16>
    %c0_10 = arith.constant 0 : index
    %c0_11 = arith.constant 0 : index
    %c0_12 = arith.constant 0 : index
    %11 = vector.load %arg2[%c0_10, %c0_11, %c0_12] : memref<5x256x128xbf16, #tpu.memory_space<vmem>>, vector<1x256x128xbf16>
    %12 = vector.shape_cast %11 : vector<1x256x128xbf16> to vector<256x128xbf16>
    %cst_13 = arith.constant dense<0.000000e+00> : vector<286x128xf32>
    %13 = tpu.matmul %10, %12, %cst_13 {dimension_numbers = #tpu.dot_dimension_numbers<[1], [0], [0], [1], [0, 0, 1, 1], [], []>} : vector<286x256xbf16>, vector<256x128xbf16>, vector<286x128xf32> -> vector<286x128xf32>
    %c2 = arith.constant 2 : index
    %c0_14 = arith.constant 0 : index
    %14 = vector.load %arg9[%c2, %c0_14] : memref<324x128xbf16, #tpu.memory_space<vmem>>, vector<286x128xbf16>
    %c18 = arith.constant 18 : index
    %c0_15 = arith.constant 0 : index
    %15 = vector.load %arg9[%c18, %c0_15] : memref<324x128xbf16, #tpu.memory_space<vmem>>, vector<286x128xbf16>
    %16 = tpu.concatenate %14, %15 in 1 : vector<286x128xbf16>, vector<286x128xbf16> -> vector<286x256xbf16>
    %c1_16 = arith.constant 1 : index
    %c0_17 = arith.constant 0 : index
    %c0_18 = arith.constant 0 : index
    %17 = vector.load %arg2[%c1_16, %c0_17, %c0_18] : memref<5x256x128xbf16, #tpu.memory_space<vmem>>, vector<1x256x128xbf16>
    %18 = vector.shape_cast %17 : vector<1x256x128xbf16> to vector<256x128xbf16>
    %cst_19 = arith.constant dense<0.000000e+00> : vector<286x128xf32>
    %19 = tpu.matmul %16, %18, %cst_19 {dimension_numbers = #tpu.dot_dimension_numbers<[1], [0], [0], [1], [0, 0, 1, 1], [], []>} : vector<286x256xbf16>, vector<256x128xbf16>, vector<286x128xf32> -> vector<286x128xf32>
    %20 = arith.addf %13, %19 : vector<286x128xf32>
    %c19 = arith.constant 19 : index
    %c0_20 = arith.constant 0 : index
    %21 = vector.load %arg9[%c19, %c0_20] : memref<324x128xbf16, #tpu.memory_space<vmem>>, vector<286x128xbf16>
    %c20 = arith.constant 20 : index
    %c0_21 = arith.constant 0 : index
    %22 = vector.load %arg9[%c20, %c0_21] : memref<324x128xbf16, #tpu.memory_space<vmem>>, vector<286x128xbf16>
    %23 = tpu.concatenate %21, %22 in 1 : vector<286x128xbf16>, vector<286x128xbf16> -> vector<286x256xbf16>
    %c2_22 = arith.constant 2 : index
    %c0_23 = arith.constant 0 : index
    %c0_24 = arith.constant 0 : index
    %24 = vector.load %arg2[%c2_22, %c0_23, %c0_24] : memref<5x256x128xbf16, #tpu.memory_space<vmem>>, vector<1x256x128xbf16>
    %25 = vector.shape_cast %24 : vector<1x256x128xbf16> to vector<256x128xbf16>
    %cst_25 = arith.constant dense<0.000000e+00> : vector<286x128xf32>
    %26 = tpu.matmul %23, %25, %cst_25 {dimension_numbers = #tpu.dot_dimension_numbers<[1], [0], [0], [1], [0, 0, 1, 1], [], []>} : vector<286x256xbf16>, vector<256x128xbf16>, vector<286x128xf32> -> vector<286x128xf32>
    %27 = arith.addf %20, %26 : vector<286x128xf32>
    %c36 = arith.constant 36 : index
    %c0_26 = arith.constant 0 : index
    %28 = vector.load %arg9[%c36, %c0_26] : memref<324x128xbf16, #tpu.memory_space<vmem>>, vector<286x128xbf16>
    %c37 = arith.constant 37 : index
    %c0_27 = arith.constant 0 : index
    %29 = vector.load %arg9[%c37, %c0_27] : memref<324x128xbf16, #tpu.memory_space<vmem>>, vector<286x128xbf16>
    %30 = tpu.concatenate %28, %29 in 1 : vector<286x128xbf16>, vector<286x128xbf16> -> vector<286x256xbf16>
    %c3 = arith.constant 3 : index
    %c0_28 = arith.constant 0 : index
    %c0_29 = arith.constant 0 : index
    %31 = vector.load %arg2[%c3, %c0_28, %c0_29] : memref<5x256x128xbf16, #tpu.memory_space<vmem>>, vector<1x256x128xbf16>
    %32 = vector.shape_cast %31 : vector<1x256x128xbf16> to vector<256x128xbf16>
    %cst_30 = arith.constant dense<0.000000e+00> : vector<286x128xf32>
    %33 = tpu.matmul %30, %32, %cst_30 {dimension_numbers = #tpu.dot_dimension_numbers<[1], [0], [0], [1], [0, 0, 1, 1], [], []>} : vector<286x256xbf16>, vector<256x128xbf16>, vector<286x128xf32> -> vector<286x128xf32>
    %34 = arith.addf %27, %33 : vector<286x128xf32>
    %c38 = arith.constant 38 : index
    %c0_31 = arith.constant 0 : index
    %35 = vector.load %arg9[%c38, %c0_31] : memref<324x128xbf16, #tpu.memory_space<vmem>>, vector<286x128xbf16>
    %c4 = arith.constant 4 : index
    %c0_32 = arith.constant 0 : index
    %c0_33 = arith.constant 0 : index
    %36 = vector.load %arg2[%c4, %c0_32, %c0_33] : memref<5x256x128xbf16, #tpu.memory_space<vmem>>, vector<1x128x128xbf16>
    %37 = vector.shape_cast %36 : vector<1x128x128xbf16> to vector<128x128xbf16>
    %cst_34 = arith.constant dense<0.000000e+00> : vector<286x128xf32>
    %38 = tpu.matmul %35, %37, %cst_34 {dimension_numbers = #tpu.dot_dimension_numbers<[1], [0], [0], [1], [0, 0, 1, 1], [], []>} : vector<286x128xbf16>, vector<128x128xbf16>, vector<286x128xf32> -> vector<286x128xf32>
    %39 = arith.addf %34, %38 : vector<286x128xf32>
    %c0_35 = arith.constant 0 : index
    %c0_36 = arith.constant 0 : index
    %40 = vector.load %arg3[%c0_35, %c0_36] : memref<1x128xf32, #tpu.memory_space<vmem>>, vector<1x128xf32>
    %41 = vector.broadcast %40 : vector<1x128xf32> to vector<286x128xf32>
    %42 = arith.addf %39, %41 : vector<286x128xf32>
    %43 = tpu.iota {dimensions = array<i32: 0>} : vector<286x1xi32>
    %c18_i32 = arith.constant 18 : i32
    %c0_i32 = arith.constant 0 : i32
    %44 = arith.cmpi eq, %c18_i32, %c0_i32 : i32
    %c1_i32 = arith.constant 1 : i32
    %45 = arith.select %44, %c1_i32, %c18_i32 : i32
    %46 = vector.broadcast %45 : i32 to vector<286x1xi32>
    %47 = arith.remsi %43, %46 : vector<286x1xi32>
    %c0_i32_37 = arith.constant 0 : i32
    %48 = vector.broadcast %c0_i32_37 : i32 to vector<286x1xi32>
    %49 = arith.cmpi ne, %47, %48 : vector<286x1xi32>
    %c0_i32_38 = arith.constant 0 : i32
    %50 = vector.broadcast %c0_i32_38 : i32 to vector<286x1xi32>
    %51 = arith.cmpi slt, %47, %50 : vector<286x1xi32>
    %c0_i32_39 = arith.constant 0 : i32
    %52 = arith.cmpi slt, %45, %c0_i32_39 : i32
    %53 = vector.broadcast %52 : i1 to vector<286x1xi1>
    %54 = vector.broadcast %53 : vector<286x1xi1> to vector<286x1xi1>
    %55 = arith.xori %51, %54 : vector<286x1xi1>
    %56 = arith.andi %55, %49 : vector<286x1xi1>
    %57 = vector.broadcast %45 : i32 to vector<286x1xi32>
    %58 = arith.addi %47, %57 : vector<286x1xi32>
    %59 = arith.select %56, %58, %47 : vector<286x1xi1>, vector<286x1xi32>
    %c16_i32 = arith.constant 16 : i32
    %60 = vector.broadcast %c16_i32 : i32 to vector<286x1xi32>
    %61 = arith.cmpi slt, %59, %60 : vector<286x1xi32>
    %cst_40 = arith.constant 0.000000e+00 : f32
    %62 = vector.broadcast %cst_40 : f32 to vector<286x128xf32>
    %63 = arith.maximumf %42, %62 : vector<286x128xf32>
    %cst_41 = arith.constant 0.000000e+00 : f32
    %64 = vector.shape_cast %61 : vector<286x1xi1> to vector<286x1xi1>
    %65 = vector.broadcast %64 : vector<286x1xi1> to vector<286x128xi1>
    %66 = vector.broadcast %cst_41 : f32 to vector<286x128xf32>
    %67 = arith.select %65, %63, %66 : vector<286x128xi1>, vector<286x128xf32>
    %68 = arith.truncf %67 : vector<286x128xf32> to vector<286x128xbf16>
    %c24 = arith.constant 24 : index
    %c0_42 = arith.constant 0 : index
    %69 = vector.load %arg10[%c24, %c0_42] : memref<329x128xbf16, #tpu.memory_space<vmem>>, vector<286x128xbf16>
    tpu.vector_store %arg10[%c24, %c0_42], %68 {strides = array<i32>} : memref<329x128xbf16, #tpu.memory_space<vmem>>, vector<286x128xbf16>,
    %c5_43 = arith.constant 5 : index
    %c0_44 = arith.constant 0 : index
    %70 = vector.load %arg10[%c5_43, %c0_44] : memref<329x128xbf16, #tpu.memory_space<vmem>>, vector<286x128xbf16>
    %c6 = arith.constant 6 : index
    %c0_45 = arith.constant 0 : index
    %71 = vector.load %arg10[%c6, %c0_45] : memref<329x128xbf16, #tpu.memory_space<vmem>>, vector<286x128xbf16>
    %72 = tpu.concatenate %70, %71 in 1 : vector<286x128xbf16>, vector<286x128xbf16> -> vector<286x256xbf16>
    %c0_46 = arith.constant 0 : index
    %c0_47 = arith.constant 0 : index
    %c0_48 = arith.constant 0 : index
    %73 = vector.load %arg4[%c0_46, %c0_47, %c0_48] : memref<5x256x128xbf16, #tpu.memory_space<vmem>>, vector<1x256x128xbf16>
    %74 = vector.shape_cast %73 : vector<1x256x128xbf16> to vector<256x128xbf16>
    %cst_49 = arith.constant dense<0.000000e+00> : vector<286x128xf32>
    %75 = tpu.matmul %72, %74, %cst_49 {dimension_numbers = #tpu.dot_dimension_numbers<[1], [0], [0], [1], [0, 0, 1, 1], [], []>} : vector<286x256xbf16>, vector<256x128xbf16>, vector<286x128xf32> -> vector<286x128xf32>
    %c7 = arith.constant 7 : index
    %c0_50 = arith.constant 0 : index
    %76 = vector.load %arg10[%c7, %c0_50] : memref<329x128xbf16, #tpu.memory_space<vmem>>, vector<286x128xbf16>
    %c23 = arith.constant 23 : index
    %c0_51 = arith.constant 0 : index
    %77 = vector.load %arg10[%c23, %c0_51] : memref<329x128xbf16, #tpu.memory_space<vmem>>, vector<286x128xbf16>
    %78 = tpu.concatenate %76, %77 in 1 : vector<286x128xbf16>, vector<286x128xbf16> -> vector<286x256xbf16>
    %c1_52 = arith.constant 1 : index
    %c0_53 = arith.constant 0 : index
    %c0_54 = arith.constant 0 : index
    %79 = vector.load %arg4[%c1_52, %c0_53, %c0_54] : memref<5x256x128xbf16, #tpu.memory_space<vmem>>, vector<1x256x128xbf16>
    %80 = vector.shape_cast %79 : vector<1x256x128xbf16> to vector<256x128xbf16>
    %cst_55 = arith.constant dense<0.000000e+00> : vector<286x128xf32>
    %81 = tpu.matmul %78, %80, %cst_55 {dimension_numbers = #tpu.dot_dimension_numbers<[1], [0], [0], [1], [0, 0, 1, 1], [], []>} : vector<286x256xbf16>, vector<256x128xbf16>, vector<286x128xf32> -> vector<286x128xf32>
    %82 = arith.addf %75, %81 : vector<286x128xf32>
    %c24_56 = arith.constant 24 : index
    %c0_57 = arith.constant 0 : index
    %83 = vector.load %arg10[%c24_56, %c0_57] : memref<329x128xbf16, #tpu.memory_space<vmem>>, vector<286x128xbf16>
    %c25 = arith.constant 25 : index
    %c0_58 = arith.constant 0 : index
    %84 = vector.load %arg10[%c25, %c0_58] : memref<329x128xbf16, #tpu.memory_space<vmem>>, vector<286x128xbf16>
    %85 = tpu.concatenate %83, %84 in 1 : vector<286x128xbf16>, vector<286x128xbf16> -> vector<286x256xbf16>
    %c2_59 = arith.constant 2 : index
    %c0_60 = arith.constant 0 : index
    %c0_61 = arith.constant 0 : index
    %86 = vector.load %arg4[%c2_59, %c0_60, %c0_61] : memref<5x256x128xbf16, #tpu.memory_space<vmem>>, vector<1x256x128xbf16>
    %87 = vector.shape_cast %86 : vector<1x256x128xbf16> to vector<256x128xbf16>
    %cst_62 = arith.constant dense<0.000000e+00> : vector<286x128xf32>
    %88 = tpu.matmul %85, %87, %cst_62 {dimension_numbers = #tpu.dot_dimension_numbers<[1], [0], [0], [1], [0, 0, 1, 1], [], []>} : vector<286x256xbf16>, vector<256x128xbf16>, vector<286x128xf32> -> vector<286x128xf32>
    %89 = arith.addf %82, %88 : vector<286x128xf32>
    %c41 = arith.constant 41 : index
    %c0_63 = arith.constant 0 : index
    %90 = vector.load %arg10[%c41, %c0_63] : memref<329x128xbf16, #tpu.memory_space<vmem>>, vector<286x128xbf16>
    %c42 = arith.constant 42 : index
    %c0_64 = arith.constant 0 : index
    %91 = vector.load %arg10[%c42, %c0_64] : memref<329x128xbf16, #tpu.memory_space<vmem>>, vector<286x128xbf16>
    %92 = tpu.concatenate %90, %91 in 1 : vector<286x128xbf16>, vector<286x128xbf16> -> vector<286x256xbf16>
    %c3_65 = arith.constant 3 : index
    %c0_66 = arith.constant 0 : index
    %c0_67 = arith.constant 0 : index
    %93 = vector.load %arg4[%c3_65, %c0_66, %c0_67] : memref<5x256x128xbf16, #tpu.memory_space<vmem>>, vector<1x256x128xbf16>
    %94 = vector.shape_cast %93 : vector<1x256x128xbf16> to vector<256x128xbf16>
    %cst_68 = arith.constant dense<0.000000e+00> : vector<286x128xf32>
    %95 = tpu.matmul %92, %94, %cst_68 {dimension_numbers = #tpu.dot_dimension_numbers<[1], [0], [0], [1], [0, 0, 1, 1], [], []>} : vector<286x256xbf16>, vector<256x128xbf16>, vector<286x128xf32> -> vector<286x128xf32>
    %96 = arith.addf %89, %95 : vector<286x128xf32>
    %c43 = arith.constant 43 : index
    %c0_69 = arith.constant 0 : index
    %97 = vector.load %arg10[%c43, %c0_69] : memref<329x128xbf16, #tpu.memory_space<vmem>>, vector<286x128xbf16>
    %c4_70 = arith.constant 4 : index
    %c0_71 = arith.constant 0 : index
    %c0_72 = arith.constant 0 : index
    %98 = vector.load %arg4[%c4_70, %c0_71, %c0_72] : memref<5x256x128xbf16, #tpu.memory_space<vmem>>, vector<1x128x128xbf16>
    %99 = vector.shape_cast %98 : vector<1x128x128xbf16> to vector<128x128xbf16>
    %cst_73 = arith.constant dense<0.000000e+00> : vector<286x128xf32>
    %100 = tpu.matmul %97, %99, %cst_73 {dimension_numbers = #tpu.dot_dimension_numbers<[1], [0], [0], [1], [0, 0, 1, 1], [], []>} : vector<286x128xbf16>, vector<128x128xbf16>, vector<286x128xf32> -> vector<286x128xf32>
    %101 = arith.addf %96, %100 : vector<286x128xf32>
    %c0_74 = arith.constant 0 : index
    %c0_75 = arith.constant 0 : index
    %102 = vector.load %arg5[%c0_74, %c0_75] : memref<1x128xf32, #tpu.memory_space<vmem>>, vector<1x128xf32>
    %103 = vector.broadcast %102 : vector<1x128xf32> to vector<286x128xf32>
    %104 = arith.addf %101, %103 : vector<286x128xf32>
    %c0_76 = arith.constant 0 : index
    %c19_77 = arith.constant 19 : index
    %c0_78 = arith.constant 0 : index
    %105 = vector.load %arg1[%c0_76, %c19_77, %c0_78] : memref<1x324x128xbf16, #tpu.memory_space<vmem>>, vector<1x286x128xbf16>
    %106 = vector.shape_cast %105 : vector<1x286x128xbf16> to vector<286x128xbf16>
    %c0_79 = arith.constant 0 : index
    %c0_80 = arith.constant 0 : index
    %107 = vector.load %arg6[%c0_79, %c0_80] : memref<128x128xbf16, #tpu.memory_space<vmem>>, vector<128x128xbf16>
    %cst_81 = arith.constant dense<0.000000e+00> : vector<286x128xf32>
    %108 = tpu.matmul %106, %107, %cst_81 {dimension_numbers = #tpu.dot_dimension_numbers<[1], [0], [0], [1], [0, 0, 1, 1], [], []>} : vector<286x128xbf16>, vector<128x128xbf16>, vector<286x128xf32> -> vector<286x128xf32>
    %c0_82 = arith.constant 0 : index
    %c0_83 = arith.constant 0 : index
    %109 = vector.load %arg7[%c0_82, %c0_83] : memref<1x128xf32, #tpu.memory_space<vmem>>, vector<1x128xf32>
    %110 = vector.broadcast %109 : vector<1x128xf32> to vector<286x128xf32>
    %111 = arith.addf %108, %110 : vector<286x128xf32>
    %112 = arith.addf %104, %111 : vector<286x128xf32>
    %c0_84 = arith.constant 0 : index
    %c0_85 = arith.constant 0 : index
    %113 = vector.load %arg11[%c0_84, %c0_85] : memref<288x128xf32, #tpu.memory_space<vmem>>, vector<286x128xf32>
    tpu.vector_store %arg11[%c0_84, %c0_85], %112 {strides = array<i32>} : memref<288x128xf32, #tpu.memory_space<vmem>>, vector<286x128xf32>,
    %cst_86 = arith.constant 0.000000e+00 : bf16
    %114 = vector.broadcast %cst_86 : bf16 to vector<10x128xbf16>
    %c0_87 = arith.constant 0 : index
    %c0_88 = arith.constant 0 : index
    %c0_89 = arith.constant 0 : index
    %115 = vector.load %arg8[%c0_87, %c0_88, %c0_89] : memref<1x100x128xbf16, #tpu.memory_space<vmem>>, vector<1x10x128xbf16>
    %116 = vector.shape_cast %115 : vector<1x10x128xbf16> to vector<10x128xbf16>
    %117 = vector.shape_cast %114 : vector<10x128xbf16> to vector<1x10x128xbf16>
    tpu.vector_store %arg8[%c0_87, %c0_88, %c0_89], %117 {strides = array<i32>} : memref<1x100x128xbf16, #tpu.memory_space<vmem>>, vector<1x10x128xbf16>,
    %c0_90 = arith.constant 0 : index
    %c90 = arith.constant 90 : index
    %c0_91 = arith.constant 0 : index
    %118 = vector.load %arg8[%c0_90, %c90, %c0_91] : memref<1x100x128xbf16, #tpu.memory_space<vmem>>, vector<1x10x128xbf16>
    %119 = vector.shape_cast %118 : vector<1x10x128xbf16> to vector<10x128xbf16>
    %120 = vector.shape_cast %114 : vector<10x128xbf16> to vector<1x10x128xbf16>
    tpu.vector_store %arg8[%c0_90, %c90, %c0_91], %120 {strides = array<i32>} : memref<1x100x128xbf16, #tpu.memory_space<vmem>>, vector<1x10x128xbf16>,
    %cst_92 = arith.constant 0.000000e+00 : f32
    %121 = vector.broadcast %cst_92 : f32 to vector<1x128xf32>
    %c0_93 = arith.constant 0 : index
    %c0_94 = arith.constant 0 : index
    %122 = tpu.strided_load %arg11[%c0_93, %c0_94] {strides = array<i32: 2, 1>} : memref<288x128xf32, #tpu.memory_space<vmem>>, vector<8x128xf32>
    %c1_95 = arith.constant 1 : index
    %c0_96 = arith.constant 0 : index
    %123 = tpu.strided_load %arg11[%c1_95, %c0_96] {strides = array<i32: 2, 1>} : memref<288x128xf32, #tpu.memory_space<vmem>>, vector<8x128xf32>
    %124 = arith.addf %122, %123 : vector<8x128xf32>
    %c18_97 = arith.constant 18 : index
    %c0_98 = arith.constant 0 : index
    %125 = tpu.strided_load %arg11[%c18_97, %c0_98] {strides = array<i32: 2, 1>} : memref<288x128xf32, #tpu.memory_space<vmem>>, vector<8x128xf32>
    %126 = arith.addf %124, %125 : vector<8x128xf32>
    %c19_99 = arith.constant 19 : index
    %c0_100 = arith.constant 0 : index
    %127 = tpu.strided_load %arg11[%c19_99, %c0_100] {strides = array<i32: 2, 1>} : memref<288x128xf32, #tpu.memory_space<vmem>>, vector<8x128xf32>
    %128 = arith.addf %126, %127 : vector<8x128xf32>
    %cst_101 = arith.constant 2.500000e-01 : f32
    %129 = vector.broadcast %cst_101 : f32 to vector<8x128xf32>
    %130 = arith.mulf %129, %128 : vector<8x128xf32>
    %131 = tpu.concatenate %121, %130, %121 in 0 : vector<1x128xf32>, vector<8x128xf32>, vector<1x128xf32> -> vector<10x128xf32>
    %132 = arith.truncf %131 : vector<10x128xf32> to vector<10x128xbf16>
    %c0_102 = arith.constant 0 : index
    %c10 = arith.constant 10 : index
    %c0_103 = arith.constant 0 : index
    %133 = vector.load %arg8[%c0_102, %c10, %c0_103] : memref<1x100x128xbf16, #tpu.memory_space<vmem>>, vector<1x10x128xbf16>
    %134 = vector.shape_cast %133 : vector<1x10x128xbf16> to vector<10x128xbf16>
    %135 = vector.shape_cast %132 : vector<10x128xbf16> to vector<1x10x128xbf16>
    tpu.vector_store %arg8[%c0_102, %c10, %c0_103], %135 {strides = array<i32>} : memref<1x100x128xbf16, #tpu.memory_space<vmem>>, vector<1x10x128xbf16>,
    %c36_104 = arith.constant 36 : index
    %c0_105 = arith.constant 0 : index
    %136 = tpu.strided_load %arg11[%c36_104, %c0_105] {strides = array<i32: 2, 1>} : memref<288x128xf32, #tpu.memory_space<vmem>>, vector<8x128xf32>
    %c37_106 = arith.constant 37 : index
    %c0_107 = arith.constant 0 : index
    %137 = tpu.strided_load %arg11[%c37_106, %c0_107] {strides = array<i32: 2, 1>} : memref<288x128xf32, #tpu.memory_space<vmem>>, vector<8x128xf32>
    %138 = arith.addf %136, %137 : vector<8x128xf32>
    %c54 = arith.constant 54 : index
    %c0_108 = arith.constant 0 : index
    %139 = tpu.strided_load %arg11[%c54, %c0_108] {strides = array<i32: 2, 1>} : memref<288x128xf32, #tpu.memory_space<vmem>>, vector<8x128xf32>
    %140 = arith.addf %138, %139 : vector<8x128xf32>
    %c55 = arith.constant 55 : index
    %c0_109 = arith.constant 0 : index
    %141 = tpu.strided_load %arg11[%c55, %c0_109] {strides = array<i32: 2, 1>} : memref<288x128xf32, #tpu.memory_space<vmem>>, vector<8x128xf32>
    %142 = arith.addf %140, %141 : vector<8x128xf32>
    %cst_110 = arith.constant 2.500000e-01 : f32
    %143 = vector.broadcast %cst_110 : f32 to vector<8x128xf32>
    %144 = arith.mulf %143, %142 : vector<8x128xf32>
    %145 = tpu.concatenate %121, %144, %121 in 0 : vector<1x128xf32>, vector<8x128xf32>, vector<1x128xf32> -> vector<10x128xf32>
    %146 = arith.truncf %145 : vector<10x128xf32> to vector<10x128xbf16>
    %c0_111 = arith.constant 0 : index
    %c20_112 = arith.constant 20 : index
    %c0_113 = arith.constant 0 : index
    %147 = vector.load %arg8[%c0_111, %c20_112, %c0_113] : memref<1x100x128xbf16, #tpu.memory_space<vmem>>, vector<1x10x128xbf16>
    %148 = vector.shape_cast %147 : vector<1x10x128xbf16> to vector<10x128xbf16>
    %149 = vector.shape_cast %146 : vector<10x128xbf16> to vector<1x10x128xbf16>
    tpu.vector_store %arg8[%c0_111, %c20_112, %c0_113], %149 {strides = array<i32>} : memref<1x100x128xbf16, #tpu.memory_space<vmem>>, vector<1x10x128xbf16>,
    %c72 = arith.constant 72 : index
    %c0_114 = arith.constant 0 : index
    %150 = tpu.strided_load %arg11[%c72, %c0_114] {strides = array<i32: 2, 1>} : memref<288x128xf32, #tpu.memory_space<vmem>>, vector<8x128xf32>
    %c73 = arith.constant 73 : index
    %c0_115 = arith.constant 0 : index
    %151 = tpu.strided_load %arg11[%c73, %c0_115] {strides = array<i32: 2, 1>} : memref<288x128xf32, #tpu.memory_space<vmem>>, vector<8x128xf32>
    %152 = arith.addf %150, %151 : vector<8x128xf32>
    %c90_116 = arith.constant 90 : index
    %c0_117 = arith.constant 0 : index
    %153 = tpu.strided_load %arg11[%c90_116, %c0_117] {strides = array<i32: 2, 1>} : memref<288x128xf32, #tpu.memory_space<vmem>>, vector<8x128xf32>
    %154 = arith.addf %152, %153 : vector<8x128xf32>
    %c91 = arith.constant 91 : index
    %c0_118 = arith.constant 0 : index
    %155 = tpu.strided_load %arg11[%c91, %c0_118] {strides = array<i32: 2, 1>} : memref<288x128xf32, #tpu.memory_space<vmem>>, vector<8x128xf32>
    %156 = arith.addf %154, %155 : vector<8x128xf32>
    %cst_119 = arith.constant 2.500000e-01 : f32
    %157 = vector.broadcast %cst_119 : f32 to vector<8x128xf32>
    %158 = arith.mulf %157, %156 : vector<8x128xf32>
    %159 = tpu.concatenate %121, %158, %121 in 0 : vector<1x128xf32>, vector<8x128xf32>, vector<1x128xf32> -> vector<10x128xf32>
    %160 = arith.truncf %159 : vector<10x128xf32> to vector<10x128xbf16>
    %c0_120 = arith.constant 0 : index
    %c30 = arith.constant 30 : index
    %c0_121 = arith.constant 0 : index
    %161 = vector.load %arg8[%c0_120, %c30, %c0_121] : memref<1x100x128xbf16, #tpu.memory_space<vmem>>, vector<1x10x128xbf16>
    %162 = vector.shape_cast %161 : vector<1x10x128xbf16> to vector<10x128xbf16>
    %163 = vector.shape_cast %160 : vector<10x128xbf16> to vector<1x10x128xbf16>
    tpu.vector_store %arg8[%c0_120, %c30, %c0_121], %163 {strides = array<i32>} : memref<1x100x128xbf16, #tpu.memory_space<vmem>>, vector<1x10x128xbf16>,
    %c108 = arith.constant 108 : index
    %c0_122 = arith.constant 0 : index
    %164 = tpu.strided_load %arg11[%c108, %c0_122] {strides = array<i32: 2, 1>} : memref<288x128xf32, #tpu.memory_space<vmem>>, vector<8x128xf32>
    %c109 = arith.constant 109 : index
    %c0_123 = arith.constant 0 : index
    %165 = tpu.strided_load %arg11[%c109, %c0_123] {strides = array<i32: 2, 1>} : memref<288x128xf32, #tpu.memory_space<vmem>>, vector<8x128xf32>
    %166 = arith.addf %164, %165 : vector<8x128xf32>
    %c126 = arith.constant 126 : index
    %c0_124 = arith.constant 0 : index
    %167 = tpu.strided_load %arg11[%c126, %c0_124] {strides = array<i32: 2, 1>} : memref<288x128xf32, #tpu.memory_space<vmem>>, vector<8x128xf32>
    %168 = arith.addf %166, %167 : vector<8x128xf32>
    %c127 = arith.constant 127 : index
    %c0_125 = arith.constant 0 : index
    %169 = tpu.strided_load %arg11[%c127, %c0_125] {strides = array<i32: 2, 1>} : memref<288x128xf32, #tpu.memory_space<vmem>>, vector<8x128xf32>
    %170 = arith.addf %168, %169 : vector<8x128xf32>
    %cst_126 = arith.constant 2.500000e-01 : f32
    %171 = vector.broadcast %cst_126 : f32 to vector<8x128xf32>
    %172 = arith.mulf %171, %170 : vector<8x128xf32>
    %173 = tpu.concatenate %121, %172, %121 in 0 : vector<1x128xf32>, vector<8x128xf32>, vector<1x128xf32> -> vector<10x128xf32>
    %174 = arith.truncf %173 : vector<10x128xf32> to vector<10x128xbf16>
    %c0_127 = arith.constant 0 : index
    %c40 = arith.constant 40 : index
    %c0_128 = arith.constant 0 : index
    %175 = vector.load %arg8[%c0_127, %c40, %c0_128] : memref<1x100x128xbf16, #tpu.memory_space<vmem>>, vector<1x10x128xbf16>
    %176 = vector.shape_cast %175 : vector<1x10x128xbf16> to vector<10x128xbf16>
    %177 = vector.shape_cast %174 : vector<10x128xbf16> to vector<1x10x128xbf16>
    tpu.vector_store %arg8[%c0_127, %c40, %c0_128], %177 {strides = array<i32>} : memref<1x100x128xbf16, #tpu.memory_space<vmem>>, vector<1x10x128xbf16>,
    %c144 = arith.constant 144 : index
    %c0_129 = arith.constant 0 : index
    %178 = tpu.strided_load %arg11[%c144, %c0_129] {strides = array<i32: 2, 1>} : memref<288x128xf32, #tpu.memory_space<vmem>>, vector<8x128xf32>
    %c145 = arith.constant 145 : index
    %c0_130 = arith.constant 0 : index
    %179 = tpu.strided_load %arg11[%c145, %c0_130] {strides = array<i32: 2, 1>} : memref<288x128xf32, #tpu.memory_space<vmem>>, vector<8x128xf32>
    %180 = arith.addf %178, %179 : vector<8x128xf32>
    %c162 = arith.constant 162 : index
    %c0_131 = arith.constant 0 : index
    %181 = tpu.strided_load %arg11[%c162, %c0_131] {strides = array<i32: 2, 1>} : memref<288x128xf32, #tpu.memory_space<vmem>>, vector<8x128xf32>
    %182 = arith.addf %180, %181 : vector<8x128xf32>
    %c163 = arith.constant 163 : index
    %c0_132 = arith.constant 0 : index
    %183 = tpu.strided_load %arg11[%c163, %c0_132] {strides = array<i32: 2, 1>} : memref<288x128xf32, #tpu.memory_space<vmem>>, vector<8x128xf32>
    %184 = arith.addf %182, %183 : vector<8x128xf32>
    %cst_133 = arith.constant 2.500000e-01 : f32
    %185 = vector.broadcast %cst_133 : f32 to vector<8x128xf32>
    %186 = arith.mulf %185, %184 : vector<8x128xf32>
    %187 = tpu.concatenate %121, %186, %121 in 0 : vector<1x128xf32>, vector<8x128xf32>, vector<1x128xf32> -> vector<10x128xf32>
    %188 = arith.truncf %187 : vector<10x128xf32> to vector<10x128xbf16>
    %c0_134 = arith.constant 0 : index
    %c50 = arith.constant 50 : index
    %c0_135 = arith.constant 0 : index
    %189 = vector.load %arg8[%c0_134, %c50, %c0_135] : memref<1x100x128xbf16, #tpu.memory_space<vmem>>, vector<1x10x128xbf16>
    %190 = vector.shape_cast %189 : vector<1x10x128xbf16> to vector<10x128xbf16>
    %191 = vector.shape_cast %188 : vector<10x128xbf16> to vector<1x10x128xbf16>
    tpu.vector_store %arg8[%c0_134, %c50, %c0_135], %191 {strides = array<i32>} : memref<1x100x128xbf16, #tpu.memory_space<vmem>>, vector<1x10x128xbf16>,
    %c180 = arith.constant 180 : index
    %c0_136 = arith.constant 0 : index
    %192 = tpu.strided_load %arg11[%c180, %c0_136] {strides = array<i32: 2, 1>} : memref<288x128xf32, #tpu.memory_space<vmem>>, vector<8x128xf32>
    %c181 = arith.constant 181 : index
    %c0_137 = arith.constant 0 : index
    %193 = tpu.strided_load %arg11[%c181, %c0_137] {strides = array<i32: 2, 1>} : memref<288x128xf32, #tpu.memory_space<vmem>>, vector<8x128xf32>
    %194 = arith.addf %192, %193 : vector<8x128xf32>
    %c198 = arith.constant 198 : index
    %c0_138 = arith.constant 0 : index
    %195 = tpu.strided_load %arg11[%c198, %c0_138] {strides = array<i32: 2, 1>} : memref<288x128xf32, #tpu.memory_space<vmem>>, vector<8x128xf32>
    %196 = arith.addf %194, %195 : vector<8x128xf32>
    %c199 = arith.constant 199 : index
    %c0_139 = arith.constant 0 : index
    %197 = tpu.strided_load %arg11[%c199, %c0_139] {strides = array<i32: 2, 1>} : memref<288x128xf32, #tpu.memory_space<vmem>>, vector<8x128xf32>
    %198 = arith.addf %196, %197 : vector<8x128xf32>
    %cst_140 = arith.constant 2.500000e-01 : f32
    %199 = vector.broadcast %cst_140 : f32 to vector<8x128xf32>
    %200 = arith.mulf %199, %198 : vector<8x128xf32>
    %201 = tpu.concatenate %121, %200, %121 in 0 : vector<1x128xf32>, vector<8x128xf32>, vector<1x128xf32> -> vector<10x128xf32>
    %202 = arith.truncf %201 : vector<10x128xf32> to vector<10x128xbf16>
    %c0_141 = arith.constant 0 : index
    %c60 = arith.constant 60 : index
    %c0_142 = arith.constant 0 : index
    %203 = vector.load %arg8[%c0_141, %c60, %c0_142] : memref<1x100x128xbf16, #tpu.memory_space<vmem>>, vector<1x10x128xbf16>
    %204 = vector.shape_cast %203 : vector<1x10x128xbf16> to vector<10x128xbf16>
    %205 = vector.shape_cast %202 : vector<10x128xbf16> to vector<1x10x128xbf16>
    tpu.vector_store %arg8[%c0_141, %c60, %c0_142], %205 {strides = array<i32>} : memref<1x100x128xbf16, #tpu.memory_space<vmem>>, vector<1x10x128xbf16>,
    %c216 = arith.constant 216 : index
    %c0_143 = arith.constant 0 : index
    %206 = tpu.strided_load %arg11[%c216, %c0_143] {strides = array<i32: 2, 1>} : memref<288x128xf32, #tpu.memory_space<vmem>>, vector<8x128xf32>
    %c217 = arith.constant 217 : index
    %c0_144 = arith.constant 0 : index
    %207 = tpu.strided_load %arg11[%c217, %c0_144] {strides = array<i32: 2, 1>} : memref<288x128xf32, #tpu.memory_space<vmem>>, vector<8x128xf32>
    %208 = arith.addf %206, %207 : vector<8x128xf32>
    %c234 = arith.constant 234 : index
    %c0_145 = arith.constant 0 : index
    %209 = tpu.strided_load %arg11[%c234, %c0_145] {strides = array<i32: 2, 1>} : memref<288x128xf32, #tpu.memory_space<vmem>>, vector<8x128xf32>
    %210 = arith.addf %208, %209 : vector<8x128xf32>
    %c235 = arith.constant 235 : index
    %c0_146 = arith.constant 0 : index
    %211 = tpu.strided_load %arg11[%c235, %c0_146] {strides = array<i32: 2, 1>} : memref<288x128xf32, #tpu.memory_space<vmem>>, vector<8x128xf32>
    %212 = arith.addf %210, %211 : vector<8x128xf32>
    %cst_147 = arith.constant 2.500000e-01 : f32
    %213 = vector.broadcast %cst_147 : f32 to vector<8x128xf32>
    %214 = arith.mulf %213, %212 : vector<8x128xf32>
    %215 = tpu.concatenate %121, %214, %121 in 0 : vector<1x128xf32>, vector<8x128xf32>, vector<1x128xf32> -> vector<10x128xf32>
    %216 = arith.truncf %215 : vector<10x128xf32> to vector<10x128xbf16>
    %c0_148 = arith.constant 0 : index
    %c70 = arith.constant 70 : index
    %c0_149 = arith.constant 0 : index
    %217 = vector.load %arg8[%c0_148, %c70, %c0_149] : memref<1x100x128xbf16, #tpu.memory_space<vmem>>, vector<1x10x128xbf16>
    %218 = vector.shape_cast %217 : vector<1x10x128xbf16> to vector<10x128xbf16>
    %219 = vector.shape_cast %216 : vector<10x128xbf16> to vector<1x10x128xbf16>
    tpu.vector_store %arg8[%c0_148, %c70, %c0_149], %219 {strides = array<i32>} : memref<1x100x128xbf16, #tpu.memory_space<vmem>>, vector<1x10x128xbf16>,
    %c252 = arith.constant 252 : index
    %c0_150 = arith.constant 0 : index
    %220 = tpu.strided_load %arg11[%c252, %c0_150] {strides = array<i32: 2, 1>} : memref<288x128xf32, #tpu.memory_space<vmem>>, vector<8x128xf32>
    %c253 = arith.constant 253 : index
    %c0_151 = arith.constant 0 : index
    %221 = tpu.strided_load %arg11[%c253, %c0_151] {strides = array<i32: 2, 1>} : memref<288x128xf32, #tpu.memory_space<vmem>>, vector<8x128xf32>
    %222 = arith.addf %220, %221 : vector<8x128xf32>
    %c270 = arith.constant 270 : index
    %c0_152 = arith.constant 0 : index
    %223 = tpu.strided_load %arg11[%c270, %c0_152] {strides = array<i32: 2, 1>} : memref<288x128xf32, #tpu.memory_space<vmem>>, vector<8x128xf32>
    %224 = arith.addf %222, %223 : vector<8x128xf32>
    %c271 = arith.constant 271 : index
    %c0_153 = arith.constant 0 : index
    %225 = tpu.strided_load %arg11[%c271, %c0_153] {strides = array<i32: 2, 1>} : memref<288x128xf32, #tpu.memory_space<vmem>>, vector<8x128xf32>
    %226 = arith.addf %224, %225 : vector<8x128xf32>
    %cst_154 = arith.constant 2.500000e-01 : f32
    %227 = vector.broadcast %cst_154 : f32 to vector<8x128xf32>
    %228 = arith.mulf %227, %226 : vector<8x128xf32>
    %229 = tpu.concatenate %121, %228, %121 in 0 : vector<1x128xf32>, vector<8x128xf32>, vector<1x128xf32> -> vector<10x128xf32>
    %230 = arith.truncf %229 : vector<10x128xf32> to vector<10x128xbf16>
    %c0_155 = arith.constant 0 : index
    %c80 = arith.constant 80 : index
    %c0_156 = arith.constant 0 : index
    %231 = vector.load %arg8[%c0_155, %c80, %c0_156] : memref<1x100x128xbf16, #tpu.memory_space<vmem>>, vector<1x10x128xbf16>
    %232 = vector.shape_cast %231 : vector<1x10x128xbf16> to vector<10x128xbf16>
    %233 = vector.shape_cast %230 : vector<10x128xbf16> to vector<1x10x128xbf16>
    tpu.vector_store %arg8[%c0_155, %c80, %c0_156], %233 {strides = array<i32>} : memref<1x100x128xbf16, #tpu.memory_space<vmem>>, vector<1x10x128xbf16>,
    return
  }
  func.func @transform_0(%arg0: i32) -> (i32, i32, i32) {
    %c0_i32 = arith.constant 0 : i32
    %c0_i32_0 = arith.constant 0 : i32
    %c0_i32_1 = arith.constant 0 : i32
    return %arg0, %c0_i32, %c0_i32_0 : i32, i32, i32
  }
  func.func @transform_1(%arg0: i32) -> (i32, i32, i32) {
    %c0_i32 = arith.constant 0 : i32
    %c0_i32_0 = arith.constant 0 : i32
    %c0_i32_1 = arith.constant 0 : i32
    %c0_i32_2 = arith.constant 0 : i32
    return %c0_i32, %c0_i32_0, %c0_i32_1 : i32, i32, i32
  }
  func.func @transform_2(%arg0: i32) -> (i32, i32) {
    %c0_i32 = arith.constant 0 : i32
    %c0_i32_0 = arith.constant 0 : i32
    %c0_i32_1 = arith.constant 0 : i32
    return %c0_i32, %c0_i32_0 : i32, i32
  }
  func.func @transform_3(%arg0: i32) -> (i32, i32, i32) {
    %c0_i32 = arith.constant 0 : i32
    %c0_i32_0 = arith.constant 0 : i32
    %c0_i32_1 = arith.constant 0 : i32
    %c0_i32_2 = arith.constant 0 : i32
    return %c0_i32, %c0_i32_0, %c0_i32_1 : i32, i32, i32
  }
  func.func @transform_4(%arg0: i32) -> (i32, i32) {
    %c0_i32 = arith.constant 0 : i32
    %c0_i32_0 = arith.constant 0 : i32
    %c0_i32_1 = arith.constant 0 : i32
    return %c0_i32, %c0_i32_0 : i32, i32
  }
  func.func @transform_5(%arg0: i32) -> (i32, i32) {
    %c0_i32 = arith.constant 0 : i32
    %c0_i32_0 = arith.constant 0 : i32
    %c0_i32_1 = arith.constant 0 : i32
    return %c0_i32, %c0_i32_0 : i32, i32
  }
  func.func @transform_6(%arg0: i32) -> (i32, i32) {
    %c0_i32 = arith.constant 0 : i32
    %c0_i32_0 = arith.constant 0 : i32
    %c0_i32_1 = arith.constant 0 : i32
    return %c0_i32, %c0_i32_0 : i32, i32
  }
  func.func @transform_7(%arg0: i32) -> (i32, i32, i32) {
    %c0_i32 = arith.constant 0 : i32
    %c0_i32_0 = arith.constant 0 : i32
    %c0_i32_1 = arith.constant 0 : i32
    return %arg0, %c0_i32, %c0_i32_0 : i32, i32, i32
  }
}

</mosaic_0001>

<bundles_post_ra>
// kernel: tpu_custom_call.1
= control target key start
LH: loop header
LB: loop body
LE: loop exit
PB: predicated region body
PF: predicated region fallthrough
CT: control target
= control target key end

     0   :  { %12 = vsyncpa [#allocation6], 0  ;;  %s14935_s0 = inlined_call_operand.vmem [shape: bf16[2,324,128], index: 0, kind: input, shape index: {}]   ;;  %s14936_s1 = inlined_call_operand.vmem [shape: bf16[5,256,128], index: 1, kind: input, shape index: {}]   ;;  %s14937_s2 = inlined_call_operand.vmem [shape: f32[1,128], index: 2, kind: input, shape index: {}]   ;;  %s14938_s3 = inlined_call_operand.hbm [shape: bf16[5,256,128], index: 3, kind: input, shape index: {}]   ;;  %s14939_s4 = inlined_call_operand.vmem [shape: f32[1,128], index: 4, kind: input, shape index: {}]   ;;  %s14940_s5 = inlined_call_operand.hbm [shape: bf16[128,128], index: 5, kind: input, shape index: {}]   ;;  %s14941_s6 = inlined_call_operand.vmem [shape: f32[1,128], index: 6, kind: input, shape index: {}]   ;;  %s14942_s7 = inlined_call_operand.vmem [shape: bf16[2,100,128], index: 7, kind: output, shape index: {}]  }
   0x1   :  { %13 = vsyncpa [#allocation8], 0  ;;  %s10734_s24 = smov 0  }
   0x2 LB: > { %s10740_s25 = sadd.s32 4294967295, %s10687_s24   ;;  %p8722_p0 = scmp.ge.s32.totalorder %s10687_s24, 1  ;;  %s10687_s24 = sphi %s10734_s24, %s19_s24  }
   0x3   : > { %p202_p1 = scmp.lt.s32.totalorder %s10687_s24, 3  ;;  %s10689_s26 = smov [#allocation5]  }
   0x4   : > { %s220_s27 = sshll.u32 %s10689_s26, 4  ;;  %p14943_p3 = scmp.eq.s32.totalorder %s10740_s25, 0  ;;  %s221_s27 = int_to_ptr.vmem [resolvable:$true] %s220_s27 }
   0x5   : > { %p10744_p2 = pnand %p8722_p0, %p202_p1  ;;  %s10690_s29 = smov [#allocation7]  }
   0x6   : > { %s236_s30 = sshll.u32 %s10690_s29, 4  ;;  %s10617_s11 = scalar_lea.hbm %s14938_s3, 10240  ;;  %s10757_s30 = int_to_ptr.vmem [resolvable:$true] %s236_s30 }
   0x7   : > { %s15071_s28 = scalar_select %p10744_p2, 1, 0 }
   0x8   : > { %p10272_p4 = pneg %p10744_p2  ;;  %p10618_p6 = scmp.ne.s32.totalorder %s14938_s3, %s10617_s11 }
   0x9   : > { %p10624_p10 = scmp.lt.u32.totalorder %s10617_s11, %s14938_s3 }
   0xa   : > { %p10753_p5 = pnand %p14943_p3, %p10272_p4 }
   0xc   : > { %p10619_p7 = pneg %p10753_p5 }
   0xe   : > { %p10620_p8 = pnand %p10619_p7, %p10618_p6 }
  0x10   : > { %p10621_p9 = pneg %p10620_p8 }
  0x12   : > { %p10626_p11 = pnand %p10624_p10, %p10621_p9 }
  0x14   : > { %10629 = shalt.err (!%p10626_p11)
}
  0x15   : > { %s10630_s16 = scalar_lea.vmem %s221_s27, 10240  ;;  %p10638_p1 = scmp.lt.s32.totalorder %s221_s27, %s221_s27 }
  0x16   : > { %p10631_p12 = scmp.ne.s32.totalorder %s221_s27, %s10630_s16  ;;  %p10639_p4 = scmp.lt.s32.totalorder %s10630_s16, %s10630_s16 }
  0x18   : > { %p10633_p13 = pnand %p10631_p12, %p10619_p7  ;;  %p10640_p3 = por %p10639_p4, %p10638_p1 }
  0x1a   : > { %p10634_p0 = pneg %p10633_p13 }
  0x1c   : > { %p10641_p2 = pnand %p10640_p3, %p10634_p0 }
  0x1e   : > { %10644 = shalt.err (!%p10641_p2)
}
  0x1f   : > { %s10691_s17 = smov 64   ;;  %s10692_s18 = smov 4  }
  0x20   : > { %10275 = dma.hbm_to_vmem [thread:$0]  (!%p10753_p5), %s14938_s3, 10240, %s221_s27, [#allocation6], %s10691_s17, %s10691_s17, %s10692_s18  }
  0x21   : > { %s10645_s23 = scalar_lea.hbm %s14940_s5, 1024 }
  0x22   : > { %p10646_p6 = scmp.ne.s32.totalorder %s14940_s5, %s10645_s23  ;;  %p10652_p8 = scmp.lt.u32.totalorder %s10645_s23, %s14940_s5 }
  0x24   : > { %p10648_p2 = pnand %p10646_p6, %p10619_p7 }
  0x26   : > { %p10649_p3 = pneg %p10648_p2 }
  0x28   : > { %p10654_p9 = pnand %p10652_p8, %p10649_p3 }
  0x2a   : > { %10657 = shalt.err (!%p10654_p9)
}
  0x2b   : > { %s10658_s27 = scalar_lea.vmem %s10757_s30, 1024  ;;  %p10666_p13 = scmp.lt.s32.totalorder %s10757_s30, %s10757_s30 }
  0x2c   : > { %p10659_p10 = scmp.ne.s32.totalorder %s10757_s30, %s10658_s27  ;;  %p10667_p0 = scmp.lt.s32.totalorder %s10658_s27, %s10658_s27 }
  0x2e   : > { %p10661_p11 = pnand %p10659_p10, %p10619_p7  ;;  %p10668_p1 = por %p10667_p0, %p10666_p13 }
  0x30   : > { %p10662_p12 = pneg %p10661_p11 }
  0x32   : > { %p10669_p4 = pnand %p10668_p1, %p10662_p12 }
  0x34   : > { %10672 = shalt.err (!%p10669_p4)
}
  0x35   : > { %10278 = dma.hbm_to_vmem [thread:$0]  (!%p10753_p5), %s14940_s5, 1024, %s10757_s30, [#allocation8], %s10691_s17, %s10691_s17, %s10692_s18  }
  0x36   : > { %p15073_p6 = scmp.ne.s32.totalorder %s15071_s28, 0 }
  0x38   : > { %263 = sbr.rel (%p15073_p6) target bundleno = 1706 (0x6aa), region = 48 }
  0x3f   : > { %p15074_p2 = scmp.eq.s32.totalorder %s10740_s25, 0 }
  0x41   : > { %10678 = dma.done.wait (%p15074_p2), [#allocation6], 10240   ;;  %p15075_p7 = pmov %p15074_p2 }
  0x42   : > { %p15076_p3 = pmov %p15074_p2 }
  0x43   : > { %10680 = vsyncadd (%p15075_p7), [#allocation6], 4294957056 }
  0x44   : > { %10682 = dma.done.wait (%p15076_p3), [#allocation8], 1024   ;;  %p15077_p8 = pmov %p15074_p2 }
  0x45   : > { %v14945_v0 = vmov 0   ;;  %v10296_v1 = vld [vmem:[%s14936_s1 + $0x80] sm:$0xff]   ;;  %p299_p5 = scmp.lt.s32.totalorder %s10740_s25, 1  ;;  %v10297_v2 = vld [vmem:[%s14936_s1 + $0x88] sm:$0xff]   ;;  %v10298_v3 = vld [vmem:[%s14936_s1 + $0x90] sm:$0xff]   ;;  %vm840_vm0 = vcmask 1046528  }
  0x46   : > { %10684 = vsyncadd (%p15077_p8), [#allocation8], 4294966272  ;;  %997 = vmatprep.subr.bf16.mxu0 %v14945_v0  ;;  %316 = vst [vmem:[#allocation3 + $0x4] sm:$0xf] %v14945_v0  ;;  %v10299_v4 = vld [vmem:[%s14936_s1 + $0x98] sm:$0xff]   ;;  %v10300_v5 = vld [vmem:[%s14936_s1 + $0xa0] sm:$0xff]  }
  0x47   : > { %317 = vst [vmem:[#allocation3 + $0x8] sm:$0xf] %v14945_v0  ;;  %318 = vst [vmem:[#allocation3 + $0x98] sm:$0x8] %v14945_v0  ;;  %998 = vmatpush1.bf16.msra.mxu0 %v10296_v1  ;;  %s15802_s25 = smov (!%p299_p5, %s10740_s25), 1  ;;  %v10301_v15 = vld [vmem:[%s14936_s1 + $0xa8] sm:$0xff]  }
  0x48   : > { %319 = vst [vmem:[#allocation3 + $0x9c] sm:$0xf] %v14945_v0  ;;  %320 = vst [vmem:[#allocation3 + $0xa0] sm:$0xf] %v14945_v0  ;;  %999 = vmatprep.subr.bf16.mxu0 %v14945_v0  ;;  %s10190_s16 = smul.u32 164, %s15802_s25  ;;  %v10302_v29 = vld [vmem:[%s14936_s1 + $0xb0] sm:$0xff]  }
  0x49   : > { %v10303_v39 = vld [vmem:[%s14936_s1 + $0xb8] sm:$0xff]   ;;  %v10304_v57 = vld [vmem:[%s14936_s1 + $0xc0] sm:$0xff]   ;;  %vm14951_vm1 = vsmask.f32 7424  ;;  %vm14948_vm2 = vsmask.f32 6400 }
  0x4a   : > { %s10845_s21 = scalar_lea.vmem %s14935_s0, %s10190_s16  ;;  %vm3113_vm3 = vcmask 1044480   ;;  %vm2672_vm4 = vcmask 1045504   ;;  %vm310_vm5 = vcmask 1043458   ;;  %vm311_vm6 = vsmask.f32 7946  ;;  %s10191_s22 = smul.u32 52, %s15802_s25 }
  0x4b   : > { %1000 = vmatpush1.bf16.msra.mxu0 %v10297_v2  ;;  %v329_v6 = vld [vmem:[%s10845_s21 + $0x8] sm:$0xf]  ;;  %v330_v7 = vld [vmem:[%s10845_s21 + $0xc] sm:$0xf]  ;;  %v331_v8 = vld [vmem:[%s10845_s21 + $0x10] sm:$0xf] }
  0x4c   : > { %1001 = vmatprep.subr.bf16.mxu0 %v14945_v0  ;;  %v332_v9 = vld [vmem:[%s10845_s21 + $0x14] sm:$0xf]  ;;  %v370_v10 = vmax.bf16 %v14945_v0, %v329_v6  ;;  %v371_v11 = vmax.bf16 %v14945_v0, %v330_v7  ;;  %v372_v12 = vmax.bf16 %v14945_v0, %v331_v8  ;;  %v327_v13 = vld [vmem:[%s10845_s21] sm:$0xf]  ;;  %v328_v14 = vld [vmem:[%s10845_s21 + $0x4] sm:$0xf]  ;;  %s14614_s29 = scalar_lea.vmem %s14942_s7, %s10191_s22 }
  0x4d   : > { %v373_v16 = vmax.bf16 %v14945_v0, %v332_v9  ;;  %v368_v17 = vmax.bf16 %v14945_v0, %v327_v13  ;;  %v369_v18 = vmax.bf16 %v14945_v0, %v328_v14  ;;  %v333_v20 = vld [vmem:[%s10845_s21 + $0x18] sm:$0xf]  ;;  %v334_v21 = vld [vmem:[%s10845_s21 + $0x1c] sm:$0xf]  ;;  %v335_v26 = vld [vmem:[%s10845_s21 + $0x20] sm:$0xf] }
  0x4e   : > { %v9453_v19 = vcombine.low %v370_v10, %v371_v11  ;;  %v374_v24 = vmax.bf16 %v14945_v0, %v333_v20  ;;  %v375_v25 = vmax.bf16 %v14945_v0, %v334_v21  ;;  %v336_v27 = vld [vmem:[%s10845_s21 + $0x24] sm:$0xf]  ;;  %v376_v28 = vmax.bf16 %v14945_v0, %v335_v26  ;;  %v337_v32 = vld [vmem:[%s10845_s21 + $0x28] sm:$0xf]  ;;  %v338_v33 = vld [vmem:[%s10845_s21 + $0x2c] sm:$0xf] }
  0x4f   : > { %1002 = vmatpush1.bf16.msra.mxu0 %v10298_v3  ;;  %v9455_v22 = vcombine.low %v372_v12, %v373_v16  ;;  %v9452_v23 = vcombine.low %v368_v17, %v369_v18  ;;  %v377_v31 = vmax.bf16 %v14945_v0, %v336_v27  ;;  %v378_v34 = vmax.bf16 %v14945_v0, %v337_v32  ;;  %v339_v37 = vld [vmem:[%s10845_s21 + $0x30] sm:$0xf]  ;;  %v340_v38 = vld [vmem:[%s10845_s21 + $0x34] sm:$0xf]  ;;  %v341_v43 = vld [vmem:[%s10845_s21 + $0x38] sm:$0xf] }
  0x50   : > { %1003 = vmatprep.subr.bf16.mxu0 %v14945_v0  ;;  %9454 = vst [vmem:[#allocation2 + $0x8] sm:$0xff] %v9453_v19   ;;  %v9457_v30 = vcombine.low %v374_v24, %v375_v25  ;;  %v379_v35 = vmax.bf16 %v14945_v0, %v338_v33  ;;  %v380_v41 = vmax.bf16 %v14945_v0, %v339_v37  ;;  %v342_v44 = vld [vmem:[%s10845_s21 + $0x3c] sm:$0xf]  ;;  %v343_v48 = vld [vmem:[%s10845_s21 + $0x40] sm:$0xf]  ;;  %v10305_v3 = vld [vmem:[%s14936_s1 + $0xc8] sm:$0xff]  }
  0x51   : > { %9456 = vst [vmem:[#allocation2 + $0x10] sm:$0xff] %v9455_v22   ;;  %9271 = vst [vmem:[#allocation2] sm:$0xff] %v9452_v23   ;;  %v9459_v36 = vcombine.low %v376_v28, %v377_v31  ;;  %v381_v42 = vmax.bf16 %v14945_v0, %v340_v38  ;;  %v382_v45 = vmax.bf16 %v14945_v0, %v341_v43  ;;  %v344_v49 = vld [vmem:[%s10845_s21 + $0x44] sm:$0xf]  ;;  %v345_v61 = vld [vmem:[%s10845_s21 + $0x48] sm:$0xf] }
  0x52   : > { %9458 = vst [vmem:[#allocation2 + $0x18] sm:$0xff] %v9457_v30   ;;  %v9461_v40 = vcombine.low %v378_v34, %v379_v35  ;;  %v383_v47 = vmax.bf16 %v14945_v0, %v342_v44  ;;  %v384_v52 = vmax.bf16 %v14945_v0, %v343_v48  ;;  %v385_v53 = vmax.bf16 %v14945_v0, %v344_v49  ;;  %v346_v62 = vld [vmem:[%s10845_s21 + $0x4c] sm:$0xf]  ;;  %v348_v6 = vld [vmem:[%s10845_s21 + $0x54] sm:$0xf]  ;;  %v10307_v12 = vld [vmem:[%s14936_s1 + $0xd8] sm:$0xff]  }
  0x53   : > { %1004 = vmatpush1.bf16.msra.mxu0 %v10299_v4  ;;  %9460 = vst [vmem:[#allocation2 + $0x20] sm:$0xff] %v9459_v36   ;;  %v9463_v46 = vcombine.low %v380_v41, %v381_v42  ;;  %v386_v1 = vmax.bf16 %v14945_v0, %v345_v61  ;;  %v387_v2 = vmax.bf16 %v14945_v0, %v346_v62  ;;  %v10306_v7 = vld [vmem:[%s14936_s1 + $0xd0] sm:$0xff]   ;;  %v349_v11 = vld [vmem:[%s10845_s21 + $0x58] sm:$0xf]  ;;  %v350_v13 = vld [vmem:[%s10845_s21 + $0x5c] sm:$0xf] }
  0x54   : > { %1005 = vmatprep.subr.bf16.mxu0 %v14945_v0  ;;  %9462 = vst [vmem:[#allocation2 + $0x28] sm:$0xff] %v9461_v40   ;;  %v9465_v56 = vcombine.low %v382_v45, %v383_v47  ;;  %v9467_v58 = vcombine.low %v384_v52, %v385_v53  ;;  %v389_v9 = vmax.bf16 %v14945_v0, %v348_v6  ;;  %v351_v16 = vld [vmem:[%s10845_s21 + $0x60] sm:$0xf]  ;;  %v352_v17 = vld [vmem:[%s10845_s21 + $0x64] sm:$0xf]  ;;  %v10309_v30 = vld [vmem:[%s14936_s1 + $0xe8] sm:$0xff]  }
  0x55   : > { %9464 = vst [vmem:[#allocation2 + $0x30] sm:$0xff] %v9463_v46   ;;  %v9469_v4 = vcombine.low %v386_v1, %v387_v2  ;;  %v390_v14 = vmax.bf16 %v14945_v0, %v349_v11  ;;  %v392_v18 = vmax.bf16 %v14945_v0, %v351_v16  ;;  %v393_v19 = vmax.bf16 %v14945_v0, %v352_v17  ;;  %v353_v22 = vld [vmem:[%s10845_s21 + $0x68] sm:$0xf]  ;;  %v354_v23 = vld [vmem:[%s10845_s21 + $0x6c] sm:$0xf]  ;;  %v10308_v24 = vld [vmem:[%s14936_s1 + $0xe0] sm:$0xff]  }
  0x56   : > { %9466 = vst [vmem:[#allocation2 + $0x38] sm:$0xff] %v9465_v56   ;;  %9468 = vst [vmem:[#allocation2 + $0x40] sm:$0xff] %v9467_v58   ;;  %v394_v25 = vmax.bf16 %v14945_v0, %v353_v22  ;;  %v395_v26 = vmax.bf16 %v14945_v0, %v354_v23  ;;  %v355_v27 = vld [vmem:[%s10845_s21 + $0x70] sm:$0xf]  ;;  %v356_v28 = vld [vmem:[%s10845_s21 + $0x74] sm:$0xf] }
  0x57   : > { %1006 = vmatpush1.bf16.msra.mxu0 %v10300_v5  ;;  %v10897_v50 = vld [vmem:[#allocation2 + $0xc] sm:$0xf]  ;;  %v793_v51 = vld [vmem:[#allocation2 + $0x8] sm:$0xe]  ;;  %9470 = vst [vmem:[#allocation2 + $0x48] sm:$0xff] %v9469_v4   ;;  %v9475_v21 = vcombine.low %v392_v18, %v393_v19  ;;  %v397_v32 = vmax.bf16 %v14945_v0, %v356_v28  ;;  %v10310_v47 = vld [vmem:[%s14936_s1 + $0xf0] sm:$0xff]  }
  0x58   : > { %1007 = vmatprep.subr.bf16.mxu0 %v14945_v0  ;;  %v10313_v54 = vld [vmem:[#allocation2 + $0x10] sm:$0xff]   ;;  %v8751_v55 = vcombine.low %v793_v51, %v10897_v50  ;;  %v9477_v31 = vcombine.low %v394_v25, %v395_v26  ;;  %v357_v33 = vld [vmem:[%s10845_s21 + $0x78] sm:$0xf]  ;;  %v358_v34 = vld [vmem:[%s10845_s21 + $0x7c] sm:$0xf] }
  0x59   : > { %v10906_v60 = vrot.slane %v10313_v54, 1  ;;  %v347_v5 = vld [vmem:[%s10845_s21 + $0x50] sm:$0xf]  ;;  %9476 = vst [vmem:[#allocation2 + $0x60] sm:$0xff] %v9475_v21   ;;  %v452_v35 = vld [vmem:[#allocation2 + $0x8] sm:$0xf]  ;;  %v398_v36 = vmax.bf16 %v14945_v0, %v357_v33  ;;  %v399_v37 = vmax.bf16 %v14945_v0, %v358_v34  ;;  %vm312_vm7 = vmand %vm310_vm5, %vm311_vm6 }
  0x5a   : > { %v844_v59 = vrot.slane %v8751_v55, 1  ;;  %v388_v8 = vmax.bf16 %v14945_v0, %v347_v5  ;;  %v10957_v38 = vld [vmem:[#allocation2 + $0x4] sm:$0xf]  ;;  %9478 = vst [vmem:[#allocation2 + $0x68] sm:$0xff] %v9477_v31   ;;  %v792_v40 = vld [vmem:[#allocation2] sm:$0xe]  ;;  %v10969_v48 = vcombine.low %v452_v35, %v10897_v50 }
  0x5b   : > { %1008 = vmatpush1.bf16.msra.mxu0 %v10301_v15  ;;  %v391_v15 = vmax.bf16 %v14945_v0, %v350_v13  ;;  %v9481_v41 = vcombine.low %v398_v36, %v399_v37  ;;  %v359_v42 = vld [vmem:[%s10845_s21 + $0x80] sm:$0xf]  ;;  %v360_v43 = vld [vmem:[%s10845_s21 + $0x84] sm:$0xf]  ;;  %v361_v46 = vld [vmem:[%s10845_s21 + $0x88] sm:$0xf]  ;;  %v8750_v49 = vcombine.low %v792_v40, %v10957_v38 }
  0x5c   : > { %1009 = vmatprep.subr.bf16.mxu0 %v14945_v0  ;;  %v846_v63 = vsel %vm840_vm0, %v844_v59, %v10906_v60  ;;  %v9471_v10 = vcombine.low %v388_v8, %v389_v9  ;;  %v400_v44 = vmax.bf16 %v14945_v0, %v359_v42  ;;  %v401_v45 = vmax.bf16 %v14945_v0, %v360_v43  ;;  %v10318_v53 = vld [vmem:[#allocation2 + $0x18] sm:$0xff]   ;;  %v362_v54 = vld [vmem:[%s10845_s21 + $0x8c] sm:$0xf]  ;;  %v363_v55 = vld [vmem:[%s10845_s21 + $0x90] sm:$0xf] }
  0x5d   : > { %1029 = vmatprep.mubr.bf16.mxu0 %v846_v63  ;;  %v9473_v20 = vcombine.low %v390_v14, %v391_v15  ;;  %9482 = vst [vmem:[#allocation2 + $0x78] sm:$0xff] %v9481_v41   ;;  %v402_v52 = vmax.bf16 %v14945_v0, %v361_v46  ;;  %v403_v56 = vmax.bf16 %v14945_v0, %v362_v54  ;;  %v10311_v50 = vld [vmem:[%s14936_s1 + $0xf8] sm:$0xff]   ;;  %v841_v61 = vrot.slane %v8750_v49, 1  ;;  %v10317_v4 = vld [vmem:[%s14936_s1] sm:$0xff]   ;;  %v10321_v9 = vld [vmem:[%s14936_s1 + $0x10] sm:$0xff]  }
  0x5e   : > { %9472 = vst [vmem:[#allocation2 + $0x50] sm:$0xff] %v9471_v10   ;;  %v9483_v51 = vcombine.low %v400_v44, %v401_v45  ;;  %v404_v58 = vmax.bf16 %v14945_v0, %v363_v55  ;;  %v842_v62 = vrot.slane %v10969_v48, 1  ;;  %v848_v1 = vrot.slane %v10318_v53, 1  ;;  %v10992_v6 = vld [vmem:[#allocation2 + $0x20] sm:$0xff]   ;;  %v11004_v11 = vld [vmem:[#allocation2 + $0x28] sm:$0xff]   ;;  %v10323_v13 = vld [vmem:[%s14936_s1 + $0x18] sm:$0xff]  }
  0x5f   : > { %1010 = vmatpush1.bf16.msra.mxu0 %v10302_v29  ;;  %9474 = vst [vmem:[#allocation2 + $0x58] sm:$0xff] %v9473_v20   ;;  %v396_v29 = vmax.bf16 %v14945_v0, %v355_v27  ;;  %v9485_v63 = vcombine.low %v402_v52, %v403_v56  ;;  %v850_v8 = vrot.slane %v10992_v6, 1  ;;  %v852_v14 = vrot.slane %v11004_v11, 1  ;;  %v11013_v15 = vld [vmem:[#allocation2 + $0x30] sm:$0xff]   ;;  %v10327_v18 = vld [vmem:[%s14936_s1 + $0x28] sm:$0xff]   ;;  %v11028_v20 = vld [vmem:[#allocation2 + $0x38] sm:$0xff]  }
  0x60   : > { %1011 = vmatprep.subr.bf16.mxu0 %v14945_v0  ;;  %9484 = vst [vmem:[#allocation2 + $0x80] sm:$0xff] %v9483_v51   ;;  %v849_v5 = vsel %vm840_vm0, %v10906_v60, %v848_v1  ;;  %v847_v10 = vsel %vm840_vm0, %v842_v62, %v10906_v60  ;;  %v10325_v60 = vld [vmem:[%s14936_s1 + $0x20] sm:$0xff]   ;;  %v854_v17 = vrot.slane %v11013_v15, 1  ;;  %v10330_v19 = vld [vmem:[%s14936_s1 + $0x30] sm:$0xff]   ;;  %v10332_v22 = vld [vmem:[%s14936_s1 + $0x38] sm:$0xff]   ;;  %v856_v23 = vrot.slane %v11028_v20, 1 }
  0x61   : > { %9486 = vst [vmem:[#allocation2 + $0x88] sm:$0xff] %v9485_v63   ;;  %v853_v16 = vsel %vm840_vm0, %v850_v8, %v852_v14  ;;  %v11040_v25 = vld [vmem:[#allocation2 + $0x40] sm:$0xff]   ;;  %v10336_v27 = vld [vmem:[%s14936_s1 + $0x48] sm:$0xff]   ;;  %v10347_v40 = vld [vmem:[%s14936_s1 + $0x70] sm:$0xff]  }
  0x62   : > { %v855_v21 = vsel %vm840_vm0, %v852_v14, %v854_v17  ;;  %v857_v26 = vsel %vm840_vm0, %v854_v17, %v856_v23  ;;  %v858_v28 = vrot.slane %v11040_v25, 1  ;;  %v10342_v34 = vld [vmem:[%s14936_s1 + $0x60] sm:$0xff]   ;;  %v10344_v37 = vld [vmem:[%s14936_s1 + $0x68] sm:$0xff]   ;;  %v10348_v43 = vld [vmem:[%s14936_s1 + $0x78] sm:$0xff]  }
  0x63   : > { %1012 = vmatpush1.bf16.msra.mxu0 %v10303_v39  ;;  %v9479_v39 = vcombine.low %v396_v29, %v397_v32  ;;  %v10338_v29 = vld [vmem:[%s14936_s1 + $0x50] sm:$0xff]   ;;  %v10340_v32 = vld [vmem:[%s14936_s1 + $0x58] sm:$0xff]   ;;  %v11085_v45 = vld [vmem:[#allocation2 + $0x60] sm:$0xff]  }
  0x64   : > { %1013 = vmatprep.subr.bf16.mxu0 %v14945_v0  ;;  %v859_v31 = vsel %vm840_vm0, %v856_v23, %v858_v28  ;;  %v11090_v49 = vld [vmem:[#allocation2 + $0x68] sm:$0xff]   ;;  %v11098_v56 = vld [vmem:[#allocation2 + $0x78] sm:$0xff]  }
  0x65   : > { %9480 = vst [vmem:[#allocation2 + $0x70] sm:$0xff] %v9479_v39   ;;  %v11064_v35 = vld [vmem:[#allocation2 + $0x50] sm:$0xff]   ;;  %v868_v52 = vrot.slane %v11090_v49, 1 }
  0x66   : > { %v862_v39 = vrot.slane %v11064_v35, 1  ;;  %v11076_v41 = vld [vmem:[#allocation2 + $0x58] sm:$0xff]  }
  0x67   : > { %1014 = vmatpush1.bf16.msra.mxu0 %v10304_v57  ;;  %v364_v57 = vld [vmem:[%s10845_s21 + $0x94] sm:$0xf]  ;;  %v864_v44 = vrot.slane %v11076_v41, 1 }
  0x68   : > { %1015 = vmatprep.subr.bf16.mxu0 %v14945_v0  ;;  %v405_v59 = vmax.bf16 %v14945_v0, %v364_v57  ;;  %v486_v63 = vld [vmem:[#allocation2 + $0x8c] sm:$0xf] }
  0x69   : > { %v865_v46 = vsel %vm840_vm0, %v862_v39, %v864_v44 }
  0x6a   : > { %v9487_v2 = vcombine.low %v404_v58, %v405_v59  ;;  %v872_v58 = vrot.slane %v11098_v56, 1 }
  0x6b   : > { %1016 = vmatpush1.bf16.msra.mxu0 %v10305_v3  ;;  %v843_v3 = vsel %vm840_vm0, %v841_v61, %v842_v62  ;;  %v11106_v62 = vld [vmem:[#allocation2 + $0x88] sm:$0xf] }
  0x6c   : > { %1017 = vmatprep.subr.bf16.mxu0 %v14945_v0  ;;  %9488 = vst [vmem:[#allocation2 + $0x90] sm:$0xff] %v9487_v2   ;;  %v11094_v53 = vld [vmem:[#allocation2 + $0x70] sm:$0xff]   ;;  %v11110_v2 = vcombine.low %v11106_v62, %v486_v63 }
  0x6d   : > { %v870_v55 = vrot.slane %v11094_v53, 1 }
  0x6f   : > { %1018 = vmatpush1.bf16.msra.mxu0 %v10306_v7  ;;  %v10319_v7 = vld [vmem:[%s14936_s1 + $0x8] sm:$0xff]   ;;  %v871_v57 = vsel %vm840_vm0, %v868_v52, %v870_v55  ;;  %v873_v59 = vsel %vm840_vm0, %v870_v55, %v872_v58  ;;  %v10355_v55 = vld [vmem:[%s14936_s1 + $0x130] sm:$0xff]  }
  0x70   : > { %1019 = vmatprep.subr.bf16.mxu0 %v14945_v0 }
  0x73   : > { %1020 = vmatpush1.bf16.msra.mxu0 %v10307_v12  ;;  %v851_v12 = vsel %vm840_vm0, %v848_v1, %v850_v8 }
  0x74   : > { %1021 = vmatprep.subr.bf16.mxu0 %v14945_v0 }
  0x77   : > { %1022 = vmatpush1.bf16.msra.mxu0 %v10308_v24  ;;  %v10334_v24 = vld [vmem:[%s14936_s1 + $0x40] sm:$0xff]  }
  0x78   : > { %1023 = vmatprep.subr.bf16.mxu0 %v14945_v0 }
  0x7b   : > { %1024 = vmatpush1.bf16.msra.mxu0 %v10309_v30  ;;  %v11052_v30 = vld [vmem:[#allocation2 + $0x48] sm:$0xff]  }
  0x7c   : > { %1025 = vmatprep.subr.bf16.mxu0 %v14945_v0  ;;  %v860_v33 = vrot.slane %v11052_v30, 1 }
  0x7e   : > { %v861_v36 = vsel %vm840_vm0, %v858_v28, %v860_v33  ;;  %v863_v42 = vsel %vm840_vm0, %v860_v33, %v862_v39  ;;  %v10612_v28 = vld [vmem:[#allocation2 + $0x18] sm:$0xff]   ;;  %v631_v39 = vshll.u32 %v10992_v6, 16  ;;  %v10613_v6 = vld [vmem:[#allocation2 + $0x20] sm:$0xff]  }
  0x7f   : > { %1026 = vmatpush1.bf16.msra.mxu0 %v10310_v47  ;;  %v866_v47 = vrot.slane %v11085_v45, 1 }
  0x80   : > { %1027 = vmatprep.subr.bf16.mxu0 %v14945_v0 }
  0x81   : > { %v867_v51 = vsel %vm840_vm0, %v864_v44, %v866_v47  ;;  %v869_v54 = vsel %vm840_vm0, %v866_v47, %v868_v52  ;;  %v10353_v44 = vld [vmem:[%s14936_s1 + $0x120] sm:$0xff]   ;;  %v635_v47 = vshrl.u32 %v10613_v6, 16 }
  0x83   : > { %1028 = vmatpush1.bf16.msra.mxu0 %v10311_v50  ;;  %v11102_v50 = vld [vmem:[#allocation2 + $0x80] sm:$0xff]  }
  0x84   : > { %1270 = vmatprep.subr.bf16.mxu0 %v14945_v0  ;;  %v874_v61 = vrot.slane %v11102_v50, 1 }
  0x86   : > { %1030 = vmatmul.mubr.bf16.vlgmr.msra.gmra.mrb[0].mxu0 %v843_v3  ;;  %v875_v1 = vsel %vm840_vm0, %v872_v58, %v874_v61  ;;  %v450_v3 = vld [vmem:[#allocation2] sm:$0xf]  ;;  %v643_v58 = vshrl.u32 %v11004_v11, 16 }
  0x87   : > { %1271 = vmatpush1.bf16.msra.mxu0 %v10317_v4  ;;  %1037 = vmatprep.mubr.bf16.mxu0 %v849_v5  ;;  %v876_v4 = vrot.slane %v11110_v2, 1 }
  0x88   : > { %1272 = vmatprep.subr.bf16.mxu0 %v14945_v0 }
  0x89   : > { %v877_v8 = vsel %vm840_vm0, %v874_v61, %v876_v4  ;;  %v10356_v61 = vld [vmem:[%s14936_s1 + $0x138] sm:$0xff]  }
  0x8b   : > { %1273 = vmatpush1.bf16.msra.mxu0 %v10319_v7  ;;  %v8731_v7 = vcombine.low %v450_v3, %v10957_v38 }
  0x8c   : > { %1274 = vmatprep.subr.bf16.mxu0 %v14945_v0 }
  0x8e   : > { %1038 = vmatmul.mubr.bf16.gmra.mrb[4].mxu0 %v847_v10  ;;  %v602_v10 = vshll.u32 %v8731_v7, 16 }
  0x8f   : > { %1045 = vmatprep.mubr.bf16.mxu0 %v851_v12  ;;  %1275 = vmatpush1.bf16.msra.mxu0 %v10321_v9 }
  0x90   : > { %1276 = vmatprep.subr.bf16.mxu0 %v14945_v0  ;;  %v604_v14 = vrot.slane %v602_v10, 1 }
  0x93   : > { %1277 = vmatpush1.bf16.msra.mxu0 %v10323_v13  ;;  %v600_v13 = vshrl.u32 %v8731_v7, 16 }
  0x94   : > { %1278 = vmatprep.subr.bf16.mxu0 %v14945_v0 }
  0x96   : > { %1046 = vmatmul.mubr.bf16.gmra.mrb[8].mxu0 %v849_v5  ;;  %v10346_v5 = vld [vmem:[#allocation2 + $0x90] sm:$0xff]  }
  0x97   : > { %1053 = vmatprep.mubr.bf16.mxu0 %v853_v16  ;;  %1279 = vmatpush1.bf16.msra.mxu0 %v10325_v60  ;;  %v878_v9 = vrot.slane %v10346_v5, 1  ;;  %v607_v60 = vshll.u32 %v10969_v48, 16  ;;  %v655_v5 = vshll.u32 %v11028_v20, 16 }
  0x98   : > { %1280 = vmatprep.subr.bf16.mxu0 %v14945_v0 }
  0x99   : > { %v609_v17 = vrot.slane %v607_v60, 1  ;;  %v10360_v60 = vld [vmem:[%s14936_s1 + $0x158] sm:$0xff]  }
  0x9b   : > { %1281 = vmatpush1.bf16.msra.mxu0 %v10327_v18  ;;  %v611_v18 = vshrl.u32 %v10969_v48, 16 }
  0x9c   : > { %1282 = vmatprep.subr.bf16.mxu0 %v14945_v0 }
  0x9e   : > { %1054 = vmatmul.mubr.bf16.gmra.mrb[12].mxu0 %v851_v12  ;;  %v879_v12 = vsel %vm840_vm0, %v876_v4, %v878_v9 }
  0x9f   : > { %1061 = vmatprep.mubr.bf16.mxu0 %v855_v21  ;;  %1283 = vmatpush1.bf16.msra.mxu0 %v10330_v19  ;;  %v10611_v19 = vld [vmem:[#allocation2 + $0x10] sm:$0xff]  }
  0xa0   : > { %1284 = vmatprep.subr.bf16.mxu0 %v14945_v0 }
  0xa3   : > { %1285 = vmatpush1.bf16.msra.mxu0 %v10332_v22  ;;  %v613_v22 = vor.u32 %v611_v18, %v609_v17 }
  0xa4   : > { %1286 = vmatprep.subr.bf16.mxu0 %v14945_v0 }
  0xa6   : > { %1062 = vmatmul.mubr.bf16.gmra.mrb[16].mxu0 %v853_v16  ;;  %v605_v16 = vor.u32 %v604_v14, %v600_v13  ;;  %v663_v13 = vshll.u32 %v11040_v25, 16  ;;  %v10614_v14 = vld [vmem:[#allocation2 + $0x28] sm:$0xff]  }
  0xa7   : > { %1069 = vmatprep.mubr.bf16.mxu0 %v857_v26  ;;  %1287 = vmatpush1.bf16.msra.mxu0 %v10334_v24  ;;  %v10349_v24 = vld [vmem:[%s14936_s1 + $0x100] sm:$0xff]  }
  0xa8   : > { %1288 = vmatprep.subr.bf16.mxu0 %v14945_v0  ;;  %v610_v38 = vsel %vm14951_vm1, %v605_v16, %v609_v17  ;;  %v665_v17 = vrot.slane %v663_v13, 1  ;;  %v731_v13 = vshrl.u32 %v11102_v50, 16 }
  0xab   : > { %1289 = vmatpush1.bf16.msra.mxu0 %v10336_v27  ;;  %v619_v27 = vshrl.u32 %v10611_v19, 16 }
  0xac   : > { %1290 = vmatprep.subr.bf16.mxu0 %v14945_v0 }
  0xae   : > { %1070 = vmatmul.mubr.bf16.gmra.mrb[20].mxu0 %v855_v21  ;;  %v615_v21 = vshll.u32 %v10611_v19, 16 }
  0xaf   : > { %1077 = vmatprep.mubr.bf16.mxu0 %v859_v31  ;;  %1291 = vmatpush1.bf16.msra.mxu0 %v10338_v29  ;;  %v623_v29 = vshll.u32 %v10612_v28, 16 }
  0xb0   : > { %1292 = vmatprep.subr.bf16.mxu0 %v14945_v0  ;;  %v617_v23 = vrot.slane %v615_v21, 1  ;;  %v671_v21 = vshll.u32 %v11052_v30, 16 }
  0xb1   : > { %v625_v33 = vrot.slane %v623_v29, 1  ;;  %v675_v29 = vshrl.u32 %v11052_v30, 16 }
  0xb3   : > { %1293 = vmatpush1.bf16.msra.mxu0 %v10340_v32  ;;  %v621_v32 = vor.u32 %v619_v27, %v617_v23  ;;  %v10363_v27 = vld [vmem:[%s14936_s1 + $0x170] sm:$0xff]  }
  0xb4   : > { %1294 = vmatprep.subr.bf16.mxu0 %v14945_v0 }
  0xb6   : > { %1078 = vmatmul.mubr.bf16.gmra.mrb[24].mxu0 %v857_v26  ;;  %v618_v26 = vsel %vm14951_vm1, %v613_v22, %v617_v23  ;;  %v10615_v22 = vld [vmem:[#allocation2 + $0x30] sm:$0xff]   ;;  %v10362_v23 = vld [vmem:[%s14936_s1 + $0x168] sm:$0xff]  }
  0xb7   : > { %1085 = vmatprep.mubr.bf16.mxu0 %v861_v36  ;;  %1295 = vmatpush1.bf16.msra.mxu0 %v10342_v34  ;;  %v10351_v34 = vld [vmem:[%s14936_s1 + $0x110] sm:$0xff]  }
  0xb8   : > { %1296 = vmatprep.subr.bf16.mxu0 %v14945_v0 }
  0xbb   : > { %1297 = vmatpush1.bf16.msra.mxu0 %v10344_v37  ;;  %v627_v37 = vshrl.u32 %v10612_v28, 16 }
  0xbc   : > { %1298 = vmatprep.subr.bf16.mxu0 %v14945_v0 }
  0xbe   : > { %1086 = vmatmul.mubr.bf16.gmra.mrb[28].mxu0 %v859_v31  ;;  %v10350_v31 = vld [vmem:[%s14936_s1 + $0x108] sm:$0xff]  }
  0xbf   : > { %1093 = vmatprep.mubr.bf16.mxu0 %v863_v42  ;;  %1299 = vmatpush1.bf16.msra.mxu0 %v10347_v40  ;;  %v10352_v40 = vld [vmem:[%s14936_s1 + $0x118] sm:$0xff]  }
  0xc0   : > { %1300 = vmatprep.subr.bf16.mxu0 %v14945_v0 }
  0xc3   : > { %1301 = vmatpush1.bf16.msra.mxu0 %v10348_v43  ;;  %v633_v43 = vrot.slane %v631_v39, 1  ;;  %v687_v39 = vshll.u32 %v11076_v41, 16 }
  0xc4   : > { %2141 = vmatprep.subr.bf16.mxu0 %v14945_v0 }
  0xc5   : > { %v637_v52 = vor.u32 %v635_v47, %v633_v43 }
  0xc6   : > { %1094 = vmatmul.mubr.bf16.gmra.mrb[32].mxu0 %v861_v36  ;;  %v626_v36 = vsel %vm14951_vm1, %v621_v32, %v625_v33  ;;  %v10365_v32 = vld [vmem:[%s14936_s1 + $0x178] sm:$0xff]  }
  0xc7   : > { %1101 = vmatprep.mubr.bf16.mxu0 %v865_v46 }
  0xce   : > { %1102 = vmatmul.mubr.bf16.gmra.mrb[36].mxu0 %v863_v42  ;;  %v629_v42 = vor.u32 %v627_v37, %v625_v33  ;;  %v683_v37 = vshrl.u32 %v11064_v35, 16 }
  0xcf   : > { %1109 = vmatprep.mubr.bf16.mxu0 %v867_v51 }
  0xd6   : > { %1110 = vmatmul.mubr.bf16.gmra.mrb[40].mxu0 %v865_v46  ;;  %v634_v46 = vsel %vm14951_vm1, %v629_v42, %v633_v43  ;;  %v691_v43 = vshrl.u32 %v11076_v41, 16 }
  0xd7   : > { %1117 = vmatprep.mubr.bf16.mxu0 %v869_v54 }
  0xde   : > { %1118 = vmatmul.mubr.bf16.gmra.mrb[44].mxu0 %v867_v51  ;;  %v10354_v51 = vld [vmem:[%s14936_s1 + $0x128] sm:$0xff]  }
  0xdf   : > { %1125 = vmatprep.mubr.bf16.mxu0 %v871_v57 }
  0xe6   : > { %1126 = vmatmul.mubr.bf16.gmra.mrb[48].mxu0 %v869_v54 }
  0xe7   : > { %1133 = vmatprep.mubr.bf16.mxu0 %v873_v59 }
  0xee   : > { %1134 = vmatmul.mubr.bf16.gmra.mrb[52].mxu0 %v871_v57 }
  0xef   : > { %1141 = vmatprep.mubr.bf16.mxu0 %v875_v1 }
  0xf6   : > { %1142 = vmatmul.mubr.bf16.gmra.mrb[56].mxu0 %v873_v59  ;;  %v647_v59 = vshll.u32 %v11013_v15, 16 }
  0xf7   : > { %1149 = vmatprep.mubr.bf16.mxu0 %v877_v8 }
  0xfe   : > { %1150 = vmatmul.mubr.bf16.gmra.mrb[60].mxu0 %v875_v1  ;;  %v649_v1 = vrot.slane %v647_v59, 1 }
  0xff   : > { %1157 = vmatprep.mubr.bf16.mxu0 %v879_v12  ;;  %v659_v12 = vshrl.u32 %v11028_v20, 16 }
 0x106   : > { %1158 = vmatmul.mubr.bf16.gmra.mrb[64].mxu0 %v877_v8 }
 0x107   : > { %1165 = vmatprep.mubr.bf16.mxu0 %v878_v9  ;;  %v657_v9 = vrot.slane %v655_v5, 1 }
 0x109   : > { %v661_v16 = vor.u32 %v659_v12, %v657_v9 }
 0x10b   : > { %v666_v18 = vsel %vm14951_vm1, %v661_v16, %v665_v17 }
 0x10e   : > { %1166 = vmatmul.mubr.bf16.gmra.mrb[68].mxu0 %v876_v4  ;;  %v651_v4 = vshrl.u32 %v11013_v15, 16  ;;  %v10359_v15 = vld [vmem:[%s14936_s1 + $0x150] sm:$0xff]  }
 0x10f   : > { %1302 = vmatprep.mubr.bf16.mxu0 %v610_v38  ;;  %v10361_v38 = vld [vmem:[%s14936_s1 + $0x160] sm:$0xff]  }
 0x110   : > { %v653_v8 = vor.u32 %v651_v4, %v649_v1 }
 0x112   : > { %v658_v10 = vsel %vm14951_vm1, %v653_v8, %v657_v9  ;;  %v11228_v8 = vld [vmem:[#allocation2 + $0x10] sm:$0xff]  }
 0x113   : > { %v1589_v12 = vshll.u32 %v11228_v8, 16 }
 0x116   : > { %1303 = vmatmul.mubr.bf16.vlgmr.msra.gmra.mrb[0].mxu0 %v8731_v7  ;;  %v10358_v7 = vld [vmem:[%s14936_s1 + $0x148] sm:$0xff]  }
 0x117   : > { %2142 = vmatpush1.bf16.msra.mxu0 %v10349_v24  ;;  %1310 = vmatprep.mubr.bf16.mxu0 %v618_v26  ;;  %v673_v26 = vrot.slane %v671_v21, 1 }
 0x118   : > { %2143 = vmatprep.subr.bf16.mxu0 %v14945_v0 }
 0x119   : > { %v677_v33 = vor.u32 %v675_v29, %v673_v26  ;;  %v365_v29 = vld [vmem:[%s10845_s21 + $0x98] sm:$0xf] }
 0x11b   : > { %2144 = vmatpush1.bf16.msra.mxu0 %v10350_v31  ;;  %v679_v31 = vshll.u32 %v11064_v35, 16 }
 0x11c   : > { %2145 = vmatprep.subr.bf16.mxu0 %v14945_v0 }
 0x11e   : > { %1311 = vmatmul.mubr.bf16.gmra.mrb[4].mxu0 %v10969_v48  ;;  %v639_v48 = vshll.u32 %v11004_v11, 16  ;;  %v10357_v11 = vld [vmem:[%s14936_s1 + $0x140] sm:$0xff]  }
 0x11f   : > { %1318 = vmatprep.mubr.bf16.mxu0 %v626_v36  ;;  %2146 = vmatpush1.bf16.msra.mxu0 %v10351_v34  ;;  %v681_v34 = vrot.slane %v679_v31, 1  ;;  %v366_v31 = vld [vmem:[%s10845_s21 + $0x9c] sm:$0xf] }
 0x120   : > { %2147 = vmatprep.subr.bf16.mxu0 %v14945_v0  ;;  %v641_v54 = vrot.slane %v639_v48, 1  ;;  %v699_v48 = vshrl.u32 %v11085_v45, 16 }
 0x121   : > { %v682_v36 = vsel %vm14951_vm1, %v677_v33, %v681_v34  ;;  %v406_v33 = vmax.bf16 %v14945_v0, %v365_v29 }
 0x122   : > { %v642_v57 = vsel %vm14951_vm1, %v637_v52, %v641_v54  ;;  %v645_v63 = vor.u32 %v643_v58, %v641_v54 }
 0x123   : > { %2148 = vmatpush1.bf16.msra.mxu0 %v10352_v40  ;;  %v689_v40 = vrot.slane %v687_v39, 1  ;;  %v739_v39 = vshrl.u32 %v11110_v2, 16 }
 0x124   : > { %2149 = vmatprep.subr.bf16.mxu0 %v14945_v0  ;;  %v650_v3 = vsel %vm14951_vm1, %v645_v63, %v649_v1 }
 0x126   : > { %1319 = vmatmul.mubr.bf16.gmra.mrb[8].mxu0 %v10611_v19  ;;  %v667_v19 = vshrl.u32 %v11040_v25, 16 }
 0x127   : > { %1326 = vmatprep.mubr.bf16.mxu0 %v634_v46  ;;  %2150 = vmatpush1.bf16.msra.mxu0 %v10353_v44  ;;  %v695_v44 = vshll.u32 %v11085_v45, 16  ;;  %v693_v46 = vor.u32 %v691_v43, %v689_v40 }
 0x128   : > { %2151 = vmatprep.subr.bf16.mxu0 %v14945_v0  ;;  %v669_v24 = vor.u32 %v667_v19, %v665_v17 }
 0x12b   : > { %2152 = vmatpush1.bf16.msra.mxu0 %v10354_v51 }
 0x12c   : > { %2153 = vmatprep.subr.bf16.mxu0 %v14945_v0 }
 0x12e   : > { %1327 = vmatmul.mubr.bf16.gmra.mrb[12].mxu0 %v10612_v28  ;;  %v674_v28 = vsel %vm14951_vm1, %v669_v24, %v673_v26 }
 0x12f   : > { %1334 = vmatprep.mubr.bf16.mxu0 %v642_v57  ;;  %2154 = vmatpush1.bf16.msra.mxu0 %v10355_v55  ;;  %v707_v55 = vshrl.u32 %v11090_v49, 16 }
 0x130   : > { %2155 = vmatprep.subr.bf16.mxu0 %v14945_v0 }
 0x133   : > { %2156 = vmatpush1.bf16.msra.mxu0 %v10356_v61  ;;  %v715_v61 = vshrl.u32 %v11094_v53, 16 }
 0x134   : > { %2157 = vmatprep.subr.bf16.mxu0 %v14945_v0 }
 0x136   : > { %1335 = vmatmul.mubr.bf16.gmra.mrb[16].mxu0 %v10613_v6  ;;  %v697_v6 = vrot.slane %v695_v44, 1 }
 0x137   : > { %1342 = vmatprep.mubr.bf16.mxu0 %v650_v3  ;;  %2158 = vmatpush1.bf16.msra.mxu0 %v10357_v11  ;;  %v1448_v11 = vld [vmem:[#allocation2 + $0xc] sm:$0xf]  ;;  %v1484_v3 = vld [vmem:[#allocation2 + $0x8] sm:$0xc] }
 0x138   : > { %2159 = vmatprep.subr.bf16.mxu0 %v14945_v0  ;;  %v698_v47 = vsel %vm14951_vm1, %v693_v46, %v697_v6  ;;  %v701_v51 = vor.u32 %v699_v48, %v697_v6  ;;  %v8836_v4 = vcombine.low %v1484_v3, %v1448_v11  ;;  %v1447_v46 = vld [vmem:[#allocation2 + $0x8] sm:$0xe]  ;;  %v10401_v3 = vld [vmem:[%s14936_s1 + $0x210] sm:$0xff]  }
 0x13a   : > { %v1584_v9 = vshll.u32 %v8836_v4, 16 }
 0x13b   : > { %2160 = vmatpush1.bf16.msra.mxu0 %v10358_v7  ;;  %v727_v7 = vshll.u32 %v11102_v50, 16 }
 0x13c   : > { %2161 = vmatprep.subr.bf16.mxu0 %v14945_v0  ;;  %v1586_v16 = vrot.slane %v1584_v9, 1 }
 0x13e   : > { %1343 = vmatmul.mubr.bf16.gmra.mrb[20].mxu0 %v10614_v14  ;;  %v735_v14 = vshll.u32 %v11110_v2, 16 }
 0x13f   : > { %1350 = vmatprep.mubr.bf16.mxu0 %v658_v10  ;;  %2162 = vmatpush1.bf16.msra.mxu0 %v10359_v15  ;;  %v11231_v10 = vld [vmem:[#allocation2 + $0x18] sm:$0xff]  }
 0x140   : > { %2163 = vmatprep.subr.bf16.mxu0 %v14945_v0  ;;  %v737_v21 = vrot.slane %v735_v14, 1 }
 0x142   : > { %v741_v2 = vor.u32 %v739_v39, %v737_v21 }
 0x143   : > { %2164 = vmatpush1.bf16.msra.mxu0 %v10360_v60  ;;  %v1582_v60 = vshrl.u32 %v8836_v4, 16 }
 0x144   : > { %2165 = vmatprep.subr.bf16.mxu0 %v14945_v0 }
 0x146   : > { %1351 = vmatmul.mubr.bf16.gmra.mrb[24].mxu0 %v10615_v22  ;;  %v1587_v22 = vor.u32 %v1586_v16, %v1582_v60 }
 0x147   : > { %1358 = vmatprep.mubr.bf16.mxu0 %v666_v18  ;;  %2166 = vmatpush1.bf16.msra.mxu0 %v10361_v38  ;;  %v1593_v38 = vshrl.u32 %v11228_v8, 16  ;;  %v1597_v18 = vshll.u32 %v11231_v10, 16  ;;  %v10402_v8 = vld [vmem:[%s14936_s1 + $0x218] sm:$0xff]  }
 0x148   : > { %2167 = vmatprep.subr.bf16.mxu0 %v14945_v0 }
 0x149   : > { %v1599_v26 = vrot.slane %v1597_v18, 1 }
 0x14b   : > { %2168 = vmatpush1.bf16.msra.mxu0 %v10362_v23  ;;  %v11242_v23 = vld [vmem:[#allocation2 + $0x20] sm:$0xff]  }
 0x14c   : > { %2169 = vmatprep.subr.bf16.mxu0 %v14945_v0 }
 0x14e   : > { %1359 = vmatmul.mubr.bf16.gmra.mrb[28].mxu0 %v11028_v20  ;;  %v685_v20 = vor.u32 %v683_v37, %v681_v34  ;;  %v407_v34 = vmax.bf16 %v14945_v0, %v366_v31 }
 0x14f   : > { %1366 = vmatprep.mubr.bf16.mxu0 %v674_v28  ;;  %2170 = vmatpush1.bf16.msra.mxu0 %v10363_v27 }
 0x150   : > { %2171 = vmatprep.subr.bf16.mxu0 %v14945_v0  ;;  %v690_v42 = vsel %vm14951_vm1, %v685_v20, %v689_v40  ;;  %v9489_v37 = vcombine.low %v406_v33, %v407_v34 }
 0x152   : > { %9490 = vst [vmem:[#allocation2 + $0x98] sm:$0xff] %v9489_v37  }
 0x153   : > { %2172 = vmatpush1.bf16.msra.mxu0 %v10365_v32  ;;  %v1605_v32 = vshll.u32 %v11242_v23, 16 }
 0x154   : > { %2879 = vmatprep.subr.bf16.mxu0 %v14945_v0 }
 0x156   : > { %1367 = vmatmul.mubr.bf16.gmra.mrb[32].mxu0 %v11040_v25  ;;  %v703_v25 = vshll.u32 %v11090_v49, 16 }
 0x157   : > { %1374 = vmatprep.mubr.bf16.mxu0 %v682_v36 }
 0x158   : > { %v705_v52 = vrot.slane %v703_v25, 1  ;;  %v8817_v25 = vcombine.low %v1447_v46, %v1448_v11 }
 0x15a   : > { %v706_v54 = vsel %vm14951_vm1, %v701_v51, %v705_v52  ;;  %v709_v57 = vor.u32 %v707_v55, %v705_v52 }
 0x15e   : > { %1375 = vmatmul.mubr.bf16.gmra.mrb[36].mxu0 %v11052_v30  ;;  %v711_v30 = vshll.u32 %v11094_v53, 16 }
 0x15f   : > { %1382 = vmatprep.mubr.bf16.mxu0 %v690_v42  ;;  %v10397_v42 = vld [vmem:[%s14936_s1 + $0x200] sm:$0xff]  }
 0x160   : > { %v713_v58 = vrot.slane %v711_v30, 1  ;;  %9586 = vmatprep.subr.bf16.mxu1 %v10397_v42  ;;  %v1609_v30 = vshrl.u32 %v11242_v23, 16  ;;  %v11342_v23 = vld [vmem:[#allocation2 + $0x18] sm:$0xff]  }
 0x161   : > { %9587 = vmatpush3.bf16.msra.mxu1 %v10397_v42 }
 0x162   : > { %v714_v59 = vsel %vm14951_vm1, %v709_v57, %v713_v58  ;;  %v717_v63 = vor.u32 %v715_v61, %v713_v58  ;;  %v11271_v58 = vld [vmem:[#allocation2 + $0x30] sm:$0xff]   ;;  %v10398_v61 = vld [vmem:[%s14936_s1 + $0x208] sm:$0xff]  }
 0x163   : > { %9588 = vmatprep.subr.bf16.mxu1 %v10398_v61  ;;  %v1621_v9 = vshll.u32 %v11271_v58, 16  ;;  %v1625_v31 = vshrl.u32 %v11271_v58, 16 }
 0x165   : > { %9589 = vmatpush3.bf16.msra.mxu1 %v10398_v61 }
 0x166   : > { %1383 = vmatmul.mubr.bf16.gmra.mrb[40].mxu0 %v11064_v35  ;;  %v719_v35 = vshll.u32 %v11098_v56, 16  ;;  %9590 = vmatprep.subr.bf16.mxu1 %v10401_v3 }
 0x167   : > { %1390 = vmatprep.mubr.bf16.mxu0 %v698_v47  ;;  %v1607_v47 = vrot.slane %v1605_v32, 1 }
 0x168   : > { %v721_v1 = vrot.slane %v719_v35, 1  ;;  %v1766_v35 = vshrl.u32 %v8817_v25, 16 }
 0x169   : > { %9591 = vmatpush3.bf16.msra.mxu1 %v10401_v3 }
 0x16a   : > { %v722_v5 = vsel %vm14951_vm1, %v717_v63, %v721_v1  ;;  %v1769_v63 = vshll.u32 %v8817_v25, 16  ;;  %v1768_v14 = vrot.slane %v1766_v35, 1  ;;  %9592 = vmatprep.subr.bf16.mxu1 %v10402_v8  ;;  %v10407_v25 = vld [vmem:[%s14936_s1 + $0x230] sm:$0xff]  }
 0x16c   : > { %v1771_v60 = vrot.slane %v1769_v63, 2 }
 0x16d   : > { %9593 = vmatpush3.bf16.msra.mxu1 %v10402_v8  ;;  %v10376_v8 = vld [vmem:[%s14936_s1 + $0x198] sm:$0xff]  }
 0x16e   : > { %1391 = vmatmul.mubr.bf16.gmra.mrb[44].mxu0 %v11076_v41  ;;  %v723_v41 = vshrl.u32 %v11098_v56, 16 }
 0x16f   : > { %1398 = vmatprep.mubr.bf16.mxu0 %v706_v54 }
 0x170   : > { %v725_v15 = vor.u32 %v723_v41, %v721_v1 }
 0x176   : > { %1399 = vmatmul.mubr.bf16.gmra.mrb[48].mxu0 %v11085_v45  ;;  %v729_v45 = vrot.slane %v727_v7, 1 }
 0x177   : > { %1406 = vmatprep.mubr.bf16.mxu0 %v714_v59  ;;  %v485_v59 = vld [vmem:[#allocation2 + $0x8c] sm:$0x7] }
 0x178   : > { %v730_v17 = vsel %vm14951_vm1, %v725_v15, %v729_v45  ;;  %v733_v19 = vor.u32 %v731_v13, %v729_v45  ;;  %v8748_v15 = vcombine.low %v11106_v62, %v485_v59  ;;  %v1773_v45 = vrot.slane %v1593_v38, 1  ;;  %v2355_v59 = vld [vmem:[#allocation2 + $0x14] sm:$0xf] }
 0x179   : > { %v1774_v13 = vrot.slane %v1589_v12, 2  ;;  %v1623_v62 = vrot.slane %v1621_v9, 1 }
 0x17a   : > { %v738_v27 = vsel %vm14951_vm1, %v733_v19, %v737_v21 }
 0x17b   : > { %v1627_v46 = vor.u32 %v1625_v31, %v1623_v62 }
 0x17e   : > { %1407 = vmatmul.mubr.bf16.gmra.mrb[52].mxu0 %v11090_v49  ;;  %v1591_v49 = vrot.slane %v1589_v12, 1  ;;  %v1772_v12 = vor.u32 %v1771_v60, %v1768_v14 }
 0x17f   : > { %1414 = vmatprep.mubr.bf16.mxu0 %v722_v5 }
 0x180   : > { %v1595_v24 = vor.u32 %v1593_v38, %v1591_v49  ;;  %v1592_v28 = vsel %vm14951_vm1, %v1587_v22, %v1591_v49  ;;  %v11297_v22 = vld [vmem:[#allocation2 + $0x38] sm:$0xff]   ;;  %v1775_v38 = vor.u32 %v1774_v13, %v1773_v45 }
 0x181   : > { %v1778_v20 = vshrl.u32 %v1592_v28, 16  ;;  %v1781_v40 = vshll.u32 %v1592_v28, 16  ;;  %v1629_v33 = vshll.u32 %v11297_v22, 16 }
 0x182   : > { %v1600_v36 = vsel %vm14951_vm1, %v1595_v24, %v1599_v26  ;;  %v1776_v34 = vsel %vm14948_vm2, %v1772_v12, %v1775_v38 }
 0x183   : > { %v1786_v43 = vshrl.u32 %v1600_v36, 16  ;;  %v1789_v44 = vshll.u32 %v1600_v36, 16  ;;  %v1780_v48 = vrot.slane %v1778_v20, 1  ;;  %v1783_v51 = vrot.slane %v1781_v40, 2  ;;  %v10370_v36 = vld [vmem:[%s14936_s1 + $0x180] sm:$0xff]  }
 0x184   : > { %v1795_v20 = vrot.slane %v1597_v18, 2  ;;  %v10372_v18 = vld [vmem:[%s14936_s1 + $0x188] sm:$0xff]  }
 0x185   : > { %v1788_v52 = vrot.slane %v1786_v43, 1  ;;  %v1791_v54 = vrot.slane %v1789_v44, 2  ;;  %v1784_v4 = vor.u32 %v1783_v51, %v1780_v48  ;;  %v1808_v48 = vrot.slane %v1605_v32, 2 }
 0x186   : > { %1415 = vmatmul.mubr.bf16.gmra.mrb[56].mxu0 %v11094_v53  ;;  %v1601_v53 = vshrl.u32 %v11231_v10, 16  ;;  %v1633_v32 = vshrl.u32 %v11297_v22, 16 }
 0x187   : > { %1422 = vmatprep.mubr.bf16.mxu0 %v730_v17  ;;  %v1792_v5 = vor.u32 %v1791_v54, %v1788_v52 }
 0x188   : > { %v1603_v6 = vor.u32 %v1601_v53, %v1599_v26  ;;  %v10405_v26 = vld [vmem:[%s14936_s1 + $0x220] sm:$0xff]   ;;  %v1794_v39 = vrot.slane %v1601_v53, 1  ;;  %v10406_v53 = vld [vmem:[%s14936_s1 + $0x228] sm:$0xff]  }
 0x189   : > { %v1793_v49 = vsel %vm14948_vm2, %v1784_v4, %v1792_v5  ;;  %9594 = vmatprep.subr.bf16.mxu1 %v10405_v26  ;;  %v11352_v4 = vld [vmem:[#allocation2 + $0x20] sm:$0xff]  }
 0x18a   : > { %v1608_v55 = vsel %vm14951_vm1, %v1603_v6, %v1607_v47  ;;  %v1631_v6 = vrot.slane %v1629_v33, 1  ;;  %9595 = vmatpush3.bf16.msra.mxu1 %v10405_v26  ;;  %v1796_v10 = vor.u32 %v1795_v20, %v1794_v39  ;;  %v2504_v26 = vshll.u32 %v11352_v4, 16 }
 0x18b   : > { %v1799_v1 = vshrl.u32 %v1608_v55, 16  ;;  %v1802_v11 = vshll.u32 %v1608_v55, 16  ;;  %9596 = vmatprep.subr.bf16.mxu1 %v10406_v53  ;;  %v2354_v55 = vld [vmem:[#allocation2 + $0x10] sm:$0xc] }
 0x18c   : > { %v11340_v61 = vsel %vm14951_vm1, %v1627_v46, %v1631_v6  ;;  %v1797_v63 = vsel %vm14948_vm2, %v1775_v38, %v1796_v10  ;;  %v2506_v20 = vrot.slane %v2504_v26, 1 }
 0x18d   : > { %v1801_v16 = vrot.slane %v1799_v1, 1  ;;  %v1804_v17 = vrot.slane %v1802_v11, 2  ;;  %v10374_v11 = vld [vmem:[%s14936_s1 + $0x190] sm:$0xff]   ;;  %v1841_v45 = vshll.u32 %v11340_v61, 16 }
 0x18e   : > { %1423 = vmatmul.mubr.bf16.gmra.mrb[60].mxu0 %v11098_v56  ;;  %v11266_v56 = vld [vmem:[#allocation2 + $0x28] sm:$0xff]   ;;  %9597 = vmatpush3.bf16.msra.mxu1 %v10406_v53 }
 0x18f   : > { %1430 = vmatprep.mubr.bf16.mxu0 %v738_v27  ;;  %v1613_v57 = vshll.u32 %v11266_v56, 16  ;;  %v1617_v7 = vshrl.u32 %v11266_v56, 16  ;;  %v1805_v24 = vor.u32 %v1804_v17, %v1801_v16  ;;  %9598 = vmatprep.subr.bf16.mxu1 %v10407_v25  ;;  %v2500_v16 = vshrl.u32 %v11342_v23, 16 }
 0x190   : > { %v1635_v17 = vor.u32 %v1633_v32, %v1631_v6  ;;  %v10378_v6 = vld [vmem:[%s14936_s1 + $0x1a0] sm:$0xff]  }
 0x191   : > { %v1615_v41 = vrot.slane %v1613_v57, 1  ;;  %v1806_v37 = vsel %vm14948_vm2, %v1792_v5, %v1805_v24  ;;  %v2496_v5 = vshll.u32 %v11342_v23, 16  ;;  %v1821_v46 = vrot.slane %v1613_v57, 2 }
 0x192   : > { %9599 = vmatpush3.bf16.msra.mxu1 %v10407_v25  ;;  %v1843_v57 = vrot.slane %v1841_v45, 2  ;;  %v1834_v45 = vrot.slane %v1621_v9, 2 }
 0x193   : > { %v1619_v21 = vor.u32 %v1617_v7, %v1615_v41  ;;  %v2498_v60 = vrot.slane %v2496_v5, 1  ;;  %v2679_v5 = vrot.slane %v11352_v4, 2 }
 0x195   : > { %v1624_v29 = vsel %vm14951_vm1, %v1619_v21, %v1623_v62  ;;  %v3092_v21 = vld [vmem:[#allocation2 + $0x10] sm:$0x8]  ;;  %v3115_v62 = vrot.slane %v11342_v23, 3 }
 0x196   : > { %1431 = vmatmul.mubr.bf16.gmra.mrb[64].mxu0 %v11102_v50  ;;  %v1611_v50 = vor.u32 %v1609_v30, %v1607_v47  ;;  %v1825_v43 = vshrl.u32 %v1624_v29, 16  ;;  %v1828_v44 = vshll.u32 %v1624_v29, 16  ;;  %v11321_v47 = vld [vmem:[#allocation2 + $0x40] sm:$0xff]   ;;  %v8969_v12 = vcombine.low %v3092_v21, %v2355_v59 }
 0x197   : > { %1438 = vmatprep.mubr.bf16.mxu0 %v741_v2  ;;  %v1807_v2 = vrot.slane %v1609_v30, 1  ;;  %v8885_v30 = vcombine.low %v2354_v55, %v2355_v59  ;;  %v1637_v35 = vshll.u32 %v11321_v47, 16  ;;  %v2674_v29 = vrot.slane %v11342_v23, 2  ;;  %v10380_v23 = vld [vmem:[%s14936_s1 + $0x1a8] sm:$0xff]  }
 0x198   : > { %v1616_v19 = vsel %vm14951_vm1, %v1611_v50, %v1615_v41  ;;  %v1827_v52 = vrot.slane %v1825_v43, 1  ;;  %v1830_v54 = vrot.slane %v1828_v44, 2  ;;  %v1641_v25 = vshrl.u32 %v11321_v47, 16 }
 0x199   : > { %v1812_v27 = vshrl.u32 %v1616_v19, 16  ;;  %v1815_v28 = vshll.u32 %v1616_v19, 16  ;;  %v11347_v1 = vor.u32 %v1808_v48, %v1807_v2  ;;  %v2491_v3 = vshll.u32 %v8885_v30, 16  ;;  %v10409_v19 = vld [vmem:[%s14936_s1 + $0x238] sm:$0xff]  }
 0x19a   : > { %v11358_v41 = vor.u32 %v1830_v54, %v1827_v52  ;;  %v2489_v13 = vshrl.u32 %v8885_v30, 16  ;;  %9600 = vmatprep.subr.bf16.mxu1 %v10409_v19  ;;  %v2508_v54 = vshrl.u32 %v11352_v4, 16 }
 0x19b   : > { %v1814_v40 = vrot.slane %v1812_v27, 1  ;;  %v1817_v42 = vrot.slane %v1815_v28, 2  ;;  %v2493_v14 = vrot.slane %v2491_v3, 1  ;;  %v3117_v27 = vrot.slane %v11352_v4, 3  ;;  %9601 = vmatpush3.bf16.msra.mxu1 %v10409_v19 }
 0x19c   : > { %v2673_v28 = vrot.slane %v8885_v30, 2  ;;  %5040 = vmatprep.subr.bf16.mxu1 %v14945_v0  ;;  %v1846_v4 = vrot.slane %v1633_v32, 1 }
 0x19d   : > { %v11337_v51 = vor.u32 %v1817_v42, %v1814_v40  ;;  %v2494_v38 = vor.u32 %v2493_v14, %v2489_v13  ;;  %v1820_v40 = vrot.slane %v1617_v7, 1  ;;  %v3118_v43 = vsel %vm3113_vm3, %v3115_v62, %v3117_v27 }
 0x19e   : > { %1439 = vmatmul.mubr.bf16.gmra.mrb[68].mxu0 %v8748_v15  ;;  %v1838_v15 = vshrl.u32 %v11340_v61, 16  ;;  %v11391_v44 = vsel %vm2672_vm4, %v2673_v28, %v2674_v29 }
 0x19f   : > { %2173 = vmatprep.mubr.bf16.mxu0 %v1793_v49  ;;  %v1819_v50 = vsel %vm14948_vm2, %v1805_v24, %v11337_v51  ;;  %v11367_v49 = vrot.slane %v1637_v35, 1  ;;  %v2502_v24 = vor.u32 %v2500_v16, %v2498_v60  ;;  %v2499_v39 = vsel %vm14951_vm1, %v2494_v38, %v2498_v60 }
 0x1a0   : > { %v2676_v42 = vrot.slane %v2499_v39, 2  ;;  %v1832_v2 = vsel %vm14948_vm2, %v11337_v51, %v11358_v41  ;;  %v1840_v56 = vrot.slane %v1838_v15, 1  ;;  %v1822_v30 = vor.u32 %v1821_v46, %v1820_v40  ;;  %v10385_v39 = vld [vmem:[%s14936_s1 + $0x1b8] sm:$0xff]  }
 0x1a1   : > { %v1640_v7 = vsel %vm14951_vm1, %v1635_v17, %v11367_v49  ;;  %v1833_v15 = vrot.slane %v1625_v31, 1  ;;  %v1643_v13 = vor.u32 %v1641_v25, %v11367_v49  ;;  %v11434_v16 = vsel %vm2672_vm4, %v2674_v29, %v2679_v5  ;;  %v10383_v49 = vld [vmem:[%s14936_s1 + $0x1b0] sm:$0xff]  }
 0x1a2   : > { %v1851_v59 = vshrl.u32 %v1640_v7, 16  ;;  %v1854_v61 = vshll.u32 %v1640_v7, 16  ;;  %v1823_v9 = vsel %vm14948_vm2, %v11347_v1, %v1822_v30 }
 0x1a3   : > { %v11451_v38 = vor.u32 %v1834_v45, %v1833_v15  ;;  %v10389_v15 = vld [vmem:[%s14936_s1 + $0x1c8] sm:$0xff]  }
 0x1a4   : > { %v1853_v17 = vrot.slane %v1851_v59, 1  ;;  %v1856_v19 = vrot.slane %v1854_v61, 2 }
 0x1a6   : > { %2174 = vmatmul.mubr.bf16.vlgmr.msra.gmra.mrb[0].mxu0 %v1776_v34  ;;  %v1810_v34 = vsel %vm14948_vm2, %v1796_v10, %v11347_v1  ;;  %v2507_v10 = vsel %vm14951_vm1, %v2502_v24, %v2506_v20  ;;  %v11456_v28 = vor.u32 %v1856_v19, %v1853_v17  ;;  %v1859_v17 = vrot.slane %v1641_v25, 1 }
 0x1a7   : > { %2880 = vmatpush1.bf16.msra.mxu0 %v10370_v36  ;;  %2181 = vmatprep.mubr.bf16.mxu0 %v1806_v37  ;;  %v11382_v36 = vld [vmem:[#allocation2 + $0x48] sm:$0xff]   ;;  %v3114_v37 = vrot.slane %v8969_v12, 3  ;;  %v2677_v48 = vrot.slane %v2507_v10, 2  ;;  %v1860_v19 = vrot.slane %v1637_v35, 2 }
 0x1a8   : > { %2881 = vmatprep.subr.bf16.mxu0 %v14945_v0  ;;  %v1645_v52 = vshll.u32 %v11382_v36, 16  ;;  %v1649_v31 = vshrl.u32 %v11382_v36, 16 }
 0x1a9   : > { %v3116_v53 = vsel %vm3113_vm3, %v3114_v37, %v3115_v62  ;;  %v11414_v51 = vsel %vm2672_vm4, %v2676_v42, %v2677_v48  ;;  %v11443_v62 = vld [vmem:[#allocation2 + $0x30] sm:$0xff]  }
 0x1aa   : > { %9602 = vmatprep.mubr.bf16.mxu1 %v3116_v53  ;;  %v1647_v14 = vrot.slane %v1645_v52, 1  ;;  %v2520_v26 = vshll.u32 %v11443_v62, 16  ;;  %v11475_v53 = vld [vmem:[#allocation2 + $0x58] sm:$0xff]  }
 0x1ab   : > { %2882 = vmatpush1.bf16.msra.mxu0 %v10372_v18  ;;  %v11403_v18 = vld [vmem:[#allocation2 + $0x28] sm:$0xff]   ;;  %9603 = vmatmul.mubr.bf16.vlgmr.msra.gmra.mrb[0].mxu1 %v3118_v43  ;;  %v1665_v25 = vshrl.u32 %v11475_v53, 16 }
 0x1ac   : > { %2883 = vmatprep.subr.bf16.mxu0 %v14945_v0  ;;  %v2512_v55 = vshll.u32 %v11403_v18, 16  ;;  %v1648_v1 = vsel %vm14951_vm1, %v1643_v13, %v1647_v14  ;;  %v2516_v24 = vshrl.u32 %v11403_v18, 16  ;;  %v1651_v29 = vor.u32 %v1649_v31, %v1647_v14 }
 0x1ad   : > { %v2522_v40 = vrot.slane %v2520_v26, 1  ;;  %v2683_v42 = vrot.slane %v11403_v18, 2  ;;  %v1864_v43 = vshrl.u32 %v1648_v1, 16  ;;  %v1867_v46 = vshll.u32 %v1648_v1, 16 }
 0x1ae   : > { %2182 = vmatmul.mubr.bf16.gmra.mrb[4].mxu0 %v1797_v63  ;;  %v11419_v63 = vld [vmem:[#allocation2 + $0x50] sm:$0xff]   ;;  %v2514_v3 = vrot.slane %v2512_v55, 1  ;;  %v2687_v14 = vrot.slane %v11443_v62, 2 }
 0x1af   : > { %2189 = vmatprep.mubr.bf16.mxu0 %v1819_v50  ;;  %2884 = vmatpush1.bf16.msra.mxu0 %v10374_v11  ;;  %v2510_v11 = vor.u32 %v2508_v54, %v2506_v20  ;;  %v1844_v50 = vor.u32 %v1843_v57, %v1840_v56  ;;  %v1653_v21 = vshll.u32 %v11419_v63, 16  ;;  %v1836_v56 = vsel %vm14948_vm2, %v1822_v30, %v11451_v38  ;;  %v11491_v54 = vld [vmem:[#allocation2 + $0x38] sm:$0xff]  }
 0x1b0   : > { %2885 = vmatprep.subr.bf16.mxu0 %v14945_v0  ;;  %v2518_v20 = vor.u32 %v2516_v24, %v2514_v3  ;;  %v1866_v59 = vrot.slane %v1864_v43, 1  ;;  %v1869_v61 = vrot.slane %v1867_v46, 2  ;;  %v1657_v22 = vshrl.u32 %v11419_v63, 16 }
 0x1b1   : > { %v2515_v60 = vsel %vm14951_vm1, %v2510_v11, %v2514_v3  ;;  %v1655_v37 = vrot.slane %v1653_v21, 1  ;;  %v1858_v55 = vsel %vm14948_vm2, %v1844_v50, %v11456_v28  ;;  %v2524_v30 = vshrl.u32 %v11443_v62, 16 }
 0x1b2   : > { %v2681_v58 = vrot.slane %v2515_v60, 2  ;;  %v2523_v10 = vsel %vm14951_vm1, %v2518_v20, %v2522_v40  ;;  %v1870_v60 = vor.u32 %v1869_v61, %v1866_v59  ;;  %v11537_v20 = vor.u32 %v1860_v19, %v1859_v17  ;;  %v11561_v59 = vld [vmem:[#allocation2 + $0x68] sm:$0xff]  }
 0x1b3   : > { %2886 = vmatpush1.bf16.msra.mxu0 %v10376_v8  ;;  %v1845_v8 = vsel %vm14948_vm2, %v11358_v41, %v1844_v50  ;;  %v3119_v41 = vrot.slane %v11403_v18, 3  ;;  %v2685_v18 = vrot.slane %v2523_v10, 2  ;;  %v1656_v57 = vsel %vm14951_vm1, %v1651_v29, %v1655_v37  ;;  %v11503_v50 = vld [vmem:[#allocation2 + $0x60] sm:$0xff]   ;;  %v10391_v29 = vld [vmem:[%s14936_s1 + $0x1d0] sm:$0xff]   ;;  %v10393_v10 = vld [vmem:[%s14936_s1 + $0x1d8] sm:$0xff]  }
 0x1b4   : > { %2887 = vmatprep.subr.bf16.mxu0 %v14945_v0  ;;  %v11449_v12 = vsel %vm2672_vm4, %v2677_v48, %v2681_v58  ;;  %v10387_v48 = vld [vmem:[%s14936_s1 + $0x1c0] sm:$0xff]   ;;  %v1877_v11 = vshrl.u32 %v1656_v57, 16  ;;  %v1880_v3 = vshll.u32 %v1656_v57, 16  ;;  %v2526_v45 = vor.u32 %v2524_v30, %v2522_v40 }
 0x1b5   : > { %v11497_v32 = vsel %vm2672_vm4, %v2681_v58, %v2685_v18  ;;  %v1659_v58 = vor.u32 %v1657_v22, %v1655_v37  ;;  %v1669_v35 = vshll.u32 %v11503_v50, 16  ;;  %v1871_v37 = vsel %vm14948_vm2, %v11456_v28, %v1870_v60 }
 0x1b6   : > { %2190 = vmatmul.mubr.bf16.gmra.mrb[8].mxu0 %v1810_v34  ;;  %v3121_v34 = vrot.slane %v11443_v62, 3  ;;  %v1879_v1 = vrot.slane %v1877_v11, 1  ;;  %v1882_v24 = vrot.slane %v1880_v3, 2  ;;  %v2532_v40 = vshrl.u32 %v11491_v54, 16  ;;  %v10395_v3 = vld [vmem:[%s14936_s1 + $0x1e0] sm:$0xff]  }
 0x1b7   : > { %2197 = vmatprep.mubr.bf16.mxu0 %v1832_v2  ;;  %2888 = vmatpush1.bf16.msra.mxu0 %v10378_v6  ;;  %v3120_v6 = vsel %vm3113_vm3, %v3117_v27, %v3119_v41  ;;  %v11479_v2 = vsel %vm2672_vm4, %v2679_v5, %v2683_v42  ;;  %v1847_v27 = vrot.slane %v1629_v33, 2  ;;  %v1661_v33 = vshll.u32 %v11475_v53, 16 }
 0x1b8   : > { %2889 = vmatprep.subr.bf16.mxu0 %v14945_v0  ;;  %v3122_v7 = vsel %vm3113_vm3, %v3119_v41, %v3121_v34  ;;  %9606 = vmatprep.mubr.bf16.mxu1 %v3120_v6  ;;  %v11529_v41 = vld [vmem:[#allocation2 + $0x40] sm:$0xff]   ;;  %v11542_v43 = vor.u32 %v1882_v24, %v1879_v1  ;;  %v3123_v28 = vrot.slane %v11491_v54, 3  ;;  %v1872_v62 = vrot.slane %v1649_v31, 1 }
 0x1b9   : > { %9607 = vmatmul.mubr.bf16.gmra.mrb[4].mxu1 %v3122_v7  ;;  %v1848_v5 = vor.u32 %v1847_v27, %v1846_v4  ;;  %v3125_v6 = vrot.slane %v11529_v41, 3  ;;  %v1671_v7 = vrot.slane %v1669_v35, 1  ;;  %v2691_v4 = vrot.slane %v11491_v54, 2 }
 0x1ba   : > { %v1673_v36 = vshrl.u32 %v11503_v50, 16 }
 0x1bb   : > { %2890 = vmatpush1.bf16.msra.mxu0 %v10380_v23  ;;  %v2528_v23 = vshll.u32 %v11491_v54, 16  ;;  %v1849_v47 = vsel %vm14948_vm2, %v11451_v38, %v1848_v5  ;;  %v11565_v30 = vsel %vm2672_vm4, %v2687_v14, %v2691_v4 }
 0x1bc   : > { %2891 = vmatprep.subr.bf16.mxu0 %v14945_v0 }
 0x1bd   : > { %v2530_v13 = vrot.slane %v2528_v23, 1  ;;  %v1862_v23 = vsel %vm14948_vm2, %v1848_v5, %v11537_v20 }
 0x1be   : > { %2198 = vmatmul.mubr.bf16.gmra.mrb[12].mxu0 %v1823_v9  ;;  %v1663_v9 = vrot.slane %v1661_v33, 1 }
 0x1bf   : > { %2205 = vmatprep.mubr.bf16.mxu0 %v1845_v8  ;;  %2892 = vmatpush1.bf16.msra.mxu0 %v10383_v49  ;;  %v2531_v49 = vsel %vm14951_vm1, %v2526_v45, %v2530_v13  ;;  %v11520_v8 = vsel %vm2672_vm4, %v2683_v42, %v2687_v14  ;;  %v2536_v42 = vshll.u32 %v11529_v41, 16  ;;  %v1884_v45 = vsel %vm14948_vm2, %v1870_v60, %v11542_v43 }
 0x1c0   : > { %2893 = vmatprep.subr.bf16.mxu0 %v14945_v0  ;;  %v2689_v26 = vrot.slane %v2531_v49, 2  ;;  %v1664_v38 = vsel %vm14951_vm1, %v1659_v58, %v1663_v9  ;;  %v1667_v46 = vor.u32 %v1665_v25, %v1663_v9  ;;  %v2540_v14 = vshrl.u32 %v11529_v41, 16  ;;  %v11589_v9 = vld [vmem:[#allocation2 + $0x70] sm:$0xff]   ;;  %v10399_v49 = vld [vmem:[%s14936_s1 + $0x1e8] sm:$0xff]  }
 0x1c1   : > { %v1890_v27 = vshrl.u32 %v1664_v38, 16  ;;  %v1893_v57 = vshll.u32 %v1664_v38, 16  ;;  %v1675_v38 = vor.u32 %v1673_v36, %v1671_v7 }
 0x1c2   : > { %v1672_v11 = vsel %vm14951_vm1, %v1667_v46, %v1671_v7  ;;  %v10404_v7 = vld [vmem:[%s14936_s1 + $0x1f0] sm:$0xff]  }
 0x1c3   : > { %2894 = vmatpush1.bf16.msra.mxu0 %v10385_v39  ;;  %v11535_v39 = vsel %vm2672_vm4, %v2685_v18, %v2689_v26  ;;  %v2534_v18 = vor.u32 %v2532_v40, %v2530_v13  ;;  %v1892_v13 = vrot.slane %v1890_v27, 1  ;;  %v1895_v5 = vrot.slane %v1893_v57, 2 }
 0x1c4   : > { %2895 = vmatprep.subr.bf16.mxu0 %v14945_v0  ;;  %v1903_v19 = vshrl.u32 %v1672_v11, 16  ;;  %v1906_v58 = vshll.u32 %v1672_v11, 16 }
 0x1c6   : > { %2206 = vmatmul.mubr.bf16.gmra.mrb[16].mxu0 %v1836_v56  ;;  %v2538_v56 = vrot.slane %v2536_v42, 1 }
 0x1c7   : > { %2213 = vmatprep.mubr.bf16.mxu0 %v1858_v55  ;;  %2896 = vmatpush1.bf16.msra.mxu0 %v10387_v48  ;;  %v3124_v48 = vsel %vm3113_vm3, %v3121_v34, %v3123_v28  ;;  %v3126_v55 = vsel %vm3113_vm3, %v3123_v28, %v3125_v6  ;;  %v1873_v34 = vrot.slane %v1645_v52, 2  ;;  %v1677_v52 = vshll.u32 %v11561_v59, 16 }
 0x1c8   : > { %2897 = vmatprep.subr.bf16.mxu0 %v14945_v0  ;;  %9610 = vmatprep.mubr.bf16.mxu1 %v3124_v48  ;;  %v2539_v61 = vsel %vm14951_vm1, %v2534_v18, %v2538_v56  ;;  %v2542_v1 = vor.u32 %v2540_v14, %v2538_v56  ;;  %v1905_v28 = vrot.slane %v1903_v19, 1  ;;  %v11615_v56 = vld [vmem:[#allocation2 + $0x50] sm:$0xff]   ;;  %v11643_v19 = vld [vmem:[#allocation2 + $0x78] sm:$0xff]  }
 0x1c9   : > { %9611 = vmatmul.mubr.bf16.gmra.mrb[8].mxu1 %v3126_v55  ;;  %v2693_v54 = vrot.slane %v2539_v61, 2  ;;  %v1874_v60 = vor.u32 %v1873_v34, %v1872_v62  ;;  %v1679_v40 = vrot.slane %v1677_v52, 1  ;;  %v2552_v55 = vshll.u32 %v11615_v56, 16  ;;  %v10408_v34 = vld [vmem:[%s14936_s1 + $0x1f8] sm:$0xff]  }
 0x1cb   : > { %2898 = vmatpush1.bf16.msra.mxu0 %v10389_v15  ;;  %v11577_v15 = vld [vmem:[#allocation2 + $0x48] sm:$0xff]   ;;  %v11583_v31 = vsel %vm2672_vm4, %v2689_v26, %v2693_v54  ;;  %v2695_v26 = vrot.slane %v11529_v41, 2  ;;  %v1875_v63 = vsel %vm14948_vm2, %v11537_v20, %v1874_v60  ;;  %v1680_v20 = vsel %vm14951_vm1, %v1675_v38, %v1679_v40 }
 0x1cc   : > { %2899 = vmatprep.subr.bf16.mxu0 %v14945_v0  ;;  %v2544_v17 = vshll.u32 %v11577_v15, 16  ;;  %v2548_v48 = vshrl.u32 %v11577_v15, 16  ;;  %v3127_v62 = vrot.slane %v11577_v15, 3  ;;  %v1898_v41 = vrot.slane %v1665_v25, 1 }
 0x1cd   : > { %v11606_v46 = vsel %vm2672_vm4, %v2691_v4, %v2695_v26  ;;  %v2556_v25 = vshrl.u32 %v11615_v56, 16 }
 0x1ce   : > { %2214 = vmatmul.mubr.bf16.gmra.mrb[20].mxu0 %v1849_v47  ;;  %v2546_v24 = vrot.slane %v2544_v17, 1  ;;  %v1896_v47 = vor.u32 %v1895_v5, %v1892_v13  ;;  %v1916_v13 = vshrl.u32 %v1680_v20, 16  ;;  %v1919_v5 = vshll.u32 %v1680_v20, 16 }
 0x1cf   : > { %2221 = vmatprep.mubr.bf16.mxu0 %v1871_v37  ;;  %2900 = vmatpush1.bf16.msra.mxu0 %v10391_v29  ;;  %v1885_v29 = vrot.slane %v1657_v22, 1  ;;  %v1886_v37 = vrot.slane %v1653_v21, 2  ;;  %v1681_v22 = vshrl.u32 %v11561_v59, 16  ;;  %v1685_v21 = vshll.u32 %v11589_v9, 16 }
 0x1d0   : > { %2901 = vmatprep.subr.bf16.mxu0 %v14945_v0  ;;  %v2547_v42 = vsel %vm14951_vm1, %v2542_v1, %v2546_v24  ;;  %v1897_v4 = vsel %vm14948_vm2, %v11542_v43, %v1896_v47  ;;  %v3129_v43 = vrot.slane %v11615_v56, 3  ;;  %v2550_v11 = vor.u32 %v2548_v48, %v2546_v24 }
 0x1d1   : > { %v2697_v18 = vrot.slane %v2547_v42, 2  ;;  %v1887_v57 = vor.u32 %v1886_v37, %v1885_v29  ;;  %v3128_v14 = vsel %vm3113_vm3, %v3125_v6, %v3127_v62  ;;  %v1899_v6 = vrot.slane %v1661_v33, 2  ;;  %v11655_v29 = vld [vmem:[#allocation2 + $0x58] sm:$0xff]  }
 0x1d2   : > { %v3130_v17 = vsel %vm3113_vm3, %v3127_v62, %v3129_v43  ;;  %9614 = vmatprep.mubr.bf16.mxu1 %v3128_v14  ;;  %v1918_v38 = vrot.slane %v1916_v13, 1  ;;  %v1693_v42 = vshll.u32 %v11643_v19, 16  ;;  %v2560_v53 = vshll.u32 %v11655_v29, 16 }
 0x1d3   : > { %2902 = vmatpush1.bf16.msra.mxu0 %v10393_v10  ;;  %v1908_v10 = vrot.slane %v1906_v58, 2  ;;  %v11621_v27 = vsel %vm2672_vm4, %v2693_v54, %v2697_v18  ;;  %v1687_v54 = vrot.slane %v1685_v21, 1  ;;  %9615 = vmatmul.mubr.bf16.gmra.mrb[12].mxu1 %v3130_v17  ;;  %v1888_v1 = vsel %vm14948_vm2, %v1874_v60, %v1887_v57 }
 0x1d4   : > { %2903 = vmatprep.subr.bf16.mxu0 %v14945_v0  ;;  %v1689_v60 = vshrl.u32 %v11589_v9, 16  ;;  %v1911_v20 = vrot.slane %v1673_v36, 1  ;;  %v1912_v48 = vrot.slane %v1669_v35, 2  ;;  %v1697_v13 = vshrl.u32 %v11643_v19, 16  ;;  %v11683_v35 = vld [vmem:[#allocation2 + $0x60] sm:$0xff]  }
 0x1d5   : > { %v1909_v61 = vor.u32 %v1908_v10, %v1905_v28  ;;  %v1900_v10 = vor.u32 %v1899_v6, %v1898_v41  ;;  %v3131_v6 = vrot.slane %v11655_v29, 3 }
 0x1d6   : > { %2222 = vmatmul.mubr.bf16.gmra.mrb[24].mxu0 %v1862_v23  ;;  %v1683_v23 = vor.u32 %v1681_v22, %v1679_v40  ;;  %v1913_v17 = vor.u32 %v1912_v48, %v1911_v20 }
 0x1d7   : > { %2229 = vmatprep.mubr.bf16.mxu0 %v1884_v45  ;;  %2904 = vmatpush1.bf16.msra.mxu0 %v10395_v3  ;;  %v2554_v3 = vrot.slane %v2552_v55, 1  ;;  %v2699_v45 = vrot.slane %v11577_v15, 2  ;;  %v1910_v37 = vsel %vm14948_vm2, %v1896_v47, %v1909_v61  ;;  %v1691_v55 = vor.u32 %v1689_v60, %v1687_v54 }
 0x1d8   : > { %2905 = vmatprep.subr.bf16.mxu0 %v14945_v0  ;;  %v1688_v24 = vsel %vm14951_vm1, %v1683_v23, %v1687_v54  ;;  %v1695_v23 = vrot.slane %v1693_v42, 1  ;;  %v1901_v36 = vsel %vm14948_vm2, %v1887_v57, %v1900_v10  ;;  %v1914_v20 = vsel %vm14948_vm2, %v1900_v10, %v1913_v17 }
 0x1d9   : > { %v2555_v58 = vsel %vm14951_vm1, %v2550_v11, %v2554_v3  ;;  %v1929_v33 = vshrl.u32 %v1688_v24, 16  ;;  %v1932_v28 = vshll.u32 %v1688_v24, 16  ;;  %v2558_v47 = vor.u32 %v2556_v25, %v2554_v3 }
 0x1da   : > { %v2701_v15 = vrot.slane %v2555_v58, 2  ;;  %v2564_v58 = vshrl.u32 %v11655_v29, 16  ;;  %v1699_v57 = vor.u32 %v1697_v13, %v1695_v23  ;;  %v3133_v24 = vrot.slane %v11683_v35, 3 }
 0x1db   : > { %2906 = vmatpush1.bf16.msra.mxu0 %v10399_v49  ;;  %v11647_v49 = vsel %vm2672_vm4, %v2695_v26, %v2699_v45  ;;  %v1921_v26 = vrot.slane %v1919_v5, 2  ;;  %v1931_v11 = vrot.slane %v1929_v33, 1  ;;  %v1934_v3 = vrot.slane %v1932_v28, 2  ;;  %v11705_v28 = vld [vmem:[#allocation2 + $0x88] sm:$0xff]  }
 0x1dc   : > { %2907 = vmatprep.subr.bf16.mxu0 %v14945_v0  ;;  %v11659_v40 = vsel %vm2672_vm4, %v2697_v18, %v2701_v15  ;;  %v2703_v18 = vrot.slane %v11615_v56, 2  ;;  %v3134_v33 = vsel %vm3113_vm3, %v3131_v6, %v3133_v24  ;;  %v1924_v56 = vrot.slane %v1681_v22, 1 }
 0x1dd   : > { %v1935_v41 = vor.u32 %v1934_v3, %v1931_v11  ;;  %v1709_v10 = vshll.u32 %v11705_v28, 16  ;;  %v2572_v22 = vshrl.u32 %v11683_v35, 16 }
 0x1de   : > { %2230 = vmatmul.mubr.bf16.gmra.mrb[28].mxu0 %v1875_v63  ;;  %v11665_v63 = vld [vmem:[#allocation2 + $0x80] sm:$0xff]  }
 0x1df   : > { %2237 = vmatprep.mubr.bf16.mxu0 %v1897_v4  ;;  %2908 = vmatpush1.bf16.msra.mxu0 %v10404_v7  ;;  %v2562_v7 = vrot.slane %v2560_v53, 1  ;;  %v1922_v4 = vor.u32 %v1921_v26, %v1918_v38  ;;  %v1701_v50 = vshll.u32 %v11665_v63, 16  ;;  %v2707_v38 = vrot.slane %v11655_v29, 2 }
 0x1e0   : > { %2909 = vmatprep.subr.bf16.mxu0 %v14945_v0  ;;  %v3132_v53 = vsel %vm3113_vm3, %v3129_v43, %v3131_v6  ;;  %v1925_v43 = vrot.slane %v1677_v52, 2  ;;  %v1705_v3 = vshrl.u32 %v11665_v63, 16  ;;  %v1938_v6 = vrot.slane %v1685_v21, 2  ;;  %v11745_v21 = vld [vmem:[#allocation2 + $0x70] sm:$0xff]  }
 0x1e1   : > { %v2563_v62 = vsel %vm14951_vm1, %v2558_v47, %v2562_v7  ;;  %v1923_v54 = vsel %vm14948_vm2, %v1909_v61, %v1922_v4  ;;  %v1703_v61 = vrot.slane %v1701_v50, 1  ;;  %9618 = vmatprep.mubr.bf16.mxu1 %v3132_v53 }
 0x1e2   : > { %v2705_v5 = vrot.slane %v2563_v62, 2  ;;  %9619 = vmatmul.mubr.bf16.gmra.mrb[16].mxu1 %v3134_v33 }
 0x1e3   : > { %2910 = vmatpush1.bf16.msra.mxu0 %v10408_v34  ;;  %v11678_v34 = vsel %vm2672_vm4, %v2699_v45, %v2703_v18  ;;  %v1696_v45 = vsel %vm14951_vm1, %v1691_v55, %v1695_v23  ;;  %v1704_v48 = vsel %vm14951_vm1, %v1699_v57, %v1703_v61  ;;  %v11717_v55 = vld [vmem:[#allocation2 + $0x68] sm:$0xff]   ;;  %v1936_v23 = vsel %vm14948_vm2, %v1922_v4, %v1935_v41 }
 0x1e4   : > { %v11687_v14 = vsel %vm2672_vm4, %v2701_v15, %v2705_v5  ;;  %v2566_v15 = vor.u32 %v2564_v58, %v2562_v7  ;;  %v1942_v26 = vshrl.u32 %v1696_v45, 16  ;;  %v1945_v25 = vshll.u32 %v1696_v45, 16  ;;  %v11727_v45 = vld [vmem:[#allocation2 + $0x90] sm:$0xff]  }
 0x1e5   : > { %v11709_v7 = vsel %vm2672_vm4, %v2703_v18, %v2707_v38  ;;  %v2576_v59 = vshll.u32 %v11717_v55, 16  ;;  %v1955_v52 = vshrl.u32 %v1704_v48, 16  ;;  %v1937_v57 = vrot.slane %v1689_v60, 1 }
 0x1e6   : > { %2238 = vmatmul.mubr.bf16.gmra.mrb[32].mxu0 %v1888_v1  ;;  %v2568_v1 = vshll.u32 %v11683_v35, 16  ;;  %v1944_v62 = vrot.slane %v1942_v26, 1  ;;  %v1947_v11 = vrot.slane %v1945_v25, 2  ;;  %v1711_v26 = vrot.slane %v1709_v10, 1 }
 0x1e7   : > { %2245 = vmatprep.mubr.bf16.mxu0 %v1910_v37  ;;  %v2578_v58 = vrot.slane %v2576_v59, 1  ;;  %v1957_v53 = vrot.slane %v1955_v52, 1  ;;  %v1717_v9 = vshll.u32 %v11727_v45, 16  ;;  %v2715_v52 = vrot.slane %v11717_v55, 2 }
 0x1e8   : > { %v2570_v37 = vrot.slane %v2568_v1, 1  ;;  %v1948_v1 = vor.u32 %v1947_v11, %v1944_v62  ;;  %v3135_v11 = vrot.slane %v11717_v55, 3 }
 0x1ea   : > { %v2571_v47 = vsel %vm14951_vm1, %v2566_v15, %v2570_v37  ;;  %v2574_v4 = vor.u32 %v2572_v22, %v2570_v37  ;;  %v1707_v15 = vor.u32 %v1705_v3, %v1703_v61  ;;  %v1949_v61 = vsel %vm14948_vm2, %v1935_v41, %v1948_v1 }
 0x1eb   : > { %v2709_v29 = vrot.slane %v2571_v47, 2  ;;  %v1713_v47 = vshrl.u32 %v11705_v28, 16  ;;  %v3137_v22 = vrot.slane %v11745_v21, 3  ;;  %v1719_v41 = vrot.slane %v1717_v9, 1 }
 0x1ec   : > { %v2579_v25 = vsel %vm14951_vm1, %v2574_v4, %v2578_v58 }
 0x1ed   : > { %v11721_v18 = vsel %vm2672_vm4, %v2705_v5, %v2709_v29  ;;  %v2711_v5 = vrot.slane %v11683_v35, 2  ;;  %v1951_v35 = vrot.slane %v1693_v42, 2  ;;  %v2588_v42 = vshrl.u32 %v11745_v21, 16 }
 0x1ee   : > { %2246 = vmatmul.mubr.bf16.gmra.mrb[36].mxu0 %v1901_v36  ;;  %v1958_v36 = vshll.u32 %v1704_v48, 16  ;;  %v2580_v48 = vshrl.u32 %v11717_v55, 16  ;;  %v1950_v55 = vrot.slane %v1697_v13, 1  ;;  %v1721_v13 = vshrl.u32 %v11727_v45, 16 }
 0x1ef   : > { %2253 = vmatprep.mubr.bf16.mxu0 %v1923_v54  ;;  %v1926_v54 = vor.u32 %v1925_v43, %v1924_v56  ;;  %v11740_v37 = vsel %vm2672_vm4, %v2707_v38, %v2711_v5  ;;  %v1939_v43 = vor.u32 %v1938_v6, %v1937_v57  ;;  %v1712_v38 = vsel %vm14951_vm1, %v1707_v15, %v1711_v26  ;;  %v11767_v15 = vld [vmem:[#allocation2 + $0x98] ss:$0 sps:$4 sm:$0x11]  }
 0x1f0   : > { %v1960_v33 = vrot.slane %v1958_v36, 2  ;;  %v1968_v36 = vshrl.u32 %v1712_v38, 16  ;;  %v1971_v4 = vshll.u32 %v1712_v38, 16  ;;  %v3136_v57 = vsel %vm3113_vm3, %v3133_v24, %v3135_v11 }
 0x1f1   : > { %v1927_v60 = vsel %vm14948_vm2, %v1913_v17, %v1926_v54  ;;  %v1715_v17 = vor.u32 %v1713_v47, %v1711_v26  ;;  %v3138_v6 = vsel %vm3113_vm3, %v3135_v11, %v3137_v22  ;;  %9622 = vmatprep.mubr.bf16.mxu1 %v3136_v57  ;;  %v1725_v19 = vshll.u32 %v11767_v15, 16 }
 0x1f2   : > { %v1961_v62 = vor.u32 %v1960_v33, %v1957_v53  ;;  %9623 = vmatmul.mubr.bf16.gmra.mrb[20].mxu1 %v3138_v6  ;;  %v11779_v33 = vld [vmem:[#allocation2 + $0x78] sm:$0xff]   ;;  %v1973_v38 = vrot.slane %v1971_v4, 2 }
 0x1f3   : > { %v1720_v53 = vsel %vm14951_vm1, %v1715_v17, %v1719_v41  ;;  %v1727_v4 = vrot.slane %v1725_v19, 1 }
 0x1f4   : > { %v1984_v17 = vshll.u32 %v1720_v53, 16 }
 0x1f6   : > { %2254 = vmatmul.mubr.bf16.gmra.mrb[40].mxu0 %v1914_v20  ;;  %v2713_v20 = vrot.slane %v2579_v25, 2  ;;  %v1940_v25 = vsel %vm14948_vm2, %v1926_v54, %v1939_v43  ;;  %v1952_v54 = vor.u32 %v1951_v35, %v1950_v55 }
 0x1f7   : > { %2261 = vmatprep.mubr.bf16.mxu0 %v1936_v23  ;;  %v2584_v23 = vshll.u32 %v11745_v21, 16 }
 0x1f8   : > { %v11749_v56 = vsel %vm2672_vm4, %v2709_v29, %v2713_v20  ;;  %v2582_v29 = vor.u32 %v2580_v48, %v2578_v58  ;;  %v11771_v58 = vsel %vm2672_vm4, %v2711_v5, %v2715_v52  ;;  %v2592_v48 = vshll.u32 %v11779_v33, 16 }
 0x1f9   : > { %v2586_v59 = vrot.slane %v2584_v23, 1  ;;  %v1981_v23 = vshrl.u32 %v1720_v53, 16  ;;  %v1953_v35 = vsel %vm14948_vm2, %v1939_v43, %v1952_v54  ;;  %v1986_v53 = vrot.slane %v1984_v17, 2 }
 0x1fb   : > { %v2587_v26 = vsel %vm14951_vm1, %v2582_v29, %v2586_v59  ;;  %v2590_v11 = vor.u32 %v2588_v42, %v2586_v59  ;;  %v2719_v29 = vrot.slane %v11745_v21, 2  ;;  %v1964_v59 = vrot.slane %v1701_v50, 2 }
 0x1fc   : > { %v2717_v24 = vrot.slane %v2587_v26, 2  ;;  %v1963_v26 = vrot.slane %v1705_v3, 1  ;;  %v3139_v50 = vrot.slane %v11779_v33, 3  ;;  %v1977_v21 = vrot.slane %v1709_v10, 2 }
 0x1fd   : > { %v11796_v6 = vsel %vm2672_vm4, %v2715_v52, %v2719_v29  ;;  %v1729_v10 = vshrl.u32 %v11767_v15, 16 }
 0x1fe   : > { %2262 = vmatmul.mubr.bf16.gmra.mrb[44].mxu0 %v1927_v60  ;;  %v1962_v60 = vsel %vm14948_vm2, %v1948_v1, %v1961_v62  ;;  %v11783_v5 = vsel %vm2672_vm4, %v2713_v20, %v2717_v24  ;;  %v2594_v1 = vrot.slane %v2592_v48, 1  ;;  %v1723_v20 = vor.u32 %v1721_v13, %v1719_v41  ;;  %v11803_v41 = vld [vmem:[#allocation2 + $0x80] sm:$0xff]  }
 0x1ff   : > { %2269 = vmatprep.mubr.bf16.mxu0 %v1949_v61  ;;  %v1970_v61 = vrot.slane %v1968_v36, 1  ;;  %v2600_v3 = vshll.u32 %v11803_v41, 16  ;;  %v1965_v63 = vor.u32 %v1964_v59, %v1963_v26  ;;  %v3141_v43 = vrot.slane %v11803_v41, 3  ;;  %v10426_v59 = vld [vmem:[#allocation2 + $0x88] sm:$0xff]  }
 0x200   : > { %v2595_v57 = vsel %vm14951_vm1, %v2590_v11, %v2594_v1  ;;  %v1728_v52 = vsel %vm14951_vm1, %v1723_v20, %v1727_v4  ;;  %v3140_v11 = vsel %vm3113_vm3, %v3137_v22, %v3139_v50 }
 0x201   : > { %v1974_v36 = vor.u32 %v1973_v38, %v1970_v61  ;;  %v2721_v55 = vrot.slane %v2595_v57, 2  ;;  %v2596_v38 = vshrl.u32 %v11779_v33, 16  ;;  %v1997_v17 = vshll.u32 %v1728_v52, 16  ;;  %9626 = vmatprep.mubr.bf16.mxu1 %v3140_v11 }
 0x202   : > { %v3142_v20 = vsel %vm3113_vm3, %v3139_v50, %v3141_v43 }
 0x203   : > { %v11807_v61 = vsel %vm2672_vm4, %v2717_v24, %v2721_v55  ;;  %v2598_v48 = vor.u32 %v2596_v38, %v2594_v1  ;;  %v1994_v24 = vshrl.u32 %v1728_v52, 16  ;;  %9627 = vmatmul.mubr.bf16.gmra.mrb[24].mxu1 %v3142_v20  ;;  %v1966_v1 = vsel %vm14948_vm2, %v1952_v54, %v1965_v63 }
 0x204   : > { %v2612_v20 = vshrl.u32 %v10426_v59, 16 }
 0x206   : > { %2270 = vmatmul.mubr.bf16.gmra.mrb[48].mxu0 %v1940_v25  ;;  %v1983_v25 = vrot.slane %v1981_v23, 1  ;;  %v2602_v23 = vrot.slane %v2600_v3, 1 }
 0x207   : > { %2277 = vmatprep.mubr.bf16.mxu0 %v1962_v60  ;;  %v1975_v60 = vsel %vm14948_vm2, %v1961_v62, %v1974_v36  ;;  %v2723_v62 = vrot.slane %v11779_v33, 2  ;;  %v1976_v33 = vrot.slane %v1713_v47, 1  ;;  %v2727_v47 = vrot.slane %v11803_v41, 2 }
 0x208   : > { %v1987_v42 = vor.u32 %v1986_v53, %v1983_v25  ;;  %v2603_v4 = vsel %vm14951_vm1, %v2598_v48, %v2602_v23  ;;  %v1999_v25 = vrot.slane %v1997_v17, 2  ;;  %v1989_v48 = vrot.slane %v1721_v13, 1 }
 0x209   : > { %v11821_v57 = vsel %vm2672_vm4, %v2719_v29, %v2723_v62  ;;  %v2725_v26 = vrot.slane %v2603_v4, 2  ;;  %v2604_v29 = vshrl.u32 %v11803_v41, 16  ;;  %v1978_v54 = vor.u32 %v1977_v21, %v1976_v33 }
 0x20a   : > { %v1988_v22 = vsel %vm14948_vm2, %v1974_v36, %v1987_v42  ;;  %v11837_v3 = vsel %vm2672_vm4, %v2723_v62, %v2727_v47  ;;  %v2005_v17 = vshll.u32 %v1729_v10, 16  ;;  %v3143_v4 = vrot.slane %v10426_v59, 3 }
 0x20b   : > { %v11830_v53 = vsel %vm2672_vm4, %v2721_v55, %v2725_v26  ;;  %v2606_v52 = vor.u32 %v2604_v29, %v2602_v23  ;;  %v1979_v50 = vsel %vm14948_vm2, %v1965_v63, %v1978_v54  ;;  %v1990_v23 = vrot.slane %v1717_v9, 2 }
 0x20c   : > { %v2731_v21 = vrot.slane %v10426_v59, 2  ;;  %v2007_v45 = vrot.slane %v2005_v17, 2  ;;  %v3144_v9 = vsel %vm3113_vm3, %v3141_v43, %v3143_v4 }
 0x20d   : > { %v1991_v63 = vor.u32 %v1990_v23, %v1989_v48  ;;  %9630 = vmatprep.mubr.bf16.mxu1 %v3144_v9 }
 0x20e   : > { %2278 = vmatmul.mubr.bf16.gmra.mrb[52].mxu0 %v1953_v35  ;;  %v1996_v35 = vrot.slane %v1994_v24, 1  ;;  %v10427_v24 = vld [vmem:[#allocation2 + $0x90] sm:$0xff]  }
 0x20f   : > { %2285 = vmatprep.mubr.bf16.mxu0 %v1975_v60  ;;  %v2608_v60 = vshll.u32 %v10426_v59, 16  ;;  %v2616_v62 = vshll.u32 %v10427_v24, 16  ;;  %v2735_v48 = vrot.slane %v10427_v24, 2 }
 0x210   : > { %v2000_v28 = vor.u32 %v1999_v25, %v1996_v35  ;;  %v367_v35 = vld [vmem:[%s10845_s21 + $0xa0] sm:$0x3] }
 0x211   : > { %v2610_v38 = vrot.slane %v2608_v60, 1  ;;  %v2618_v13 = vrot.slane %v2616_v62, 1  ;;  %v408_v29 = vmax.bf16 %v14945_v0, %v367_v35  ;;  %v1992_v60 = vsel %vm14948_vm2, %v1978_v54, %v1991_v63 }
 0x212   : > { %v2001_v41 = vsel %vm14948_vm2, %v1987_v42, %v2000_v28  ;;  %v2008_v59 = vsel %vm14948_vm2, %v2000_v28, %v2007_v45  ;;  %v11868_v23 = vsel %vm2672_vm4, %v2731_v21, %v2735_v48 }
 0x213   : > { %v2611_v36 = vsel %vm14951_vm1, %v2606_v52, %v2610_v38  ;;  %v2614_v33 = vor.u32 %v2612_v20, %v2610_v38  ;;  %v11857_v52 = vld [vmem:[#allocation2 + $0x98] sm:$0xff]   ;;  %449 = vst [vmem:[#allocation2 + $0xa0] sm:$0x3] %v408_v29  ;;  %v2620_v38 = vshrl.u32 %v10427_v24, 16 }
 0x214   : > { %v2729_v55 = vrot.slane %v2611_v36, 2  ;;  %v2624_v10 = vshll.u32 %v11857_v52, 16  ;;  %v2628_v20 = vshrl.u32 %v11857_v52, 16  ;;  %v3147_v15 = vrot.slane %v11857_v52, 3  ;;  %v10432_v29 = vld [vmem:[#allocation5 + $0x88] sm:$0xff]  }
 0x215   : > { %v2622_v36 = vor.u32 %v2620_v38, %v2618_v13 }
 0x216   : > { %2286 = vmatmul.mubr.bf16.gmra.mrb[56].mxu0 %v1966_v1  ;;  %v11846_v11 = vsel %vm2672_vm4, %v2725_v26, %v2729_v55  ;;  %v3145_v1 = vrot.slane %v10427_v24, 3  ;;  %v2619_v26 = vsel %vm14951_vm1, %v2614_v33, %v2618_v13  ;;  %v2739_v33 = vrot.slane %v11857_v52, 2 }
 0x217   : > { %2293 = vmatprep.mubr.bf16.mxu0 %v1988_v22  ;;  %v11852_v22 = vsel %vm2672_vm4, %v2727_v47, %v2731_v21  ;;  %v2733_v25 = vrot.slane %v2619_v26, 2  ;;  %v2002_v47 = vrot.slane %v1725_v19, 2 }
 0x218   : > { %v3146_v42 = vsel %vm3113_vm3, %v3143_v4, %v3145_v1  ;;  %v3148_v13 = vsel %vm3113_vm3, %v3145_v1, %v3147_v15  ;;  %v11884_v45 = vsel %vm2672_vm4, %v2735_v48, %v2739_v33  ;;  %v3473_v48 = vlaneseq }
 0x219   : > { %9631 = vmatmul.mubr.bf16.gmra.mrb[28].mxu1 %v3146_v42  ;;  %v11861_v43 = vsel %vm2672_vm4, %v2729_v55, %v2733_v25  ;;  %v2003_v55 = vsel %vm14948_vm2, %v1991_v63, %v2002_v47 }
 0x21a   : > { %9634 = vmatprep.mubr.bf16.mxu1 %v3148_v13 }
 0x21e   : > { %2294 = vmatmul.mubr.bf16.gmra.mrb[60].mxu0 %v1979_v50  ;;  %v2626_v50 = vrot.slane %v2624_v10, 1  ;;  %v10446_v10 = vld [vmem:[#allocation5 + $0xf0] sm:$0xff]  }
 0x21f   : > { %2301 = vmatprep.mubr.bf16.mxu0 %v2001_v41  ;;  %v10429_v41 = vld [vmem:[#allocation2 + $0xa0] ss:$0 sps:$4 sm:$0x33]  }
 0x220   : > { %v2627_v54 = vsel %vm14951_vm1, %v2622_v36, %v2626_v50  ;;  %v2632_v62 = vshll.u32 %v10429_v41, 16  ;;  %v3149_v19 = vrot.slane %v10429_v41, 3  ;;  %v2630_v24 = vor.u32 %v2628_v20, %v2626_v50 }
 0x221   : > { %v2737_v28 = vrot.slane %v2627_v54, 2  ;;  %v2636_v42 = vshrl.u32 %v10429_v41, 16  ;;  %v10455_v41 = vld [vmem:[#allocation5 + $0x218] sm:$0xff]  }
 0x222   : > { %v2634_v4 = vrot.slane %v2632_v62, 1  ;;  %v3150_v63 = vsel %vm3113_vm3, %v3147_v15, %v3149_v19  ;;  %v10457_v62 = vld [vmem:[#allocation5 + $0x220] sm:$0xff]  }
 0x223   : > { %v11872_v17 = vsel %vm2672_vm4, %v2733_v25, %v2737_v28  ;;  %9635 = vmatmul.mubr.bf16.gmra.mrb[32].mxu1 %v3150_v63  ;;  %v10431_v25 = vld [vmem:[#allocation5 + $0x80] sm:$0xff]  }
 0x224   : > { %v2635_v21 = vsel %vm14951_vm1, %v2630_v24, %v2634_v4  ;;  %v2638_v1 = vor.u32 %v2636_v42, %v2634_v4  ;;  %5041 = vmatpush1.bf16.msra.mxu1 %v10431_v25  ;;  %v10430_v24 = vld [vmem:[#allocation2 + $0xa0] ss:$0 sps:$4 sm:$0x11]  }
 0x225   : > { %v2741_v9 = vrot.slane %v2635_v21, 2  ;;  %5042 = vmatprep.subr.bf16.mxu1 %v14945_v0 }
 0x226   : > { %2302 = vmatmul.mubr.bf16.gmra.mrb[64].mxu0 %v1992_v60  ;;  %v2745_v26 = vrot.slane %v2638_v1, 2  ;;  %v10433_v60 = vld [vmem:[#allocation5 + $0x90] sm:$0xff]   ;;  %v2743_v1 = vrot.slane %v10430_v24, 2 }
 0x227   : > { %2309 = vmatprep.mubr.bf16.mxu0 %v2008_v59 }
 0x228   : > { %v11892_v35 = vsel %vm2672_vm4, %v2741_v9, %v2745_v26  ;;  %5043 = vmatpush1.bf16.msra.mxu1 %v10432_v29 }
 0x229   : > { %5044 = vmatprep.subr.bf16.mxu1 %v14945_v0 }
 0x22c   : > { %5045 = vmatpush1.bf16.msra.mxu1 %v10433_v60 }
 0x22d   : > { %5046 = vmatprep.subr.bf16.mxu1 %v14945_v0 }
 0x22e   : > { %2310 = vmatmul.mubr.bf16.gmra.mrb[68].mxu0 %v2003_v55  ;;  %v11975_v55 = vshrl.u32 %v3473_v48, 7 }
 0x22f   : > { %2911 = vmatprep.mubr.bf16.mxu0 %v11414_v51  ;;  %v11887_v51 = vsel %vm2672_vm4, %v2737_v28, %v2741_v9  ;;  %v10448_v28 = vld [vmem:[#allocation5 + $0xf8] sm:$0xff]  }
 0x230   : > { %v3476_v20 = vadd.s32 16, %v11975_v55  ;;  %v11982_v15 = vmul.u32.u64.low 3817748708, %v11975_v55  ;;  %v11983_v19 = vmul.u32.u64.high 3817748708, %v11975_v55, %v11982_v15  ;;  %v3477_v4 = vadd.s32 24, %v11975_v55 }
 0x232   : > { %v11998_v26 = vmul.u32.u64.low 3817748708, %v3477_v4  ;;  %v11999_v25 = vmul.u32.u64.high 3817748708, %v3477_v4, %v11998_v26 }
 0x234   : > { %v3549_v52 = vshrl.u32 %v11999_v25, 4 }
 0x236   : > { %2912 = vmatmul.mubr.bf16.vlgmr.msra.gmra.mrb[0].mxu0 %v11391_v44  ;;  %v10434_v44 = vld [vmem:[#allocation5 + $0x98] sm:$0xff]   ;;  %v3550_v48 = vmul.u32 18, %v3549_v52 }
 0x237   : > { %2919 = vmatprep.mubr.bf16.mxu0 %v11449_v12  ;;  %5047 = vmatpush1.bf16.msra.mxu1 %v10434_v44  ;;  %v10436_v12 = vld [vmem:[#allocation5 + $0xa8] sm:$0xff]   ;;  %v10461_v44 = vld [vmem:[#allocation5 + $0x230] sm:$0xff]  }
 0x238   : > { %5048 = vmatprep.subr.bf16.mxu1 %v14945_v0 }
 0x23e   : > { %2920 = vmatmul.mubr.bf16.gmra.mrb[4].mxu0 %v11434_v16  ;;  %v10435_v16 = vld [vmem:[#allocation5 + $0xa0] sm:$0xff]  }
 0x23f   : > { %2927 = vmatprep.mubr.bf16.mxu0 %v11497_v32  ;;  %5049 = vmatpush1.bf16.msra.mxu1 %v10435_v16  ;;  %v10438_v32 = vld [vmem:[#allocation5 + $0xb8] sm:$0xff]   ;;  %v3516_v16 = vshrl.u32 %v11983_v19, 4 }
 0x240   : > { %5050 = vmatprep.subr.bf16.mxu1 %v14945_v0 }
 0x243   : > { %5051 = vmatpush1.bf16.msra.mxu1 %v10436_v12  ;;  %v12007_v12 = vadd.s32 32, %v11975_v55 }
 0x244   : > { %5052 = vmatprep.subr.bf16.mxu1 %v14945_v0 }
 0x246   : > { %2928 = vmatmul.mubr.bf16.gmra.mrb[8].mxu0 %v11479_v2  ;;  %v10437_v2 = vld [vmem:[#allocation5 + $0xb0] sm:$0xff]  }
 0x247   : > { %2935 = vmatprep.mubr.bf16.mxu0 %v11535_v39  ;;  %5053 = vmatpush1.bf16.msra.mxu1 %v10437_v2 }
 0x248   : > { %5054 = vmatprep.subr.bf16.mxu1 %v14945_v0 }
 0x24b   : > { %5055 = vmatpush1.bf16.msra.mxu1 %v10438_v32 }
 0x24c   : > { %5056 = vmatprep.subr.bf16.mxu1 %v14945_v0 }
 0x24e   : > { %2936 = vmatmul.mubr.bf16.gmra.mrb[12].mxu0 %v11520_v8 }
 0x24f   : > { %2943 = vmatprep.mubr.bf16.mxu0 %v11583_v31 }
 0x256   : > { %2944 = vmatmul.mubr.bf16.gmra.mrb[16].mxu0 %v11565_v30 }
 0x257   : > { %2951 = vmatprep.mubr.bf16.mxu0 %v11621_v27  ;;  %v10440_v27 = vld [vmem:[#allocation5 + $0xc8] sm:$0xff]  }
 0x25e   : > { %2952 = vmatmul.mubr.bf16.gmra.mrb[20].mxu0 %v11606_v46  ;;  %v10439_v46 = vld [vmem:[#allocation5 + $0xc0] sm:$0xff]  }
 0x25f   : > { %2959 = vmatprep.mubr.bf16.mxu0 %v11659_v40  ;;  %5057 = vmatpush1.bf16.msra.mxu1 %v10439_v46  ;;  %v3517_v46 = vmul.u32 18, %v3516_v16 }
 0x260   : > { %5058 = vmatprep.subr.bf16.mxu1 %v14945_v0 }
 0x263   : > { %5059 = vmatpush1.bf16.msra.mxu1 %v10440_v27 }
 0x264   : > { %5060 = vmatprep.subr.bf16.mxu1 %v14945_v0 }
 0x266   : > { %2960 = vmatmul.mubr.bf16.gmra.mrb[24].mxu0 %v11647_v49  ;;  %v313_v49 = vld [vmem:[#allocation3] sm:$0xc] }
 0x267   : > { %2967 = vmatprep.mubr.bf16.mxu0 %v11687_v14  ;;  %v314_v40 = vsel %vm312_vm7, 0, %v313_v49  ;;  %v12018_v27 = vmul.u32.u64.low 3817748708, %v12007_v12  ;;  %v12019_v49 = vmul.u32.u64.high 3817748708, %v12007_v12, %v12018_v27 }
 0x268   : > { %315 = vst [vmem:[#allocation3] sm:$0xc] %v314_v40  ;;  %v12022_v40 = vadd.s32 48, %v11975_v55 }
 0x269   : > { %v3560_v24 = vshrl.u32 %v12019_v49, 4 }
 0x26b   : > { %v3561_v25 = vmul.u32 18, %v3560_v24 }
 0x26e   : > { %2968 = vmatmul.mubr.bf16.gmra.mrb[28].mxu0 %v11678_v34  ;;  %v10441_v34 = vld [vmem:[#allocation5 + $0xd0] sm:$0xff]  }
 0x26f   : > { %2975 = vmatprep.mubr.bf16.mxu0 %v11721_v18  ;;  %5061 = vmatpush1.bf16.msra.mxu1 %v10441_v34 }
 0x270   : > { %5062 = vmatprep.subr.bf16.mxu1 %v14945_v0 }
 0x276   : > { %2976 = vmatmul.mubr.bf16.gmra.mrb[32].mxu0 %v11709_v7 }
 0x277   : > { %2983 = vmatprep.mubr.bf16.mxu0 %v11749_v56 }
 0x27e   : > { %2984 = vmatmul.mubr.bf16.gmra.mrb[36].mxu0 %v11740_v37  ;;  %v11922_v8 = vpop.f32.mrb[0].mxu1  ;;  %v10442_v37 = vld [vmem:[#allocation5 + $0xd8] sm:$0xff]  }
 0x27f   : > { %2991 = vmatprep.mubr.bf16.mxu0 %v11783_v5  ;;  %v11924_v39 = vpop.f32.mrb[1].mxu1  ;;  %v4483_v5 = vld [vmem:[#allocation3] sm:$0x8]  ;;  %5063 = vmatpush1.bf16.msra.mxu1 %v10442_v37  ;;  %v12030_v37 = vadd.s32 56, %v11975_v55 }
 0x280   : > { %v11926_v30 = vpop.f32.mrb[2].mxu1  ;;  %5064 = vmatprep.subr.bf16.mxu1 %v14945_v0 }
 0x281   : > { %v11928_v31 = vpop.f32.mrb[3].mxu1 }
 0x286   : > { %2992 = vmatmul.mubr.bf16.gmra.mrb[40].mxu0 %v11771_v58  ;;  %v11945_v58 = vld [vmem:[#allocation3 + $0x4] sm:$0xf] }
 0x287   : > { %2999 = vmatprep.mubr.bf16.mxu0 %v11807_v61  ;;  %v10443_v61 = vld [vmem:[#allocation5 + $0xe0] sm:$0xff]  }
 0x288   : > { %5065 = vmatpush1.bf16.msra.mxu1 %v10443_v61 }
 0x289   : > { %5066 = vmatprep.subr.bf16.mxu1 %v14945_v0 }
 0x28c   : > { %v11934_v14 = vpop.f32.mrb[4].mxu1 }
 0x28d   : > { %15078 = vst [vmem:[#allocation11_spill] sm:$0xff] %v11934_v14  ;;  %v11937_v7 = vpop.f32.mrb[5].mxu1 }
 0x28e   : > { %3000 = vmatmul.mubr.bf16.gmra.mrb[44].mxu0 %v11796_v6  ;;  %15079 = vst [vmem:[#allocation12_spill] sm:$0xff] %v11937_v7  ;;  %v11941_v18 = vpop.f32.mrb[6].mxu1  ;;  %v11949_v6 = vcombine.low %v4483_v5, %v11945_v58  ;;  %v10465_v5 = vld [vmem:[#allocation5 + $0x238] sm:$0xff]  }
 0x28f   : > { %3007 = vmatprep.mubr.bf16.mxu0 %v11830_v53  ;;  %15080 = vst [vmem:[#allocation13_spill] sm:$0xff] %v11941_v18  ;;  %v11943_v56 = vpop.f32.mrb[7].mxu1  ;;  %v10444_v53 = vld [vmem:[#allocation5 + $0xe8] sm:$0xff]  }
 0x290   : > { %15081 = vst [vmem:[#allocation14_spill] sm:$0xff] %v11943_v56  ;;  %5067 = vmatpush1.bf16.msra.mxu1 %v10444_v53  ;;  %v4581_v59 = vshrl.u32 %v11949_v6, 16  ;;  %v12033_v53 = vadd.s32 64, %v11975_v55 }
 0x291   : > { %5068 = vmatprep.subr.bf16.mxu1 %v14945_v0 }
 0x294   : > { %5069 = vmatpush1.bf16.msra.mxu1 %v10446_v10 }
 0x295   : > { %5070 = vmatprep.subr.bf16.mxu1 %v14945_v0 }
 0x296   : > { %3008 = vmatmul.mubr.bf16.gmra.mrb[48].mxu0 %v11821_v57  ;;  %v14947_v57 = vshll.u32 %v11949_v6, 16 }
 0x297   : > { %3015 = vmatprep.mubr.bf16.mxu0 %v11846_v11  ;;  %v10445_v11 = vld [vmem:[#allocation5 + $0x200] sm:$0xff]  }
 0x298   : > { %9638 = vmatprep.subr.bf16.mxu0 %v10445_v11  ;;  %v4585_v38 = vrot.slane %v14947_v57, 1  ;;  %5071 = vmatpush1.bf16.msra.mxu1 %v10448_v28  ;;  %v12224_v57 = vadd.s32 128, %v11975_v55 }
 0x299   : > { %9639 = vmatpush3.bf16.msra.mxu0 %v10445_v11  ;;  %5600 = vmatprep.subr.bf16.mxu1 %v14945_v0 }
 0x29a   : > { %v11966_v36 = vor.u32 %v4585_v38, %v4581_v59  ;;  %v12036_v38 = vmul.u32.u64.low 3817748708, %v12022_v40  ;;  %v12037_v10 = vmul.u32.u64.high 3817748708, %v12022_v40, %v12036_v38 }
 0x29b   : > { %v12129_v38 = vadd.s32 96, %v11975_v55 }
 0x29c   : > { %15084 = vst [vmem:[#allocation17_spill] sm:$0xff] %v11966_v36 }
 0x29e   : > { %3016 = vmatmul.mubr.bf16.gmra.mrb[52].mxu0 %v11837_v3  ;;  %v11959_v3 = vpop.f32.mrb[8].mxu1 }
 0x29f   : > { %3023 = vmatprep.mubr.bf16.mxu0 %v11861_v43  ;;  %15082 = vst [vmem:[#allocation15_spill] sm:$0xff] %v11959_v3  ;;  %v10447_v43 = vld [vmem:[#allocation5 + $0x208] sm:$0xff]   ;;  %v11962_v47 = vpop.f32.mrb[9].mxu1 }
 0x2a0   : > { %15083 = vst [vmem:[#allocation16_spill] sm:$0xff] %v11962_v47  ;;  %v11969_v50 = vpop.f32.mrb[10].mxu1  ;;  %9640 = vmatprep.subr.bf16.mxu0 %v10447_v43 }
 0x2a1   : > { %15085 = vst [vmem:[#allocation18_spill] sm:$0xff] %v11969_v50  ;;  %v11971_v54 = vpop.f32.mrb[11].mxu1  ;;  %9641 = vmatpush3.bf16.msra.mxu0 %v10447_v43  ;;  %v12040_v43 = vsub.s32 %v11975_v55, %v3517_v46 }
 0x2a2   : > { %15086 = vst [vmem:[#allocation19_spill] sm:$0xff] %v11971_v54 }
 0x2a3   : > { %vm3906_vm8 = vcmp.ne.s32.totalorder %v12040_v43, 0  ;;  %vm3942_vm9 = vcmp.lt.s32.totalorder %v12040_v43, 0 }
 0x2a4   : > { %vm12092_vm14 = vmand %vm3942_vm9, %vm3906_vm8 }
 0x2a6   : > { %3024 = vmatmul.mubr.bf16.gmra.mrb[56].mxu0 %v11852_v22  ;;  %v10452_v22 = vld [vmem:[#allocation5 + $0x210] sm:$0xff]   ;;  %v11992_v9 = vpop.f32.mrb[12].mxu1 }
 0x2a7   : > { %3031 = vmatprep.mubr.bf16.mxu0 %v11872_v17  ;;  %9642 = vmatprep.subr.bf16.mxu0 %v10452_v22  ;;  %v3475_v17 = vadd.s32 8, %v11975_v55  ;;  %15087 = vst [vmem:[#allocation20_spill] sm:$0xff] %v11992_v9  ;;  %v11995_v42 = vpop.f32.mrb[13].mxu1 }
 0x2a8   : > { %9643 = vmatpush3.bf16.msra.mxu0 %v10452_v22  ;;  %15088 = vst [vmem:[#allocation21_spill] sm:$0xff] %v11995_v42  ;;  %v12001_v29 = vpop.f32.mrb[14].mxu1  ;;  %v12043_v28 = vmul.u32.u64.low 3817748708, %v12030_v37  ;;  %v12044_v22 = vmul.u32.u64.high 3817748708, %v12030_v37, %v12043_v28 }
 0x2a9   : > { %9644 = vmatprep.subr.bf16.mxu0 %v10455_v41  ;;  %v11986_v13 = vmul.u32.u64.low 3817748708, %v3475_v17  ;;  %v11987_v63 = vmul.u32.u64.high 3817748708, %v3475_v17, %v11986_v13  ;;  %15089 = vst [vmem:[#allocation22_spill] sm:$0xff] %v12001_v29  ;;  %v12003_v60 = vpop.f32.mrb[15].mxu1  ;;  %v15125_v29 = vmov 0 }
 0x2aa   : > { %15090 = vst [vmem:[#allocation23_spill] sm:$0xff] %v12003_v60  ;;  %v12056_v13 = vsub.s32 %v3477_v4, %v3550_v48  ;;  %v12136_v48 = vsub.s32 %v12007_v12, %v3561_v25 }
 0x2ab   : > { %v3527_v2 = vshrl.u32 %v11987_v63, 4 }
 0x2ac   : > { %9645 = vmatpush3.bf16.msra.mxu0 %v10455_v41  ;;  %vm3909_vm15 = vcmp.ne.s32.totalorder %v12056_v13, 0  ;;  %vm3945_vm0 = vcmp.lt.s32.totalorder %v12056_v13, 0  ;;  %15103 = vst [vmem:[#allocation28_spill] sm:$0xff] %v12136_v48  ;;  %vm3910_vm6 = vcmp.ne.s32.totalorder %v12136_v48, 0  ;;  %vm3946_vm7 = vcmp.lt.s32.totalorder %v12136_v48, 0 }
 0x2ad   : > { %9646 = vmatprep.subr.bf16.mxu0 %v10457_v62  ;;  %v3528_v61 = vmul.u32 18, %v3527_v2  ;;  %vm12131_vm5 = vmand %vm3945_vm0, %vm3909_vm15  ;;  %v12175_v0 = vadd.s32 18, %v12136_v48 }
 0x2ae   : > { %3032 = vmatmul.mubr.bf16.gmra.mrb[60].mxu0 %v11868_v23  ;;  %v11989_v23 = vmul.u32.u64.low 3817748708, %v3476_v20  ;;  %v11990_v21 = vmul.u32.u64.high 3817748708, %v3476_v20, %v11989_v23 }
 0x2af   : > { %3039 = vmatprep.mubr.bf16.mxu0 %v11887_v51  ;;  %v10459_v51 = vld [vmem:[#allocation5 + $0x228] sm:$0xff]   ;;  %v12046_v41 = vsub.s32 %v3475_v17, %v3528_v61  ;;  %v12063_v17 = vadd.s32 18, %v12040_v43 }
 0x2b0   : > { %9647 = vmatpush3.bf16.msra.mxu0 %v10457_v62  ;;  %v3538_v32 = vshrl.u32 %v11990_v21, 4  ;;  %v12049_v62 = vmul.u32.u64.low 3817748708, %v12033_v53  ;;  %v12050_v15 = vmul.u32.u64.high 3817748708, %v12033_v53, %v12049_v62 }
 0x2b1   : > { %9648 = vmatprep.subr.bf16.mxu0 %v10459_v51  ;;  %vm3907_vm10 = vcmp.ne.s32.totalorder %v12046_v41, 0  ;;  %vm3943_vm11 = vcmp.lt.s32.totalorder %v12046_v41, 0  ;;  %v12073_v4 = vadd.s32 18, %v12046_v41  ;;  %v12204_v62 = vadd.s32 120, %v11975_v55 }
 0x2b2   : > { %v3539_v11 = vmul.u32 18, %v3538_v32  ;;  %v3593_v32 = vshrl.u32 %v12044_v22, 4  ;;  %vm12103_vm3 = vmand %vm3943_vm11, %vm3907_vm10  ;;  %v3604_v27 = vshrl.u32 %v12050_v15, 4 }
 0x2b4   : > { %9649 = vmatpush3.bf16.msra.mxu0 %v10459_v51  ;;  %v12052_v19 = vsub.s32 %v3476_v20, %v3539_v11  ;;  %v12067_v20 = vadd.s32 72, %v11975_v55  ;;  %v12077_v51 = vadd.s32 80, %v11975_v55  ;;  %v3594_v24 = vmul.u32 18, %v3593_v32 }
 0x2b5   : > { %9650 = vmatprep.subr.bf16.mxu0 %v10461_v44  ;;  %v12059_v23 = vpop.f32.mrb[16].mxu1  ;;  %v3605_v25 = vmul.u32 18, %v3604_v27  ;;  %v12166_v32 = vadd.s32 104, %v11975_v55 }
 0x2b6   : > { %3040 = vmatmul.mubr.bf16.gmra.mrb[64].mxu0 %v11884_v45  ;;  %v2744_v45 = vsel %vm2672_vm4, %v2739_v33, %v2743_v1  ;;  %15091 = vst [vmem:[#allocation24_spill] sm:$0xff] %v12059_v23  ;;  %v12069_v21 = vpop.f32.mrb[17].mxu1  ;;  %vm3908_vm12 = vcmp.ne.s32.totalorder %v12052_v19, 0  ;;  %vm3944_vm13 = vcmp.lt.s32.totalorder %v12052_v19, 0  ;;  %v12083_v26 = vadd.s32 18, %v12052_v19 }
 0x2b7   : > { %3047 = vmatprep.mubr.bf16.mxu0 %v11892_v35  ;;  %v12013_v35 = vadd.s32 40, %v11975_v55  ;;  %15092 = vst [vmem:[#allocation25_spill] sm:$0xff] %v12069_v21  ;;  %v12079_v1 = vpop.f32.mrb[18].mxu1  ;;  %v12109_v49 = vmul.u32.u64.low 3817748708, %v12067_v20  ;;  %v12110_v52 = vmul.u32.u64.high 3817748708, %v12067_v20, %v12109_v49  ;;  %vm12117_vm4 = vmand %vm3944_vm13, %vm3908_vm12  ;;  %v15122_v21 = vshll.u32 %v11949_v6, 16 }
 0x2b8   : > { %9651 = vmatpush3.bf16.msra.mxu0 %v10461_v44  ;;  %15093 = vst [vmem:[#allocation26_spill] sm:$0xff] %v12079_v1  ;;  %v3582_v44 = vshrl.u32 %v12037_v10, 4  ;;  %v12086_v16 = vpop.f32.mrb[19].mxu1  ;;  %v12125_v61 = vmul.u32.u64.low 3817748708, %v12077_v51  ;;  %v12126_v11 = vmul.u32.u64.high 3817748708, %v12077_v51, %v12125_v61  ;;  %v15101_v10 = vmov 0  ;;  %vm12217_vm13 = vmand %vm3946_vm7, %vm3910_vm6 }
 0x2b9   : > { %v12026_v33 = vmul.u32.u64.low 3817748708, %v12013_v35  ;;  %v12027_v34 = vmul.u32.u64.high 3817748708, %v12013_v35, %v12026_v33  ;;  %9652 = vmatprep.subr.bf16.mxu0 %v10465_v5  ;;  %15094 = vst [vmem:[#allocation27_spill] sm:$0xff] %v12086_v16  ;;  %v15102_v10 = vsel %vm12131_vm5, 4294967295, %v15101_v10  ;;  %v12179_v61 = vsub.s32 %v12030_v37, %v3594_v24 }
 0x2ba   : > { %v12113_v33 = vadd.s32 88, %v11975_v55  ;;  %v3583_v28 = vmul.u32 18, %v3582_v44  ;;  %v3626_v37 = vshrl.u32 %v12126_v11, 4 }
 0x2bb   : > { %v3571_v63 = vshrl.u32 %v12027_v34, 4  ;;  %v15099_v34 = vmov 0  ;;  %15106 = vst [vmem:[#allocation31_spill] sm:$0xff] %v12179_v61  ;;  %vm3913_vm12 = vcmp.ne.s32.totalorder %v12179_v61, 0  ;;  %vm3949_vm15 = vcmp.lt.s32.totalorder %v12179_v61, 0 }
 0x2bc   : > { %9653 = vmatpush3.bf16.msra.mxu0 %v10465_v5  ;;  %v15100_v34 = vsel %vm12117_vm4, 4294967295, %v15099_v34  ;;  %v12122_v5 = vadd.s32 18, %v12056_v13  ;;  %v12154_v44 = vmul.u32.u64.low 3817748708, %v12113_v33  ;;  %v12155_v49 = vmul.u32.u64.high 3817748708, %v12113_v33, %v12154_v44 }
 0x2bd   : > { %v3572_v2 = vmul.u32 18, %v3571_v63  ;;  %v4446_v63 = vld [vmem:[#allocation3] sm:$0xc]  ;;  %v12171_v27 = vsub.s32 %v12022_v40, %v3583_v28  ;;  %v12189_v40 = vsub.s32 %v12033_v53, %v3605_v25  ;;  %v12194_v28 = vrot.slane %v4581_v59, 3 }
 0x2be   : > { %3048 = vmatmul.mubr.bf16.gmra.mrb[68].mxu0 %v2744_v45  ;;  %v9015_v44 = vcombine.low %v4446_v63, %v11945_v58  ;;  %v3615_v58 = vshrl.u32 %v12110_v52, 4  ;;  %v12198_v24 = vmul.u32.u64.low 3817748708, %v12166_v32  ;;  %v12199_v63 = vmul.u32.u64.high 3817748708, %v12166_v32, %v12198_v24 }
 0x2bf   : > { %v12147_v15 = vsub.s32 %v12013_v35, %v3572_v2  ;;  %v12162_v35 = vmul.u32.u64.low 3817748708, %v12129_v38  ;;  %v12163_v2 = vmul.u32.u64.high 3817748708, %v12129_v38, %v12162_v35  ;;  %15105 = vst [vmem:[#allocation30_spill] sm:$0xff] %v12171_v27  ;;  %15108 = vst [vmem:[#allocation33_spill] sm:$0xff] %v12189_v40  ;;  %vm3912_vm10 = vcmp.ne.s32.totalorder %v12171_v27, 0 }
 0x2c0   : > { %v12182_v35 = vadd.s32 112, %v11975_v55  ;;  %15109 = vst [vmem:[#allocation34_spill] sm:$0xff] %v12194_v28  ;;  %vm3948_vm11 = vcmp.lt.s32.totalorder %v12171_v27, 0  ;;  %v5219_v53 = vshrl.u32 %v9015_v44, 16  ;;  %v5222_v11 = vshll.u32 %v9015_v44, 16 }
 0x2c1   : > { %15104 = vst [vmem:[#allocation29_spill] sm:$0xff] %v12147_v15  ;;  %vm3911_vm8 = vcmp.ne.s32.totalorder %v12147_v15, 0  ;;  %vm3947_vm9 = vcmp.lt.s32.totalorder %v12147_v15, 0  ;;  %v12186_v12 = vadd.s32 18, %v12147_v15  ;;  %v15111_v24 = vmov 0  ;;  %vm12245_vm7 = vmand %vm3948_vm11, %vm3912_vm10 }
 0x2c2   : > { %v12208_v52 = vmul.u32.u64.low 3817748708, %v12182_v35  ;;  %v12209_v59 = vmul.u32.u64.high 3817748708, %v12182_v35, %v12208_v52  ;;  %v15112_v24 = vsel %vm12217_vm13, 4294967295, %v15111_v24  ;;  %vm3914_vm0 = vcmp.ne.s32.totalorder %v12189_v40, 0  ;;  %vm12232_vm2 = vmand %vm3947_vm9, %vm3911_vm8 }
 0x2c3   : > { %15107 = vst [vmem:[#allocation32_spill] sm:$0xff] %v12186_v12  ;;  %v3616_v22 = vmul.u32 18, %v3615_v58  ;;  %v15114_v44 = vmov 0  ;;  %vm3950_vm6 = vcmp.lt.s32.totalorder %v12189_v40, 0  ;;  %v3637_v1 = vshrl.u32 %v12155_v49, 4  ;;  %vm12266_vm8 = vmand %vm3949_vm15, %vm3913_vm12 }
 0x2c4   : > { %v15115_v44 = vsel %vm12232_vm2, 4294967295, %v15114_v44  ;;  %v3648_v58 = vshrl.u32 %v12163_v2, 4  ;;  %v12250_v16 = vadd.s32 18, %v12171_v27  ;;  %v15126_v29 = vsel %vm12266_vm8, 4294967295, %v15125_v29  ;;  %vm12288_vm9 = vmand %vm3950_vm6, %vm3914_vm0 }
 0x2c5   : > { %v12211_v25 = vpop.f32.mrb[20].mxu1  ;;  %15116 = vst [vmem:[#allocation37_spill] sm:$0xff] %v15115_v44  ;;  %v12257_v49 = vmul.u32.u64.low 3817748708, %v12204_v62  ;;  %v12258_v2 = vmul.u32.u64.high 3817748708, %v12204_v62, %v12257_v49  ;;  %15127 = vst [vmem:[#allocation43_spill] sm:$0xff] %v15126_v29  ;;  %v12271_v9 = vadd.s32 18, %v12179_v61  ;;  %v12293_v42 = vsub.s32 %v12067_v20, %v3616_v22 }
 0x2c6   : > { %15110 = vst [vmem:[#allocation35_spill] sm:$0xff] %v12211_v25  ;;  %v12226_v52 = vpop.f32.mrb[21].mxu1  ;;  %v3627_v25 = vmul.u32 18, %v3626_v37  ;;  %15121 = vst [vmem:[#allocation40_spill] sm:$0xff] %v12250_v16  ;;  %v12254_v37 = vrot.slane %v15122_v21, 4  ;;  %v12274_v6 = vadd.s32 18, %v12189_v40 }
 0x2c7   : > { %15113 = vst [vmem:[#allocation36_spill] sm:$0xff] %v12226_v52  ;;  %v12239_v23 = vpop.f32.mrb[22].mxu1  ;;  %v15118_v52 = vmov 0  ;;  %15128 = vst [vmem:[#allocation44_spill] sm:$0xff] %v12271_v9  ;;  %v12276_v21 = vrot.slane %v5219_v53, 2  ;;  %v12278_v60 = vrot.slane %v5222_v11, 3 }
 0x2c8   : > { %15117 = vst [vmem:[#allocation38_spill] sm:$0xff] %v12239_v23  ;;  %v15119_v52 = vsel %vm12245_vm7, 4294967295, %v15118_v52  ;;  %15123 = vst [vmem:[#allocation41_spill] sm:$0xff] %v12254_v37  ;;  %v12260_v23 = vpop.f32.mrb[23].mxu1  ;;  %v12296_v53 = vmul.u32.u64.low 3817748708, %v12224_v57  ;;  %v12297_v11 = vmul.u32.u64.high 3817748708, %v12224_v57, %v12296_v53  ;;  %v12300_v50 = vsub.s32 %v12077_v51, %v3627_v25 }
 0x2c9   : > { %15120 = vst [vmem:[#allocation39_spill] sm:$0xff] %v15119_v52  ;;  %15124 = vst [vmem:[#allocation42_spill] sm:$0xff] %v12260_v23  ;;  %v15132_v23 = vmov 0  ;;  %v3638_v3 = vmul.u32 18, %v3637_v1  ;;  %v3649_v49 = vmul.u32 18, %v3648_v58  ;;  %v3659_v54 = vshrl.u32 %v12199_v63, 4 }
 0x2ca   : > { %15129 = vst [vmem:[#allocation45_spill] sm:$0xff] %v12274_v6  ;;  %15130 = vst [vmem:[#allocation46_spill] sm:$0xff] %v12276_v21  ;;  %v15133_v23 = vsel %vm12288_vm9, 4294967295, %v15132_v23  ;;  %v12314_v51 = vadd.s32 136, %v11975_v55  ;;  %v3670_v25 = vshrl.u32 %v12209_v59, 4  ;;  %vm3915_vm10 = vcmp.ne.s32.totalorder %v12293_v42, 0 }
 0x2cb   : > { %15131 = vst [vmem:[#allocation47_spill] sm:$0xff] %v12278_v60  ;;  %15134 = vst [vmem:[#allocation48_spill] sm:$0xff] %v15133_v23  ;;  %vm3951_vm11 = vcmp.lt.s32.totalorder %v12293_v42, 0  ;;  %v12330_v53 = vadd.s32 18, %v12293_v42  ;;  %v12333_v22 = vadd.s32 144, %v11975_v55  ;;  %vm3916_vm12 = vcmp.ne.s32.totalorder %v12300_v50, 0 }
 0x2cc   : > { %15135 = vst [vmem:[#allocation49_spill] sm:$0xff] %v12293_v42  ;;  %15136 = vst [vmem:[#allocation50_spill] sm:$0xff] %v12300_v50  ;;  %v12337_v1 = vsub.s32 %v12113_v33, %v3638_v3  ;;  %v12340_v59 = vsub.s32 %v12129_v38, %v3649_v49  ;;  %v3660_v63 = vmul.u32 18, %v3659_v54  ;;  %v3681_v58 = vshrl.u32 %v12258_v2, 4 }
 0x2cd   : > { %15137 = vst [vmem:[#allocation51_spill] sm:$0xff] %v12330_v53  ;;  %v12344_v20 = vmul.u32.u64.low 3817748708, %v12314_v51  ;;  %v12345_v47 = vmul.u32.u64.high 3817748708, %v12314_v51, %v12344_v20  ;;  %v12348_v28 = vadd.s32 152, %v11975_v55  ;;  %v12352_v37 = vadd.s32 18, %v12300_v50  ;;  %vm12423_vm15 = vmand %vm3951_vm11, %vm3915_vm10 }
 0x2ce   : > { %15138 = vst [vmem:[#allocation52_spill] sm:$0xff] %v12337_v1  ;;  %15139 = vst [vmem:[#allocation53_spill] sm:$0xff] %v12340_v59  ;;  %v3671_v3 = vmul.u32 18, %v3670_v25  ;;  %v12355_v33 = vadd.s32 160, %v11975_v55  ;;  %v3692_v54 = vshrl.u32 %v12297_v11, 4  ;;  %v12363_v49 = vadd.s32 168, %v11975_v55 }
 0x2cf   : > { %15140 = vst [vmem:[#allocation54_spill] sm:$0xff] %v12352_v37  ;;  %v12359_v38 = vmul.u32.u64.low 3817748708, %v12333_v22  ;;  %v12360_v2 = vmul.u32.u64.high 3817748708, %v12333_v22, %v12359_v38  ;;  %v12368_v20 = vadd.s32 18, %v12337_v1  ;;  %v12371_v25 = vsub.s32 %v12166_v32, %v3660_v63 }
 0x2d0   : > { %v3682_v11 = vmul.u32 18, %v3681_v58  ;;  %v12375_v21 = vmul.u32.u64.low 3817748708, %v12348_v28  ;;  %v12376_v60 = vmul.u32.u64.high 3817748708, %v12348_v28, %v12375_v21  ;;  %v12380_v38 = vsub.s32 %v12182_v35, %v3671_v3 }
 0x2d1   : > { %15141 = vst [vmem:[#allocation55_spill] sm:$0xff] %v12368_v20  ;;  %15142 = vst [vmem:[#allocation56_spill] sm:$0xff] %v12371_v25  ;;  %v12383_v40 = vmul.u32.u64.low 3817748708, %v12355_v33  ;;  %v12384_v6 = vmul.u32.u64.high 3817748708, %v12355_v33, %v12383_v40  ;;  %v3693_v32 = vmul.u32 18, %v3692_v54  ;;  %v12393_v58 = vadd.s32 176, %v11975_v55 }
 0x2d2   : > { %15143 = vst [vmem:[#allocation57_spill] sm:$0xff] %v12380_v38  ;;  %v12389_v63 = vmul.u32.u64.low 3817748708, %v12363_v49  ;;  %v12390_v18 = vmul.u32.u64.high 3817748708, %v12363_v49, %v12389_v63  ;;  %v12398_v36 = vadd.s32 18, %v12340_v59  ;;  %v12402_v35 = vadd.s32 184, %v11975_v55 }
 0x2d3   : > { %v12407_v3 = vadd.s32 192, %v11975_v55  ;;  %v12411_v54 = vadd.s32 18, %v12371_v25  ;;  %v12414_v63 = vsub.s32 %v12204_v62, %v3682_v11  ;;  %v12430_v14 = vadd.s32 18, %v12380_v38 }
 0x2d4   : > { %15146 = vst [vmem:[#allocation60_spill] sm:$0xff] %v12398_v36  ;;  %v12433_v62 = vadd.s32 200, %v11975_v55  ;;  %vm15155_vm0 = vcmp.lt.s32.totalorder %v12300_v50, 0  ;;  %v12444_v11 = vsub.s32 %v12224_v57, %v3693_v32  ;;  %vm15160_vm10 = vcmp.ne.s32.totalorder %v12337_v1, 0 }
 0x2d5   : > { %15148 = vst [vmem:[#allocation62_spill] sm:$0xff] %v12411_v54  ;;  %15149 = vst [vmem:[#allocation63_spill] sm:$0xff] %v12414_v63  ;;  %v12448_v61 = vmul.u32.u64.low 3817748708, %v12393_v58  ;;  %v12449_v9 = vmul.u32.u64.high 3817748708, %v12393_v58, %v12448_v61  ;;  %vm15161_vm11 = vcmp.lt.s32.totalorder %v12337_v1, 0  ;;  %v15162_v29 = vmov 0 }
 0x2d6   : > { %v12386_v23 = vpop.f32.mrb[24].mxu1  ;;  %15154 = vst [vmem:[#allocation66_spill] sm:$0xff] %v12430_v14  ;;  %vm12439_vm9 = vmand %vm15155_vm0, %vm3916_vm12  ;;  %v12460_v27 = vmul.u32.u64.low 3817748708, %v12402_v35  ;;  %v12461_v16 = vmul.u32.u64.high 3817748708, %v12402_v35, %v12460_v27  ;;  %v12464_v57 = vmul.u32.u64.low 3817748708, %v12407_v3  ;;  %v12465_v32 = vmul.u32.u64.high 3817748708, %v12407_v3, %v12464_v57 }
 0x2d7   : > { %15144 = vst [vmem:[#allocation58_spill] sm:$0xff] %v12386_v23  ;;  %v12395_v21 = vpop.f32.mrb[25].mxu1  ;;  %v3703_v23 = vshrl.u32 %v12345_v47, 4  ;;  %v15156_v47 = vmov 0  ;;  %15159 = vst [vmem:[#allocation68_spill] sm:$0xff] %v12444_v11  ;;  %vm15165_vm12 = vcmp.ne.s32.totalorder %v12340_v59, 0 }
 0x2d8   : > { %15145 = vst [vmem:[#allocation59_spill] sm:$0xff] %v12395_v21  ;;  %v12404_v40 = vpop.f32.mrb[26].mxu1  ;;  %v15157_v47 = vsel %vm12439_vm9, 4294967295, %v15156_v47  ;;  %vm12455_vm6 = vmand %vm15161_vm11, %vm15160_vm10  ;;  %vm15166_vm0 = vcmp.lt.s32.totalorder %v12340_v59, 0  ;;  %v15167_v61 = vmov 0  ;;  %vm3921_vm10 = vcmp.ne.s32.totalorder %v12414_v63, 0 }
 0x2d9   : > { %15147 = vst [vmem:[#allocation61_spill] sm:$0xff] %v12404_v40  ;;  %v12417_v21 = vpop.f32.mrb[27].mxu1  ;;  %v15151_v40 = vmov 0  ;;  %15158 = vst [vmem:[#allocation67_spill] sm:$0xff] %v15157_v47  ;;  %v15163_v29 = vsel %vm12455_vm6, 4294967295, %v15162_v29  ;;  %v3725_v52 = vshrl.u32 %v12376_v60, 4 }
 0x2da   : > { %15150 = vst [vmem:[#allocation64_spill] sm:$0xff] %v12417_v21  ;;  %v15152_v40 = vsel %vm12423_vm15, 4294967295, %v15151_v40  ;;  %v3714_v21 = vshrl.u32 %v12360_v2, 4  ;;  %15164 = vst [vmem:[#allocation69_spill] sm:$0xff] %v15163_v29  ;;  %v3704_v2 = vmul.u32 18, %v3703_v23  ;;  %vm15170_vm8 = vcmp.ne.s32.totalorder %v12371_v25, 0 }
 0x2db   : > { %15153 = vst [vmem:[#allocation65_spill] sm:$0xff] %v15152_v40  ;;  %vm12471_vm1 = vmand %vm15166_vm0, %vm15165_vm12  ;;  %vm15171_vm7 = vcmp.lt.s32.totalorder %v12371_v25, 0  ;;  %v15172_v27 = vmov 0  ;;  %v12487_v57 = vadd.s32 18, %v12414_v63  ;;  %v3736_v15 = vshrl.u32 %v12384_v6, 4 }
 0x2dc   : > { %v15168_v61 = vsel %vm12471_vm1, 4294967295, %v15167_v61  ;;  %vm12482_vm2 = vmand %vm15171_vm7, %vm15170_vm8  ;;  %v12491_v12 = vmul.u32.u64.low 3817748708, %v12433_v62  ;;  %v12492_v44 = vmul.u32.u64.high 3817748708, %v12433_v62, %v12491_v12  ;;  %vm15176_vm12 = vcmp.ne.s32.totalorder %v12380_v38, 0 }
 0x2dd   : > { %15169 = vst [vmem:[#allocation70_spill] sm:$0xff] %v15168_v61  ;;  %v15173_v27 = vsel %vm12482_vm2, 4294967295, %v15172_v27  ;;  %15175 = vst [vmem:[#allocation72_spill] sm:$0xff] %v12487_v57  ;;  %vm15177_vm0 = vcmp.lt.s32.totalorder %v12380_v38, 0  ;;  %v15178_v60 = vmov 0  ;;  %vm3922_vm7 = vcmp.ne.s32.totalorder %v12444_v11, 0 }
 0x2de   : > { %15174 = vst [vmem:[#allocation71_spill] sm:$0xff] %v15173_v27  ;;  %vm12498_vm11 = vmand %vm15177_vm0, %vm15176_vm12  ;;  %vm3958_vm8 = vcmp.lt.s32.totalorder %v12444_v11, 0  ;;  %v3715_v23 = vmul.u32 18, %v3714_v21  ;;  %v3747_v56 = vshrl.u32 %v12390_v18, 4  ;;  %vm15181_vm12 = vcmp.lt.s32.totalorder %v12414_v63, 0 }
 0x2df   : > { %v15179_v60 = vsel %vm12498_vm11, 4294967295, %v15178_v60  ;;  %vm12521_vm0 = vmand %vm15181_vm12, %vm3921_vm10  ;;  %v15182_v18 = vmov 0  ;;  %v12526_v21 = vadd.s32 208, %v11975_v55  ;;  %v12533_v12 = vadd.s32 18, %v12444_v11 }
 0x2e0   : > { %15180 = vst [vmem:[#allocation73_spill] sm:$0xff] %v15179_v60  ;;  %v15183_v18 = vsel %vm12521_vm0, 4294967295, %v15182_v18  ;;  %v12536_v7 = vsub.s32 %v12314_v51, %v3704_v2  ;;  %v3726_v1 = vmul.u32 18, %v3725_v52  ;;  %vm12550_vm10 = vmand %vm3958_vm8, %vm3922_vm7  ;;  %v15187_v6 = vmov 0 }
 0x2e1   : > { %15184 = vst [vmem:[#allocation74_spill] sm:$0xff] %v15183_v18  ;;  %15185 = vst [vmem:[#allocation75_spill] sm:$0xff] %v12533_v12  ;;  %v15188_v6 = vsel %vm12550_vm10, 4294967295, %v15187_v6  ;;  %v3737_v51 = vmul.u32 18, %v3736_v15  ;;  %v12555_v52 = vadd.s32 216, %v11975_v55  ;;  %v12562_v20 = vsub.s32 %v12333_v22, %v3715_v23 }
 0x2e2   : > { %15186 = vst [vmem:[#allocation76_spill] sm:$0xff] %v12536_v7  ;;  %15189 = vst [vmem:[#allocation77_spill] sm:$0xff] %v15188_v6  ;;  %v3748_v29 = vmul.u32 18, %v3747_v56  ;;  %v3758_v38 = vshrl.u32 %v12449_v9, 4  ;;  %v3769_v14 = vshrl.u32 %v12461_v16, 4  ;;  %v3780_v60 = vshrl.u32 %v12465_v32, 4 }
 0x2e3   : > { %v12568_v15 = vmul.u32.u64.low 3817748708, %v12526_v21  ;;  %v12569_v25 = vmul.u32.u64.high 3817748708, %v12526_v21, %v12568_v15  ;;  %v12578_v56 = vsub.s32 %v12348_v28, %v3726_v1  ;;  %v12581_v9 = vsub.s32 %v12355_v33, %v3737_v51 }
 0x2e4   : > { %v3791_v16 = vshrl.u32 %v12492_v44, 4  ;;  %v12585_v22 = vmul.u32.u64.low 3817748708, %v12555_v52  ;;  %v12586_v32 = vmul.u32.u64.high 3817748708, %v12555_v52, %v12585_v22  ;;  %v12591_v15 = vadd.s32 18, %v12536_v7 }
 0x2e5   : > { %15190 = vst [vmem:[#allocation78_spill] sm:$0xff] %v12578_v56  ;;  %v3759_v18 = vmul.u32 18, %v3758_v38  ;;  %v12597_v28 = vadd.s32 224, %v11975_v55  ;;  %v12601_v44 = vsub.s32 %v12363_v49, %v3748_v29  ;;  %v3770_v1 = vmul.u32 18, %v3769_v14 }
 0x2e6   : > { %v3781_v33 = vmul.u32 18, %v3780_v60  ;;  %v12606_v22 = vadd.s32 18, %v12562_v20  ;;  %v3792_v14 = vmul.u32 18, %v3791_v16  ;;  %v12620_v29 = vadd.s32 240, %v11975_v55 }
 0x2e7   : > { %v12624_v49 = vsub.s32 %v12393_v58, %v3759_v18  ;;  %v3802_v16 = vshrl.u32 %v12569_v25, 4  ;;  %vm15198_vm8 = vcmp.ne.s32.totalorder %v12536_v7, 0  ;;  %vm15199_vm10 = vcmp.lt.s32.totalorder %v12536_v7, 0 }
 0x2e8   : > { %v12635_v11 = vsub.s32 %v12407_v3, %v3781_v33  ;;  %vm12642_vm12 = vmand %vm15199_vm10, %vm15198_vm8  ;;  %vm15202_vm7 = vcmp.ne.s32.totalorder %v12562_v20, 0  ;;  %vm15203_vm11 = vcmp.lt.s32.totalorder %v12562_v20, 0  ;;  %v12663_v3 = vsub.s32 %v12433_v62, %v3792_v14 }
 0x2e9   : > { %15195 = vst [vmem:[#allocation83_spill] sm:$0xff] %v12624_v49  ;;  %vm12658_vm2 = vmand %vm15203_vm11, %vm15202_vm7  ;;  %v12667_v33 = vmul.u32.u64.low 3817748708, %v12620_v29  ;;  %v12668_v12 = vmul.u32.u64.high 3817748708, %v12620_v29, %v12667_v33  ;;  %vm15207_vm10 = vcmp.ne.s32.totalorder %v12578_v56, 0  ;;  %vm15208_vm8 = vcmp.lt.s32.totalorder %v12578_v56, 0 }
 0x2ea   : > { %15197 = vst [vmem:[#allocation85_spill] sm:$0xff] %v12635_v11  ;;  %15206 = vst [vmem:[#allocation86_spill] sm:$0xff] %v12663_v3  ;;  %v12679_v6 = vadd.s32 18, %v12581_v9  ;;  %v12682_v62 = vadd.s32 18, %v12601_v44  ;;  %vm3928_vm11 = vcmp.ne.s32.totalorder %v12624_v49, 0  ;;  %vm3964_vm7 = vcmp.lt.s32.totalorder %v12624_v49, 0 }
 0x2eb   : > { %vm12674_vm0 = vmand %vm15208_vm8, %vm15207_vm10  ;;  %vm15211_vm1 = vcmp.ne.s32.totalorder %v12581_v9, 0  ;;  %vm15212_vm6 = vcmp.lt.s32.totalorder %v12581_v9, 0  ;;  %vm3930_vm15 = vcmp.ne.s32.totalorder %v12635_v11, 0  ;;  %v3803_v14 = vmul.u32 18, %v3802_v16 }
 0x2ec   : > { %v12588_v23 = vpop.f32.mrb[28].mxu1  ;;  %vm12690_vm9 = vmand %vm15212_vm6, %vm15211_vm1  ;;  %vm15216_vm13 = vcmp.ne.s32.totalorder %v12601_v44, 0  ;;  %vm15217_vm5 = vcmp.lt.s32.totalorder %v12601_v44, 0  ;;  %v15218_v33 = vmov 0  ;;  %v12711_v54 = vadd.s32 256, %v11975_v55 }
 0x2ed   : > { %15191 = vst [vmem:[#allocation79_spill] sm:$0xff] %v12588_v23  ;;  %v12594_v2 = vpop.f32.mrb[29].mxu1  ;;  %v12613_v23 = vadd.s32 232, %v11975_v55  ;;  %vm12701_vm4 = vmand %vm15217_vm5, %vm15216_vm13  ;;  %v15220_v27 = vmov 0  ;;  %v12718_v16 = vadd.s32 18, %v12624_v49  ;;  %vm3931_vm5 = vcmp.ne.s32.totalorder %v12663_v3, 0 }
 0x2ee   : > { %15192 = vst [vmem:[#allocation80_spill] sm:$0xff] %v12594_v2  ;;  %v12603_v51 = vpop.f32.mrb[30].mxu1  ;;  %v12616_v2 = vadd.s32 18, %v12578_v56  ;;  %v15219_v33 = vsel %vm12701_vm4, 4294967295, %v15218_v33  ;;  %vm12713_vm6 = vmand %vm3964_vm7, %vm3928_vm11  ;;  %vm3967_vm13 = vcmp.lt.s32.totalorder %v12663_v3, 0  ;;  %v15222_v36 = vmov 0 }
 0x2ef   : > { %15193 = vst [vmem:[#allocation81_spill] sm:$0xff] %v12603_v51  ;;  %v12610_v38 = vpop.f32.mrb[31].mxu1  ;;  %v12627_v60 = vmul.u32.u64.low 3817748708, %v12597_v28  ;;  %v12628_v51 = vmul.u32.u64.high 3817748708, %v12597_v28, %v12627_v60  ;;  %v15221_v27 = vsel %vm12713_vm6, 4294967295, %v15220_v27  ;;  %v12734_v37 = vadd.s32 264, %v11975_v55 }
 0x2f0   : > { %15194 = vst [vmem:[#allocation82_spill] sm:$0xff] %v12610_v38  ;;  %v12632_v38 = vsub.s32 %v12402_v35, %v3770_v1  ;;  %v12648_v18 = vmul.u32.u64.low 3817748708, %v12613_v23  ;;  %v12649_v60 = vmul.u32.u64.high 3817748708, %v12613_v23, %v12648_v18  ;;  %v12652_v35 = vadd.s32 248, %v11975_v55 }
 0x2f1   : > { %v3813_v1 = vshrl.u32 %v12586_v32, 4  ;;  %v15213_v32 = vmov 0  ;;  %v12730_v61 = vmul.u32.u64.low 3817748708, %v12711_v54  ;;  %v12731_v50 = vmul.u32.u64.high 3817748708, %v12711_v54, %v12730_v61 }
 0x2f2   : > { %15196 = vst [vmem:[#allocation84_spill] sm:$0xff] %v12632_v38  ;;  %v15214_v32 = vsel %vm12690_vm9, 4294967295, %v15213_v32  ;;  %vm3929_vm10 = vcmp.ne.s32.totalorder %v12632_v38, 0  ;;  %vm3965_vm8 = vcmp.lt.s32.totalorder %v12632_v38, 0  ;;  %v12746_v42 = vadd.s32 18, %v12632_v38 }
 0x2f3   : > { %15215 = vst [vmem:[#allocation87_spill] sm:$0xff] %v15214_v32  ;;  %v12707_v63 = vmul.u32.u64.low 3817748708, %v12652_v35  ;;  %v12708_v57 = vmul.u32.u64.high 3817748708, %v12652_v35, %v12707_v63  ;;  %v3814_v59 = vmul.u32 18, %v3813_v1  ;;  %vm12724_vm1 = vmand %vm3965_vm8, %vm3929_vm10  ;;  %v15225_v1 = vsel %vm12092_vm14, %v12063_v17, %v12040_v43 }
 0x2f4   : > { %v15223_v36 = vsel %vm12724_vm1, 4294967295, %v15222_v36  ;;  %v3824_v63 = vshrl.u32 %v12628_v51, 4  ;;  %vm12741_vm11 = vcmp.lt.s32.totalorder %v15225_v1, 16  ;;  %15228 = vst [vmem:[#allocation89_spill] sm:$0xff] %v12746_v42  ;;  %vm15229_vm7 = vcmp.lt.s32.totalorder %v12635_v11, 0  ;;  %vm12771_vm14 = vmand %vm3967_vm13, %vm3931_vm5 }
 0x2f5   : > { %15224 = vst [vmem:[#allocation88_spill] sm:$0xff] %v15223_v36  ;;  %vm12752_vm10 = vmand %vm15229_vm7, %vm3930_vm15  ;;  %v15230_v61 = vmov 0  ;;  %v12757_v45 = vadd.s32 18, %v12635_v11  ;;  %v12760_v43 = vadd.s32 18, %v12663_v3  ;;  %v12763_v17 = vsub.s32 %v12526_v21, %v3803_v14 }
 0x2f6   : > { %v15231_v61 = vsel %vm12752_vm10, 4294967295, %v15230_v61  ;;  %v15236_v1 = vmov 0  ;;  %v3835_v53 = vshrl.u32 %v12649_v60, 4  ;;  %v3846_v60 = vshrl.u32 %v12668_v12, 4  ;;  %v12793_v7 = vpop.f32.mrb[32].mxu1 }
 0x2f7   : > { %15232 = vst [vmem:[#allocation90_spill] sm:$0xff] %v15231_v61  ;;  %15233 = vst [vmem:[#allocation91_spill] sm:$0xff] %v12757_v45  ;;  %v15237_v1 = vsel %vm12771_vm14, 4294967295, %v15236_v1  ;;  %v12777_v40 = vmul.u32.u64.low 3817748708, %v12734_v37  ;;  %v12778_v48 = vmul.u32.u64.high 3817748708, %v12734_v37, %v12777_v40  ;;  %v12804_v14 = vsub.s32 %v12555_v52, %v3814_v59  ;;  %v12806_v32 = vpop.f32.mrb[33].mxu1 }
 0x2f8   : > { %15234 = vst [vmem:[#allocation92_spill] sm:$0xff] %v12760_v43  ;;  %15235 = vst [vmem:[#allocation93_spill] sm:$0xff] %v12763_v17  ;;  %v3825_v56 = vmul.u32 18, %v3824_v63  ;;  %v12811_v12 = vld [vmem:[%s14937_s2] ss:$0 sm:$0xff]  ;;  %vm3932_vm15 = vcmp.ne.s32.totalorder %v12763_v17, 0  ;;  %vm15249_vm7 = vnez %v15100_v34 }
 0x2f9   : > { %15238 = vst [vmem:[#allocation94_spill] sm:$0xff] %v15237_v1  ;;  %15239 = vst [vmem:[#allocation95_spill] sm:$0xff] %v12793_v7  ;;  %v12826_v63 = vpop.f32.mrb[34].mxu1  ;;  %v3836_v40 = vmul.u32 18, %v3835_v53  ;;  %v12834_v11 = vadd.s32 18, %v12763_v17  ;;  %v3847_v1 = vmul.u32 18, %v3846_v60 }
 0x2fa   : > { %15240 = vst [vmem:[#allocation96_spill] sm:$0xff] %v12804_v14  ;;  %15241 = vst [vmem:[#allocation97_spill] sm:$0xff] %v12806_v32  ;;  %v3857_v32 = vshrl.u32 %v12708_v57, 4  ;;  %v12831_v38 = vpop.f32.mrb[35].mxu1  ;;  %v3868_v52 = vshrl.u32 %v12731_v50, 4  ;;  %v12838_v3 = vadd.s32 272, %v11975_v55  ;;  %v12844_v53 = vsub.s32 %v12597_v28, %v3825_v56 }
 0x2fb   : > { %15242 = vst [vmem:[#allocation98_spill] sm:$0xff] %v12826_v63  ;;  %15243 = vst [vmem:[#allocation99_spill] sm:$0xff] %v12831_v38  ;;  %v15246_v57 = vsel %vm12103_vm3, %v12073_v4, %v12046_v41  ;;  %v3879_v56 = vshrl.u32 %v12778_v48, 4  ;;  %v12870_v41 = vadd.s32 280, %v11975_v55  ;;  %v12874_v34 = vsub.s32 %v12613_v23, %v3836_v40  ;;  %v15293_v50 = vld [vmem:[#allocation12_spill] sm:$0xff]  ;;  %v15308_v38 = vld [vmem:[#allocation29_spill] sm:$0xff] }
 0x2fc   : > { %15244 = vst [vmem:[#allocation100_spill] sm:$0xff] %v12834_v11  ;;  %15245 = vst [vmem:[#allocation101_spill] sm:$0xff] %v12844_v53  ;;  %vm12851_vm13 = vcmp.lt.s32.totalorder %v15246_v57, 16  ;;  %v12866_v46 = vmul.u32.u64.low 3817748708, %v12838_v3  ;;  %v12867_v28 = vmul.u32.u64.high 3817748708, %v12838_v3, %v12866_v46  ;;  %v3869_v60 = vmul.u32 18, %v3868_v52 }
 0x2fd   : > { %15253 = vst [vmem:[#allocation102_spill] sm:$0xff] %v12874_v34  ;;  %vm15255_vm5 = vcmp.lt.s32.totalorder %v12763_v17, 0  ;;  %v12900_v47 = vadd.s32 18, %v12844_v53  ;;  %vm15262_vm3 = vcmp.lt.s32.totalorder %v12804_v14, 0  ;;  %vm15267_vm10 = vcmp.ne.s32.totalorder %v12844_v53, 0  ;;  %v15307_v63 = vld [vmem:[#allocation32_spill] sm:$0xff] }
 0x2fe   : > { %vm12892_vm14 = vmand %vm15255_vm5, %vm3932_vm15  ;;  %vm3935_vm15 = vcmp.ne.s32.totalorder %v12874_v34, 0  ;;  %vm3971_vm5 = vcmp.lt.s32.totalorder %v12874_v34, 0  ;;  %vm15268_vm1 = vcmp.lt.s32.totalorder %v12844_v53, 0  ;;  %v10464_v43 = vld [vmem:[#allocation5 + $0x10] sm:$0xff]  }
 0x2ff   : > { %15260 = vst [vmem:[#allocation106_spill] sm:$0xff] %v12900_v47  ;;  %vm12920_vm6 = vmand %vm15268_vm1, %vm15267_vm10  ;;  %vm15273_vm1 = vnez %v15102_v10 }
 0x309   : > { %v2913_v51 = vpop.f32.mrb[0].mxu0 }
 0x30a   : > { %v3394_v21 = vadd.f32 %v11924_v39, %v2913_v51  ;;  %v2915_v7 = vpop.f32.mrb[1].mxu0 }
 0x30b   : > { %v2916_v59 = vpop.f32.mrb[2].mxu0 }
 0x30c   : > { %v3437_v39 = vadd.f32 %v12811_v12, %v3394_v21  ;;  %v3395_v7 = vadd.f32 %v11928_v31, %v2916_v59  ;;  %v2918_v51 = vpop.f32.mrb[3].mxu0  ;;  %v15250_v31 = vsel %vm15249_vm7, %v12083_v26, %v12052_v19  ;;  %v3858_v19 = vmul.u32 18, %v3857_v32 }
 0x30d   : > { %vm12860_vm8 = vcmp.lt.s32.totalorder %v15250_v31, 16  ;;  %v12877_v26 = vsub.s32 %v12620_v29, %v3847_v1  ;;  %v12880_v48 = vmul.u32.u64.low 3817748708, %v12870_v41  ;;  %v12881_v59 = vmul.u32.u64.high 3817748708, %v12870_v41, %v12880_v48 }
 0x30e   : > { %v4122_v4 = vmax.f32 %v3437_v39, 0.0  ;;  %v3438_v55 = vadd.f32 %v12811_v12, %v3395_v7  ;;  %v15256_v29 = vmov 0  ;;  %v12897_v32 = vadd.s32 18, %v12804_v14 }
 0x30f   : > { %15254 = vst [vmem:[#allocation103_spill] sm:$0xff] %v12877_v26  ;;  %v15257_v29 = vsel %vm12892_vm14, 4294967295, %v15256_v29  ;;  %v3880_v1 = vmul.u32 18, %v3879_v56  ;;  %v15263_v7 = vmov 0  ;;  %v12914_v57 = vsub.s32 %v12652_v35, %v3858_v19 }
 0x310   : > { %v4230_v51 = vsel %vm12741_vm11, %v4122_v4, 0.0  ;;  %15258 = vst [vmem:[#allocation104_spill] sm:$0xff] %v15257_v29  ;;  %15259 = vst [vmem:[#allocation105_spill] sm:$0xff] %v12897_v32  ;;  %vm15261_vm11 = vcmp.ne.s32.totalorder %v12804_v14, 0  ;;  %v12927_v56 = vsub.s32 %v12711_v54, %v3869_v60  ;;  %v3890_v35 = vshrl.u32 %v12867_v28, 4  ;;  %v15278_v54 = vld [vmem:[#allocation28_spill] sm:$0xff] }
 0x311   : > { %v9215_v23 = vpack.c.bf16 %v4230_v51, %v4230_v51  ;;  %v2921_v40 = vpop.f32.mrb[4].mxu0  ;;  %vm12907_vm7 = vmand %vm15262_vm3, %vm15261_vm11  ;;  %15266 = vst [vmem:[#allocation108_spill] sm:$0xff] %v12914_v57  ;;  %v4123_v46 = vmax.f32 %v3438_v55, 0.0  ;;  %v3901_v51 = vshrl.u32 %v12881_v59, 4  ;;  %vm15277_vm11 = vnez %v15112_v24  ;;  %v15330_v60 = vld [vmem:[#allocation11_spill] sm:$0xff] }
 0x312   : > { %v3396_v52 = vadd.f32 %v11922_v8, %v2921_v40  ;;  %v2923_v39 = vpop.f32.mrb[5].mxu0  ;;  %v15264_v7 = vsel %vm12907_vm7, 4294967295, %v15263_v7  ;;  %v15269_v8 = vmov 0  ;;  %15272 = vst [vmem:[#allocation110_spill] sm:$0xff] %v12927_v56  ;;  %v15279_v28 = vsel %vm15277_vm11, %v12175_v0, %v15278_v54  ;;  %vm12973_vm11 = vmand %vm3971_vm5, %vm3935_vm15 }
 0x313   : > { %15265 = vst [vmem:[#allocation107_spill] sm:$0xff] %v15264_v7  ;;  %4410 = vst [vmem:[#allocation3 + $0xc] sm:$0xf] %v9215_v23  ;;  %v2924_v31 = vpop.f32.mrb[6].mxu0  ;;  %v15270_v8 = vsel %vm12920_vm6, 4294967295, %v15269_v8  ;;  %v15274_v23 = vsel %vm15273_vm1, %v12122_v5, %v12056_v13  ;;  %vm12947_vm3 = vcmp.lt.s32.totalorder %v15279_v28, 16  ;;  %v12963_v10 = vsub.s32 %v12734_v37, %v3880_v1 }
 0x314   : > { %15271 = vst [vmem:[#allocation109_spill] sm:$0xff] %v15270_v8  ;;  %v3439_v4 = vadd.f32 %v12811_v12, %v3396_v52  ;;  %v3397_v19 = vadd.f32 %v11926_v30, %v2924_v31  ;;  %v2926_v48 = vpop.f32.mrb[7].mxu0  ;;  %vm12938_vm10 = vcmp.lt.s32.totalorder %v15274_v23, 16  ;;  %v12960_v5 = vadd.s32 18, %v12874_v34  ;;  %v4448_v37 = vld [vmem:[#allocation3 + $0x8] sm:$0xf] }
 0x315   : > { %15283 = vst [vmem:[#allocation111_spill] sm:$0xff] %v12963_v10  ;;  %v15284_v59 = vmov 0  ;;  %v12978_v55 = vadd.s32 18, %v12877_v26  ;;  %vm3937_vm1 = vcmp.ne.s32.totalorder %v12914_v57, 0  ;;  %vm15288_vm7 = vcmp.ne.s32.totalorder %v12877_v26, 0  ;;  %v15304_v30 = vld [vmem:[#allocation14_spill] sm:$0xff] }
 0x316   : > { %15282 = vst [vmem:[#allocation28_spill] sm:$0xff] %v12960_v5  ;;  %v4124_v0 = vmax.f32 %v3439_v4, 0.0  ;;  %v15285_v59 = vsel %vm12973_vm11, 4294967295, %v15284_v59  ;;  %vm15289_vm14 = vcmp.lt.s32.totalorder %v12877_v26, 0  ;;  %v15290_v1 = vmov 0  ;;  %v15354_v8 = vld [vmem:[#allocation16_spill] sm:$0xff] }
 0x317   : > { %15286 = vst [vmem:[#allocation112_spill] sm:$0xff] %v15285_v59  ;;  %15287 = vst [vmem:[#allocation113_spill] sm:$0xff] %v12978_v55  ;;  %vm3973_vm6 = vcmp.lt.s32.totalorder %v12914_v57, 0  ;;  %vm3938_vm15 = vcmp.ne.s32.totalorder %v12927_v56, 0  ;;  %vm3974_vm5 = vcmp.lt.s32.totalorder %v12927_v56, 0  ;;  %v3891_v52 = vmul.u32 18, %v3890_v35 }
 0x318   : > { %vm12985_vm4 = vmand %vm15289_vm14, %vm15288_vm7  ;;  %v4231_v39 = vsel %vm12851_vm13, %v4123_v46, 0.0  ;;  %v4232_v31 = vsel %vm12860_vm8, %v4124_v0, 0.0  ;;  %v3440_v4 = vadd.f32 %v12811_v12, %v3397_v19  ;;  %v4764_v48 = vld [vmem:[#allocation3 + $0x8] sm:$0x8]  ;;  %v3902_v23 = vmul.u32 18, %v3901_v51 }
 0x319   : > { %v15291_v1 = vsel %vm12985_vm4, 4294967295, %v15290_v1  ;;  %v9370_v54 = vpack.c.bf16 %v4232_v31, %v4231_v39  ;;  %v2929_v28 = vpop.f32.mrb[8].mxu0  ;;  %vm3939_vm14 = vcmp.ne.s32.totalorder %v12963_v10, 0  ;;  %vm3975_vm7 = vcmp.lt.s32.totalorder %v12963_v10, 0  ;;  %vm13012_vm8 = vmand %vm3973_vm6, %vm3937_vm1  ;;  %v10471_v7 = vld [vmem:[#allocation5 + $0x20] sm:$0xff]  }
 0x31a   : > { %15292 = vst [vmem:[#allocation114_spill] sm:$0xff] %v15291_v1  ;;  %v3398_v35 = vadd.f32 %v15293_v50, %v2929_v28  ;;  %v2931_v46 = vpop.f32.mrb[9].mxu0  ;;  %v4449_v21 = vld [vmem:[#allocation3 + $0xc] sm:$0xf]  ;;  %v15294_v51 = vmov 0  ;;  %v13017_v0 = vadd.s32 18, %v12914_v57  ;;  %vm13026_vm13 = vmand %vm3974_vm5, %vm3938_vm15  ;;  %v13034_v24 = vsub.s32 %v12838_v3, %v3891_v52 }
 0x31b   : > { %v15295_v51 = vsel %vm13012_vm8, 4294967295, %v15294_v51  ;;  %v13020_v39 = vadd.s32 18, %v12927_v56  ;;  %9491 = vst [vmem:[#allocation3 + $0x10] sm:$0xff] %v9370_v54   ;;  %v2932_v31 = vpop.f32.mrb[10].mxu0  ;;  %v9016_v28 = vcombine.low %v4448_v37, %v4449_v21  ;;  %v9036_v50 = vcombine.low %v4764_v48, %v4449_v21  ;;  %v15305_v48 = vld [vmem:[#allocation37_spill] sm:$0xff]  ;;  %vm13051_vm15 = vmand %vm3975_vm7, %vm3939_vm14  ;;  %v15315_v52 = vld [vmem:[#allocation39_spill] sm:$0xff] }
 0x31c   : > { %15296 = vst [vmem:[#allocation12_spill] sm:$0xff] %v15295_v51  ;;  %15297 = vst [vmem:[#allocation115_spill] sm:$0xff] %v13017_v0  ;;  %v15299_v46 = vmov 0  ;;  %v13031_v19 = vadd.s32 18, %v12963_v10  ;;  %v4125_v13 = vmax.f32 %v3440_v4, 0.0  ;;  %v3441_v54 = vadd.f32 %v12811_v12, %v3398_v35  ;;  %v2934_v1 = vpop.f32.mrb[11].mxu0 }
 0x31d   : > { %15298 = vst [vmem:[#allocation116_spill] sm:$0xff] %v13020_v39  ;;  %v15300_v46 = vsel %vm13026_vm13, 4294967295, %v15299_v46  ;;  %15303 = vst [vmem:[#allocation119_spill] sm:$0xff] %v13034_v24  ;;  %v3399_v37 = vadd.f32 %v15304_v30, %v2932_v31  ;;  %vm15306_vm6 = vnez %v15305_v48  ;;  %v15312_v3 = vmov 0  ;;  %v15317_v4 = vld [vmem:[#allocation40_spill] sm:$0xff] }
 0x31e   : > { %15301 = vst [vmem:[#allocation117_spill] sm:$0xff] %v15300_v46  ;;  %15302 = vst [vmem:[#allocation118_spill] sm:$0xff] %v13031_v19  ;;  %v15309_v26 = vsel %vm15306_vm6, %v15307_v63, %v15308_v38  ;;  %v15313_v3 = vsel %vm13051_vm15, 4294967295, %v15312_v3  ;;  %v13056_v30 = vsub.s32 %v12870_v41, %v3902_v23  ;;  %vm15316_vm5 = vnez %v15315_v52  ;;  %v15318_v38 = vld [vmem:[#allocation30_spill] sm:$0xff] }
 0x31f   : > { %vm13043_vm1 = vcmp.lt.s32.totalorder %v15309_v26, 16  ;;  %15314 = vst [vmem:[#allocation14_spill] sm:$0xff] %v15313_v3  ;;  %v15319_v63 = vsel %vm15316_vm5, %v15317_v4, %v15318_v38  ;;  %v4824_v1 = vshrl.u32 %v9036_v50, 16  ;;  %v4827_v35 = vshll.u32 %v9036_v50, 16  ;;  %v15323_v38 = vld [vmem:[#allocation43_spill] sm:$0xff] }
 0x320   : > { %vm13063_vm6 = vcmp.lt.s32.totalorder %v15319_v63, 16  ;;  %v4588_v31 = vshll.u32 %v9016_v28, 16  ;;  %v4592_v48 = vshrl.u32 %v9016_v28, 16  ;;  %v4126_v34 = vmax.f32 %v3441_v54, 0.0  ;;  %v15325_v63 = vld [vmem:[#allocation44_spill] sm:$0xff] }
 0x321   : > { %v3442_v5 = vadd.f32 %v12811_v12, %v3399_v37  ;;  %vm15043_vm14 = vsmask.f32 5376  ;;  %v13076_v52 = vrot.slane %v4824_v1, 3  ;;  %v13078_v50 = vrot.slane %v4827_v35, 4  ;;  %v15326_v1 = vld [vmem:[#allocation31_spill] sm:$0xff]  ;;  %v2937_v40 = vpop.f32.mrb[12].mxu0 }
 0x322   : > { %v13085_v54 = vadd.s32 18, %v13034_v24  ;;  %v4233_v37 = vsel %vm12938_vm10, %v4125_v13, 0.0  ;;  %v4234_v4 = vsel %vm12947_vm3, %v4126_v34, 0.0  ;;  %vm15324_vm5 = vnez %v15323_v38  ;;  %v2939_v56 = vpop.f32.mrb[13].mxu0  ;;  %v4450_v38 = vld [vmem:[#allocation3 + $0x10] sm:$0xf] }
 0x323   : > { %v15327_v35 = vsel %vm15324_vm5, %v15325_v63, %v15326_v1  ;;  %v13101_v28 = vadd.s32 18, %v13056_v30  ;;  %v4590_v41 = vrot.slane %v4588_v31, 1  ;;  %v9375_v10 = vpack.c.bf16 %v4234_v4, %v4233_v37  ;;  %v13104_v39 = vld [vmem:[#allocation3 + $0x14] sm:$0xf]  ;;  %v15331_v63 = vld [vmem:[#allocation17_spill] sm:$0xff]  ;;  %v2940_v57 = vpop.f32.mrb[14].mxu0 }
 0x324   : > { %15322 = vst [vmem:[#allocation37_spill] sm:$0xff] %v13085_v54  ;;  %vm13096_vm7 = vcmp.lt.s32.totalorder %v15327_v35, 16  ;;  %v4127_v19 = vmax.f32 %v3442_v5, 0.0  ;;  %v4819_v13 = vrot.slane %v4592_v48, 3  ;;  %v4820_v3 = vrot.slane %v4588_v31, 4  ;;  %v15333_v56 = vld [vmem:[#allocation13_spill] sm:$0xff] }
 0x325   : > { %v3400_v34 = vadd.f32 %v15330_v60, %v2937_v40  ;;  %vm15332_vm3 = vsmask.f32 7424  ;;  %v4594_v35 = vor.u32 %v4592_v48, %v4590_v41  ;;  %v5226_v46 = vrot.slane %v4592_v48, 2  ;;  %9492 = vst [vmem:[#allocation3 + $0x18] sm:$0xff] %v9375_v10   ;;  %v2942_v51 = vpop.f32.mrb[15].mxu0  ;;  %v15337_v48 = vld [vmem:[#allocation45_spill] sm:$0xff] }
 0x326   : > { %v4591_v1 = vsel %vm15332_vm3, %v15331_v63, %v4590_v41  ;;  %v9017_v0 = vcombine.low %v4450_v38, %v13104_v39  ;;  %v4830_v5 = vor.u32 %v13078_v50, %v13076_v52  ;;  %v3401_v60 = vadd.f32 %v15333_v56, %v2940_v57  ;;  %v15335_v63 = vld [vmem:[#allocation48_spill] sm:$0xff]  ;;  %v15338_v10 = vld [vmem:[#allocation33_spill] sm:$0xff] }
 0x327   : > { %v5231_v37 = vshrl.u32 %v4591_v1, 16  ;;  %v5234_v4 = vshll.u32 %v4591_v1, 16  ;;  %v3443_v40 = vadd.f32 %v12811_v12, %v3400_v34  ;;  %v5227_v59 = vrot.slane %v4588_v31, 3  ;;  %v10508_v51 = vld [vmem:[#allocation3 + $0x9c] sm:$0xff]   ;;  %v15432_v54 = vld [vmem:[#allocation20_spill] sm:$0xff] }
 0x328   : > { %v13113_v53 = vcombine.low %v4449_v21, %v4450_v38  ;;  %vm15336_vm10 = vnez %v15335_v63  ;;  %v13124_v52 = vshll.u32 %v9017_v0, 16  ;;  %v13126_v50 = vshrl.u32 %v9017_v0, 16  ;;  %v15342_v63 = vld [vmem:[#allocation65_spill] sm:$0xff] }
 0x329   : > { %v15339_v41 = vsel %vm15336_vm10, %v15337_v48, %v15338_v10  ;;  %v4821_v34 = vor.u32 %v4820_v3, %v4819_v13  ;;  %v13128_v1 = vrot.slane %v5231_v37, 2  ;;  %v4128_v57 = vmax.f32 %v3443_v40, 0.0  ;;  %v15344_v48 = vld [vmem:[#allocation51_spill] sm:$0xff]  ;;  %v15345_v10 = vld [vmem:[#allocation49_spill] sm:$0xff] }
 0x32a   : > { %15334 = vst [vmem:[#allocation32_spill] sm:$0xff] %v13113_v53  ;;  %vm13120_vm5 = vcmp.lt.s32.totalorder %v15339_v41, 16  ;;  %v3444_v21 = vadd.f32 %v12811_v12, %v3401_v60  ;;  %v13131_v31 = vrot.slane %v5234_v4, 3  ;;  %v13133_v38 = vor.u32 %v5227_v59, %v5226_v46  ;;  %v2945_v60 = vpop.f32.mrb[16].mxu0 }
 0x32b   : > { %v4235_v56 = vsel %vm13043_vm1, %v4127_v19, 0.0  ;;  %vm15343_vm3 = vnez %v15342_v63  ;;  %v4831_v13 = vrot.slane %v13126_v50, 3  ;;  %v4832_v37 = vrot.slane %v13124_v52, 4  ;;  %v2947_v26 = vpop.f32.mrb[17].mxu0 }
 0x32c   : > { %v15346_v0 = vsel %vm15343_vm3, %v15344_v48, %v15345_v10  ;;  %v4598_v4 = vrot.slane %v13124_v52, 1  ;;  %v4236_v59 = vsel %vm13063_vm6, %v4128_v57, 0.0  ;;  %v4129_v55 = vmax.f32 %v3444_v21, 0.0  ;;  %v15350_v48 = vld [vmem:[#allocation47_spill] sm:$0xff]  ;;  %v15351_v10 = vld [vmem:[#allocation46_spill] sm:$0xff]  ;;  %v15355_v57 = vld [vmem:[#allocation41_spill] sm:$0xff] }
 0x32d   : > { %vm13142_vm10 = vcmp.lt.s32.totalorder %v15346_v0, 16  ;;  %v7422_v19 = vshrl.u32 %v10508_v51, 16  ;;  %v7425_v46 = vshll.u32 %v10508_v51, 16  ;;  %v9380_v40 = vpack.c.bf16 %v4236_v59, %v4235_v56  ;;  %v15356_v21 = vld [vmem:[#allocation34_spill] sm:$0xff]  ;;  %v10454_v56 = vld [vmem:[#allocation5] sm:$0xff]  }
 0x32e   : > { %v13151_v41 = vor.u32 %v4832_v37, %v4831_v13  ;;  %vm15349_vm1 = vsmask.f32 7424  ;;  %v15352_v0 = vor.u32 %v15350_v48, %v15351_v10  ;;  %v3402_v14 = vadd.f32 %v15354_v8, %v2945_v60  ;;  %v4452_v13 = vld [vmem:[#allocation3 + $0x18] sm:$0xf]  ;;  %v13166_v37 = vld [vmem:[#allocation3 + $0x1c] sm:$0xf] }
 0x32f   : > { %v4599_v63 = vsel %vm15349_vm1, %v4594_v35, %v4598_v4  ;;  %v15357_v32 = vor.u32 %v15355_v57, %v15356_v21  ;;  %vm15358_vm6 = vsmask.f32 4352  ;;  %v4602_v59 = vor.u32 %v13126_v50, %v4598_v4  ;;  %9493 = vst [vmem:[#allocation3 + $0x20] sm:$0xff] %v9380_v40   ;;  %v2948_v8 = vpop.f32.mrb[18].mxu0  ;;  %v15361_v26 = vld [vmem:[#allocation19_spill] sm:$0xff]  ;;  %v15364_v35 = vld [vmem:[#allocation54_spill] sm:$0xff] }
 0x330   : > { %v13159_v53 = vsel %vm15043_vm14, %v15352_v0, %v13133_v38  ;;  %v4237_v48 = vsel %vm13096_vm7, %v4129_v55, 0.0  ;;  %vm15359_vm3 = vmmov %vm15358_vm6  ;;  %v9018_v10 = vcombine.low %v4452_v13, %v13166_v37  ;;  %v3445_v0 = vadd.f32 %v12811_v12, %v3402_v14  ;;  %v2950_v21 = vpop.f32.mrb[19].mxu0  ;;  %v10462_v4 = vld [vmem:[#allocation3 + $0x14] sm:$0xfe]   ;;  %v15362_v55 = vld [vmem:[#allocation67_spill] sm:$0xff] }
 0x331   : > { %15353 = vst [vmem:[#allocation29_spill] sm:$0xff] %v13159_v53  ;;  %v4822_v51 = vsel %vm15358_vm6, %v15357_v32, %v4821_v34  ;;  %v4834_v60 = vsel %vm15359_vm3, %v4830_v5, %v13151_v41  ;;  %vm15360_vm1 = vmmov %vm15359_vm3  ;;  %v3403_v57 = vadd.f32 %v15361_v26, %v2948_v8  ;;  %v13180_v40 = vrot.slane %v7422_v19, 1  ;;  %v15365_v5 = vld [vmem:[#allocation50_spill] sm:$0xff]  ;;  %v15369_v21 = vld [vmem:[#allocation69_spill] sm:$0xff] }
 0x332   : > { %v4835_v32 = vsel %vm15360_vm1, %v4821_v34, %v13151_v41  ;;  %5072 = vmatprep.mubr.bf16.mxu1 %v4834_v60  ;;  %v5239_v23 = vshrl.u32 %v4599_v63, 16  ;;  %vm15363_vm7 = vnez %v15362_v55  ;;  %v13191_v34 = vshll.u32 %v9018_v10, 16  ;;  %v15371_v55 = vld [vmem:[#allocation55_spill] sm:$0xff] }
 0x333   : > { %5073 = vmatmul.mubr.bf16.vlgmr.msra.gmra.mrb[36].mxu1 %v4822_v51  ;;  %v15366_v53 = vsel %vm15363_vm7, %v15364_v35, %v15365_v5  ;;  %v13193_v14 = vshrl.u32 %v9018_v10, 16  ;;  %vm3940_vm3 = vcmp.ne.s32.totalorder %v13034_v24, 0  ;;  %v13197_v19 = vrot.slane %v7425_v46, 2  ;;  %v10458_v35 = vld [vmem:[#allocation5 + $0x8] sm:$0xff]  }
 0x334   : > { %vm13187_vm6 = vcmp.lt.s32.totalorder %v15366_v53, 16  ;;  %v5242_v51 = vshll.u32 %v4599_v63, 16  ;;  %v4130_v8 = vmax.f32 %v3445_v0, 0.0  ;;  %v3446_v60 = vadd.f32 %v12811_v12, %v3403_v57  ;;  %5601 = vmatpush1.bf16.msra.mxu1 %v10454_v56  ;;  %v15372_v5 = vld [vmem:[#allocation52_spill] sm:$0xff]  ;;  %v15377_v56 = vld [vmem:[#allocation15_spill] sm:$0xff] }
 0x335   : > { %v7270_v53 = vshrl.u32 %v10462_v4, 16  ;;  %v7273_v26 = vshll.u32 %v10462_v4, 16  ;;  %vm15370_vm7 = vnez %v15369_v21  ;;  %v4836_v46 = vrot.slane %v13193_v14, 3 }
 0x336   : > { %v15373_v10 = vsel %vm15370_vm7, %v15371_v55, %v15372_v5  ;;  %v4837_v63 = vrot.slane %v13191_v34, 4  ;;  %v15376_v0 = vmov 0   ;;  %v5241_v57 = vrot.slane %v5239_v23, 2 }
 0x337   : > { %vm13205_vm14 = vcmp.lt.s32.totalorder %v15373_v10, 16  ;;  %5602 = vmatprep.subr.bf16.mxu1 %v15376_v0  ;;  %v4238_v4 = vsel %vm13120_vm5, %v4130_v8, 0.0  ;;  %v4131_v21 = vmax.f32 %v3446_v60, 0.0  ;;  %v13215_v11 = vrot.slane %v7270_v53, 1  ;;  %v2953_v10 = vpop.f32.mrb[20].mxu0  ;;  %vm15379_vm5 = vmmov %vm15360_vm1  ;;  %8391 = vst [vmem:[%s14614_s29] sm:$0xf] %v15376_v0 }
 0x338   : > { %v13217_v55 = vrot.slane %v7273_v26, 2  ;;  %v9385_v5 = vpack.c.bf16 %v4238_v4, %v4237_v48  ;;  %v13219_v29 = vor.u32 %v4837_v63, %v4836_v46  ;;  %v5244_v45 = vrot.slane %v5242_v51, 3  ;;  %v2955_v47 = vpop.f32.mrb[21].mxu0  ;;  %5603 = vmatpush1.bf16.msra.mxu1 %v10458_v35  ;;  %v13225_v8 = vld [vmem:[#allocation3 + $0x20] sm:$0xf] }
 0x339   : > { %v4606_v61 = vrot.slane %v13191_v34, 1  ;;  %v4239_v23 = vsel %vm13142_vm10, %v4131_v21, 0.0  ;;  %v3404_v42 = vadd.f32 %v15377_v56, %v2953_v10  ;;  %v13227_v60 = vld [vmem:[#allocation3 + $0x24] sm:$0xf]  ;;  %v13232_v53 = vcombine.low %v13104_v39, %v4452_v13  ;;  %v2956_v51 = vpop.f32.mrb[22].mxu0  ;;  %v10463_v26 = vld [vmem:[#allocation3 + $0x1c] sm:$0xff]   ;;  %5604 = vmatprep.subr.bf16.mxu1 %v15376_v0 }
 0x33a   : > { %v7276_v48 = vor.u32 %v13217_v55, %v13215_v11  ;;  %9494 = vst [vmem:[#allocation3 + $0x28] sm:$0xff] %v9385_v5   ;;  %v13237_v3 = vsel %vm15379_vm5, %v13151_v41, %v13219_v29  ;;  %v9019_v35 = vcombine.low %v13225_v8, %v13227_v60  ;;  %v5245_v46 = vor.u32 %v5244_v45, %v5241_v57  ;;  %v15381_v39 = vld [vmem:[#allocation18_spill] sm:$0xff]  ;;  %v2958_v56 = vpop.f32.mrb[23].mxu0  ;;  %v15384_v55 = vld [vmem:[#allocation60_spill] sm:$0xff]  ;;  %v15385_v45 = vld [vmem:[#allocation53_spill] sm:$0xff] }
 0x33b   : > { %15378 = vst [vmem:[#allocation39_spill] sm:$0xff] %v13232_v53  ;;  %vm15380_vm10 = vsmask.f32 7424  ;;  %v3447_v11 = vadd.f32 %v12811_v12, %v3404_v42  ;;  %v3405_v13 = vadd.f32 %v15381_v39, %v2956_v51  ;;  %5080 = vmatprep.mubr.bf16.mxu1 %v13237_v3  ;;  %v15382_v21 = vld [vmem:[#allocation70_spill] sm:$0xff]  ;;  %v7278_v10 = vshrl.u32 %v10463_v26, 16 }
 0x33c   : > { %v4607_v63 = vsel %vm15380_vm10, %v4602_v59, %v4606_v61  ;;  %5081 = vmatmul.mubr.bf16.gmra.mrb[40].mxu1 %v4835_v32  ;;  %vm15383_vm1 = vnez %v15382_v21  ;;  %v13257_v42 = vshll.u32 %v9019_v35, 16  ;;  %v13259_v5 = vshrl.u32 %v9019_v35, 16  ;;  %v10468_v32 = vld [vmem:[#allocation5 + $0x18] sm:$0xff]   ;;  %8392 = vst [vmem:[%s14614_s29 + $0x4] sm:$0x1] %v15376_v0 }
 0x33d   : > { %v5252_v41 = vshrl.u32 %v4607_v63, 16  ;;  %v5255_v4 = vshll.u32 %v4607_v63, 16  ;;  %v15386_v57 = vsel %vm15383_vm1, %v15384_v55, %v15385_v45  ;;  %v7281_v47 = vshll.u32 %v10463_v26, 16  ;;  %5605 = vmatpush1.bf16.msra.mxu1 %v10464_v43  ;;  %v15392_v55 = vld [vmem:[#allocation71_spill] sm:$0xff]  ;;  %v15394_v45 = vld [vmem:[#allocation62_spill] sm:$0xff] }
 0x33e   : > { %vm13253_vm10 = vcmp.lt.s32.totalorder %v15386_v57, 16  ;;  %v4132_v51 = vmax.f32 %v3447_v11, 0.0  ;;  %v3448_v39 = vadd.f32 %v12811_v12, %v3405_v13  ;;  %v15389_v63 = vor.u32 %v13131_v31, %v13128_v1  ;;  %v15395_v57 = vld [vmem:[#allocation56_spill] sm:$0xff]  ;;  %5606 = vmatprep.subr.bf16.mxu1 %v15376_v0  ;;  %8393 = vst [vmem:[%s14614_s29 + $0x2c] sm:$0xe] %v15376_v0 }
 0x33f   : > { %vm15390_vm5 = vsmask.f32 5376  ;;  %v5254_v21 = vrot.slane %v5252_v41, 2  ;;  %vm15393_vm1 = vnez %v15392_v55  ;;  %v4840_v26 = vrot.slane %v13259_v5, 3  ;;  %8394 = vst [vmem:[%s14614_s29 + $0x30] sm:$0x3] %v15376_v0 }
 0x340   : > { %v13266_v56 = vsel %vm15390_vm5, %v15389_v63, %v5245_v46  ;;  %v15396_v35 = vsel %vm15393_vm1, %v15394_v45, %v15395_v57  ;;  %v4841_v43 = vrot.slane %v13257_v42, 4  ;;  %v7280_v11 = vrot.slane %v7278_v10, 1  ;;  %v2961_v10 = vpop.f32.mrb[24].mxu0 }
 0x341   : > { %15391 = vst [vmem:[#allocation40_spill] sm:$0xff] %v13266_v56  ;;  %vm13273_vm7 = vcmp.lt.s32.totalorder %v15396_v35, 16  ;;  %v7283_v13 = vrot.slane %v7281_v47, 2  ;;  %v4240_v1 = vsel %vm13187_vm6, %v4132_v51, 0.0  ;;  %v4133_v31 = vmax.f32 %v3448_v39, 0.0  ;;  %v15403_v35 = vld [vmem:[#allocation21_spill] sm:$0xff]  ;;  %5607 = vmatpush1.bf16.msra.mxu1 %v10468_v32 }
 0x342   : > { %vm15399_vm5 = vcmp.lt.s32.totalorder %v13034_v24, 0  ;;  %v15400_v41 = vmov 0  ;;  %v5257_v63 = vrot.slane %v5255_v4, 3  ;;  %v5248_v55 = vrot.slane %v13124_v52, 3  ;;  %v2963_v36 = vpop.f32.mrb[25].mxu0  ;;  %v10467_v32 = vld [vmem:[#allocation3 + $0x24] sm:$0xff]   ;;  %5608 = vmatprep.subr.bf16.mxu1 %v15376_v0 }
 0x343   : > { %vm13286_vm1 = vmand %vm15399_vm5, %vm3940_vm3  ;;  %v9390_v45 = vpack.c.bf16 %v4240_v1, %v4239_v23  ;;  %v13291_v47 = vor.u32 %v4841_v43, %v4840_v26  ;;  %v13293_v57 = vor.u32 %v7283_v13, %v7280_v11  ;;  %v4610_v51 = vor.u32 %v13193_v14, %v4606_v61  ;;  %v13299_v49 = vld [vmem:[#allocation3 + $0x28] sm:$0xf]  ;;  %v13301_v4 = vld [vmem:[#allocation3 + $0x2c] sm:$0xf]  ;;  %v2964_v43 = vpop.f32.mrb[26].mxu0 }
 0x344   : > { %v15401_v41 = vsel %vm13286_vm1, 4294967295, %v15400_v41  ;;  %v4241_v39 = vsel %vm13205_vm14, %v4133_v31, 0.0  ;;  %v3406_v56 = vadd.f32 %v15403_v35, %v2961_v10  ;;  %15404 = vst [vmem:[#allocation43_spill] sm:$0xff] %v13301_v4  ;;  %v13303_v52 = vor.u32 %v5257_v63, %v5254_v21  ;;  %v15408_v11 = vld [vmem:[#allocation23_spill] sm:$0xff]  ;;  %v15411_v31 = vld [vmem:[#allocation73_spill] sm:$0xff]  ;;  %v15413_v63 = vld [vmem:[#allocation66_spill] sm:$0xff] }
 0x345   : > { %15402 = vst [vmem:[#allocation30_spill] sm:$0xff] %v15401_v41  ;;  %v15405_v23 = vrot.slane %v13126_v50, 2  ;;  %9495 = vst [vmem:[#allocation3 + $0x30] sm:$0xff] %v9390_v45   ;;  %vm15406_vm6 = vsmask.f32 4352  ;;  %v9020_v17 = vcombine.low %v13299_v49, %v13301_v4  ;;  %v3407_v13 = vadd.f32 %v15408_v11, %v2964_v43  ;;  %5609 = vmatpush1.bf16.msra.mxu1 %v10471_v7 }
 0x346   : > { %v13312_v61 = vsel %vm15406_vm6, %v13219_v29, %v13291_v47  ;;  %vm15407_vm14 = vsmask.f32 6400  ;;  %v3449_v21 = vadd.f32 %v12811_v12, %v3406_v56  ;;  %v2966_v29 = vpop.f32.mrb[27].mxu0  ;;  %vm15409_vm3 = vsmask.f32 5376  ;;  %5610 = vmatprep.subr.bf16.mxu1 %v15376_v0 }
 0x347   : > { %v13307_v26 = vor.u32 %v5248_v55, %v15405_v23  ;;  %v7285_v36 = vsel %vm15407_vm14, %v7276_v48, %v13293_v57  ;;  %5088 = vmatprep.mubr.bf16.mxu1 %v13312_v61  ;;  %v13328_v48 = vsel %vm15409_vm3, %v5245_v46, %v13303_v52  ;;  %v4614_v1 = vrot.slane %v13257_v42, 1  ;;  %v15414_v55 = vld [vmem:[#allocation57_spill] sm:$0xff]  ;;  %vm15418_vm14 = vmmov %vm15409_vm3  ;;  %v2969_v50 = vpop.f32.mrb[28].mxu0 }
 0x348   : > { %9654 = vmatprep.mubr.bf16.mxu0 %v7285_v36  ;;  %15410 = vst [vmem:[#allocation44_spill] sm:$0xff] %v13328_v48  ;;  %5089 = vmatmul.mubr.bf16.gmra.mrb[44].mxu1 %v13237_v3  ;;  %vm15412_vm5 = vnez %v15411_v31  ;;  %v13341_v10 = vshll.u32 %v9020_v17, 16  ;;  %v13343_v35 = vshrl.u32 %v9020_v17, 16  ;;  %v7287_v23 = vshrl.u32 %v10467_v32, 16  ;;  %v10474_v3 = vld [vmem:[#allocation5 + $0x28] sm:$0xff]   ;;  %v15421_v31 = vld [vmem:[#allocation74_spill] sm:$0xff] }
 0x349   : > { %v15415_v45 = vsel %vm15412_vm5, %v15413_v63, %v15414_v55  ;;  %v7290_v46 = vshll.u32 %v10467_v32, 16  ;;  %v4134_v43 = vmax.f32 %v3449_v21, 0.0  ;;  %v3450_v36 = vadd.f32 %v12811_v12, %v3407_v13  ;;  %v15423_v63 = vld [vmem:[#allocation72_spill] sm:$0xff]  ;;  %v15424_v55 = vld [vmem:[#allocation63_spill] sm:$0xff]  ;;  %v2971_v4 = vpop.f32.mrb[29].mxu0  ;;  %5611 = vmatpush1.bf16.msra.mxu1 %v10474_v3 }
 0x34a   : > { %vm13337_vm6 = vcmp.lt.s32.totalorder %v15415_v45, 16  ;;  %v13349_v11 = vsel %vm15418_vm14, %v13133_v38, %v13307_v26  ;;  %vm15420_vm3 = vsmask.f32 7424  ;;  %vm15422_vm5 = vnez %v15421_v31  ;;  %5612 = vmatprep.subr.bf16.mxu1 %v15376_v0 }
 0x34b   : > { %15419 = vst [vmem:[#allocation31_spill] sm:$0xff] %v13349_v11  ;;  %v4615_v29 = vsel %vm15420_vm3, %v4610_v51, %v4614_v1  ;;  %v15425_v17 = vsel %vm15422_vm5, %v15423_v63, %v15424_v55  ;;  %v4844_v32 = vrot.slane %v13343_v35, 3  ;;  %v4845_v7 = vrot.slane %v13341_v10, 4  ;;  %v10478_v11 = vld [vmem:[#allocation5 + $0x30] sm:$0xff]  }
 0x34c   : > { %vm13357_vm1 = vcmp.lt.s32.totalorder %v15425_v17, 16  ;;  %v7289_v21 = vrot.slane %v7287_v23, 1  ;;  %v7292_v13 = vrot.slane %v7290_v46, 2  ;;  %vm15428_vm14 = vcmp.ne.s32.totalorder %v13056_v30, 0  ;;  %v13382_v59 = vld [vmem:[#allocation3 + $0x30] sm:$0xf] }
 0x34d   : > { %vm15429_vm3 = vcmp.lt.s32.totalorder %v13056_v30, 0  ;;  %v4242_v51 = vsel %vm13253_vm10, %v4134_v43, 0.0  ;;  %v4135_v31 = vmax.f32 %v3450_v36, 0.0  ;;  %v5265_v63 = vshrl.u32 %v4615_v29, 16  ;;  %v13384_v43 = vld [vmem:[#allocation3 + $0x34] sm:$0xf]  ;;  %5613 = vmatpush1.bf16.msra.mxu1 %v10478_v11 }
 0x34e   : > { %vm13368_vm15 = vmand %vm15429_vm3, %vm15428_vm14  ;;  %v5268_v55 = vshll.u32 %v4615_v29, 16  ;;  %v9395_v17 = vpack.c.bf16 %v4242_v51, %v4241_v39  ;;  %v13374_v23 = vor.u32 %v4845_v7, %v4844_v32  ;;  %v13376_v46 = vor.u32 %v7292_v13, %v7289_v21  ;;  %v15435_v29 = vld [vmem:[#allocation22_spill] sm:$0xff]  ;;  %v15436_v21 = vld [vmem:[#allocation77_spill] sm:$0xff]  ;;  %5614 = vmatprep.subr.bf16.mxu1 %v15376_v0 }
 0x34f   : > { %v5260_v48 = vrot.slane %v13193_v14, 2  ;;  %v4243_v24 = vsel %vm13273_vm7, %v4135_v31, 0.0  ;;  %v3408_v41 = vadd.f32 %v15432_v54, %v2969_v50  ;;  %v4618_v36 = vor.u32 %v13259_v5, %v4614_v1  ;;  %v2972_v14 = vpop.f32.mrb[30].mxu0  ;;  %v10470_v50 = vld [vmem:[#allocation3 + $0x2c] sm:$0xff]  }
 0x350   : > { %9496 = vst [vmem:[#allocation3 + $0x38] sm:$0xff] %v9395_v17   ;;  %vm15433_vm7 = vsmask.f32 4352  ;;  %vm15434_vm10 = vsmask.f32 6400  ;;  %v9021_v4 = vcombine.low %v13382_v59, %v13384_v43  ;;  %v13404_v1 = vor.u32 %v13197_v19, %v13180_v40  ;;  %v15438_v13 = vld [vmem:[#allocation75_spill] sm:$0xff] }
 0x351   : > { %v13394_v53 = vsel %vm15433_vm7, %v13291_v47, %v13374_v23  ;;  %v7294_v54 = vsel %vm15434_vm10, %v13293_v57, %v13376_v46  ;;  %v3451_v3 = vadd.f32 %v12811_v12, %v3408_v41  ;;  %v3409_v32 = vadd.f32 %v15435_v29, %v2972_v14  ;;  %v2974_v47 = vpop.f32.mrb[31].mxu0  ;;  %v15439_v51 = vld [vmem:[#allocation68_spill] sm:$0xff] }
 0x352   : > { %5096 = vmatprep.mubr.bf16.mxu1 %v13394_v53  ;;  %9655 = vmatmul.mubr.bf16.vlgmr.msra.gmra.mrb[72].mxu0 %v7294_v54  ;;  %v5267_v7 = vrot.slane %v5265_v63, 2  ;;  %v5270_v57 = vrot.slane %v5268_v55, 3  ;;  %vm15437_vm5 = vnez %v15436_v21  ;;  %v13419_v19 = vshll.u32 %v9021_v4, 16  ;;  %v15443_v47 = vld [vmem:[#allocation76_spill] sm:$0xff] }
 0x353   : > { %5097 = vmatmul.mubr.bf16.gmra.mrb[48].mxu1 %v13312_v61  ;;  %v15440_v31 = vsel %vm15437_vm5, %v15438_v13, %v15439_v51  ;;  %v13421_v41 = vshrl.u32 %v9021_v4, 16  ;;  %v7296_v17 = vshrl.u32 %v10470_v50, 16  ;;  %v7299_v14 = vshll.u32 %v10470_v50, 16  ;;  %v10482_v61 = vld [vmem:[#allocation5 + $0x38] sm:$0xff]  }
 0x354   : > { %vm13415_vm14 = vcmp.lt.s32.totalorder %v15440_v31, 16  ;;  %v4136_v54 = vmax.f32 %v3451_v3, 0.0  ;;  %v3452_v63 = vadd.f32 %v12811_v12, %v3409_v32  ;;  %v13424_v55 = vor.u32 %v5270_v57, %v5267_v7  ;;  %v2977_v57 = vpop.f32.mrb[32].mxu0  ;;  %5615 = vmatpush1.bf16.msra.mxu1 %v10482_v61 }
 0x355   : > { %v5261_v29 = vrot.slane %v13191_v34, 3  ;;  %v15444_v21 = vsel %vm12642_vm12, %v12591_v15, %v15443_v47  ;;  %v4848_v4 = vrot.slane %v13421_v41, 3  ;;  %v4849_v50 = vrot.slane %v13419_v19, 4  ;;  %v2979_v47 = vpop.f32.mrb[33].mxu0  ;;  %5616 = vmatprep.subr.bf16.mxu1 %v15376_v0 }
 0x356   : > { %vm13432_vm3 = vcmp.lt.s32.totalorder %v15444_v21, 16  ;;  %v7298_v3 = vrot.slane %v7296_v17, 1  ;;  %v7301_v11 = vrot.slane %v7299_v14, 2  ;;  %v4244_v34 = vsel %vm13337_vm6, %v4136_v54, 0.0  ;;  %v10485_v17 = vld [vmem:[#allocation5 + $0x40] sm:$0xff]   ;;  %v15449_v54 = vld [vmem:[#allocation25_spill] sm:$0xff]  ;;  %vm15453_vm6 = vmmov %vm15434_vm10 }
 0x357   : > { %v4137_v32 = vmax.f32 %v3452_v63, 0.0  ;;  %vm15447_vm7 = vsmask.f32 5376  ;;  %v13446_v58 = vor.u32 %v5261_v29, %v5260_v48  ;;  %v9400_v7 = vpack.c.bf16 %v4244_v34, %v4243_v24  ;;  %v13456_v21 = vld [vmem:[#allocation3 + $0x38] sm:$0xf]  ;;  %v2980_v45 = vpop.f32.mrb[34].mxu0 }
 0x358   : > { %v13444_v15 = vsel %vm15447_vm7, %v13303_v52, %v13424_v55  ;;  %v13448_v51 = vor.u32 %v4849_v50, %v4848_v4  ;;  %v13450_v31 = vor.u32 %v7301_v11, %v7298_v3  ;;  %v4622_v14 = vrot.slane %v13341_v10, 1  ;;  %v13458_v52 = vld [vmem:[#allocation3 + $0x3c] sm:$0xf]  ;;  %vm15450_vm12 = vmmov %vm15447_vm7  ;;  %v15455_v50 = vld [vmem:[#allocation27_spill] sm:$0xff]  ;;  %v2982_v11 = vpop.f32.mrb[35].mxu0  ;;  %5617 = vmatpush1.bf16.msra.mxu1 %v10485_v17 }
 0x359   : > { %15448 = vst [vmem:[#allocation11_spill] sm:$0xff] %v13444_v15  ;;  %v4245_v56 = vsel %vm13357_vm1, %v4137_v32, 0.0  ;;  %v3410_v63 = vadd.f32 %v15449_v54, %v2977_v57  ;;  %v13463_v24 = vsel %vm15450_vm12, %v13307_v26, %v13446_v58  ;;  %v13467_v48 = vcombine.low %v13166_v37, %v13225_v8  ;;  %9497 = vst [vmem:[#allocation3 + $0x40] sm:$0xff] %v9400_v7   ;;  %v10473_v26 = vld [vmem:[#allocation3 + $0x34] sm:$0xff]   ;;  %v2985_v11 = vpop.f32.mrb[36].mxu0 }
 0x35a   : > { %15451 = vst [vmem:[#allocation17_spill] sm:$0xff] %v13463_v24  ;;  %vm15452_vm1 = vsmask.f32 4352  ;;  %v7303_v61 = vsel %vm15453_vm6, %v13376_v46, %v13450_v31  ;;  %v9022_v4 = vcombine.low %v13456_v21, %v13458_v52  ;;  %vm15454_vm10 = vsmask.f32 7424  ;;  %5618 = vmatprep.subr.bf16.mxu1 %v15376_v0 }
 0x35b   : > { %v13472_v29 = vsel %vm15452_vm1, %v13374_v23, %v13448_v51  ;;  %v4623_v37 = vsel %vm15454_vm10, %v4618_v36, %v4622_v14  ;;  %v3453_v8 = vadd.f32 %v12811_v12, %v3410_v63  ;;  %v3411_v3 = vadd.f32 %v15455_v50, %v2980_v45  ;;  %9658 = vmatprep.mubr.bf16.mxu0 %v7303_v61 }
 0x35c   : > { %5104 = vmatprep.mubr.bf16.mxu1 %v13472_v29  ;;  %v5278_v23 = vshrl.u32 %v4623_v37, 16  ;;  %v5281_v34 = vshll.u32 %v4623_v37, 16  ;;  %v15456_v46 = vsel %vm12658_vm2, %v12606_v22, %v12562_v20  ;;  %v13494_v36 = vshll.u32 %v9022_v4, 16  ;;  %v15459_v20 = vld [vmem:[#allocation78_spill] sm:$0xff] }
 0x35d   : > { %5105 = vmatmul.mubr.bf16.gmra.mrb[52].mxu1 %v13394_v53  ;;  %vm13490_vm5 = vcmp.lt.s32.totalorder %v15456_v46, 16  ;;  %v13496_v7 = vshrl.u32 %v9022_v4, 16  ;;  %v7305_v57 = vshrl.u32 %v10473_v26, 16  ;;  %v7308_v54 = vshll.u32 %v10473_v26, 16  ;;  %v10488_v53 = vld [vmem:[#allocation5 + $0x48] sm:$0xff]   ;;  %v10491_v46 = vld [vmem:[#allocation5 + $0x50] sm:$0xff]  }
 0x35e   : > { %v4138_v63 = vmax.f32 %v3453_v8, 0.0  ;;  %v3454_v47 = vadd.f32 %v12811_v12, %v3411_v3  ;;  %v5280_v45 = vrot.slane %v5278_v23, 2  ;;  %v5283_v25 = vrot.slane %v5281_v34, 3  ;;  %5619 = vmatpush1.bf16.msra.mxu1 %v10488_v53 }
 0x35f   : > { %v15460_v22 = vsel %vm12674_vm0, %v12616_v2, %v15459_v20  ;;  %v4852_v4 = vrot.slane %v13496_v7, 3  ;;  %v4853_v26 = vrot.slane %v13494_v36, 4  ;;  %v7307_v37 = vrot.slane %v7305_v57, 1  ;;  %v15463_v20 = vld [vmem:[#allocation24_spill] sm:$0xff]  ;;  %vm15464_vm0 = vmmov %vm15447_vm7  ;;  %5620 = vmatprep.subr.bf16.mxu1 %v15376_v0 }
 0x360   : > { %vm13504_vm2 = vcmp.lt.s32.totalorder %v15460_v22, 16  ;;  %v7310_v8 = vrot.slane %v7308_v54, 2  ;;  %v4246_v17 = vsel %vm13415_vm14, %v4138_v63, 0.0  ;;  %v4139_v50 = vmax.f32 %v3454_v47, 0.0  ;;  %v2987_v63 = vpop.f32.mrb[37].mxu0  ;;  %vm15466_vm14 = vmmov %vm15452_vm1  ;;  %v10476_v22 = vld [vmem:[#allocation3 + $0x3c] sm:$0xff]  }
 0x361   : > { %v13513_v18 = vor.u32 %v5283_v25, %v5280_v45  ;;  %v5273_v2 = vrot.slane %v13259_v5, 2  ;;  %v9405_v3 = vpack.c.bf16 %v4246_v17, %v4245_v56  ;;  %v13516_v23 = vor.u32 %v4853_v26, %v4852_v4  ;;  %v13524_v47 = vld [vmem:[#allocation3 + $0x40] sm:$0xf]  ;;  %v13526_v45 = vld [vmem:[#allocation3 + $0x44] sm:$0xf]  ;;  %vm15473_vm12 = vmmov %vm15464_vm0 }
 0x362   : > { %v13518_v34 = vor.u32 %v7310_v8, %v7307_v37  ;;  %v5274_v57 = vrot.slane %v13257_v42, 3  ;;  %v4247_v54 = vsel %vm13432_vm3, %v4139_v50, 0.0  ;;  %v3412_v40 = vadd.f32 %v15463_v20, %v2985_v11  ;;  %v2988_v42 = vpop.f32.mrb[38].mxu0  ;;  %vm15467_vm3 = vmmov %vm15453_vm6  ;;  %v15468_v4 = vld [vmem:[#allocation26_spill] sm:$0xff]  ;;  %5621 = vmatpush1.bf16.msra.mxu1 %v10491_v46  ;;  %v15480_v8 = vld [vmem:[#allocation36_spill] sm:$0xff] }
 0x363   : > { %v13531_v5 = vsel %vm15464_vm0, %v13424_v55, %v13513_v18  ;;  %v4626_v56 = vor.u32 %v13343_v35, %v4622_v14  ;;  %9498 = vst [vmem:[#allocation3 + $0x48] sm:$0xff] %v9405_v3   ;;  %v13537_v13 = vsel %vm15466_vm14, %v13448_v51, %v13516_v23  ;;  %v9023_v53 = vcombine.low %v13524_v47, %v13526_v45  ;;  %v2990_v37 = vpop.f32.mrb[39].mxu0 }
 0x364   : > { %15465 = vst [vmem:[#allocation13_spill] sm:$0xff] %v13531_v5  ;;  %v7312_v25 = vsel %vm15467_vm3, %v13450_v31, %v13518_v34  ;;  %v13545_v55 = vor.u32 %v5274_v57, %v5273_v2  ;;  %v3455_v14 = vadd.f32 %v12811_v12, %v3412_v40  ;;  %v3413_v26 = vadd.f32 %v15468_v4, %v2988_v42  ;;  %v10497_v4 = vld [vmem:[#allocation5 + $0x60] sm:$0xff]  }
 0x365   : > { %5112 = vmatprep.mubr.bf16.mxu1 %v13537_v13  ;;  %9659 = vmatmul.mubr.bf16.gmra.mrb[76].mxu0 %v7312_v25  ;;  %v4630_v51 = vrot.slane %v13419_v19, 1  ;;  %v5286_v31 = vrot.slane %v13343_v35, 2  ;;  %v15470_v17 = vsel %vm12690_vm9, %v12679_v6, %v12581_v9  ;;  %v13562_v2 = vshll.u32 %v9023_v53, 16  ;;  %vm15475_vm9 = vmmov %vm15454_vm10 }
 0x366   : > { %5113 = vmatmul.mubr.bf16.gmra.mrb[56].mxu1 %v13472_v29  ;;  %vm13558_vm7 = vcmp.lt.s32.totalorder %v15470_v17, 16  ;;  %v13564_v3 = vshrl.u32 %v9023_v53, 16  ;;  %v7314_v11 = vshrl.u32 %v10476_v22, 16  ;;  %v7317_v57 = vshll.u32 %v10476_v22, 16  ;;  %v10494_v29 = vld [vmem:[#allocation5 + $0x58] sm:$0xff]   ;;  %5622 = vmatprep.subr.bf16.mxu1 %v15376_v0  ;;  %vm15481_vm10 = vmmov %vm15466_vm14 }
 0x367   : > { %v4140_v20 = vmax.f32 %v3455_v14, 0.0  ;;  %v3456_v35 = vadd.f32 %v12811_v12, %v3413_v26  ;;  %v13570_v40 = vsel %vm15473_vm12, %v13446_v58, %v13545_v55  ;;  %v4631_v6 = vsel %vm15475_vm9, %v4626_v56, %v4630_v51  ;;  %5623 = vmatpush1.bf16.msra.mxu1 %v10494_v29  ;;  %vm15489_vm14 = vmmov %vm15473_vm12 }
 0x368   : > { %15474 = vst [vmem:[#allocation48_spill] sm:$0xff] %v13570_v40  ;;  %vm15476_vm1 = vnez %v15219_v33  ;;  %v4856_v12 = vrot.slane %v13564_v3, 3  ;;  %v4857_v46 = vrot.slane %v13562_v2, 4  ;;  %v7316_v42 = vrot.slane %v7314_v11, 1  ;;  %5624 = vmatprep.subr.bf16.mxu1 %v15376_v0  ;;  %vm15498_vm9 = vmmov %vm15489_vm14 }
 0x369   : > { %v15477_v9 = vsel %vm15476_vm1, %v12682_v62, %v12601_v44  ;;  %v7319_v25 = vrot.slane %v7317_v57, 2  ;;  %v4248_v58 = vsel %vm13490_vm5, %v4140_v20, 0.0  ;;  %v4141_v56 = vmax.f32 %v3456_v35, 0.0  ;;  %v2993_v44 = vpop.f32.mrb[40].mxu0  ;;  %vm15482_vm5 = vmmov %vm15467_vm3 }
 0x36a   : > { %vm13578_vm6 = vcmp.lt.s32.totalorder %v15477_v9, 16  ;;  %v5291_v33 = vshrl.u32 %v4631_v6, 16  ;;  %v5294_v53 = vshll.u32 %v4631_v6, 16  ;;  %v9410_v22 = vpack.c.bf16 %v4248_v58, %v4247_v54  ;;  %v2995_v11 = vpop.f32.mrb[41].mxu0  ;;  %v13595_v32 = vld [vmem:[#allocation3 + $0x48] sm:$0xf]  ;;  %vm15502_vm1 = vmmov %vm15481_vm10 }
 0x36b   : > { %v13587_v62 = vor.u32 %v4857_v46, %v4856_v12  ;;  %v13589_v14 = vor.u32 %v7319_v25, %v7316_v42  ;;  %v5287_v26 = vrot.slane %v13341_v10, 3  ;;  %v4249_v37 = vsel %vm13504_vm2, %v4141_v56, 0.0  ;;  %v13597_v57 = vld [vmem:[#allocation3 + $0x4c] sm:$0xf]  ;;  %v2996_v35 = vpop.f32.mrb[42].mxu0  ;;  %v10479_v6 = vld [vmem:[#allocation3 + $0x44] sm:$0xff]   ;;  %5625 = vmatpush1.bf16.msra.mxu1 %v10497_v4 }
 0x36c   : > { %v3414_v17 = vadd.f32 %v15480_v8, %v2993_v44  ;;  %v4634_v54 = vor.u32 %v13421_v41, %v4630_v51  ;;  %v13602_v20 = vcombine.low %v13227_v60, %v13299_v49  ;;  %9499 = vst [vmem:[#allocation3 + $0x50] sm:$0xff] %v9410_v22   ;;  %v9024_v29 = vcombine.low %v13595_v32, %v13597_v57  ;;  %v13620_v49 = vld [vmem:[%s14937_s2] ss:$0 sm:$0xff]  ;;  %v2998_v12 = vpop.f32.mrb[43].mxu0 }
 0x36d   : > { %v13607_v10 = vsel %vm15481_vm10, %v13516_v23, %v13587_v62  ;;  %v7321_v61 = vsel %vm15482_vm5, %v13518_v34, %v13589_v14  ;;  %v13615_v51 = vor.u32 %v5287_v26, %v5286_v31  ;;  %v15483_v23 = vld [vmem:[#allocation42_spill] sm:$0xff]  ;;  %v5293_v34 = vrot.slane %v5291_v33, 2  ;;  %v15485_v31 = vld [vmem:[#allocation83_spill] sm:$0xff]  ;;  %v15493_v8 = vld [vmem:[#allocation89_spill] sm:$0xff]  ;;  %5626 = vmatprep.subr.bf16.mxu1 %v15376_v0 }
 0x36e   : > { %v3457_v60 = vadd.f32 %v13620_v49, %v3414_v17  ;;  %v3415_v9 = vadd.f32 %v15483_v23, %v2996_v35  ;;  %5120 = vmatprep.mubr.bf16.mxu1 %v13607_v10  ;;  %9662 = vmatprep.mubr.bf16.mxu0 %v7321_v61  ;;  %v5296_v46 = vrot.slane %v5294_v53, 3  ;;  %vm15484_vm2 = vnez %v15221_v27  ;;  %v15494_v17 = vld [vmem:[#allocation84_spill] sm:$0xff] }
 0x36f   : > { %5121 = vmatmul.mubr.bf16.gmra.mrb[60].mxu1 %v13537_v13  ;;  %v15486_v42 = vsel %vm15484_vm2, %v12718_v16, %v15485_v31  ;;  %v13635_v58 = vshll.u32 %v9024_v29, 16  ;;  %v13637_v56 = vshrl.u32 %v9024_v29, 16  ;;  %v7323_v22 = vshrl.u32 %v10479_v6, 16  ;;  %v10500_v13 = vld [vmem:[#allocation5 + $0x68] sm:$0xff]  }
 0x370   : > { %vm13631_vm0 = vcmp.lt.s32.totalorder %v15486_v42, 16  ;;  %v7326_v44 = vshll.u32 %v10479_v6, 16  ;;  %v4142_v26 = vmax.f32 %v3457_v60, 0.0  ;;  %v3458_v33 = vadd.f32 %v13620_v49, %v3415_v9  ;;  %v15491_v16 = vld [vmem:[#allocation88_spill] sm:$0xff]  ;;  %v10504_v42 = vld [vmem:[#allocation5 + $0x70] sm:$0xff]   ;;  %5627 = vmatpush1.bf16.msra.mxu1 %v10500_v13 }
 0x371   : > { %v13640_v53 = vor.u32 %v5296_v46, %v5293_v34  ;;  %v13645_v27 = vsel %vm15489_vm14, %v13545_v55, %v13615_v51  ;;  %vm15492_vm3 = vnez %v15491_v16  ;;  %v4860_v61 = vrot.slane %v13637_v56, 3  ;;  %v3001_v34 = vpop.f32.mrb[44].mxu0  ;;  %5628 = vmatprep.subr.bf16.mxu1 %v15376_v0 }
 0x372   : > { %15490 = vst [vmem:[#allocation45_spill] sm:$0xff] %v13645_v27  ;;  %v15495_v11 = vsel %vm15492_vm3, %v15493_v8, %v15494_v17  ;;  %v4861_v4 = vrot.slane %v13635_v58, 4  ;;  %v7325_v29 = vrot.slane %v7323_v22, 1  ;;  %v7328_v6 = vrot.slane %v7326_v44, 2  ;;  %v15500_v44 = vld [vmem:[#allocation35_spill] sm:$0xff]  ;;  %vm15524_vm3 = vmmov %vm15502_vm1 }
 0x373   : > { %vm13652_vm12 = vcmp.lt.s32.totalorder %v15495_v11, 16  ;;  %v4250_v55 = vsel %vm13558_vm7, %v4142_v26, 0.0  ;;  %v4143_v60 = vmax.f32 %v3458_v33, 0.0  ;;  %v13664_v23 = vsel %vm15498_vm9, %v13513_v18, %v13640_v53  ;;  %v3003_v33 = vpop.f32.mrb[45].mxu0  ;;  %v13675_v16 = vld [vmem:[#allocation3 + $0x50] sm:$0xf] }
 0x374   : > { %15499 = vst [vmem:[#allocation33_spill] sm:$0xff] %v13664_v23  ;;  %v4638_v9 = vrot.slane %v13494_v36, 1  ;;  %v9415_v12 = vpack.c.bf16 %v4250_v55, %v4249_v37  ;;  %v13667_v46 = vor.u32 %v4861_v4, %v4860_v61  ;;  %v13669_v31 = vor.u32 %v7328_v6, %v7325_v29  ;;  %v13677_v18 = vld [vmem:[#allocation3 + $0x54] sm:$0xf]  ;;  %v3004_v17 = vpop.f32.mrb[46].mxu0  ;;  %v10481_v61 = vld [vmem:[#allocation3 + $0x4c] sm:$0xff]   ;;  %5629 = vmatpush1.bf16.msra.mxu1 %v10504_v42 }
 0x375   : > { %v5299_v22 = vrot.slane %v13421_v41, 2  ;;  %v4251_v50 = vsel %vm13578_vm6, %v4143_v60, 0.0  ;;  %v3416_v26 = vadd.f32 %v15500_v44, %v3001_v34  ;;  %vm15501_vm7 = vsmask.f32 7424  ;;  %vm15503_vm6 = vmmov %vm15482_vm5  ;;  %v15506_v29 = vld [vmem:[#allocation38_spill] sm:$0xff]  ;;  %5630 = vmatprep.subr.bf16.mxu1 %v15376_v0 }
 0x376   : > { %v4639_v37 = vsel %vm15501_vm7, %v4634_v54, %v4638_v9  ;;  %v4642_v8 = vor.u32 %v13496_v7, %v4638_v9  ;;  %9500 = vst [vmem:[#allocation3 + $0x58] sm:$0xff] %v9415_v12   ;;  %v13684_v41 = vsel %vm15502_vm1, %v13587_v62, %v13667_v46  ;;  %v7330_v63 = vsel %vm15503_vm6, %v13589_v14, %v13669_v31  ;;  %v15504_v54 = vld [vmem:[#allocation43_spill] sm:$0xff]  ;;  %v3006_v62 = vpop.f32.mrb[47].mxu0  ;;  %v15507_v60 = vld [vmem:[#allocation90_spill] sm:$0xff]  ;;  %v15510_v12 = vld [vmem:[#allocation85_spill] sm:$0xff] }
 0x377   : > { %v9025_v11 = vcombine.low %v13675_v16, %v13677_v18  ;;  %v13694_v13 = vcombine.low %v15504_v54, %v13382_v59  ;;  %v3459_v4 = vadd.f32 %v13620_v49, %v3416_v26  ;;  %v3417_v6 = vadd.f32 %v15506_v29, %v3004_v17  ;;  %5128 = vmatprep.mubr.bf16.mxu1 %v13684_v41  ;;  %v15509_v9 = vld [vmem:[#allocation91_spill] sm:$0xff]  ;;  %v15514_v62 = vld [vmem:[#allocation94_spill] sm:$0xff] }
 0x378   : > { %9663 = vmatmul.mubr.bf16.gmra.mrb[80].mxu0 %v7330_v63  ;;  %v5304_v55 = vshrl.u32 %v4639_v37, 16  ;;  %v5307_v14 = vshll.u32 %v4639_v37, 16  ;;  %5129 = vmatmul.mubr.bf16.gmra.mrb[64].mxu1 %v13607_v10  ;;  %vm15508_vm10 = vnez %v15507_v60  ;;  %v7332_v33 = vshrl.u32 %v10481_v61, 16  ;;  %v10510_v10 = vld [vmem:[#allocation5 + $0x78] sm:$0xff]   ;;  %v15516_v60 = vld [vmem:[#allocation92_spill] sm:$0xff] }
 0x379   : > { %15505 = vst [vmem:[#allocation65_spill] sm:$0xff] %v13694_v13  ;;  %v15511_v34 = vsel %vm15508_vm10, %v15509_v9, %v15510_v12  ;;  %v13709_v44 = vshll.u32 %v9025_v11, 16  ;;  %v13711_v26 = vshrl.u32 %v9025_v11, 16  ;;  %v7335_v17 = vshll.u32 %v10481_v61, 16  ;;  %v15517_v9 = vld [vmem:[#allocation86_spill] sm:$0xff]  ;;  %5631 = vmatpush1.bf16.msra.mxu1 %v10510_v10 }
 0x37a   : > { %vm13705_vm5 = vcmp.lt.s32.totalorder %v15511_v34, 16  ;;  %v4144_v63 = vmax.f32 %v3459_v4, 0.0  ;;  %v3460_v37 = vadd.f32 %v13620_v49, %v3417_v6  ;;  %v5306_v54 = vrot.slane %v5304_v55, 2  ;;  %6107 = vmatprep.subr.bf16.mxu1 %v15376_v0 }
 0x37b   : > { %v5309_v29 = vrot.slane %v5307_v14, 3  ;;  %vm15515_vm2 = vnez %v15514_v62  ;;  %v4864_v11 = vrot.slane %v13711_v26, 3  ;;  %v4865_v61 = vrot.slane %v13709_v44, 4 }
 0x37c   : > { %v15518_v12 = vsel %vm15515_vm2, %v15516_v60, %v15517_v9  ;;  %v7334_v4 = vrot.slane %v7332_v33, 1  ;;  %v7337_v39 = vrot.slane %v7335_v17, 2  ;;  %v4252_v42 = vsel %vm13631_vm0, %v4144_v63, 0.0  ;;  %v3009_v60 = vpop.f32.mrb[48].mxu0  ;;  %v15521_v17 = vld [vmem:[#allocation59_spill] sm:$0xff]  ;;  %vm15522_vm0 = vmmov %vm15498_vm9 }
 0x37d   : > { %vm13719_vm14 = vcmp.lt.s32.totalorder %v15518_v12, 16  ;;  %v4145_v6 = vmax.f32 %v3460_v37, 0.0  ;;  %v13728_v55 = vor.u32 %v5309_v29, %v5306_v54  ;;  %v5300_v14 = vrot.slane %v13419_v19, 3  ;;  %v3011_v40 = vpop.f32.mrb[49].mxu0  ;;  %v13735_v5 = vld [vmem:[#allocation3 + $0x58] sm:$0xf]  ;;  %vm15526_vm9 = vmmov %vm15501_vm7 }
 0x37e   : > { %v9420_v62 = vpack.c.bf16 %v4252_v42, %v4251_v50  ;;  %v4866_v9 = vor.u32 %v4865_v61, %v4864_v11  ;;  %v7338_v12 = vor.u32 %v7337_v39, %v7334_v4  ;;  %v4646_v27 = vrot.slane %v13562_v2, 1  ;;  %v13737_v25 = vld [vmem:[#allocation3 + $0x5c] sm:$0xf]  ;;  %v3012_v39 = vpop.f32.mrb[50].mxu0  ;;  %v10484_v37 = vld [vmem:[#allocation3 + $0x54] sm:$0xff]   ;;  %vm15528_vm7 = vmmov %vm15522_vm0 }
 0x37f   : > { %v4253_v33 = vsel %vm13652_vm12, %v4145_v6, 0.0  ;;  %v3418_v23 = vadd.f32 %v15521_v17, %v3009_v60  ;;  %v13742_v19 = vsel %vm15522_vm0, %v13640_v53, %v13728_v55  ;;  %v13744_v50 = vor.u32 %v5300_v14, %v5299_v22  ;;  %vm15525_vm12 = vmmov %vm15503_vm6  ;;  %v15527_v22 = vld [vmem:[#allocation64_spill] sm:$0xff]  ;;  %v3014_v29 = vpop.f32.mrb[51].mxu0  ;;  %v15533_v4 = vld [vmem:[#allocation93_spill] sm:$0xff] }
 0x380   : > { %15523 = vst [vmem:[#allocation51_spill] sm:$0xff] %v13742_v19  ;;  %9501 = vst [vmem:[#allocation3 + $0x60] sm:$0xff] %v9420_v62   ;;  %v4867_v35 = vsel %vm15524_vm3, %v13667_v46, %v4866_v9  ;;  %v7339_v40 = vsel %vm15525_vm12, %v13669_v31, %v7338_v12  ;;  %v9026_v63 = vcombine.low %v13735_v5, %v13737_v25  ;;  %v15530_v11 = vld [vmem:[#allocation104_spill] sm:$0xff]  ;;  %v7341_v14 = vshrl.u32 %v10484_v37, 16  ;;  %v15544_v19 = vld [vmem:[#allocation58_spill] sm:$0xff] }
 0x381   : > { %v4647_v10 = vsel %vm15526_vm9, %v4642_v8, %v4646_v27  ;;  %v3461_v53 = vadd.f32 %v13620_v49, %v3418_v23  ;;  %v3419_v54 = vadd.f32 %v15527_v22, %v3012_v39  ;;  %5136 = vmatprep.mubr.bf16.mxu1 %v4867_v35  ;;  %9666 = vmatprep.mubr.bf16.mxu0 %v7339_v40  ;;  %v15532_v61 = vld [vmem:[#allocation100_spill] sm:$0xff]  ;;  %v7344_v62 = vshll.u32 %v10484_v37, 16  ;;  %v15537_v39 = vld [vmem:[#allocation107_spill] sm:$0xff]  ;;  %v15539_v40 = vld [vmem:[#allocation105_spill] sm:$0xff] }
 0x382   : > { %v13759_v46 = vsel %vm15528_vm7, %v13615_v51, %v13744_v50  ;;  %v5317_v31 = vshrl.u32 %v4647_v10, 16  ;;  %5137 = vmatmul.mubr.bf16.gmra.mrb[68].mxu1 %v13684_v41  ;;  %vm15531_vm1 = vnez %v15530_v11  ;;  %v13771_v42 = vshll.u32 %v9026_v63, 16  ;;  %v15540_v22 = vld [vmem:[#allocation96_spill] sm:$0xff]  ;;  %vm15546_vm0 = vmmov %vm15525_vm12 }
 0x383   : > { %15529 = vst [vmem:[#allocation49_spill] sm:$0xff] %v13759_v46  ;;  %v15534_v8 = vsel %vm15531_vm1, %v15532_v61, %v15533_v4  ;;  %v13773_v6 = vshrl.u32 %v9026_v63, 16  ;;  %v4146_v51 = vmax.f32 %v3461_v53, 0.0  ;;  %v3462_v60 = vadd.f32 %v13620_v49, %v3419_v54  ;;  %vm15557_vm9 = vmmov %vm15528_vm7 }
 0x384   : > { %vm13767_vm6 = vcmp.lt.s32.totalorder %v15534_v8, 16  ;;  %v5319_v17 = vrot.slane %v5317_v31, 2  ;;  %v5320_v41 = vshll.u32 %v4647_v10, 16  ;;  %vm15538_vm10 = vnez %v15537_v39  ;;  %v3017_v39 = vpop.f32.mrb[52].mxu0 }
 0x385   : > { %v15541_v29 = vsel %vm15538_vm10, %v15539_v40, %v15540_v22  ;;  %v4868_v61 = vrot.slane %v13773_v6, 3  ;;  %v4869_v63 = vrot.slane %v13771_v42, 4  ;;  %v7343_v4 = vrot.slane %v7341_v14, 1  ;;  %v3019_v14 = vpop.f32.mrb[53].mxu0 }
 0x386   : > { %vm13781_vm2 = vcmp.lt.s32.totalorder %v15541_v29, 16  ;;  %v7346_v37 = vrot.slane %v7344_v62, 2  ;;  %v4254_v53 = vsel %vm13705_vm5, %v4146_v51, 0.0  ;;  %v4147_v54 = vmax.f32 %v3462_v60, 0.0  ;;  %vm15545_vm5 = vmmov %vm15524_vm3 }
 0x387   : > { %v5322_v10 = vrot.slane %v5320_v41, 3  ;;  %v5312_v31 = vrot.slane %v13496_v7, 2  ;;  %v9425_v8 = vpack.c.bf16 %v4254_v53, %v4253_v33  ;;  %v4870_v40 = vor.u32 %v4869_v63, %v4868_v61  ;;  %v13794_v62 = vld [vmem:[#allocation3 + $0x60] sm:$0xf]  ;;  %v13796_v59 = vld [vmem:[#allocation3 + $0x64] sm:$0xf] }
 0x388   : > { %v7347_v22 = vor.u32 %v7346_v37, %v7343_v4  ;;  %v5313_v29 = vrot.slane %v13494_v36, 3  ;;  %v4255_v46 = vsel %vm13719_vm14, %v4147_v54, 0.0  ;;  %v3420_v24 = vadd.f32 %v15544_v19, %v3017_v39  ;;  %v3020_v33 = vpop.f32.mrb[54].mxu0  ;;  %v10487_v41 = vld [vmem:[#allocation3 + $0x5c] sm:$0xff]   ;;  %vm15548_vm14 = vmmov %vm15528_vm7 }
 0x389   : > { %v13798_v51 = vor.u32 %v5322_v10, %v5319_v17  ;;  %v4650_v7 = vor.u32 %v13564_v3, %v4646_v27  ;;  %9502 = vst [vmem:[#allocation3 + $0x68] sm:$0xff] %v9425_v8   ;;  %v4871_v60 = vsel %vm15545_vm5, %v4866_v9, %v4870_v40  ;;  %v9027_v34 = vcombine.low %v13794_v62, %v13796_v59  ;;  %v15547_v63 = vld [vmem:[#allocation61_spill] sm:$0xff]  ;;  %v3022_v17 = vpop.f32.mrb[55].mxu0  ;;  %v15552_v37 = vld [vmem:[#allocation106_spill] sm:$0xff] }
 0x38a   : > { %v7348_v36 = vsel %vm15546_vm0, %v7338_v12, %v7347_v22  ;;  %v13805_v19 = vor.u32 %v5313_v29, %v5312_v31  ;;  %v3463_v61 = vadd.f32 %v13620_v49, %v3420_v24  ;;  %v3421_v4 = vadd.f32 %v15547_v63, %v3020_v33  ;;  %5144 = vmatprep.mubr.bf16.mxu1 %v4871_v60  ;;  %v15550_v12 = vld [vmem:[#allocation109_spill] sm:$0xff]  ;;  %v15562_v63 = vld [vmem:[#allocation102_spill] sm:$0xff]  ;;  %v3025_v33 = vpop.f32.mrb[56].mxu0 }
 0x38b   : > { %9667 = vmatmul.mubr.bf16.gmra.mrb[84].mxu0 %v7348_v36  ;;  %v13812_v27 = vsel %vm15548_vm14, %v13728_v55, %v13798_v51  ;;  %v4654_v9 = vrot.slane %v13635_v58, 1  ;;  %5145 = vmatmul.mubr.bf16.gmra.mrb[72].mxu1 %v4867_v35  ;;  %vm15551_vm3 = vnez %v15550_v12  ;;  %v15553_v53 = vld [vmem:[#allocation101_spill] sm:$0xff]  ;;  %v13824_v10 = vshll.u32 %v9027_v34, 16  ;;  %v15561_v36 = vld [vmem:[#allocation28_spill] sm:$0xff]  ;;  %v3027_v13 = vpop.f32.mrb[57].mxu0 }
 0x38c   : > { %15549 = vst [vmem:[#allocation47_spill] sm:$0xff] %v13812_v27  ;;  %v15554_v54 = vsel %vm15551_vm3, %v15552_v37, %v15553_v53  ;;  %v13826_v31 = vshrl.u32 %v9027_v34, 16  ;;  %v7350_v8 = vshrl.u32 %v10487_v41, 16  ;;  %v7353_v39 = vshll.u32 %v10487_v41, 16  ;;  %v15566_v27 = vld [vmem:[#allocation80_spill] sm:$0xff] }
 0x38d   : > { %vm13820_vm12 = vcmp.lt.s32.totalorder %v15554_v54, 16  ;;  %v4148_v55 = vmax.f32 %v3463_v61, 0.0  ;;  %v3464_v29 = vadd.f32 %v13620_v49, %v3421_v4  ;;  %v13832_v35 = vsel %vm15557_vm9, %v13744_v50, %v13805_v19 }
 0x38e   : > { %15558 = vst [vmem:[#allocation46_spill] sm:$0xff] %v13832_v35  ;;  %vm15559_vm7 = vsmask.f32 7424  ;;  %v15563_v17 = vsel %vm12973_vm11, %v15561_v36, %v15562_v63  ;;  %v4872_v41 = vrot.slane %v13826_v31, 3  ;;  %v4873_v61 = vrot.slane %v13824_v10, 4  ;;  %vm15568_vm11 = vmmov %vm15545_vm5 }
 0x38f   : > { %v4655_v14 = vsel %vm15559_vm7, %v4650_v7, %v4654_v9  ;;  %vm13840_vm1 = vcmp.lt.s32.totalorder %v15563_v17, 16  ;;  %v7352_v4 = vrot.slane %v7350_v8, 1  ;;  %v7355_v12 = vrot.slane %v7353_v39, 2  ;;  %vm15590_vm14 = vmmov %vm15559_vm7 }
 0x390   : > { %v4256_v50 = vsel %vm13767_vm6, %v4148_v55, 0.0  ;;  %v4149_v37 = vmax.f32 %v3464_v29, 0.0  ;;  %v5330_v7 = vshrl.u32 %v4655_v14, 16  ;;  %v5333_v53 = vshll.u32 %v4655_v14, 16  ;;  %v13852_v8 = vld [vmem:[#allocation3 + $0x68] sm:$0xf]  ;;  %vm15569_vm6 = vmmov %vm15546_vm0 }
 0x391   : > { %v9430_v54 = vpack.c.bf16 %v4256_v50, %v4255_v46  ;;  %v4874_v35 = vor.u32 %v4873_v61, %v4872_v41  ;;  %v7356_v36 = vor.u32 %v7355_v12, %v7352_v4  ;;  %v5325_v63 = vrot.slane %v13564_v3, 2  ;;  %v13854_v39 = vld [vmem:[#allocation3 + $0x6c] sm:$0xf]  ;;  %v3028_v55 = vpop.f32.mrb[58].mxu0  ;;  %v10490_v13 = vld [vmem:[#allocation3 + $0x64] sm:$0xff]   ;;  %vm15607_vm7 = vmmov %vm15545_vm5 }
 0x392   : > { %v4257_v17 = vsel %vm13781_vm2, %v4149_v37, 0.0  ;;  %v3422_v15 = vadd.f32 %v15566_v27, %v3025_v33  ;;  %v4658_v23 = vor.u32 %v13637_v56, %v4654_v9  ;;  %v13859_v46 = vcombine.low %v13384_v43, %v13456_v21  ;;  %v15571_v14 = vld [vmem:[#allocation82_spill] sm:$0xff]  ;;  %v3030_v43 = vpop.f32.mrb[59].mxu0  ;;  %v15574_v4 = vld [vmem:[#allocation103_spill] sm:$0xff]  ;;  %vm15584_vm2 = vmmov %vm15557_vm9 }
 0x393   : > { %9503 = vst [vmem:[#allocation3 + $0x70] sm:$0xff] %v9430_v54   ;;  %v4875_v3 = vsel %vm15568_vm11, %v4870_v40, %v4874_v35  ;;  %v7357_v11 = vsel %vm15569_vm6, %v7347_v22, %v7356_v36  ;;  %v9028_v27 = vcombine.low %v13852_v8, %v13854_v39  ;;  %v13867_v29 = vcombine.low %v13458_v52, %v13524_v47  ;;  %v15573_v22 = vld [vmem:[#allocation113_spill] sm:$0xff]  ;;  %vm15606_vm9 = vmmov %vm15584_vm2 }
 0x394   : > { %15567 = vst [vmem:[#allocation16_spill] sm:$0xff] %v13859_v46  ;;  %v3465_v9 = vadd.f32 %v13620_v49, %v3422_v15  ;;  %v3423_v41 = vadd.f32 %v15571_v14, %v3028_v55  ;;  %5152 = vmatprep.mubr.bf16.mxu1 %v4875_v3  ;;  %9670 = vmatprep.mubr.bf16.mxu0 %v7357_v11  ;;  %v5332_v21 = vrot.slane %v5330_v7, 2  ;;  %v5335_v61 = vrot.slane %v5333_v53, 3  ;;  %v15579_v55 = vld [vmem:[#allocation115_spill] sm:$0xff]  ;;  %v15580_v11 = vld [vmem:[#allocation108_spill] sm:$0xff] }
 0x395   : > { %15570 = vst [vmem:[#allocation41_spill] sm:$0xff] %v13867_v29  ;;  %5153 = vmatmul.mubr.bf16.gmra.mrb[76].mxu1 %v4871_v60  ;;  %v15575_v12 = vsel %vm12985_vm4, %v15573_v22, %v15574_v4  ;;  %v13880_v52 = vshll.u32 %v9028_v27, 16  ;;  %v13882_v15 = vshrl.u32 %v9028_v27, 16  ;;  %v7359_v47 = vshrl.u32 %v10490_v13, 16  ;;  %v3033_v4 = vpop.f32.mrb[60].mxu0  ;;  %v15605_v29 = vld [vmem:[#allocation97_spill] sm:$0xff] }
 0x396   : > { %vm13876_vm10 = vcmp.lt.s32.totalorder %v15575_v12, 16  ;;  %v7362_v37 = vshll.u32 %v10490_v13, 16  ;;  %v4150_v54 = vmax.f32 %v3465_v9, 0.0  ;;  %v3466_v7 = vadd.f32 %v13620_v49, %v3423_v41 }
 0x397   : > { %v13885_v53 = vor.u32 %v5335_v61, %v5332_v21  ;;  %v5326_v60 = vrot.slane %v13562_v2, 3  ;;  %v15581_v14 = vsel %vm13012_vm8, %v15579_v55, %v15580_v11  ;;  %v4876_v27 = vrot.slane %v13882_v15, 3  ;;  %vm15587_vm8 = vmmov %vm15584_vm2 }
 0x398   : > { %vm13893_vm4 = vcmp.lt.s32.totalorder %v15581_v14, 16  ;;  %v4877_v13 = vrot.slane %v13880_v52, 4  ;;  %v7361_v9 = vrot.slane %v7359_v47, 1  ;;  %v7364_v40 = vrot.slane %v7362_v37, 2  ;;  %v15586_v37 = vld [vmem:[#allocation79_spill] sm:$0xff] }
 0x399   : > { %v4258_v41 = vsel %vm13820_vm12, %v4150_v54, 0.0  ;;  %v4151_v21 = vmax.f32 %v3466_v7, 0.0  ;;  %v13904_v2 = vsel %vm15584_vm2, %v13798_v51, %v13885_v53  ;;  %v13906_v61 = vor.u32 %v5326_v60, %v5325_v63  ;;  %v3035_v54 = vpop.f32.mrb[61].mxu0 }
 0x39a   : > { %15585 = vst [vmem:[#allocation34_spill] sm:$0xff] %v13904_v2  ;;  %v9435_v22 = vpack.c.bf16 %v4258_v41, %v4257_v17  ;;  %v4878_v12 = vor.u32 %v4877_v13, %v4876_v27  ;;  %v7365_v33 = vor.u32 %v7364_v40, %v7361_v9  ;;  %v4662_v55 = vrot.slane %v13709_v44, 1  ;;  %v13912_v7 = vld [vmem:[#allocation3 + $0x70] sm:$0xf]  ;;  %v13914_v11 = vld [vmem:[#allocation3 + $0x74] sm:$0xf] }
 0x39b   : > { %v4259_v47 = vsel %vm13840_vm1, %v4151_v21, 0.0  ;;  %v3424_v24 = vadd.f32 %v15586_v37, %v3033_v4  ;;  %v13919_v51 = vsel %vm15587_vm8, %v13805_v19, %v13906_v61  ;;  %v13923_v63 = vcombine.low %v13526_v45, %v13595_v32  ;;  %v3036_v17 = vpop.f32.mrb[62].mxu0  ;;  %v10493_v27 = vld [vmem:[#allocation3 + $0x6c] sm:$0xff]   ;;  %v15591_v19 = vld [vmem:[#allocation81_spill] sm:$0xff]  ;;  %vm15608_vm1 = vmmov %vm15546_vm0 }
 0x39c   : > { %15588 = vst [vmem:[#allocation19_spill] sm:$0xff] %v13919_v51  ;;  %9504 = vst [vmem:[#allocation3 + $0x78] sm:$0xff] %v9435_v22   ;;  %v4879_v34 = vsel %vm15545_vm5, %v4874_v35, %v4878_v12  ;;  %v7366_v60 = vsel %vm15546_vm0, %v7356_v36, %v7365_v33  ;;  %v9029_v14 = vcombine.low %v13912_v7, %v13914_v11  ;;  %v3038_v41 = vpop.f32.mrb[63].mxu0  ;;  %v15593_v35 = vld [vmem:[#allocation116_spill] sm:$0xff]  ;;  %v15594_v36 = vld [vmem:[#allocation110_spill] sm:$0xff]  ;;  %v7371_v54 = vshll.u32 %v10493_v27, 16 }
 0x39d   : > { %15589 = vst [vmem:[#allocation67_spill] sm:$0xff] %v13923_v63  ;;  %v4663_v13 = vsel %vm15590_vm14, %v4658_v23, %v4662_v55  ;;  %v3467_v9 = vadd.f32 %v13620_v49, %v3424_v24  ;;  %v3425_v40 = vadd.f32 %v15591_v19, %v3036_v17  ;;  %5160 = vmatprep.mubr.bf16.mxu1 %v4879_v34  ;;  %v7368_v24 = vshrl.u32 %v10493_v27, 16  ;;  %v15598_v19 = vld [vmem:[#allocation14_spill] sm:$0xff]  ;;  %v15601_v21 = vld [vmem:[#allocation111_spill] sm:$0xff]  ;;  %vm15625_vm8 = vmmov %vm15546_vm0 }
 0x39e   : > { %9671 = vmatmul.mubr.bf16.gmra.mrb[88].mxu0 %v7366_v60  ;;  %v5343_v45 = vshrl.u32 %v4663_v13, 16  ;;  %v5346_v32 = vshll.u32 %v4663_v13, 16  ;;  %5161 = vmatmul.mubr.bf16.gmra.mrb[80].mxu1 %v4875_v3  ;;  %v15595_v22 = vsel %vm13026_vm13, %v15593_v35, %v15594_v36  ;;  %v13941_v23 = vshll.u32 %v9029_v14, 16  ;;  %v15600_v41 = vld [vmem:[#allocation118_spill] sm:$0xff] }
 0x39f   : > { %vm13937_vm3 = vcmp.lt.s32.totalorder %v15595_v22, 16  ;;  %v13943_v37 = vshrl.u32 %v9029_v14, 16  ;;  %v4152_v17 = vmax.f32 %v3467_v9, 0.0  ;;  %v3468_v60 = vadd.f32 %v13620_v49, %v3425_v40 }
 0x3a0   : > { %v5345_v13 = vrot.slane %v5343_v45, 2  ;;  %v5348_v3 = vrot.slane %v5346_v32, 3  ;;  %vm15599_vm12 = vnez %v15598_v19  ;;  %v4881_v14 = vrot.slane %v13941_v23, 4 }
 0x3a1   : > { %v15602_v35 = vsel %vm15599_vm12, %v15600_v41, %v15601_v21  ;;  %v4880_v22 = vrot.slane %v13943_v37, 3  ;;  %v7370_v51 = vrot.slane %v7368_v24, 1  ;;  %v7373_v27 = vrot.slane %v7371_v54, 2  ;;  %v3041_v41 = vpop.f32.mrb[64].mxu0  ;;  %vm15633_vm12 = vmmov %vm15608_vm1 }
 0x3a2   : > { %vm13951_vm13 = vcmp.lt.s32.totalorder %v15602_v35, 16  ;;  %v4260_v9 = vsel %vm13876_vm10, %v4152_v17, 0.0  ;;  %v4153_v40 = vmax.f32 %v3468_v60, 0.0  ;;  %v13959_v45 = vor.u32 %v5348_v3, %v5345_v13  ;;  %v3043_v54 = vpop.f32.mrb[65].mxu0  ;;  %v15609_v3 = vld [vmem:[#allocation99_spill] sm:$0xff]  ;;  %vm15617_vm10 = vmmov %vm15584_vm2 }
 0x3a3   : > { %v5338_v32 = vrot.slane %v13637_v56, 2  ;;  %v9440_v19 = vpack.c.bf16 %v4260_v9, %v4259_v47  ;;  %v4882_v21 = vor.u32 %v4881_v14, %v4880_v22  ;;  %v7374_v35 = vor.u32 %v7373_v27, %v7370_v51  ;;  %v13966_v46 = vld [vmem:[#allocation3 + $0x78] sm:$0xf]  ;;  %v13968_v50 = vld [vmem:[#allocation3 + $0x7c] sm:$0xf]  ;;  %v3044_v51 = vpop.f32.mrb[66].mxu0 }
 0x3a4   : > { %v5339_v2 = vrot.slane %v13635_v58, 3  ;;  %v4261_v63 = vsel %vm13893_vm4, %v4153_v40, 0.0  ;;  %v3426_v24 = vadd.f32 %v15605_v29, %v3041_v41  ;;  %v13973_v56 = vsel %vm15606_vm9, %v13885_v53, %v13959_v45  ;;  %v10496_v17 = vld [vmem:[#allocation3 + $0x74] sm:$0xff]   ;;  %v3046_v14 = vpop.f32.mrb[67].mxu0  ;;  %v15613_v27 = vld [vmem:[#allocation119_spill] sm:$0xff]  ;;  %vm15619_vm4 = vmmov %vm15590_vm14 }
 0x3a5   : > { %v4666_v47 = vor.u32 %v13711_v26, %v4662_v55  ;;  %9505 = vst [vmem:[#allocation3 + $0x80] sm:$0xff] %v9440_v19   ;;  %v4883_v58 = vsel %vm15607_vm7, %v4878_v12, %v4882_v21  ;;  %v7375_v43 = vsel %vm15608_vm1, %v7365_v33, %v7374_v35  ;;  %v9030_v29 = vcombine.low %v13966_v46, %v13968_v50  ;;  %v15610_v12 = vld [vmem:[#allocation30_spill] sm:$0xff]  ;;  %v15612_v33 = vld [vmem:[#allocation37_spill] sm:$0xff]  ;;  %vm15630_vm14 = vmmov %vm15619_vm4 }
 0x3a6   : > { %v5340_v60 = vor.u32 %v5339_v2, %v5338_v32  ;;  %v3469_v13 = vadd.f32 %v13620_v49, %v3426_v24  ;;  %v3427_v22 = vadd.f32 %v15609_v3, %v3044_v51  ;;  %5168 = vmatprep.mubr.bf16.mxu1 %v4883_v58  ;;  %9674 = vmatprep.mubr.bf16.mxu0 %v7375_v43  ;;  %v4670_v53 = vrot.slane %v13771_v42, 1 }
 0x3a7   : > { %v5351_v55 = vrot.slane %v13711_v26, 2  ;;  %5169 = vmatmul.mubr.bf16.gmra.mrb[84].mxu1 %v4879_v34  ;;  %vm15611_vm11 = vnez %v15610_v12  ;;  %v13993_v2 = vshll.u32 %v9030_v29, 16  ;;  %v13995_v32 = vshrl.u32 %v9030_v29, 16  ;;  %v3049_v12 = vpop.f32.mrb[68].mxu0 }
 0x3a8   : > { %v15614_v9 = vsel %vm15611_vm11, %v15612_v33, %v15613_v27  ;;  %v7377_v19 = vshrl.u32 %v10496_v17, 16  ;;  %v7380_v41 = vshll.u32 %v10496_v17, 16  ;;  %v4154_v24 = vmax.f32 %v3469_v13, 0.0 }
 0x3a9   : > { %vm13989_vm6 = vcmp.lt.s32.totalorder %v15614_v9, 16  ;;  %v3470_v54 = vadd.f32 %v13620_v49, %v3427_v22  ;;  %v14000_v26 = vsel %vm15617_vm10, %v13906_v61, %v5340_v60  ;;  %v4671_v34 = vsel %vm15619_vm4, %v4666_v47, %v4670_v53  ;;  %v15623_v9 = vld [vmem:[#allocation95_spill] sm:$0xff] }
 0x3aa   : > { %15618 = vst [vmem:[#allocation54_spill] sm:$0xff] %v14000_v26  ;;  %v15620_v51 = vsel %vm13368_vm15, %v13101_v28, %v13056_v30  ;;  %v4884_v29 = vrot.slane %v13995_v32, 3  ;;  %v4885_v17 = vrot.slane %v13993_v2, 4  ;;  %v7379_v13 = vrot.slane %v7377_v19, 1  ;;  %v3051_v26 = vpop.f32.mrb[69].mxu0  ;;  %vm15624_vm15 = vmmov %vm15545_vm5 }
 0x3ab   : > { %vm14008_vm2 = vcmp.lt.s32.totalorder %v15620_v51, 16  ;;  %v7382_v3 = vrot.slane %v7380_v41, 2  ;;  %v4262_v61 = vsel %vm13937_vm3, %v4154_v24, 0.0  ;;  %v4155_v22 = vmax.f32 %v3470_v54, 0.0  ;;  %v3052_v24 = vpop.f32.mrb[70].mxu0  ;;  %vm15627_vm5 = vmmov %vm15606_vm9 }
 0x3ac   : > { %v5356_v47 = vshrl.u32 %v4671_v34, 16  ;;  %v5359_v14 = vshll.u32 %v4671_v34, 16  ;;  %v9445_v38 = vpack.c.bf16 %v4262_v61, %v4261_v63  ;;  %v4886_v33 = vor.u32 %v4885_v17, %v4884_v29  ;;  %v14020_v19 = vld [vmem:[#allocation3 + $0x80] sm:$0xf]  ;;  %v14022_v41 = vld [vmem:[#allocation3 + $0x84] sm:$0xf]  ;;  %vm15629_vm0 = vmmov %vm15627_vm5 }
 0x3ad   : > { %v7383_v30 = vor.u32 %v7382_v3, %v7379_v13  ;;  %v5352_v28 = vrot.slane %v13709_v44, 3  ;;  %v4263_v27 = vsel %vm13951_vm13, %v4155_v22, 0.0  ;;  %v3428_v51 = vadd.f32 %v15623_v9, %v3049_v12  ;;  %v10499_v26 = vld [vmem:[#allocation3 + $0x7c] sm:$0xff]   ;;  %v3054_v13 = vpop.f32.mrb[71].mxu0  ;;  %vm15632_vm3 = vmmov %vm15607_vm7 }
 0x3ae   : > { %v4674_v4 = vor.u32 %v13773_v6, %v4670_v53  ;;  %v14027_v63 = vcombine.low %v13597_v57, %v13675_v16  ;;  %9506 = vst [vmem:[#allocation3 + $0x88] sm:$0xff] %v9445_v38   ;;  %v4887_v44 = vsel %vm15624_vm15, %v4882_v21, %v4886_v33  ;;  %v9031_v54 = vcombine.low %v14020_v19, %v14022_v41  ;;  %v15626_v17 = vld [vmem:[#allocation98_spill] sm:$0xff]  ;;  %vm15634_vm13 = vmmov %vm15619_vm4 }
 0x3af   : > { %v7384_v36 = vsel %vm15625_vm8, %v7374_v35, %v7383_v30  ;;  %v14033_v34 = vor.u32 %v5352_v28, %v5351_v55  ;;  %v3471_v29 = vadd.f32 %v13620_v49, %v3428_v51  ;;  %v3429_v53 = vadd.f32 %v15626_v17, %v3052_v24  ;;  %5176 = vmatprep.mubr.bf16.mxu1 %v4887_v44  ;;  %vm15635_vm9 = vmmov %vm15629_vm0 }
 0x3b0   : > { %9675 = vmatmul.mubr.bf16.gmra.mrb[92].mxu0 %v7384_v36  ;;  %v5358_v57 = vrot.slane %v5356_v47, 2  ;;  %v5361_v16 = vrot.slane %v5359_v14, 3  ;;  %5177 = vmatmul.mubr.bf16.gmra.mrb[88].mxu1 %v4883_v58  ;;  %v14037_v3 = vshll.u32 %v9031_v54, 16  ;;  %v14039_v21 = vshrl.u32 %v9031_v54, 16  ;;  %vm15637_vm7 = vmmov %vm15608_vm1 }
 0x3b1   : > { %v7386_v35 = vshrl.u32 %v10499_v26, 16  ;;  %v7389_v61 = vshll.u32 %v10499_v26, 16  ;;  %v4156_v22 = vmax.f32 %v3471_v29, 0.0  ;;  %v3472_v55 = vadd.f32 %v13620_v49, %v3429_v53  ;;  %vm15638_vm1 = vmmov %vm15629_vm0 }
 0x3b2   : > { %v5362_v38 = vor.u32 %v5361_v16, %v5358_v57  ;;  %v14044_v12 = vsel %vm15627_vm5, %v5340_v60, %v14033_v34  ;;  %v4888_v28 = vrot.slane %v14039_v21, 3  ;;  %v4889_v47 = vrot.slane %v14037_v3, 4  ;;  %vm15641_vm11 = vmmov %vm15632_vm3 }
 0x3b3   : > { %15628 = vst [vmem:[#allocation50_spill] sm:$0xff] %v14044_v12  ;;  %v7388_v14 = vrot.slane %v7386_v35, 1  ;;  %v7391_v58 = vrot.slane %v7389_v61, 2  ;;  %v4264_v9 = vsel %vm13989_vm6, %v4156_v22, 0.0  ;;  %v4157_v51 = vmax.f32 %v3472_v55, 0.0  ;;  %vm15643_vm6 = vmmov %vm15629_vm0 }
 0x3b4   : > { %v14052_v24 = vsel %vm15629_vm0, %v13959_v45, %v5362_v38  ;;  %v4678_v49 = vrot.slane %v13824_v10, 1  ;;  %v9450_v36 = vpack.c.bf16 %v4264_v9, %v4263_v27  ;;  %v4890_v54 = vor.u32 %v4889_v47, %v4888_v28  ;;  %vm15644_vm10 = vmmov %vm15632_vm3 }
 0x3b5   : > { %v7392_v60 = vor.u32 %v7391_v58, %v7388_v14  ;;  %v5364_v26 = vrot.slane %v13773_v6, 2  ;;  %v4265_v29 = vsel %vm14008_vm2, %v4157_v51, 0.0  ;;  %v14058_v17 = vld [vmem:[#allocation3 + $0x88] sm:$0xf]  ;;  %v14060_v53 = vld [vmem:[#allocation3 + $0x8c] sm:$0xf]  ;;  %v14066_v57 = vcombine.low %v13677_v18, %v13735_v5  ;;  %vm15645_vm4 = vmmov %vm15637_vm7 }
 0x3b6   : > { %v10502_v40 = vld [vmem:[#allocation3 + $0x84] sm:$0xff]   ;;  %v4679_v13 = vsel %vm15630_vm14, %v4674_v4, %v4678_v49  ;;  %v4682_v45 = vor.u32 %v13826_v31, %v4678_v49  ;;  %9507 = vst [vmem:[#allocation3 + $0x90] sm:$0xff] %v9450_v36   ;;  %v9250_v27 = vpack.c.bf16 %v4265_v29, %v4265_v29  ;;  %v4891_v6 = vsel %vm15632_vm3, %v4886_v33, %v4890_v54  ;;  %vm15646_vm2 = vmmov %vm15645_vm4 }
 0x3b7   : > { %15631 = vst [vmem:[#allocation69_spill] sm:$0xff] %v14066_v57  ;;  %v7393_v43 = vsel %vm15633_vm12, %v7383_v30, %v7392_v60  ;;  %v9032_v16 = vcombine.low %v14058_v17, %v14060_v53  ;;  %5184 = vmatprep.mubr.bf16.mxu1 %v4891_v6  ;;  %v7395_v35 = vshrl.u32 %v10502_v40, 16  ;;  %v7398_v61 = vshll.u32 %v10502_v40, 16  ;;  %vm15647_vm15 = vmmov %vm15646_vm2 }
 0x3b8   : > { %9678 = vmatprep.mubr.bf16.mxu0 %v7393_v43  ;;  %v5369_v4 = vshrl.u32 %v4679_v13, 16  ;;  %v5372_v22 = vshll.u32 %v4679_v13, 16  ;;  %4445 = vst [vmem:[#allocation3 + $0x98] sm:$0x7] %v9250_v27  ;;  %5185 = vmatmul.mubr.bf16.gmra.mrb[92].mxu1 %v4887_v44  ;;  %v5365_v18 = vrot.slane %v13771_v42, 3  ;;  %v4686_v33 = vrot.slane %v13880_v52, 1  ;;  %vm15648_vm8 = vmmov %vm15629_vm0 }
 0x3b9   : > { %v14072_v55 = vshll.u32 %v9032_v16, 16  ;;  %v14074_v5 = vshrl.u32 %v9032_v16, 16  ;;  %v7397_v30 = vrot.slane %v7395_v35, 1  ;;  %v7400_v28 = vrot.slane %v7398_v61, 2  ;;  %vm15649_vm5 = vmmov %vm15632_vm3 }
 0x3ba   : > { %v5371_v47 = vrot.slane %v5369_v4, 2  ;;  %v5374_v14 = vrot.slane %v5372_v22, 3  ;;  %v14080_v51 = vor.u32 %v5365_v18, %v5364_v26  ;;  %v4687_v44 = vsel %vm15634_vm13, %v4682_v45, %v4686_v33  ;;  %vm15650_vm0 = vmmov %vm15634_vm13 }
 0x3bb   : > { %v4892_v58 = vrot.slane %v14074_v5, 3  ;;  %v4893_v9 = vrot.slane %v14072_v55, 4  ;;  %v7401_v49 = vor.u32 %v7400_v28, %v7397_v30  ;;  %v5382_v29 = vshrl.u32 %v4687_v44, 16  ;;  %vm15651_vm14 = vmmov %vm15632_vm3 }
 0x3bc   : > { %v5375_v36 = vor.u32 %v5374_v14, %v5371_v47  ;;  %v5385_v40 = vshll.u32 %v4687_v44, 16  ;;  %v14088_v42 = vsel %vm15635_vm9, %v14033_v34, %v14080_v51  ;;  %v5377_v27 = vrot.slane %v13826_v31, 2  ;;  %vm15652_vm3 = vmmov %vm15650_vm0 }
 0x3bd   : > { %v14083_v13 = vor.u32 %v4893_v9, %v4892_v58  ;;  %15636 = vst [vmem:[#allocation55_spill] sm:$0xff] %v14088_v42  ;;  %v5378_v43 = vrot.slane %v13824_v10, 3  ;;  %v7402_v26 = vsel %vm15637_vm7, %v7392_v60, %v7401_v49  ;;  %v14093_v16 = vld [vmem:[#allocation3 + $0x90] sm:$0xf]  ;;  %v14095_v45 = vld [vmem:[#allocation3 + $0x94] sm:$0xf]  ;;  %v4690_v61 = vor.u32 %v13882_v15, %v4686_v33  ;;  %vm15653_vm12 = vmmov %vm15638_vm1 }
 0x3be   : > { %v14098_v35 = vsel %vm15638_vm1, %v5362_v38, %v5375_v36  ;;  %v14103_v4 = vcombine.low %v13737_v25, %v13794_v62  ;;  %9679 = vmatmul.mubr.bf16.gmra.mrb[96].mxu0 %v7402_v26  ;;  %v9037_v10 = vcombine.low %v14093_v16, %v14095_v45  ;;  %v10505_v34 = vld [vmem:[#allocation3 + $0x8c] sm:$0xff]   ;;  %v5384_v60 = vrot.slane %v5382_v29, 2  ;;  %vm15654_vm13 = vmmov %vm15638_vm1 }
 0x3bf   : > { %15639 = vst [vmem:[#allocation52_spill] sm:$0xff] %v14098_v35  ;;  %v4895_v31 = vsel %vm15641_vm11, %v4890_v54, %v14083_v13  ;;  %v14109_v22 = vor.u32 %v5378_v43, %v5377_v27  ;;  %v14111_v38 = vld [vmem:[#allocation3 + $0x98] sm:$0x7]  ;;  %v5387_v33 = vrot.slane %v5385_v40, 3  ;;  %v14115_v25 = vcombine.low %v13796_v59, %v13852_v8  ;;  %vm15655_vm9 = vmmov %vm15650_vm0 }
 0x3c0   : > { %15640 = vst [vmem:[#allocation15_spill] sm:$0xff] %v14103_v4  ;;  %5192 = vmatprep.mubr.bf16.mxu1 %v4895_v31  ;;  %v10507_v18 = vld [vmem:[#allocation3 + $0x94] sm:$0xff]   ;;  %v14119_v62 = vcombine.low %v13854_v39, %v13912_v7  ;;  %v14123_v54 = vcombine.low %v13914_v11, %v13966_v46  ;;  %v4897_v30 = vshrl.u32 %v9037_v10, 16  ;;  %v4900_v28 = vshll.u32 %v9037_v10, 16  ;;  %vm15656_vm7 = vmmov %vm15638_vm1 }
 0x3c1   : > { %5193 = vmatmul.mubr.bf16.gmra.mrb[96].mxu1 %v4891_v6  ;;  %v7404_v47 = vshrl.u32 %v10505_v34, 16  ;;  %v7407_v14 = vshll.u32 %v10505_v34, 16  ;;  %v9038_v58 = vcombine.low %v14111_v38, %v14111_v38  ;;  %v7413_v9 = vshrl.u32 %v10507_v18, 16  ;;  %v10509_v59 = vld [vmem:[#allocation3 + $0x90] ss:$0 sps:$4 sm:$0x77]   ;;  %vm15658_vm1 = vmmov %vm15650_vm0 }
 0x3c2   : > { %15642 = vst [vmem:[#allocation18_spill] sm:$0xff] %v14119_v62  ;;  %v7416_v44 = vshll.u32 %v10507_v18, 16  ;;  %v14127_v8 = vor.u32 %v5387_v33, %v5384_v60  ;;  %v4899_v29 = vrot.slane %v4897_v30, 3  ;;  %v4902_v39 = vrot.slane %v4900_v28, 4  ;;  %vm15659_vm11 = vmmov %vm15643_vm6 }
 0x3c3   : > { %v7406_v7 = vrot.slane %v7404_v47, 1  ;;  %v7409_v40 = vrot.slane %v7407_v14, 2  ;;  %v4915_v27 = vshrl.u32 %v9038_v58, 16  ;;  %v4918_v46 = vshll.u32 %v9038_v58, 16 }
 0x3c4   : > { %v7415_v11 = vrot.slane %v7413_v9, 1  ;;  %v7418_v6 = vrot.slane %v7416_v44, 2  ;;  %v4903_v43 = vor.u32 %v4902_v39, %v4899_v29  ;;  %v4906_v10 = vshrl.u32 %v10509_v59, 16 }
 0x3c5   : > { %v7410_v26 = vor.u32 %v7409_v40, %v7406_v7  ;;  %v4909_v34 = vshll.u32 %v10509_v59, 16  ;;  %v4917_v42 = vrot.slane %v4915_v27, 3  ;;  %v4920_v35 = vrot.slane %v4918_v46, 4 }
 0x3c6   : > { %v7419_v12 = vor.u32 %v7418_v6, %v7415_v11  ;;  %v14131_v18 = vsel %vm15643_vm6, %v5375_v36, %v14127_v8  ;;  %v4904_v60 = vsel %vm15644_vm10, %v14083_v13, %v4903_v43  ;;  %v4908_v30 = vrot.slane %v4906_v10, 3  ;;  %vm15660_vm10 = vmmov %vm15643_vm6 }
 0x3c7   : > { %v7411_v33 = vsel %vm15645_vm4, %v7401_v49, %v7410_v26  ;;  %v4911_v28 = vrot.slane %v4909_v34, 4  ;;  %5200 = vmatprep.mubr.bf16.mxu1 %v4904_v60  ;;  %v4921_v47 = vor.u32 %v4920_v35, %v4917_v42  ;;  %v4694_v9 = vrot.slane %v13941_v23, 1  ;;  %vm15661_vm4 = vmmov %vm15643_vm6 }
 0x3c8   : > { %9682 = vmatprep.mubr.bf16.mxu0 %v7411_v33  ;;  %v7420_v14 = vsel %vm15646_vm2, %v7410_v26, %v7419_v12  ;;  %v7429_v58 = vsel %vm15647_vm15, %v7419_v12, %v13404_v1  ;;  %v14143_v44 = vsel %vm15648_vm8, %v14080_v51, %v14109_v22  ;;  %v5390_v49 = vrot.slane %v13882_v15, 2  ;;  %vm15665_vm2 = vmmov %vm15650_vm0 }
 0x3c9   : > { %5201 = vmatmul.mubr.bf16.gmra.mrb[100].mxu1 %v4895_v31  ;;  %9683 = vmatmul.mubr.bf16.gmra.mrb[100].mxu0 %v7420_v14  ;;  %v4912_v36 = vor.u32 %v4911_v28, %v4908_v30  ;;  %v5391_v59 = vrot.slane %v13880_v52, 3  ;;  %v4922_v42 = vsel %vm15649_vm5, %v4903_v43, %v4921_v47  ;;  %v4695_v35 = vsel %vm15650_vm0, %v4690_v61, %v4694_v9  ;;  %vm15667_vm15 = vmmov %vm15661_vm4 }
 0x3ca   : > { %9686 = vmatprep.mubr.bf16.mxu0 %v7429_v58  ;;  %v4698_v12 = vor.u32 %v13943_v37, %v4694_v9  ;;  %v4702_v31 = vrot.slane %v13993_v2, 1  ;;  %5208 = vmatprep.mubr.bf16.mxu1 %v4922_v42  ;;  %v5395_v39 = vshrl.u32 %v4695_v35, 16  ;;  %v5398_v51 = vshll.u32 %v4695_v35, 16  ;;  %v14174_v9 = vld [vmem:[#allocation3 + $0x90] ss:$0 sps:$4 sm:$0x33]   ;;  %vm15668_vm8 = vmmov %vm15661_vm4 }
 0x3cb   : > { %v4913_v29 = vsel %vm15651_vm14, %v14083_v13, %v4912_v36  ;;  %v5392_v7 = vor.u32 %v5391_v59, %v5390_v49  ;;  %v5403_v52 = vrot.slane %v13943_v37, 2  ;;  %v5404_v40 = vrot.slane %v13941_v23, 3  ;;  %vm15669_vm5 = vmmov %vm15650_vm0 }
 0x3cc   : > { %v4703_v15 = vsel %vm15652_vm3, %v4698_v12, %v4702_v31  ;;  %v4706_v27 = vor.u32 %v13995_v32, %v4702_v31  ;;  %v5397_v61 = vrot.slane %v5395_v39, 2  ;;  %v5400_v46 = vrot.slane %v5398_v51, 3  ;;  %vm15671_vm0 = vmmov %vm15661_vm4 }
 0x3cd   : > { %v14159_v11 = vsel %vm15653_vm12, %v14109_v22, %v5392_v7  ;;  %v5408_v6 = vshrl.u32 %v4703_v15, 16  ;;  %v5411_v43 = vshll.u32 %v4703_v15, 16  ;;  %v5405_v13 = vor.u32 %v5404_v40, %v5403_v52  ;;  %vm15672_vm14 = vmmov %vm15658_vm1 }
 0x3ce   : > { %v4710_v26 = vrot.slane %v14037_v3, 1  ;;  %v5416_v10 = vrot.slane %v13995_v32, 2  ;;  %v5401_v34 = vor.u32 %v5400_v46, %v5397_v61  ;;  %v5417_v37 = vrot.slane %v13993_v2, 3  ;;  %v15657_v2 = vld [vmem:[#allocation40_spill] sm:$0xff]  ;;  %vm15678_vm3 = vmmov %vm15658_vm1 }
 0x3cf   : > { %v5410_v60 = vrot.slane %v5408_v6, 2  ;;  %v4718_v23 = vrot.slane %v14072_v55, 1  ;;  %v5413_v33 = vrot.slane %v5411_v43, 3  ;;  %v14166_v30 = vsel %vm15654_vm13, %v5392_v7, %v5405_v13  ;;  %vm15679_vm12 = vmmov %vm15658_vm1 }
 0x3d0   : > { %v4711_v22 = vsel %vm15655_vm9, %v4706_v27, %v4710_v26  ;;  %v4714_v28 = vor.u32 %v14039_v21, %v4710_v26  ;;  %v14172_v47 = vsel %vm15656_vm7, %v14127_v8, %v5401_v34  ;;  %v5418_v58 = vor.u32 %v5417_v37, %v5416_v10  ;;  %v15664_v37 = vld [vmem:[#allocation29_spill] sm:$0xff]  ;;  %vm15680_vm13 = vmmov %vm15658_vm1 }
 0x3d1   : > { %5209 = vmatmul.mubr.bf16.gmra.mrb[104].mxu1 %v4913_v29  ;;  %v5421_v32 = vshrl.u32 %v4711_v22, 16  ;;  %v5424_v14 = vshll.u32 %v4711_v22, 16  ;;  %v5414_v36 = vor.u32 %v5413_v33, %v5410_v60  ;;  %v5429_v59 = vrot.slane %v14039_v21, 2  ;;  %v15666_v22 = vld [vmem:[#allocation44_spill] sm:$0xff]  ;;  %vm15681_vm9 = vmmov %vm15658_vm1 }
 0x3d2   : > { %5632 = vmatprep.mubr.bf16.mxu1 %v15657_v2  ;;  %v4719_v49 = vsel %vm15658_vm1, %v4714_v28, %v4718_v23  ;;  %v5430_v42 = vrot.slane %v14037_v3, 3  ;;  %v14181_v31 = vsel %vm15659_vm11, %v5405_v13, %v5418_v58  ;;  %v4722_v7 = vor.u32 %v14074_v5, %v4718_v23  ;;  %v10512_v3 = vld [vmem:[#allocation5 + $0x100] sm:$0xff]   ;;  %v15662_v13 = vld [vmem:[#allocation32_spill] sm:$0xff]  ;;  %vm15682_vm7 = vmmov %vm15658_vm1 }
 0x3d3   : > { %v5423_v35 = vrot.slane %v5421_v32, 2  ;;  %v5426_v12 = vrot.slane %v5424_v14, 3  ;;  %v5434_v8 = vshrl.u32 %v4719_v49, 16  ;;  %v14184_v29 = vsel %vm15643_vm6, %v5401_v34, %v5414_v36  ;;  %v10513_v28 = vld [vmem:[#allocation5 + $0x108] sm:$0xff]   ;;  %vm15685_vm11 = vmmov %vm15658_vm1 }
 0x3d4   : > { %v5437_v39 = vshll.u32 %v4719_v49, 16  ;;  %v5431_v51 = vor.u32 %v5430_v42, %v5429_v59  ;;  %v15064_v40 = vshll.u32 %v14174_v9, 16  ;;  %v5442_v21 = vrot.slane %v14074_v5, 2  ;;  %v15663_v5 = vld [vmem:[#allocation39_spill] sm:$0xff]  ;;  %vm15686_vm6 = vmmov %vm15658_vm1 }
 0x3d5   : > { %v5427_v15 = vor.u32 %v5426_v12, %v5423_v35  ;;  %v5436_v52 = vrot.slane %v5434_v8, 2  ;;  %v5443_v46 = vrot.slane %v14072_v55, 3  ;;  %v5820_v26 = vshll.u32 %v15662_v13, 16 }
 0x3d6   : > { %v5439_v27 = vrot.slane %v5437_v39, 3  ;;  %v14190_v61 = vsel %vm15660_vm10, %v5418_v58, %v5431_v51  ;;  %v14198_v43 = vrot.slane %v15064_v40, 1  ;;  %v5825_v60 = vshll.u32 %v15663_v5, 16  ;;  %v10514_v39 = vld [vmem:[#allocation5 + $0x110] sm:$0xff]   ;;  %vm15687_vm10 = vmmov %vm15658_vm1 }
 0x3d7   : > { %v14194_v6 = vsel %vm15661_vm4, %v5414_v36, %v5427_v15  ;;  %v14201_v34 = vor.u32 %v5443_v46, %v5442_v21  ;;  %v5818_v55 = vshrl.u32 %v15662_v13, 16  ;;  %v5822_v33 = vrot.slane %v5820_v26, 1  ;;  %vm15688_vm4 = vmmov %vm15658_vm1 }
 0x3d8   : > { %v5440_v10 = vor.u32 %v5439_v27, %v5436_v52  ;;  %v4727_v23 = vsel %vm15665_vm2, %v4722_v7, %v14198_v43  ;;  %v5829_v49 = vshrl.u32 %v15663_v5, 16  ;;  %v5827_v35 = vrot.slane %v5825_v60, 1  ;;  %vm15689_vm2 = vmmov %vm15658_vm1 }
 0x3d9   : > { %5633 = vmatmul.mubr.bf16.vlgmr.msra.gmra.mrb[36].mxu1 %v15664_v37  ;;  %v5447_v14 = vshrl.u32 %v4727_v23, 16  ;;  %v5450_v58 = vshll.u32 %v4727_v23, 16  ;;  %v14214_v2 = vsel %vm15668_vm8, %v5431_v51, %v14201_v34  ;;  %v5823_v36 = vor.u32 %v5822_v33, %v5818_v55  ;;  %v15673_v23 = vld [vmem:[#allocation31_spill] sm:$0xff]  ;;  %vm15693_vm8 = vmmov %vm15658_vm1 }
 0x3da   : > { %5640 = vmatprep.mubr.bf16.mxu1 %v15666_v22  ;;  %6108 = vmatpush1.bf16.msra.mxu1 %v10512_v3  ;;  %v14210_v32 = vsel %vm15667_vm15, %v5427_v15, %v5440_v10  ;;  %v5833_v12 = vshll.u32 %v13467_v48, 16  ;;  %v5837_v8 = vshrl.u32 %v13467_v48, 16  ;;  %v5831_v51 = vor.u32 %v5829_v49, %v5827_v35  ;;  %v15670_v3 = vld [vmem:[#allocation65_spill] sm:$0xff]  ;;  %vm15691_vm15 = vmmov %vm15658_vm1 }
 0x3db   : > { %6109 = vmatprep.subr.bf16.mxu1 %v15376_v0  ;;  %v5449_v59 = vrot.slane %v5447_v14, 2  ;;  %v5452_v42 = vrot.slane %v5450_v58, 3  ;;  %v14223_v15 = vsel %vm15669_vm5, %v5823_v36, %v5827_v35  ;;  %v5841_v21 = vshll.u32 %v13602_v20, 16  ;;  %v15675_v58 = vld [vmem:[#allocation11_spill] sm:$0xff]  ;;  %v10515_v36 = vld [vmem:[#allocation5 + $0x118] sm:$0xff]   ;;  %v15676_v49 = vld [vmem:[#allocation41_spill] sm:$0xff] }
 0x3dc   : > { %v5835_v52 = vrot.slane %v5833_v12, 1  ;;  %v5849_v27 = vshll.u32 %v15670_v3, 16  ;;  %v5845_v37 = vshrl.u32 %v13602_v20, 16  ;;  %v5853_v22 = vshrl.u32 %v15670_v3, 16  ;;  %v15677_v35 = vld [vmem:[#allocation67_spill] sm:$0xff]  ;;  %vm15694_vm5 = vmmov %vm15658_vm1 }
 0x3dd   : > { %v14220_v7 = vor.u32 %v5452_v42, %v5449_v59  ;;  %v5843_v55 = vrot.slane %v5841_v21, 1  ;;  %v5865_v59 = vshll.u32 %v15676_v49, 16  ;;  %v5869_v42 = vshrl.u32 %v15676_v49, 16 }
 0x3de   : > { %6110 = vmatpush1.bf16.msra.mxu1 %v10513_v28  ;;  %v14233_v26 = vsel %vm15672_vm14, %v5831_v51, %v5835_v52  ;;  %v5839_v60 = vor.u32 %v5837_v8, %v5835_v52  ;;  %v5851_v33 = vrot.slane %v5849_v27, 1  ;;  %v15674_v28 = vld [vmem:[#allocation16_spill] sm:$0xff]  ;;  %v5873_v12 = vshll.u32 %v15677_v35, 16 }
 0x3df   : > { %6111 = vmatprep.subr.bf16.mxu1 %v15376_v0  ;;  %v14230_v46 = vsel %vm15671_vm0, %v5440_v10, %v14220_v7  ;;  %v5857_v14 = vshll.u32 %v15674_v28, 16  ;;  %v5861_v10 = vshrl.u32 %v15674_v28, 16  ;;  %v5847_v51 = vor.u32 %v5845_v37, %v5843_v55  ;;  %vm15695_vm0 = vmmov %vm15658_vm1 }
 0x3e0   : > { %v14246_v8 = vsel %vm15678_vm3, %v5839_v60, %v5843_v55  ;;  %v5855_v52 = vor.u32 %v5853_v22, %v5851_v33  ;;  %v5867_v27 = vrot.slane %v5865_v59, 1  ;;  %v5885_v3 = vshrl.u32 %v14027_v63, 16  ;;  %v10516_v60 = vld [vmem:[#allocation5 + $0x120] sm:$0xff]  }
 0x3e1   : > { %5641 = vmatmul.mubr.bf16.gmra.mrb[40].mxu1 %v15673_v23  ;;  %v5859_v21 = vrot.slane %v5857_v14, 1  ;;  %v5875_v23 = vrot.slane %v5873_v12, 1  ;;  %v14251_v40 = vsel %vm15679_vm12, %v5847_v51, %v5851_v33  ;;  %v5889_v14 = vshll.u32 %v14066_v57, 16 }
 0x3e2   : > { %5648 = vmatprep.mubr.bf16.mxu1 %v15675_v58  ;;  %6112 = vmatpush1.bf16.msra.mxu1 %v10514_v39  ;;  %v5877_v39 = vshrl.u32 %v15677_v35, 16  ;;  %v5881_v58 = vshll.u32 %v14027_v63, 16  ;;  %v5871_v37 = vor.u32 %v5869_v42, %v5867_v27  ;;  %v5893_v33 = vshrl.u32 %v14066_v57, 16  ;;  %v15684_v57 = vld [vmem:[#allocation13_spill] sm:$0xff] }
 0x3e3   : > { %6113 = vmatprep.subr.bf16.mxu1 %v15376_v0  ;;  %v14254_v49 = vsel %vm15680_vm13, %v5855_v52, %v5859_v21  ;;  %v5863_v28 = vor.u32 %v5861_v10, %v5859_v21  ;;  %v5897_v12 = vshll.u32 %v14103_v4, 16  ;;  %v5901_v10 = vshrl.u32 %v14103_v4, 16  ;;  %v15683_v21 = vld [vmem:[#allocation17_spill] sm:$0xff]  ;;  %v10517_v4 = vld [vmem:[#allocation5 + $0x128] sm:$0xff]  }
 0x3e4   : > { %v5879_v55 = vor.u32 %v5877_v39, %v5875_v23  ;;  %v5883_v22 = vrot.slane %v5881_v58, 1  ;;  %v14266_v51 = vsel %vm15682_vm7, %v5871_v37, %v5875_v23  ;;  %v5891_v52 = vrot.slane %v5889_v14, 1 }
 0x3e5   : > { %v14260_v59 = vsel %vm15681_vm9, %v5863_v28, %v5867_v27  ;;  %v5899_v39 = vrot.slane %v5897_v12, 1  ;;  %v5905_v28 = vshll.u32 %v14115_v25, 16  ;;  %v5909_v27 = vshrl.u32 %v14115_v25, 16 }
 0x3e6   : > { %6114 = vmatpush1.bf16.msra.mxu1 %v10515_v36  ;;  %v14269_v36 = vsel %vm15658_vm1, %v5879_v55, %v5883_v22  ;;  %v5887_v42 = vor.u32 %v5885_v3, %v5883_v22  ;;  %v5913_v58 = vshll.u32 %v14119_v62, 16  ;;  %v5895_v37 = vor.u32 %v5893_v33, %v5891_v52 }
 0x3e7   : > { %6115 = vmatprep.subr.bf16.mxu1 %v15376_v0  ;;  %v5917_v3 = vshrl.u32 %v14119_v62, 16  ;;  %v5921_v55 = vshll.u32 %v14123_v54, 16  ;;  %v5903_v22 = vor.u32 %v5901_v10, %v5899_v39  ;;  %v5907_v14 = vrot.slane %v5905_v28, 1  ;;  %v5777_v62 = vld [vmem:[#allocation3 + $0x98] sm:$0xf] }
 0x3e8   : > { %v14277_v23 = vsel %vm15685_vm11, %v5887_v42, %v5891_v52  ;;  %v5915_v12 = vrot.slane %v5913_v58, 1  ;;  %v5925_v42 = vshrl.u32 %v14123_v54, 16  ;;  %v14292_v33 = vcombine.low %v14022_v41, %v14058_v17 }
 0x3e9   : > { %5649 = vmatmul.mubr.bf16.gmra.mrb[44].mxu1 %v15683_v21  ;;  %v14284_v21 = vcombine.low %v13968_v50, %v14020_v19  ;;  %v14295_v52 = vsel %vm15687_vm10, %v5903_v22, %v5907_v14  ;;  %v5911_v10 = vor.u32 %v5909_v27, %v5907_v14  ;;  %v10518_v50 = vld [vmem:[#allocation5 + $0x130] sm:$0xff]   ;;  %v14314_v14 = vcombine.low %v14095_v45, %v5777_v62 }
 0x3ea   : > { %5656 = vmatprep.mubr.bf16.mxu1 %v15684_v57  ;;  %6116 = vmatpush1.bf16.msra.mxu1 %v10516_v60  ;;  %v14287_v57 = vsel %vm15686_vm6, %v5895_v37, %v5899_v39  ;;  %v5923_v60 = vrot.slane %v5921_v55, 1  ;;  %v5919_v28 = vor.u32 %v5917_v3, %v5915_v12  ;;  %v5937_v39 = vshll.u32 %v14292_v33, 16 }
 0x3eb   : > { %6117 = vmatprep.subr.bf16.mxu1 %v15376_v0  ;;  %v5929_v58 = vshll.u32 %v14284_v21, 16  ;;  %v14301_v37 = vcombine.low %v14060_v53, %v14093_v16  ;;  %v14305_v41 = vsel %vm15688_vm4, %v5911_v10, %v5915_v12  ;;  %v5933_v3 = vshrl.u32 %v14284_v21, 16  ;;  %v15690_v53 = vld [vmem:[#allocation48_spill] sm:$0xff]  ;;  %v10519_v10 = vld [vmem:[#allocation5 + $0x138] sm:$0xff]   ;;  %vm15734_vm4 = vmmov %vm15695_vm0 }
 0x3ec   : > { %v5927_v19 = vor.u32 %v5925_v42, %v5923_v60  ;;  %v14308_v17 = vsel %vm15689_vm2, %v5919_v28, %v5923_v60  ;;  %v5941_v55 = vshrl.u32 %v14292_v33, 16  ;;  %v15692_v42 = vld [vmem:[#allocation33_spill] sm:$0xff]  ;;  %v5953_v62 = vshll.u32 %v14314_v14, 16  ;;  %vm15735_vm2 = vmmov %vm15695_vm0 }
 0x3ed   : > { %v5931_v27 = vrot.slane %v5929_v58, 1  ;;  %v5945_v22 = vshll.u32 %v14301_v37, 16  ;;  %vm15713_vm14 = vsmask.f32 5376  ;;  %vm321_vm12 = vcmask 1040384  }
 0x3ee   : > { %6118 = vmatpush1.bf16.msra.mxu1 %v10517_v4  ;;  %v5939_v4 = vrot.slane %v5937_v39, 1  ;;  %v5949_v39 = vshrl.u32 %v14301_v37, 16  ;;  %vm15714_vm3 = vmmov %vm15713_vm14  ;;  %vm322_vm13 = vsmask.f32 256  ;;  %vm15723_vm7 = vsmask.f32 6400 }
 0x3ef   : > { %6119 = vmatprep.subr.bf16.mxu1 %v15376_v0  ;;  %v14318_v16 = vsel %vm15691_vm15, %v5927_v19, %v5931_v27  ;;  %v5935_v12 = vor.u32 %v5933_v3, %v5931_v27  ;;  %v5947_v58 = vrot.slane %v5945_v22, 1  ;;  %v14332_v3 = vrot.slane %v5953_v62, 1  ;;  %v15696_v22 = vld [vmem:[#allocation45_spill] sm:$0xff]  ;;  %v15700_v62 = vld [vmem:[#allocation46_spill] sm:$0xff]  ;;  %vm323_vm9 = vmand %vm321_vm12, %vm322_vm13 }
 0x3f0   : > { %v5943_v28 = vor.u32 %v5941_v55, %v5939_v4  ;;  %vm15724_vm1 = vmmov %vm15723_vm7 }
 0x3f1   : > { %5657 = vmatmul.mubr.bf16.gmra.mrb[48].mxu1 %v15690_v53  ;;  %v14327_v53 = vsel %vm15693_vm8, %v5935_v12, %v5939_v4  ;;  %v5951_v27 = vor.u32 %v5949_v39, %v5947_v58  ;;  %v10521_v4 = vld [vmem:[#allocation5 + $0x148] sm:$0xff]   ;;  %v10522_v12 = vld [vmem:[#allocation5 + $0x150] sm:$0xff]   ;;  %v10524_v39 = vld [vmem:[#allocation5 + $0x160] sm:$0xff]  }
 0x3f2   : > { %5664 = vmatprep.mubr.bf16.mxu1 %v15692_v42  ;;  %6120 = vmatpush1.bf16.msra.mxu1 %v10518_v50  ;;  %v14330_v19 = vsel %vm15694_vm5, %v5943_v28, %v5947_v58  ;;  %v10520_v50 = vld [vmem:[#allocation5 + $0x140] sm:$0xff]   ;;  %v10523_v58 = vld [vmem:[#allocation5 + $0x158] sm:$0xff]   ;;  %vm15725_vm11 = vmmov %vm15724_vm1 }
 0x3f3   : > { %6121 = vmatprep.subr.bf16.mxu1 %v15376_v0  ;;  %v14336_v55 = vsel %vm15695_vm0, %v5951_v27, %v14332_v3  ;;  %v15697_v42 = vld [vmem:[#allocation51_spill] sm:$0xff]  ;;  %v15701_v27 = vld [vmem:[#allocation34_spill] sm:$0xff]  ;;  %vm15728_vm6 = vmmov %vm15724_vm1 }
 0x3f4   : > { %v15699_v28 = vld [vmem:[#allocation47_spill] sm:$0xff]  ;;  %vm15729_vm10 = vmmov %vm15724_vm1 }
 0x3f5   : > { %vm15736_vm15 = vmmov %vm15695_vm0 }
 0x3f6   : > { %6122 = vmatpush1.bf16.msra.mxu1 %v10519_v10  ;;  %v15698_v10 = vld [vmem:[#allocation49_spill] sm:$0xff]  ;;  %vm15738_vm8 = vmmov %vm15695_vm0 }
 0x3f7   : > { %6123 = vmatprep.subr.bf16.mxu1 %v15376_v0  ;;  %vm15739_vm5 = vmmov %vm15695_vm0 }
 0x3f8   : > { %vm15742_vm13 = vmmov %vm15695_vm0 }
 0x3f9   : > { %5665 = vmatmul.mubr.bf16.gmra.mrb[52].mxu1 %v15696_v22  ;;  %v10527_v22 = vld [vmem:[#allocation5 + $0x170] sm:$0xff]  }
 0x3fa   : > { %5672 = vmatprep.mubr.bf16.mxu1 %v15697_v42  ;;  %6124 = vmatpush1.bf16.msra.mxu1 %v10520_v50  ;;  %v10525_v50 = vld [vmem:[#allocation5 + $0x168] sm:$0xff]   ;;  %v15702_v42 = vld [vmem:[#allocation19_spill] sm:$0xff] }
 0x3fb   : > { %6125 = vmatprep.subr.bf16.mxu1 %v15376_v0 }
 0x3fe   : > { %6126 = vmatpush1.bf16.msra.mxu1 %v10521_v4  ;;  %v10528_v4 = vld [vmem:[#allocation5 + $0x178] sm:$0xff]  }
 0x3ff   : > { %6127 = vmatprep.subr.bf16.mxu1 %v15376_v0 }
 0x401   : > { %5673 = vmatmul.mubr.bf16.gmra.mrb[56].mxu1 %v15698_v10  ;;  %v15704_v10 = vld [vmem:[#allocation50_spill] sm:$0xff] }
 0x402   : > { %5680 = vmatprep.mubr.bf16.mxu1 %v15699_v28  ;;  %6128 = vmatpush1.bf16.msra.mxu1 %v10522_v12  ;;  %v15703_v12 = vld [vmem:[#allocation54_spill] sm:$0xff]  ;;  %v15705_v28 = vld [vmem:[#allocation52_spill] sm:$0xff] }
 0x403   : > { %6129 = vmatprep.subr.bf16.mxu1 %v15376_v0 }
 0x406   : > { %6130 = vmatpush1.bf16.msra.mxu1 %v10523_v58  ;;  %v15706_v58 = vld [vmem:[#allocation55_spill] sm:$0xff] }
 0x407   : > { %6131 = vmatprep.subr.bf16.mxu1 %v15376_v0 }
 0x409   : > { %5681 = vmatmul.mubr.bf16.gmra.mrb[60].mxu1 %v15700_v62 }
 0x40a   : > { %5688 = vmatprep.mubr.bf16.mxu1 %v15701_v27  ;;  %6132 = vmatpush1.bf16.msra.mxu1 %v10524_v39 }
 0x40b   : > { %6133 = vmatprep.subr.bf16.mxu1 %v15376_v0 }
 0x40e   : > { %6134 = vmatpush1.bf16.msra.mxu1 %v10525_v50  ;;  %v4728_v50 = vshrl.u32 %v14174_v9, 16 }
 0x40f   : > { %6135 = vmatprep.subr.bf16.mxu1 %v15376_v0 }
 0x411   : > { %5689 = vmatmul.mubr.bf16.gmra.mrb[64].mxu1 %v15702_v42 }
 0x412   : > { %5696 = vmatprep.mubr.bf16.mxu1 %v13973_v56  ;;  %6136 = vmatpush1.bf16.msra.mxu1 %v10527_v22 }
 0x413   : > { %6137 = vmatprep.subr.bf16.mxu1 %v15376_v0 }
 0x416   : > { %6138 = vmatpush1.bf16.msra.mxu1 %v10528_v4 }
 0x417   : > { %6909 = vmatprep.subr.bf16.mxu1 %v15376_v0 }
 0x419   : > { %5697 = vmatmul.mubr.bf16.gmra.mrb[68].mxu1 %v15703_v12 }
 0x41a   : > { %5704 = vmatprep.mubr.bf16.mxu1 %v14052_v24 }
 0x421   : > { %5705 = vmatmul.mubr.bf16.gmra.mrb[72].mxu1 %v15704_v10 }
 0x422   : > { %5712 = vmatprep.mubr.bf16.mxu1 %v15705_v28 }
 0x425   : > { %v14363_v56 = vpop.f32.mrb[72].mxu0 }
 0x426   : > { %v14365_v39 = vpop.f32.mrb[73].mxu0 }
 0x427   : > { %v14367_v62 = vpop.f32.mrb[74].mxu0 }
 0x428   : > { %v14369_v27 = vpop.f32.mrb[75].mxu0 }
 0x429   : > { %5713 = vmatmul.mubr.bf16.gmra.mrb[76].mxu1 %v15706_v58  ;;  %v14404_v58 = vld [vmem:[#allocation7 + $0x8] sm:$0xff]  }
 0x42a   : > { %5720 = vmatprep.mubr.bf16.mxu1 %v14131_v18 }
 0x431   : > { %5721 = vmatmul.mubr.bf16.gmra.mrb[80].mxu1 %v14143_v44 }
 0x432   : > { %5728 = vmatprep.mubr.bf16.mxu1 %v14172_v47 }
 0x438   : > { %v14375_v24 = vpop.f32.mrb[76].mxu0 }
 0x439   : > { %5729 = vmatmul.mubr.bf16.gmra.mrb[84].mxu1 %v14159_v11  ;;  %v14377_v18 = vpop.f32.mrb[77].mxu0  ;;  %v4730_v11 = vor.u32 %v4728_v50, %v14198_v43  ;;  %v5455_v43 = vrot.slane %v4728_v50, 2 }
 0x43a   : > { %5736 = vmatprep.mubr.bf16.mxu1 %v14184_v29  ;;  %v14379_v44 = vpop.f32.mrb[78].mxu0 }
 0x43b   : > { %15707 = vst [vmem:[#allocation70_spill] sm:$0xff] %v14379_v44  ;;  %v14381_v47 = vpop.f32.mrb[79].mxu0  ;;  %v5460_v29 = vshrl.u32 %v4730_v11, 16 }
 0x441   : > { %5737 = vmatmul.mubr.bf16.gmra.mrb[88].mxu1 %v14166_v30  ;;  %v5463_v30 = vshll.u32 %v4730_v11, 16 }
 0x442   : > { %5744 = vmatprep.mubr.bf16.mxu1 %v14194_v6  ;;  %v5462_v6 = vrot.slane %v5460_v29, 2 }
 0x443   : > { %v5465_v22 = vrot.slane %v5463_v30, 3 }
 0x445   : > { %v5466_v10 = vor.u32 %v5465_v22, %v5462_v6  ;;  %v10532_v6 = vld [vmem:[#allocation5 + $0x180] sm:$0xff]  }
 0x446   : > { %v14431_v22 = vld [vmem:[#allocation7 + $0x20] sm:$0xff]  }
 0x449   : > { %5745 = vmatmul.mubr.bf16.gmra.mrb[92].mxu1 %v14181_v31 }
 0x44a   : > { %5752 = vmatprep.mubr.bf16.mxu1 %v14210_v32  ;;  %v15712_v32 = vshll.u32 %v14174_v9, 16 }
 0x44b   : > { %v14389_v42 = vpop.f32.mrb[80].mxu0 }
 0x44c   : > { %15708 = vst [vmem:[#allocation60_spill] sm:$0xff] %v14389_v42  ;;  %v14391_v4 = vpop.f32.mrb[81].mxu0  ;;  %v5456_v28 = vrot.slane %v15712_v32, 3  ;;  %v14443_v32 = vld [vmem:[#allocation7 + $0x30] sm:$0xff]  }
 0x44d   : > { %15709 = vst [vmem:[#allocation53_spill] sm:$0xff] %v14391_v4  ;;  %v14393_v12 = vpop.f32.mrb[82].mxu0 }
 0x44e   : > { %15710 = vst [vmem:[#allocation71_spill] sm:$0xff] %v14393_v12  ;;  %v14395_v31 = vpop.f32.mrb[83].mxu0  ;;  %v5457_v11 = vor.u32 %v5456_v28, %v5455_v43  ;;  %v10536_v43 = vld [vmem:[#allocation5 + $0x190] sm:$0xff]  }
 0x44f   : > { %15711 = vst [vmem:[#allocation62_spill] sm:$0xff] %v14395_v31 }
 0x450   : > { %v5458_v9 = vsel %vm15714_vm3, %v14201_v34, %v5457_v11  ;;  %vm15741_vm3 = vmmov %vm15695_vm0 }
 0x451   : > { %5753 = vmatmul.mubr.bf16.gmra.mrb[96].mxu1 %v14190_v61  ;;  %v5467_v61 = vsel %vm15713_vm14, %v14220_v7, %v5466_v10  ;;  %v14415_v7 = vld [vmem:[#allocation7 + $0x18] sm:$0xff]   ;;  %v14433_v10 = vld [vmem:[#allocation7 + $0x28] sm:$0xff]   ;;  %vm15740_vm14 = vmmov %vm15695_vm0 }
 0x452   : > { %5760 = vmatprep.mubr.bf16.mxu1 %v14230_v46  ;;  %v14402_v46 = vld [vmem:[#allocation7] sm:$0xff]  }
 0x453   : > { %9690 = vmatprep.subr.bf16.mxu0 %v14402_v46 }
 0x454   : > { %9691 = vmatpush3.bf16.msra.mxu0 %v14402_v46 }
 0x455   : > { %9692 = vmatprep.subr.bf16.mxu0 %v14404_v58 }
 0x458   : > { %9693 = vmatpush3.bf16.msra.mxu0 %v14404_v58 }
 0x459   : > { %5761 = vmatmul.mubr.bf16.gmra.mrb[100].mxu1 %v14214_v2  ;;  %v14413_v2 = vld [vmem:[#allocation7 + $0x10] sm:$0xff]  }
 0x45a   : > { %5768 = vmatprep.mubr.bf16.mxu1 %v5467_v61  ;;  %9694 = vmatprep.subr.bf16.mxu0 %v14413_v2 }
 0x45c   : > { %9695 = vmatpush3.bf16.msra.mxu0 %v14413_v2 }
 0x45d   : > { %9696 = vmatprep.subr.bf16.mxu0 %v14415_v7 }
 0x45e   : > { %v14417_v50 = vpop.f32.mrb[84].mxu0 }
 0x45f   : > { %15715 = vst [vmem:[#allocation56_spill] sm:$0xff] %v14417_v50  ;;  %v14419_v29 = vpop.f32.mrb[85].mxu0 }
 0x460   : > { %15716 = vst [vmem:[#allocation21_spill] sm:$0xff] %v14419_v29  ;;  %v14422_v30 = vpop.f32.mrb[86].mxu0  ;;  %9697 = vmatpush3.bf16.msra.mxu0 %v14415_v7  ;;  %v10544_v29 = vld [vmem:[#allocation5 + $0x1b0] sm:$0xff]  }
 0x461   : > { %5769 = vmatmul.mubr.bf16.gmra.mrb[104].mxu1 %v5458_v9  ;;  %15717 = vst [vmem:[#allocation23_spill] sm:$0xff] %v14422_v30  ;;  %v14425_v34 = vpop.f32.mrb[87].mxu0  ;;  %9698 = vmatprep.subr.bf16.mxu0 %v14431_v22 }
 0x462   : > { %6139 = vmatprep.mubr.bf16.mxu1 %v14223_v15  ;;  %15718 = vst [vmem:[#allocation73_spill] sm:$0xff] %v14425_v34  ;;  %v10534_v15 = vld [vmem:[#allocation5 + $0x188] sm:$0xff]  }
 0x464   : > { %9699 = vmatpush3.bf16.msra.mxu0 %v14431_v22 }
 0x465   : > { %9700 = vmatprep.subr.bf16.mxu0 %v14433_v10 }
 0x468   : > { %9701 = vmatpush3.bf16.msra.mxu0 %v14433_v10 }
 0x469   : > { %6140 = vmatmul.mubr.bf16.vlgmr.msra.gmra.mrb[36].mxu1 %v15662_v13  ;;  %v10538_v13 = vld [vmem:[#allocation5 + $0x198] sm:$0xff]   ;;  %9702 = vmatprep.subr.bf16.mxu0 %v14443_v32 }
 0x46a   : > { %6147 = vmatprep.mubr.bf16.mxu1 %v14233_v26  ;;  %6910 = vmatpush1.bf16.msra.mxu1 %v10532_v6  ;;  %v324_v26 = vld [vmem:[#allocation3 + $0xa4] sm:$0x1]  ;;  %v10540_v6 = vld [vmem:[#allocation5 + $0x1a0] sm:$0xff]  }
 0x46b   : > { %6911 = vmatprep.subr.bf16.mxu1 %v15376_v0  ;;  %v325_v11 = vsel %vm323_vm9, 0, %v324_v26  ;;  %v10542_v26 = vld [vmem:[#allocation5 + $0x1a8] sm:$0xff]   ;;  %vm15743_vm9 = vmmov %vm15695_vm0 }
 0x46c   : > { %326 = vst [vmem:[#allocation3 + $0xa4] sm:$0x1] %v325_v11  ;;  %9703 = vmatpush3.bf16.msra.mxu0 %v14443_v32  ;;  %v10580_v11 = vld [vmem:[%s10845_s21 + $0x18] sm:$0xff]  }
 0x46d   : > { %v7931_v42 = vshll.u32 %v10580_v11, 16 }
 0x46e   : > { %6912 = vmatpush1.bf16.msra.mxu1 %v10534_v15  ;;  %v10577_v15 = vld [vmem:[%s10845_s21 + $0x8] sm:$0xfe]  }
 0x46f   : > { %6913 = vmatprep.subr.bf16.mxu1 %v15376_v0  ;;  %v7911_v60 = vshrl.u32 %v10577_v15, 16  ;;  %v7933_v44 = vrot.slane %v7931_v42, 2 }
 0x471   : > { %6148 = vmatmul.mubr.bf16.gmra.mrb[40].mxu1 %v15663_v5  ;;  %v14445_v28 = vpop.f32.mrb[88].mxu0  ;;  %v14449_v5 = vld [vmem:[#allocation7 + $0x38] sm:$0xff]   ;;  %v7913_v30 = vrot.slane %v7911_v60, 1 }
 0x472   : > { %6155 = vmatprep.mubr.bf16.mxu1 %v14246_v8  ;;  %6914 = vmatpush1.bf16.msra.mxu1 %v10536_v43  ;;  %15719 = vst [vmem:[#allocation66_spill] sm:$0xff] %v14445_v28  ;;  %v14451_v61 = vpop.f32.mrb[89].mxu0  ;;  %v10578_v43 = vld [vmem:[%s10845_s21 + $0x10] sm:$0xff]   ;;  %v10546_v60 = vld [vmem:[#allocation5 + $0x1b8] sm:$0xff]  }
 0x473   : > { %6915 = vmatprep.subr.bf16.mxu1 %v15376_v0  ;;  %15720 = vst [vmem:[#allocation57_spill] sm:$0xff] %v14451_v61  ;;  %v14454_v8 = vpop.f32.mrb[90].mxu0  ;;  %9704 = vmatprep.subr.bf16.mxu0 %v14449_v5  ;;  %v7922_v28 = vshll.u32 %v10578_v43, 16  ;;  %v7928_v61 = vshrl.u32 %v10580_v11, 16  ;;  %v10553_v11 = vld [vmem:[#allocation5 + $0x1d0] sm:$0xff]  }
 0x474   : > { %15721 = vst [vmem:[#allocation74_spill] sm:$0xff] %v14454_v8  ;;  %v14457_v9 = vpop.f32.mrb[91].mxu0  ;;  %9705 = vmatpush3.bf16.msra.mxu0 %v14449_v5  ;;  %v7919_v8 = vshrl.u32 %v10578_v43, 16 }
 0x475   : > { %15722 = vst [vmem:[#allocation72_spill] sm:$0xff] %v14457_v9  ;;  %v10573_v9 = vld [vmem:[#allocation3 + $0xa4] ss:$0 sps:$4 sm:$0x11]   ;;  %v7924_v34 = vrot.slane %v7922_v28, 2  ;;  %v7930_v4 = vrot.slane %v7928_v61, 1 }
 0x476   : > { %6916 = vmatpush1.bf16.msra.mxu1 %v10538_v13  ;;  %v7914_v13 = vshll.u32 %v10577_v15, 16  ;;  %v7431_v12 = vshll.u32 %v10573_v9, 16 }
 0x477   : > { %6917 = vmatprep.subr.bf16.mxu1 %v15376_v0 }
 0x478   : > { %v7916_v50 = vrot.slane %v7914_v13, 2  ;;  %v7433_v31 = vrot.slane %v7431_v12, 2 }
 0x479   : > { %6156 = vmatmul.mubr.bf16.gmra.mrb[44].mxu1 %v13467_v48  ;;  %v7921_v48 = vrot.slane %v7919_v8, 1 }
 0x47a   : > { %6163 = vmatprep.mubr.bf16.mxu1 %v14251_v40  ;;  %6918 = vmatpush1.bf16.msra.mxu1 %v10540_v6  ;;  %v7917_v40 = vor.u32 %v7916_v50, %v7913_v30  ;;  %v7434_v28 = vsel %vm15724_vm1, %v13404_v1, %v7433_v31  ;;  %v15726_v31 = vld [vmem:[#allocation65_spill] sm:$0xff]  ;;  %v10551_v30 = vld [vmem:[#allocation5 + $0x1c8] sm:$0xff]   ;;  %vm15745_vm1 = vmmov %vm15695_vm0 }
 0x47b   : > { %6919 = vmatprep.subr.bf16.mxu1 %v15376_v0  ;;  %v7925_v6 = vor.u32 %v7924_v34, %v7921_v48  ;;  %9687 = vmatmul.mubr.bf16.gmra.mrb[104].mxu0 %v7434_v28  ;;  %v10584_v34 = vld [vmem:[%s10845_s21 + $0x28] sm:$0xff]  }
 0x47c   : > { %v7946_v61 = vshrl.u32 %v10584_v34, 16  ;;  %v7949_v9 = vshll.u32 %v10584_v34, 16  ;;  %v10555_v28 = vld [vmem:[#allocation5 + $0x1d8] sm:$0xff]  }
 0x47d   : > { %v7926_v15 = vsel %vm15723_vm7, %v7917_v40, %v7925_v6  ;;  %vm15744_vm7 = vmmov %vm15695_vm0 }
 0x47e   : > { %6920 = vmatpush1.bf16.msra.mxu1 %v10542_v26  ;;  %9706 = vmatprep.mubr.bf16.mxu0 %v7926_v15  ;;  %v7948_v13 = vrot.slane %v7946_v61, 1  ;;  %v7951_v48 = vrot.slane %v7949_v9, 2  ;;  %v10565_v61 = vld [vmem:[#allocation5 + $0x1f0] sm:$0xff]  }
 0x47f   : > { %6921 = vmatprep.subr.bf16.mxu1 %v15376_v0 }
 0x481   : > { %6164 = vmatmul.mubr.bf16.gmra.mrb[48].mxu1 %v13602_v20  ;;  %v7934_v20 = vor.u32 %v7933_v44, %v7930_v4 }
 0x482   : > { %6171 = vmatprep.mubr.bf16.mxu1 %v14254_v49  ;;  %6922 = vmatpush1.bf16.msra.mxu1 %v10544_v29  ;;  %v10549_v49 = vld [vmem:[#allocation5 + $0x1c0] sm:$0xff]   ;;  %v10582_v29 = vld [vmem:[%s10845_s21 + $0x20] sm:$0xff]  }
 0x483   : > { %v14474_v8 = vpop.f32.mrb[92].mxu0  ;;  %6923 = vmatprep.subr.bf16.mxu1 %v15376_v0  ;;  %v7935_v1 = vsel %vm15725_vm11, %v7925_v6, %v7934_v20  ;;  %v7937_v44 = vshrl.u32 %v10582_v29, 16  ;;  %v7940_v4 = vshll.u32 %v10582_v29, 16  ;;  %v15727_v6 = vld [vmem:[#allocation16_spill] sm:$0xff]  ;;  %vm15746_vm11 = vmmov %vm15695_vm0 }
 0x484   : > { %v14477_v12 = vpop.f32.mrb[93].mxu0  ;;  %9707 = vmatmul.mubr.bf16.vlgmr.msra.gmra.mrb[108].mxu0 %v7935_v1 }
 0x485   : > { %v14479_v42 = vpop.f32.mrb[94].mxu0  ;;  %v7939_v43 = vrot.slane %v7937_v44, 1  ;;  %v7942_v26 = vrot.slane %v7940_v4, 2 }
 0x486   : > { %v14481_v50 = vpop.f32.mrb[95].mxu0  ;;  %6924 = vmatpush1.bf16.msra.mxu1 %v10546_v60 }
 0x487   : > { %6925 = vmatprep.subr.bf16.mxu1 %v15376_v0  ;;  %v7943_v40 = vor.u32 %v7942_v26, %v7939_v43  ;;  %v15731_v43 = vld [vmem:[#allocation69_spill] sm:$0xff]  ;;  %v15732_v26 = vld [vmem:[#allocation15_spill] sm:$0xff] }
 0x489   : > { %6172 = vmatmul.mubr.bf16.gmra.mrb[52].mxu1 %v15726_v31  ;;  %v7944_v15 = vsel %vm15728_vm6, %v7934_v20, %v7943_v40  ;;  %v10557_v20 = vld [vmem:[#allocation5 + $0x1e0] sm:$0xff]   ;;  %vm15747_vm6 = vmmov %vm15695_vm0 }
 0x48a   : > { %6179 = vmatprep.mubr.bf16.mxu1 %v14260_v59  ;;  %6926 = vmatpush1.bf16.msra.mxu1 %v10549_v49  ;;  %v14491_v59 = vor.u32 %v7951_v48, %v7948_v13 }
 0x48b   : > { %6927 = vmatprep.subr.bf16.mxu1 %v15376_v0  ;;  %9710 = vmatprep.mubr.bf16.mxu0 %v7944_v15 }
 0x48c   : > { %v7953_v49 = vsel %vm15729_vm10, %v7943_v40, %v14491_v59  ;;  %vm15748_vm10 = vmmov %vm15695_vm0 }
 0x48d   : > { %9711 = vmatmul.mubr.bf16.gmra.mrb[112].mxu0 %v7953_v49 }
 0x48e   : > { %6928 = vmatpush1.bf16.msra.mxu1 %v10551_v30  ;;  %v10561_v30 = vld [vmem:[#allocation5 + $0x1e8] sm:$0xff]  }
 0x48f   : > { %6929 = vmatprep.subr.bf16.mxu1 %v15376_v0 }
 0x491   : > { %6180 = vmatmul.mubr.bf16.gmra.mrb[56].mxu1 %v15727_v6  ;;  %v14496_v60 = vpop.f32.mrb[96].mxu0  ;;  %v10579_v6 = vld [vmem:[#allocation3 + $0x2c] sm:$0xff]  }
 0x492   : > { %6187 = vmatprep.mubr.bf16.mxu1 %v14266_v51  ;;  %6930 = vmatpush1.bf16.msra.mxu1 %v10553_v11  ;;  %v14500_v1 = vpop.f32.mrb[97].mxu0  ;;  %v15730_v51 = vld [vmem:[#allocation41_spill] sm:$0xff]  ;;  %v6474_v49 = vshll.u32 %v10579_v6, 16 }
 0x493   : > { %6931 = vmatprep.subr.bf16.mxu1 %v15376_v0  ;;  %v14503_v31 = vpop.f32.mrb[98].mxu0 }
 0x494   : > { %v14505_v29 = vpop.f32.mrb[99].mxu0 }
 0x496   : > { %6932 = vmatpush1.bf16.msra.mxu1 %v10555_v28 }
 0x497   : > { %6933 = vmatprep.subr.bf16.mxu1 %v15376_v0 }
 0x499   : > { %6188 = vmatmul.mubr.bf16.gmra.mrb[60].mxu1 %v15730_v51 }
 0x49a   : > { %6195 = vmatprep.mubr.bf16.mxu1 %v14269_v36  ;;  %6934 = vmatpush1.bf16.msra.mxu1 %v10557_v20  ;;  %v10569_v36 = vld [vmem:[#allocation5 + $0x1f8] sm:$0xff]  }
 0x49b   : > { %6935 = vmatprep.subr.bf16.mxu1 %v15376_v0 }
 0x49c   : > { %v14511_v34 = vpop.f32.mrb[100].mxu0 }
 0x49d   : > { %v14513_v44 = vpop.f32.mrb[101].mxu0 }
 0x49e   : > { %v14515_v4 = vpop.f32.mrb[102].mxu0  ;;  %6936 = vmatpush1.bf16.msra.mxu1 %v10561_v30  ;;  %v6320_v30 = vld [vmem:[#allocation3 + $0x14] sm:$0xf] }
 0x49f   : > { %v14517_v9 = vpop.f32.mrb[103].mxu0  ;;  %6937 = vmatprep.subr.bf16.mxu1 %v15376_v0 }
 0x4a1   : > { %6196 = vmatmul.mubr.bf16.gmra.mrb[64].mxu1 %v15677_v35  ;;  %v15733_v35 = vld [vmem:[#allocation18_spill] sm:$0xff] }
 0x4a2   : > { %6203 = vmatprep.mubr.bf16.mxu1 %v14277_v23  ;;  %6938 = vmatpush1.bf16.msra.mxu1 %v10565_v61  ;;  %v6356_v23 = vld [vmem:[#allocation3 + $0x14] sm:$0xe] }
 0x4a3   : > { %6939 = vmatprep.subr.bf16.mxu1 %v15376_v0 }
 0x4a6   : > { %6940 = vmatpush1.bf16.msra.mxu1 %v10569_v36  ;;  %v6476_v36 = vrot.slane %v6474_v49, 1 }
 0x4a7   : > { %9742 = vmatprep.subr.bf16.mxu1 %v14402_v46 }
 0x4a9   : > { %6204 = vmatmul.mubr.bf16.gmra.mrb[68].mxu1 %v14027_v63  ;;  %v6321_v63 = vld [vmem:[#allocation3 + $0x18] sm:$0xf] }
 0x4aa   : > { %6211 = vmatprep.mubr.bf16.mxu1 %v14287_v57  ;;  %v9124_v57 = vcombine.low %v6356_v23, %v6321_v63 }
 0x4ac   : > { %v6451_v48 = vshrl.u32 %v9124_v57, 16 }
 0x4b1   : > { %6212 = vmatmul.mubr.bf16.gmra.mrb[72].mxu1 %v15731_v43  ;;  %v10581_v43 = vld [vmem:[#allocation3 + $0x34] sm:$0xff]  }
 0x4b2   : > { %6219 = vmatprep.mubr.bf16.mxu1 %v14295_v52  ;;  %v10570_v52 = vld [vmem:[#allocation3 + $0x1c] sm:$0xff]  }
 0x4b3   : > { %v6458_v11 = vshll.u32 %v10570_v52, 16 }
 0x4b5   : > { %v6460_v40 = vrot.slane %v6458_v11, 1 }
 0x4b9   : > { %6220 = vmatmul.mubr.bf16.gmra.mrb[76].mxu1 %v15732_v26 }
 0x4ba   : > { %6227 = vmatprep.mubr.bf16.mxu1 %v14305_v41  ;;  %v10571_v41 = vld [vmem:[#allocation3 + $0x24] sm:$0xff]  }
 0x4bb   : > { %v6466_v13 = vshll.u32 %v10571_v41, 16  ;;  %v6470_v61 = vshrl.u32 %v10571_v41, 16  ;;  %v6478_v41 = vshrl.u32 %v10579_v6, 16  ;;  %v6486_v6 = vshrl.u32 %v10581_v43, 16 }
 0x4c1   : > { %6228 = vmatmul.mubr.bf16.gmra.mrb[80].mxu1 %v14115_v25  ;;  %v6453_v25 = vshll.u32 %v9124_v57, 16 }
 0x4c2   : > { %6235 = vmatprep.mubr.bf16.mxu1 %v14308_v17 }
 0x4c3   : > { %v6455_v17 = vrot.slane %v6453_v25, 1  ;;  %v6482_v25 = vshll.u32 %v10581_v43, 16 }
 0x4c9   : > { %6236 = vmatmul.mubr.bf16.gmra.mrb[84].mxu1 %v15733_v35 }
 0x4ca   : > { %6243 = vmatprep.mubr.bf16.mxu1 %v14318_v16  ;;  %v6462_v16 = vshrl.u32 %v10570_v52, 16 }
 0x4d1   : > { %6244 = vmatmul.mubr.bf16.gmra.mrb[88].mxu1 %v14123_v54  ;;  %v6456_v54 = vor.u32 %v6455_v17, %v6451_v48  ;;  %v10583_v48 = vld [vmem:[#allocation3 + $0x3c] sm:$0xff]  }
 0x4d2   : > { %6251 = vmatprep.mubr.bf16.mxu1 %v14327_v53  ;;  %v6468_v53 = vrot.slane %v6466_v13, 1  ;;  %v6484_v13 = vrot.slane %v6482_v25, 1  ;;  %v6490_v49 = vshll.u32 %v10583_v48, 16  ;;  %v6494_v43 = vshrl.u32 %v10583_v48, 16 }
 0x4d3   : > { %v6461_v15 = vsel %vm15734_vm4, %v6456_v54, %v6460_v40  ;;  %vm15749_vm4 = vmmov %vm15695_vm0 }
 0x4d4   : > { %v6637_v20 = vshll.u32 %v6461_v15, 16  ;;  %v6472_v35 = vor.u32 %v6470_v61, %v6468_v53  ;;  %v6635_v23 = vshrl.u32 %v6461_v15, 16 }
 0x4d6   : > { %v6639_v26 = vrot.slane %v6637_v20, 1  ;;  %v6477_v52 = vsel %vm15736_vm15, %v6472_v35, %v6476_v36  ;;  %vm15751_vm15 = vmmov %vm15695_vm0 }
 0x4d7   : > { %v6650_v17 = vshll.u32 %v6477_v52, 16  ;;  %v6654_v61 = vshrl.u32 %v6477_v52, 16 }
 0x4d8   : > { %v6640_v11 = vor.u32 %v6639_v26, %v6635_v23 }
 0x4d9   : > { %6252 = vmatmul.mubr.bf16.gmra.mrb[92].mxu1 %v14284_v21  ;;  %v6464_v21 = vor.u32 %v6462_v16, %v6460_v40  ;;  %v6480_v16 = vor.u32 %v6478_v41, %v6476_v36  ;;  %v6652_v15 = vrot.slane %v6650_v17, 1 }
 0x4da   : > { %6259 = vmatprep.mubr.bf16.mxu1 %v14330_v19  ;;  %v5957_v19 = vshrl.u32 %v14314_v14, 16 }
 0x4db   : > { %v6469_v28 = vsel %vm15735_vm2, %v6464_v21, %v6468_v53  ;;  %v6656_v35 = vor.u32 %v6654_v61, %v6652_v15  ;;  %vm15750_vm2 = vmmov %vm15695_vm0 }
 0x4dc   : > { %v5959_v51 = vor.u32 %v5957_v19, %v14332_v3  ;;  %v15737_v3 = vcombine.low %v14095_v45, %v14111_v38  ;;  %v6646_v53 = vshrl.u32 %v6469_v28, 16  ;;  %v6485_v19 = vsel %vm15739_vm5, %v6480_v16, %v6484_v13  ;;  %vm15753_vm5 = vmmov %vm15695_vm0 }
 0x4e1   : > { %6260 = vmatmul.mubr.bf16.gmra.mrb[96].mxu1 %v14292_v33  ;;  %v6642_v33 = vshll.u32 %v6469_v28, 16 }
 0x4e2   : > { %6267 = vmatprep.mubr.bf16.mxu1 %v14336_v55  ;;  %v9106_v55 = vcombine.low %v6320_v30, %v6321_v63  ;;  %v10585_v30 = vld [vmem:[#allocation3 + $0x44] sm:$0xff]  }
 0x4e3   : > { %v6644_v57 = vrot.slane %v6642_v33, 1  ;;  %v6492_v33 = vrot.slane %v6490_v49, 1  ;;  %v6502_v41 = vshrl.u32 %v10585_v30, 16 }
 0x4e4   : > { %v6629_v14 = vshll.u32 %v9106_v55, 16  ;;  %v6627_v54 = vshrl.u32 %v9106_v55, 16  ;;  %v6488_v55 = vor.u32 %v6486_v6, %v6484_v13  ;;  %v10587_v13 = vld [vmem:[#allocation3 + $0x54] sm:$0xff]  }
 0x4e5   : > { %v6648_v20 = vor.u32 %v6646_v53, %v6644_v57  ;;  %v6496_v25 = vor.u32 %v6494_v43, %v6492_v33  ;;  %v6514_v53 = vshll.u32 %v10587_v13, 16 }
 0x4e6   : > { %v6631_v63 = vrot.slane %v6629_v14, 1  ;;  %v6493_v26 = vsel %vm15741_vm3, %v6488_v55, %v6492_v33  ;;  %v10586_v14 = vld [vmem:[#allocation3 + $0x4c] sm:$0xff]   ;;  %v6518_v55 = vshrl.u32 %v10587_v13, 16  ;;  %vm15755_vm3 = vmmov %vm15695_vm0 }
 0x4e7   : > { %v6653_v38 = vsel %vm15740_vm14, %v6648_v20, %v6652_v15  ;;  %v6510_v49 = vshrl.u32 %v10586_v14, 16  ;;  %v10588_v20 = vld [vmem:[#allocation3 + $0x5c] sm:$0xff]   ;;  %vm15754_vm14 = vmmov %vm15695_vm0 }
 0x4e8   : > { %v6632_v21 = vor.u32 %v6631_v63, %v6627_v54  ;;  %v6670_v54 = vshrl.u32 %v6493_v26, 16  ;;  %v6522_v6 = vshll.u32 %v10588_v20, 16 }
 0x4e9   : > { %6268 = vmatmul.mubr.bf16.gmra.mrb[100].mxu1 %v14301_v37  ;;  %v6645_v37 = vsel %vm15738_vm8, %v6640_v11, %v6644_v57  ;;  %v6662_v11 = vshrl.u32 %v6485_v19, 16  ;;  %vm15752_vm8 = vmmov %vm15695_vm0 }
 0x4ea   : > { %6275 = vmatprep.mubr.bf16.mxu1 %v5959_v51  ;;  %v6633_v45 = vsel %vm15695_vm0, %v6632_v21, %v6460_v40  ;;  %v6658_v51 = vshll.u32 %v6485_v19, 16  ;;  %v6498_v40 = vshll.u32 %v10585_v30, 16  ;;  %v6524_v61 = vrot.slane %v6522_v6, 1 }
 0x4ec   : > { %v6660_v36 = vrot.slane %v6658_v51, 1  ;;  %v6500_v57 = vrot.slane %v6498_v40, 1 }
 0x4ee   : > { %v6661_v23 = vsel %vm15742_vm13, %v6656_v35, %v6660_v36  ;;  %v6504_v48 = vor.u32 %v6502_v41, %v6500_v57  ;;  %vm15756_vm13 = vmmov %vm15695_vm0 }
 0x4f1   : > { %6276 = vmatmul.mubr.bf16.gmra.mrb[104].mxu1 %v15737_v3 }
 0x4f2   : > { %6941 = vmatprep.mubr.bf16.mxu1 %v6645_v37  ;;  %v6506_v37 = vshll.u32 %v10586_v14, 16 }
 0x4f9   : > { %6942 = vmatmul.mubr.bf16.vlgmr.msra.gmra.mrb[36].mxu1 %v6633_v45 }
 0x4fa   : > { %6949 = vmatprep.mubr.bf16.mxu1 %v6653_v38  ;;  %9750 = vmatpush3.bf16.msra.mxu1 %v14402_v46  ;;  %v6666_v46 = vshll.u32 %v6493_v26, 16 }
 0x4fb   : > { %9743 = vmatprep.subr.bf16.mxu1 %v14404_v58 }
 0x4fc   : > { %v6668_v3 = vrot.slane %v6666_v46, 1 }
 0x4fe   : > { %9751 = vmatpush3.bf16.msra.mxu1 %v14404_v58  ;;  %v6501_v58 = vsel %vm15743_vm9, %v6496_v25, %v6500_v57  ;;  %v10590_v25 = vld [vmem:[#allocation3 + $0x6c] sm:$0xff]   ;;  %vm15757_vm9 = vmmov %vm15695_vm0 }
 0x4ff   : > { %9744 = vmatprep.subr.bf16.mxu1 %v14413_v2  ;;  %v6674_v63 = vshll.u32 %v6501_v58, 16  ;;  %v6678_v38 = vshrl.u32 %v6501_v58, 16 }
 0x501   : > { %6950 = vmatmul.mubr.bf16.gmra.mrb[40].mxu1 %v6469_v28  ;;  %v6664_v28 = vor.u32 %v6662_v11, %v6660_v36  ;;  %v6676_v16 = vrot.slane %v6674_v63, 1  ;;  %v10589_v36 = vld [vmem:[#allocation3 + $0x64] sm:$0xff]  }
 0x502   : > { %6957 = vmatprep.mubr.bf16.mxu1 %v6661_v23  ;;  %9752 = vmatpush3.bf16.msra.mxu1 %v14413_v2  ;;  %v6508_v2 = vrot.slane %v6506_v37, 1  ;;  %v6530_v46 = vshll.u32 %v10589_v36, 16 }
 0x503   : > { %9745 = vmatprep.subr.bf16.mxu1 %v14415_v7  ;;  %v6669_v17 = vsel %vm15744_vm7, %v6664_v28, %v6668_v3  ;;  %vm15758_vm7 = vmmov %vm15695_vm0 }
 0x504   : > { %v6512_v45 = vor.u32 %v6510_v49, %v6508_v2  ;;  %v6532_v14 = vrot.slane %v6530_v46, 1 }
 0x506   : > { %9753 = vmatpush3.bf16.msra.mxu1 %v14415_v7  ;;  %v6509_v7 = vsel %vm15745_vm1, %v6504_v48, %v6508_v2  ;;  %v10591_v48 = vld [vmem:[#allocation3 + $0x74] sm:$0xff]   ;;  %vm15759_vm1 = vmmov %vm15695_vm0 }
 0x507   : > { %9746 = vmatprep.subr.bf16.mxu1 %v14431_v22  ;;  %v6682_v21 = vshll.u32 %v6509_v7, 16  ;;  %v6686_v40 = vshrl.u32 %v6509_v7, 16 }
 0x509   : > { %6958 = vmatmul.mubr.bf16.gmra.mrb[44].mxu1 %v6477_v52  ;;  %v6672_v52 = vor.u32 %v6670_v54, %v6668_v3  ;;  %v6684_v51 = vrot.slane %v6682_v21, 1 }
 0x50a   : > { %6965 = vmatprep.mubr.bf16.mxu1 %v6669_v17  ;;  %9754 = vmatpush3.bf16.msra.mxu1 %v14431_v22  ;;  %v6516_v22 = vrot.slane %v6514_v53, 1  ;;  %v6538_v17 = vshll.u32 %v10590_v25, 16 }
 0x50b   : > { %9747 = vmatprep.subr.bf16.mxu1 %v14433_v10  ;;  %v6677_v15 = vsel %vm15746_vm11, %v6672_v52, %v6676_v16  ;;  %v6688_v43 = vor.u32 %v6686_v40, %v6684_v51  ;;  %vm15760_vm11 = vmmov %vm15695_vm0 }
 0x50c   : > { %v6540_v13 = vrot.slane %v6538_v17, 1 }
 0x50e   : > { %9755 = vmatpush3.bf16.msra.mxu1 %v14433_v10  ;;  %v6517_v10 = vsel %vm15747_vm6, %v6512_v45, %v6516_v22  ;;  %v10592_v45 = vld [vmem:[#allocation3 + $0x7c] sm:$0xff]   ;;  %vm15761_vm6 = vmmov %vm15695_vm0 }
 0x50f   : > { %9748 = vmatprep.subr.bf16.mxu1 %v14443_v32  ;;  %v6690_v30 = vshll.u32 %v6517_v10, 16  ;;  %v6694_v3 = vshrl.u32 %v6517_v10, 16 }
 0x511   : > { %6966 = vmatmul.mubr.bf16.gmra.mrb[48].mxu1 %v6485_v19  ;;  %v6680_v19 = vor.u32 %v6678_v38, %v6676_v16  ;;  %v6692_v35 = vrot.slane %v6690_v30, 1 }
 0x512   : > { %6973 = vmatprep.mubr.bf16.mxu1 %v6677_v15  ;;  %9756 = vmatpush3.bf16.msra.mxu1 %v14443_v32  ;;  %v6520_v32 = vor.u32 %v6518_v55, %v6516_v22  ;;  %v6546_v15 = vshll.u32 %v10591_v48, 16 }
 0x513   : > { %9749 = vmatprep.subr.bf16.mxu1 %v14449_v5  ;;  %v6685_v33 = vsel %vm15748_vm10, %v6680_v19, %v6684_v51  ;;  %v6693_v57 = vsel %vm15750_vm2, %v6688_v43, %v6692_v35  ;;  %v6696_v63 = vor.u32 %v6694_v3, %v6692_v35  ;;  %vm15762_vm10 = vmmov %vm15695_vm0 }
 0x514   : > { %v6525_v23 = vsel %vm15749_vm4, %v6520_v32, %v6524_v61  ;;  %v10593_v32 = vld [vmem:[#allocation3 + $0x84] sm:$0xff]   ;;  %vm15763_vm4 = vmmov %vm15695_vm0 }
 0x515   : > { %v6702_v16 = vshrl.u32 %v6525_v23, 16  ;;  %vm15764_vm2 = vmmov %vm15695_vm0 }
 0x516   : > { %9757 = vmatpush3.bf16.msra.mxu1 %v14449_v5  ;;  %v6698_v5 = vshll.u32 %v6525_v23, 16 }
 0x518   : > { %v6700_v37 = vrot.slane %v6698_v5, 1 }
 0x519   : > { %6974 = vmatmul.mubr.bf16.gmra.mrb[52].mxu1 %v6493_v26  ;;  %v6526_v26 = vshrl.u32 %v10588_v20, 16  ;;  %v6548_v20 = vrot.slane %v6546_v15, 1 }
 0x51a   : > { %6981 = vmatprep.mubr.bf16.mxu1 %v6685_v33  ;;  %v6701_v41 = vsel %vm15752_vm8, %v6696_v63, %v6700_v37  ;;  %v6704_v21 = vor.u32 %v6702_v16, %v6700_v37  ;;  %v6554_v33 = vshll.u32 %v10592_v45, 16  ;;  %vm15766_vm8 = vmmov %vm15695_vm0 }
 0x51b   : > { %v6528_v11 = vor.u32 %v6526_v26, %v6524_v61 }
 0x51d   : > { %v6533_v28 = vsel %vm15751_vm15, %v6528_v11, %v6532_v14  ;;  %v10594_v11 = vld [vmem:[#allocation3 + $0x8c] sm:$0xff]   ;;  %vm15765_vm15 = vmmov %vm15695_vm0 }
 0x51e   : > { %v6706_v2 = vshll.u32 %v6533_v28, 16  ;;  %v6710_v51 = vshrl.u32 %v6533_v28, 16 }
 0x520   : > { %v6708_v53 = vrot.slane %v6706_v2, 1 }
 0x521   : > { %6982 = vmatmul.mubr.bf16.gmra.mrb[56].mxu1 %v6501_v58  ;;  %v6534_v58 = vshrl.u32 %v10589_v36, 16  ;;  %v6556_v36 = vrot.slane %v6554_v33, 1 }
 0x522   : > { %6989 = vmatprep.mubr.bf16.mxu1 %v6693_v57  ;;  %v6709_v49 = vsel %vm15695_vm0, %v6704_v21, %v6708_v53  ;;  %v6712_v30 = vor.u32 %v6710_v51, %v6708_v53  ;;  %v6562_v57 = vshll.u32 %v10593_v32, 16  ;;  %v10596_v51 = vld [vmem:[#allocation3 + $0x9c] sm:$0xff]  }
 0x523   : > { %v6536_v54 = vor.u32 %v6534_v58, %v6532_v14 }
 0x525   : > { %v6541_v52 = vsel %vm15753_vm5, %v6536_v54, %v6540_v13  ;;  %v10595_v54 = vld [vmem:[#allocation3 + $0x94] sm:$0xff]   ;;  %vm15767_vm5 = vmmov %vm15695_vm0  ;;  %vm15768_vm0 = vsmask.f32 6400 }
 0x526   : > { %v6714_v22 = vshll.u32 %v6541_v52, 16  ;;  %v6718_v35 = vshrl.u32 %v6541_v52, 16 }
 0x528   : > { %v6716_v6 = vrot.slane %v6714_v22, 1 }
 0x529   : > { %6990 = vmatmul.mubr.bf16.gmra.mrb[60].mxu1 %v6509_v7  ;;  %v6542_v7 = vshrl.u32 %v10590_v25, 16  ;;  %v6564_v25 = vrot.slane %v6562_v57, 1 }
 0x52a   : > { %6997 = vmatprep.mubr.bf16.mxu1 %v6701_v41  ;;  %v6717_v55 = vsel %vm15755_vm3, %v6712_v30, %v6716_v6  ;;  %v6720_v5 = vor.u32 %v6718_v35, %v6716_v6  ;;  %v6570_v41 = vshll.u32 %v10594_v11, 16  ;;  %vm15770_vm3 = vmmov %vm15768_vm0 }
 0x52b   : > { %v6544_v38 = vor.u32 %v6542_v7, %v6540_v13  ;;  %v6574_v7 = vshrl.u32 %v10594_v11, 16 }
 0x52d   : > { %v6549_v19 = vsel %vm15754_vm14, %v6544_v38, %v6548_v20  ;;  %vm15769_vm14 = vmmov %vm15768_vm0 }
 0x52e   : > { %v6722_v61 = vshll.u32 %v6549_v19, 16  ;;  %v6726_v37 = vshrl.u32 %v6549_v19, 16 }
 0x530   : > { %v6724_v46 = vrot.slane %v6722_v61, 1 }
 0x531   : > { %6998 = vmatmul.mubr.bf16.gmra.mrb[64].mxu1 %v6517_v10  ;;  %v6550_v10 = vshrl.u32 %v10591_v48, 16  ;;  %v6572_v48 = vrot.slane %v6570_v41, 1  ;;  %v6590_v41 = vshrl.u32 %v10596_v51, 16 }
 0x532   : > { %7005 = vmatprep.mubr.bf16.mxu1 %v6709_v49  ;;  %v6725_v26 = vsel %vm15757_vm9, %v6720_v5, %v6724_v46  ;;  %v6728_v2 = vor.u32 %v6726_v37, %v6724_v46  ;;  %v6578_v49 = vshll.u32 %v10595_v54, 16  ;;  %vm15772_vm9 = vmmov %vm15768_vm0 }
 0x533   : > { %v6552_v40 = vor.u32 %v6550_v10, %v6548_v20 }
 0x534   : > { %v6580_v38 = vrot.slane %v6578_v49, 1 }
 0x535   : > { %v6557_v43 = vsel %vm15756_vm13, %v6552_v40, %v6556_v36  ;;  %vm15771_vm13 = vmmov %vm15768_vm0 }
 0x536   : > { %v6730_v14 = vshll.u32 %v6557_v43, 16  ;;  %v6734_v53 = vshrl.u32 %v6557_v43, 16 }
 0x538   : > { %v6732_v17 = vrot.slane %v6730_v14, 1 }
 0x539   : > { %7006 = vmatmul.mubr.bf16.gmra.mrb[68].mxu1 %v6525_v23  ;;  %v6558_v23 = vshrl.u32 %v10592_v45, 16 }
 0x53a   : > { %7013 = vmatprep.mubr.bf16.mxu1 %v6717_v55  ;;  %v6733_v58 = vsel %vm15759_vm1, %v6728_v2, %v6732_v17  ;;  %v6736_v22 = vor.u32 %v6734_v53, %v6732_v17  ;;  %v6586_v55 = vshll.u32 %v10596_v51, 16  ;;  %v10598_v51 = vld [vmem:[%s10845_s21 + $0x38] sm:$0xff]   ;;  %vm15774_vm1 = vmmov %vm15768_vm0 }
 0x53b   : > { %v6560_v3 = vor.u32 %v6558_v23, %v6556_v36 }
 0x53c   : > { %v6588_v5 = vrot.slane %v6586_v55, 1  ;;  %v7964_v55 = vshrl.u32 %v10598_v51, 16 }
 0x53d   : > { %v6565_v63 = vsel %vm15758_vm7, %v6560_v3, %v6564_v25  ;;  %vm15773_vm7 = vmmov %vm15768_vm0 }
 0x53e   : > { %v6738_v13 = vshll.u32 %v6565_v63, 16  ;;  %v6742_v6 = vshrl.u32 %v6565_v63, 16 }
 0x540   : > { %v6740_v15 = vrot.slane %v6738_v13, 1 }
 0x541   : > { %7014 = vmatmul.mubr.bf16.gmra.mrb[72].mxu1 %v6533_v28  ;;  %v6566_v28 = vshrl.u32 %v10593_v32, 16  ;;  %v6582_v32 = vshrl.u32 %v10595_v54, 16 }
 0x542   : > { %7021 = vmatprep.mubr.bf16.mxu1 %v6725_v26  ;;  %v6741_v20 = vsel %vm15761_vm6, %v6736_v22, %v6740_v15  ;;  %v6744_v10 = vor.u32 %v6742_v6, %v6740_v15  ;;  %vm15776_vm6 = vmmov %vm15768_vm0 }
 0x543   : > { %v6568_v16 = vor.u32 %v6566_v28, %v6564_v25  ;;  %v6584_v57 = vor.u32 %v6582_v32, %v6580_v38  ;;  %v6592_v28 = vor.u32 %v6590_v41, %v6588_v5 }
 0x545   : > { %v6573_v21 = vsel %vm15760_vm11, %v6568_v16, %v6572_v48  ;;  %v6589_v25 = vsel %vm15764_vm2, %v6584_v57, %v6588_v5  ;;  %v6770_v53 = vshll.u32 %v6592_v28, 16  ;;  %v7966_v5 = vrot.slane %v7964_v55, 1  ;;  %vm15775_vm11 = vmmov %vm15768_vm0 }
 0x546   : > { %v6746_v45 = vshll.u32 %v6573_v21, 16  ;;  %v6750_v26 = vshrl.u32 %v6573_v21, 16  ;;  %v6762_v17 = vshll.u32 %v6589_v25, 16  ;;  %v6766_v15 = vshrl.u32 %v6589_v25, 16  ;;  %vm15779_vm2 = vmmov %vm15768_vm0 }
 0x547   : > { %v6772_v22 = vrot.slane %v6770_v53, 1 }
 0x548   : > { %v6748_v33 = vrot.slane %v6746_v45, 1  ;;  %v6764_v13 = vrot.slane %v6762_v17, 1 }
 0x549   : > { %7022 = vmatmul.mubr.bf16.gmra.mrb[76].mxu1 %v6541_v52  ;;  %v6576_v52 = vor.u32 %v6574_v7, %v6572_v48  ;;  %v10597_v7 = vld [vmem:[%s10845_s21 + $0x30] sm:$0xff]  }
 0x54a   : > { %7029 = vmatprep.mubr.bf16.mxu1 %v6733_v58  ;;  %v6752_v14 = vor.u32 %v6750_v26, %v6748_v33  ;;  %v6768_v49 = vor.u32 %v6766_v15, %v6764_v13  ;;  %v7955_v45 = vshrl.u32 %v10597_v7, 16 }
 0x54b   : > { %v6581_v30 = vsel %vm15762_vm10, %v6576_v52, %v6580_v38  ;;  %v7958_v52 = vshll.u32 %v10597_v7, 16  ;;  %v10602_v7 = vld [vmem:[%s10845_s21 + $0x58] sm:$0xff]   ;;  %vm15777_vm10 = vmmov %vm15768_vm0 }
 0x54c   : > { %v6754_v35 = vshll.u32 %v6581_v30, 16  ;;  %v6758_v58 = vshrl.u32 %v6581_v30, 16  ;;  %v6773_v0 = vsel %vm15767_vm5, %v6768_v49, %v6772_v22  ;;  %vm8418_vm5 = vcmask 1044484  }
 0x54d   : > { %v7960_v6 = vrot.slane %v7958_v52, 2  ;;  %v8000_v52 = vshrl.u32 %v10602_v7, 16 }
 0x54e   : > { %v14591_v61 = vpop.f32.mrb[104].mxu0  ;;  %v6756_v23 = vrot.slane %v6754_v35, 1 }
 0x54f   : > { %v14593_v36 = vpop.f32.mrb[105].mxu0  ;;  %v8002_v55 = vrot.slane %v8000_v52, 1 }
 0x550   : > { %v14595_v40 = vpop.f32.mrb[106].mxu0 }
 0x551   : > { %7030 = vmatmul.mubr.bf16.gmra.mrb[80].mxu1 %v6549_v19  ;;  %v6749_v19 = vsel %vm15763_vm4, %v6744_v10, %v6748_v33  ;;  %v14598_v46 = vpop.f32.mrb[107].mxu0  ;;  %v10599_v33 = vld [vmem:[%s10845_s21 + $0x40] sm:$0xff]   ;;  %v7967_v10 = vshll.u32 %v10598_v51, 16  ;;  %vm15778_vm4 = vmmov %vm15768_vm0 }
 0x552   : > { %7037 = vmatprep.mubr.bf16.mxu1 %v6741_v20  ;;  %v6774_v20 = vshrl.u32 %v6592_v28, 16 }
 0x553   : > { %v7969_v26 = vrot.slane %v7967_v10, 2 }
 0x554   : > { %v6776_v38 = vor.u32 %v6774_v20, %v6772_v22 }
 0x555   : > { %v7970_v41 = vor.u32 %v7969_v26, %v7966_v5  ;;  %v10605_v26 = vld [vmem:[%s10845_s21 + $0x70] sm:$0xff]  }
 0x557   : > { %v14601_v11 = vpop.f32.mrb[108].mxu0 }
 0x558   : > { %v14603_v3 = vpop.f32.mrb[109].mxu0 }
 0x559   : > { %7038 = vmatmul.mubr.bf16.gmra.mrb[84].mxu1 %v6557_v43  ;;  %v14605_v37 = vpop.f32.mrb[110].mxu0  ;;  %v6757_v43 = vsel %vm15765_vm15, %v6752_v14, %v6756_v23  ;;  %v10600_v14 = vld [vmem:[%s10845_s21 + $0x48] sm:$0xff]   ;;  %vm15780_vm15 = vmmov %vm15768_vm0 }
 0x55a   : > { %7045 = vmatprep.mubr.bf16.mxu1 %v6749_v19  ;;  %v14608_v2 = vpop.f32.mrb[111].mxu0  ;;  %v7973_v19 = vshrl.u32 %v10599_v33, 16 }
 0x560   : > { %v14624_v48 = vpop.f32.mrb[112].mxu0 }
 0x561   : > { %7046 = vmatmul.mubr.bf16.gmra.mrb[88].mxu1 %v6565_v63  ;;  %v6760_v63 = vor.u32 %v6758_v58, %v6756_v23  ;;  %v14626_v54 = vpop.f32.mrb[113].mxu0  ;;  %v7982_v58 = vshrl.u32 %v10600_v14, 16 }
 0x562   : > { %7053 = vmatprep.mubr.bf16.mxu1 %v6757_v43  ;;  %v14633_v35 = vpop.f32.mrb[114].mxu0  ;;  %v7975_v43 = vrot.slane %v7973_v19, 1 }
 0x563   : > { %v6765_v16 = vsel %vm15766_vm8, %v6760_v63, %v6764_v13  ;;  %v14635_v57 = vpop.f32.mrb[115].mxu0  ;;  %v7985_v63 = vshll.u32 %v10600_v14, 16  ;;  %v7984_v49 = vrot.slane %v7982_v58, 1  ;;  %vm15781_vm8 = vmmov %vm15768_vm0 }
 0x565   : > { %v7987_v22 = vrot.slane %v7985_v63, 2 }
 0x569   : > { %7054 = vmatmul.mubr.bf16.gmra.mrb[92].mxu1 %v6573_v21  ;;  %v7957_v21 = vrot.slane %v7955_v45, 1  ;;  %v10603_v45 = vld [vmem:[%s10845_s21 + $0x60] sm:$0xff]  }
 0x56a   : > { %7061 = vmatprep.mubr.bf16.mxu1 %v6765_v16 }
 0x56b   : > { %v7961_v32 = vor.u32 %v7960_v6, %v7957_v21  ;;  %v8009_v21 = vshrl.u32 %v10603_v45, 16  ;;  %v8012_v6 = vshll.u32 %v10603_v45, 16 }
 0x56d   : > { %v7962_v23 = vsel %vm15768_vm0, %v14491_v59, %v7961_v32  ;;  %v7971_v15 = vsel %vm15769_vm14, %v7961_v32, %v7970_v41  ;;  %v10604_v32 = vld [vmem:[%s10845_s21 + $0x68] sm:$0xff]   ;;  %v8014_v5 = vrot.slane %v8012_v6, 2  ;;  %vm14717_vm0 = vmor %vm321_vm12, %vm8418_vm5  ;;  %vm8451_vm14 = vcmask 1041408  }
 0x571   : > { %7062 = vmatmul.mubr.bf16.gmra.mrb[96].mxu1 %v6581_v30  ;;  %v7976_v30 = vshll.u32 %v10599_v33, 16 }
 0x572   : > { %7069 = vmatprep.mubr.bf16.mxu1 %v6773_v0 }
 0x573   : > { %v7978_v17 = vrot.slane %v7976_v30, 2  ;;  %v8011_v30 = vrot.slane %v8009_v21, 1  ;;  %v10608_v21 = vld [vmem:[%s10845_s21 + $0x88] sm:$0xff]  }
 0x575   : > { %v7979_v13 = vor.u32 %v7978_v17, %v7975_v43  ;;  %v8021_v43 = vshll.u32 %v10604_v32, 16  ;;  %v8015_v17 = vor.u32 %v8014_v5, %v8011_v30  ;;  %v8057_v30 = vshll.u32 %v10608_v21, 16 }
 0x577   : > { %v7980_v59 = vsel %vm15770_vm3, %v7970_v41, %v7979_v13  ;;  %v8030_v41 = vshll.u32 %v10605_v26, 16  ;;  %vm8452_vm3 = vcmask 1045508  }
 0x579   : > { %7070 = vmatmul.mubr.bf16.gmra.mrb[100].mxu1 %v6589_v25  ;;  %v10601_v25 = vld [vmem:[%s10845_s21 + $0x50] sm:$0xff]  }
 0x57a   : > { %7077 = vmatprep.mubr.bf16.mxu1 %v6776_v38  ;;  %v7991_v16 = vshrl.u32 %v10601_v25, 16  ;;  %v7994_v53 = vshll.u32 %v10601_v25, 16  ;;  %v8003_v38 = vshll.u32 %v10602_v7, 16  ;;  %v8027_v25 = vshrl.u32 %v10605_v26, 16 }
 0x57c   : > { %v7993_v0 = vrot.slane %v7991_v16, 1  ;;  %v7996_v20 = vrot.slane %v7994_v53, 2  ;;  %v8005_v10 = vrot.slane %v8003_v38, 2  ;;  %v10606_v16 = vld [vmem:[%s10845_s21 + $0x78] sm:$0xff]  }
 0x57e   : > { %v7997_v51 = vor.u32 %v7996_v20, %v7993_v0  ;;  %v8006_v14 = vor.u32 %v8005_v10, %v8002_v55  ;;  %v8039_v0 = vshll.u32 %v10606_v16, 16  ;;  %v10609_v10 = vld [vmem:[%s10845_s21 + $0x90] sm:$0xff]  }
 0x57f   : > { %v8063_v26 = vshrl.u32 %v10609_v10, 16 }
 0x580   : > { %v8007_v58 = vsel %vm15773_vm7, %v7997_v51, %v8006_v14  ;;  %v8016_v53 = vsel %vm15774_vm1, %v8006_v14, %v8015_v17  ;;  %v8066_v14 = vshll.u32 %v10609_v10, 16  ;;  %vm8486_vm7 = vcmask 1046532  }
 0x581   : > { %7078 = vmatmul.mubr.bf16.gmra.mrb[104].mxu1 %v6592_v28  ;;  %v7988_v28 = vor.u32 %v7987_v22, %v7984_v49  ;;  %v8032_v49 = vrot.slane %v8030_v41, 2  ;;  %v10607_v22 = vld [vmem:[%s10845_s21 + $0x80] sm:$0xff]   ;;  %v8065_v41 = vrot.slane %v8063_v26, 1 }
 0x582   : > { %9714 = vmatprep.mubr.bf16.mxu1 %v7962_v23  ;;  %v8018_v23 = vshrl.u32 %v10604_v32, 16  ;;  %v8045_v45 = vshrl.u32 %v10607_v22, 16 }
 0x583   : > { %v7989_v33 = vsel %vm15771_vm13, %v7979_v13, %v7988_v28  ;;  %v7998_v19 = vsel %vm15772_vm9, %v7988_v28, %v7997_v51  ;;  %v8023_v13 = vrot.slane %v8021_v43, 2  ;;  %v8048_v28 = vshll.u32 %v10607_v22, 16  ;;  %vm14845_vm13 = vmor %vm8451_vm14, %vm8452_vm3 }
 0x584   : > { %v8020_v63 = vrot.slane %v8018_v23, 1  ;;  %v8041_v51 = vrot.slane %v8039_v0, 2  ;;  %vm8485_vm9 = vcmask 1042432  }
 0x585   : > { %v8050_v55 = vrot.slane %v8048_v28, 2  ;;  %vm14873_vm1 = vmor %vm8485_vm9, %vm8486_vm7 }
 0x586   : > { %v8024_v7 = vor.u32 %v8023_v13, %v8020_v63  ;;  %v10610_v13 = vld [vmem:[%s10845_s21 + $0x98] ss:$0 sps:$4 sm:$0x11]  }
 0x588   : > { %v8025_v52 = vsel %vm15775_vm11, %v8015_v17, %v8024_v7  ;;  %v8059_v17 = vrot.slane %v8057_v30, 2 }
 0x589   : > { %9715 = vmatmul.mubr.bf16.vlgmr.msra.gmra.mrb[108].mxu1 %v7971_v15  ;;  %v8029_v15 = vrot.slane %v8027_v25, 1 }
 0x58a   : > { %9718 = vmatprep.mubr.bf16.mxu1 %v7980_v59  ;;  %v8036_v59 = vshrl.u32 %v10606_v16, 16 }
 0x58b   : > { %v8033_v20 = vor.u32 %v8032_v49, %v8029_v15  ;;  %v8072_v15 = vshll.u32 %v10610_v13, 16 }
 0x58c   : > { %v8038_v38 = vrot.slane %v8036_v59, 1  ;;  %v14666_v59 = vld [vmem:[%s14941_s6] ss:$0 sm:$0xff] }
 0x58d   : > { %v8034_v6 = vsel %vm15776_vm6, %v8024_v7, %v8033_v20  ;;  %v8074_v22 = vrot.slane %v8072_v15, 2  ;;  %v8196_v13 = vadd.f32 %v14666_v59, %v14635_v57 }
 0x58e   : > { %v8042_v32 = vor.u32 %v8041_v51, %v8038_v38 }
 0x590   : > { %v8043_v23 = vsel %vm15777_vm10, %v8033_v20, %v8042_v32  ;;  %v14671_v20 = vld [vmem:[%s14939_s4] ss:$0 sm:$0xff] }
 0x591   : > { %9719 = vmatmul.mubr.bf16.gmra.mrb[112].mxu1 %v7989_v33  ;;  %v8047_v33 = vrot.slane %v8045_v45, 1 }
 0x592   : > { %9722 = vmatprep.mubr.bf16.mxu1 %v7998_v19  ;;  %v8054_v19 = vshrl.u32 %v10608_v21, 16 }
 0x593   : > { %v8051_v5 = vor.u32 %v8050_v55, %v8047_v33  ;;  %v8180_v33 = vadd.f32 %v14666_v59, %v14608_v2 }
 0x594   : > { %v8056_v43 = vrot.slane %v8054_v19, 1 }
 0x595   : > { %v8052_v25 = vsel %vm15778_vm4, %v8042_v32, %v8051_v5 }
 0x596   : > { %v8060_v63 = vor.u32 %v8059_v17, %v8056_v43 }
 0x599   : > { %9723 = vmatmul.mubr.bf16.gmra.mrb[116].mxu1 %v8007_v58  ;;  %v8068_v58 = vrot.slane %v8066_v14, 2 }
 0x59a   : > { %9726 = vmatprep.mubr.bf16.mxu1 %v8016_v53  ;;  %v8061_v53 = vsel %vm15779_vm2, %v8051_v5, %v8060_v63 }
 0x59b   : > { %v8069_v16 = vor.u32 %v8068_v58, %v8065_v41  ;;  %v8193_v41 = vadd.f32 %v14666_v59, %v14626_v54 }
 0x59d   : > { %v8070_v49 = vsel %vm15780_vm15, %v8060_v63, %v8069_v16  ;;  %v8075_v7 = vsel %vm15781_vm8, %v8069_v16, %v8074_v22 }
 0x5a1   : > { %9727 = vmatmul.mubr.bf16.gmra.mrb[120].mxu1 %v8025_v52  ;;  %v8177_v52 = vadd.f32 %v14666_v59, %v14603_v3 }
 0x5a2   : > { %9730 = vmatprep.mubr.bf16.mxu1 %v8034_v6 }
 0x5a9   : > { %9731 = vmatmul.mubr.bf16.gmra.mrb[124].mxu1 %v8043_v23 }
 0x5aa   : > { %9734 = vmatprep.mubr.bf16.mxu1 %v8052_v25 }
 0x5b1   : > { %9735 = vmatmul.mubr.bf16.gmra.mrb[128].mxu1 %v8061_v53 }
 0x5b2   : > { %9738 = vmatprep.mubr.bf16.mxu1 %v8070_v49 }
 0x5b9   : > { %9739 = vmatmul.mubr.bf16.gmra.mrb[132].mxu1 %v8075_v7 }
 0x5cc   : > { %v6943_v0 = vpop.f32.mrb[36].mxu1 }
 0x5cd   : > { %v7678_v45 = vadd.f32 %v14365_v39, %v6943_v0  ;;  %v6945_v28 = vpop.f32.mrb[37].mxu1  ;;  %v8185_v39 = vadd.f32 %v14601_v11, %v14666_v59 }
 0x5ce   : > { %v6946_v38 = vpop.f32.mrb[38].mxu1  ;;  %v15782_v28 = vld [vmem:[#allocation70_spill] sm:$0xff] }
 0x5cf   : > { %v7721_v51 = vadd.f32 %v14671_v20, %v7678_v45  ;;  %v7679_v21 = vadd.f32 %v14369_v27, %v6946_v38  ;;  %v6948_v6 = vpop.f32.mrb[39].mxu1  ;;  %v8188_v27 = vadd.f32 %v14605_v37, %v14666_v59  ;;  %v8204_v45 = vadd.f32 %v14633_v35, %v14666_v59 }
 0x5d1   : > { %v7722_v55 = vadd.f32 %v14671_v20, %v7679_v21  ;;  %v8319_v10 = vadd.f32 %v8177_v52, %v7721_v51 }
 0x5d3   : > { %8355 = vst [vmem:[#allocation4] sm:$0xff] %v8319_v10  ;;  %v8320_v32 = vadd.f32 %v8180_v33, %v7722_v55 }
 0x5d4   : > { %v6951_v19 = vpop.f32.mrb[40].mxu1 }
 0x5d5   : > { %8356 = vst [vmem:[#allocation4 + $0x8] sm:$0xff] %v8320_v32  ;;  %v7680_v3 = vadd.f32 %v14363_v56, %v6951_v19  ;;  %v6953_v30 = vpop.f32.mrb[41].mxu1  ;;  %v15783_v19 = vld [vmem:[#allocation53_spill] sm:$0xff] }
 0x5d6   : > { %v6954_v5 = vpop.f32.mrb[42].mxu1 }
 0x5d7   : > { %v7723_v26 = vadd.f32 %v14671_v20, %v7680_v3  ;;  %v7681_v2 = vadd.f32 %v14367_v62, %v6954_v5  ;;  %v6956_v14 = vpop.f32.mrb[43].mxu1  ;;  %v15784_v5 = vld [vmem:[#allocation62_spill] sm:$0xff] }
 0x5d9   : > { %v8321_v23 = vadd.f32 %v8185_v39, %v7723_v26  ;;  %v7724_v43 = vadd.f32 %v14671_v20, %v7681_v2 }
 0x5db   : > { %8357 = vst [vmem:[#allocation4 + $0x10] sm:$0xff] %v8321_v23  ;;  %v8322_v17 = vadd.f32 %v8188_v27, %v7724_v43 }
 0x5dc   : > { %v6959_v25 = vpop.f32.mrb[44].mxu1  ;;  %v8395_v7 = vld [vmem:[#allocation4] ss:$2 sm:$0xff]  ;;  %v8397_v0 = vld [vmem:[#allocation4 + $0x1] ss:$2 sm:$0xff] }
 0x5dd   : > { %8358 = vst [vmem:[#allocation4 + $0x18] sm:$0xff] %v8322_v17  ;;  %v7682_v11 = vadd.f32 %v14377_v18, %v6959_v25  ;;  %v6961_v56 = vpop.f32.mrb[45].mxu1  ;;  %v8201_v18 = vadd.f32 %v14624_v48, %v14666_v59  ;;  %v8398_v51 = vadd.f32 %v8397_v0, %v8395_v7 }
 0x5de   : > { %v6962_v58 = vpop.f32.mrb[46].mxu1 }
 0x5df   : > { %v7725_v37 = vadd.f32 %v14671_v20, %v7682_v11  ;;  %v7683_v63 = vadd.f32 %v14381_v47, %v6962_v58  ;;  %v6964_v62 = vpop.f32.mrb[47].mxu1  ;;  %v15785_v11 = vld [vmem:[#allocation60_spill] sm:$0xff] }
 0x5e0   : > { %v15788_v62 = vld [vmem:[#allocation71_spill] sm:$0xff] }
 0x5e1   : > { %v7726_v16 = vadd.f32 %v14671_v20, %v7683_v63  ;;  %v8323_v53 = vadd.f32 %v8193_v41, %v7725_v37 }
 0x5e3   : > { %8359 = vst [vmem:[#allocation4 + $0x20] sm:$0xff] %v8323_v53  ;;  %v8324_v15 = vadd.f32 %v8196_v13, %v7726_v16 }
 0x5e4   : > { %v6967_v49 = vpop.f32.mrb[48].mxu1 }
 0x5e5   : > { %8360 = vst [vmem:[#allocation4 + $0x28] sm:$0xff] %v8324_v15  ;;  %v7684_v54 = vadd.f32 %v14375_v24, %v6967_v49  ;;  %v6969_v22 = vpop.f32.mrb[49].mxu1 }
 0x5e6   : > { %v6970_v47 = vpop.f32.mrb[50].mxu1 }
 0x5e7   : > { %v7727_v57 = vadd.f32 %v14671_v20, %v7684_v54  ;;  %v7685_v52 = vadd.f32 %v15782_v28, %v6970_v47  ;;  %v6972_v38 = vpop.f32.mrb[51].mxu1  ;;  %v15789_v54 = vld [vmem:[#allocation21_spill] sm:$0xff] }
 0x5e8   : > { %v15790_v47 = vld [vmem:[#allocation73_spill] sm:$0xff] }
 0x5e9   : > { %v8325_v21 = vadd.f32 %v8201_v18, %v7727_v57  ;;  %v7728_v6 = vadd.f32 %v14671_v20, %v7685_v52  ;;  %v15791_v52 = vld [vmem:[#allocation56_spill] sm:$0xff] }
 0x5ea   : > { %v8400_v48 = vld [vmem:[#allocation4 + $0x12] ss:$2 sm:$0xff]  ;;  %v8403_v55 = vld [vmem:[#allocation4 + $0x13] ss:$2 sm:$0xff] }
 0x5eb   : > { %v8401_v33 = vadd.f32 %v8400_v48, %v8398_v51  ;;  %8361 = vst [vmem:[#allocation4 + $0x30] sm:$0xff] %v8325_v21  ;;  %v8326_v24 = vadd.f32 %v8204_v45, %v7728_v6  ;;  %v15792_v6 = vld [vmem:[#allocation23_spill] sm:$0xff] }
 0x5ec   : > { %v6975_v10 = vpop.f32.mrb[52].mxu1 }
 0x5ed   : > { %v8404_v32 = vadd.f32 %v8403_v55, %v8401_v33  ;;  %8362 = vst [vmem:[#allocation4 + $0x38] sm:$0xff] %v8326_v24  ;;  %v14706_v39 = vadd.f32 %v15783_v19, %v6975_v10  ;;  %v6977_v35 = vpop.f32.mrb[53].mxu1  ;;  %v15793_v55 = vld [vmem:[#allocation57_spill] sm:$0xff] }
 0x5ee   : > { %v6978_v3 = vpop.f32.mrb[54].mxu1  ;;  %v15794_v35 = vld [vmem:[#allocation72_spill] sm:$0xff] }
 0x5ef   : > { %v8405_v30 = vmul.f32 0.25, %v8404_v32  ;;  %v14709_v27 = vadd.f32 %v15784_v5, %v6978_v3  ;;  %v6980_v26 = vpop.f32.mrb[55].mxu1 }
 0x5f0   : > { %v15795_v26 = vld [vmem:[#allocation66_spill] sm:$0xff] }
 0x5f1   : > { %v8407_v2 = vrot.slane %v8405_v30, 7 }
 0x5f3   : > { %v8410_v14 = vsel %vm321_vm12, 0.0, %v8407_v2  ;;  %v8411_v23 = vsel %vm321_vm12, %v8407_v2, 0.0 }
 0x5f4   : > { %v9251_v43 = vpack.c.bf16 %v8410_v14, %v8410_v14  ;;  %v9252_v17 = vpack.c.bf16 %v8411_v23, %v8411_v23  ;;  %v6983_v25 = vpop.f32.mrb[56].mxu1 }
 0x5f5   : > { %v14714_v56 = vadd.f32 %v15785_v11, %v6983_v25  ;;  %v6985_v41 = vpop.f32.mrb[57].mxu1 }
 0x5f6   : > { %v8420_v58 = vrot.slane %v9251_v43, 7  ;;  %v6986_v37 = vpop.f32.mrb[58].mxu1  ;;  %v8422_v15 = vrot.slane %v9252_v17, 7  ;;  %v15796_v43 = vld [vmem:[#allocation74_spill] sm:$0xff] }
 0x5f7   : > { %v14722_v13 = vadd.f32 %v15788_v62, %v6986_v37  ;;  %v6988_v16 = vpop.f32.mrb[59].mxu1 }
 0x5f8   : > { %v8421_v53 = vrot.slane %v8420_v58, 4  ;;  %8426 = vst [vmem:[%s14614_s29 + $0x4] sm:$0xe] %v8420_v58 }
 0x5fa   : > { %v8423_v49 = vsel %vm14717_vm0, %v8421_v53, %v8422_v15 }
 0x5fb   : > { %8427 = vst [vmem:[%s14614_s29 + $0x8] sm:$0x3] %v8423_v49 }
 0x5fc   : > { %v6991_v18 = vpop.f32.mrb[60].mxu1 }
 0x5fd   : > { %v14729_v22 = vadd.f32 %v15789_v54, %v6991_v18  ;;  %v6993_v7 = vpop.f32.mrb[61].mxu1 }
 0x5fe   : > { %v6994_v0 = vpop.f32.mrb[62].mxu1 }
 0x5ff   : > { %v14732_v45 = vadd.f32 %v15790_v47, %v6994_v0  ;;  %v6996_v57 = vpop.f32.mrb[63].mxu1 }
 0x604   : > { %v6999_v28 = vpop.f32.mrb[64].mxu1 }
 0x605   : > { %v14735_v38 = vadd.f32 %v15791_v52, %v6999_v28  ;;  %v7001_v51 = vpop.f32.mrb[65].mxu1 }
 0x606   : > { %v7002_v21 = vpop.f32.mrb[66].mxu1 }
 0x607   : > { %v14738_v48 = vadd.f32 %v15792_v6, %v7002_v21  ;;  %v7004_v33 = vpop.f32.mrb[67].mxu1 }
 0x60c   : > { %v7007_v24 = vpop.f32.mrb[68].mxu1 }
 0x60d   : > { %v14741_v10 = vadd.f32 %v15793_v55, %v7007_v24  ;;  %v7009_v32 = vpop.f32.mrb[69].mxu1 }
 0x60e   : > { %v7010_v19 = vpop.f32.mrb[70].mxu1 }
 0x60f   : > { %v14744_v3 = vadd.f32 %v15794_v35, %v7010_v19  ;;  %v7012_v30 = vpop.f32.mrb[71].mxu1 }
 0x614   : > { %v7015_v5 = vpop.f32.mrb[72].mxu1 }
 0x615   : > { %v14747_v2 = vadd.f32 %v15795_v26, %v7015_v5  ;;  %v7017_v14 = vpop.f32.mrb[73].mxu1 }
 0x616   : > { %v7018_v23 = vpop.f32.mrb[74].mxu1 }
 0x617   : > { %v14750_v17 = vadd.f32 %v15796_v43, %v7018_v23  ;;  %v7020_v25 = vpop.f32.mrb[75].mxu1 }
 0x61c   : > { %v7023_v11 = vpop.f32.mrb[76].mxu1 }
 0x61d   : > { %v14753_v41 = vadd.f32 %v14477_v12, %v7023_v11  ;;  %v7025_v58 = vpop.f32.mrb[77].mxu1 }
 0x61e   : > { %v7026_v37 = vpop.f32.mrb[78].mxu1 }
 0x61f   : > { %v14756_v62 = vadd.f32 %v14481_v50, %v7026_v37  ;;  %v7028_v16 = vpop.f32.mrb[79].mxu1 }
 0x624   : > { %v7031_v53 = vpop.f32.mrb[80].mxu1 }
 0x625   : > { %v14759_v15 = vadd.f32 %v14474_v8, %v7031_v53  ;;  %v7033_v49 = vpop.f32.mrb[81].mxu1 }
 0x626   : > { %v7034_v18 = vpop.f32.mrb[82].mxu1 }
 0x627   : > { %v14762_v54 = vadd.f32 %v14479_v42, %v7034_v18  ;;  %v7036_v7 = vpop.f32.mrb[83].mxu1 }
 0x628   : > { %v7732_v7 = vadd.f32 %v14671_v20, %v14722_v13  ;;  %v7735_v13 = vadd.f32 %v14671_v20, %v14735_v38 }
 0x62c   : > { %v7039_v0 = vpop.f32.mrb[84].mxu1 }
 0x62d   : > { %v14765_v12 = vadd.f32 %v14500_v1, %v7039_v0  ;;  %v7041_v47 = vpop.f32.mrb[85].mxu1 }
 0x62e   : > { %v7042_v57 = vpop.f32.mrb[86].mxu1 }
 0x62f   : > { %v14768_v50 = vadd.f32 %v14505_v29, %v7042_v57  ;;  %v7044_v28 = vpop.f32.mrb[87].mxu1  ;;  %v7730_v57 = vadd.f32 %v14671_v20, %v14709_v27  ;;  %v7733_v27 = vadd.f32 %v14671_v20, %v14729_v22 }
 0x634   : > { %v7047_v52 = vpop.f32.mrb[88].mxu1 }
 0x635   : > { %v14771_v8 = vadd.f32 %v14496_v60, %v7047_v52  ;;  %v7049_v51 = vpop.f32.mrb[89].mxu1 }
 0x636   : > { %v7050_v21 = vpop.f32.mrb[90].mxu1 }
 0x637   : > { %v14774_v42 = vadd.f32 %v14503_v31, %v7050_v21  ;;  %v7052_v6 = vpop.f32.mrb[91].mxu1  ;;  %v8429_v21 = vld [vmem:[#allocation4 + $0x24] ss:$2 sm:$0xff] }
 0x638   : > { %v8431_v6 = vld [vmem:[#allocation4 + $0x25] ss:$2 sm:$0xff] }
 0x639   : > { %v8432_v38 = vadd.f32 %v8431_v6, %v8429_v21 }
 0x63c   : > { %v7055_v33 = vpop.f32.mrb[92].mxu1 }
 0x63d   : > { %v14777_v1 = vadd.f32 %v14513_v44, %v7055_v33  ;;  %v7057_v24 = vpop.f32.mrb[93].mxu1 }
 0x63e   : > { %v7058_v55 = vpop.f32.mrb[94].mxu1 }
 0x63f   : > { %v14780_v29 = vadd.f32 %v14517_v9, %v7058_v55  ;;  %v7060_v32 = vpop.f32.mrb[95].mxu1 }
 0x644   : > { %v7063_v19 = vpop.f32.mrb[96].mxu1 }
 0x645   : > { %v14783_v60 = vadd.f32 %v14511_v34, %v7063_v19  ;;  %v7065_v35 = vpop.f32.mrb[97].mxu1  ;;  %v7736_v19 = vadd.f32 %v14671_v20, %v14738_v48 }
 0x646   : > { %v7066_v30 = vpop.f32.mrb[98].mxu1 }
 0x647   : > { %v14786_v31 = vadd.f32 %v14515_v4, %v7066_v30  ;;  %v7068_v5 = vpop.f32.mrb[99].mxu1 }
 0x64c   : > { %v7071_v26 = vpop.f32.mrb[100].mxu1 }
 0x64d   : > { %v14789_v44 = vadd.f32 %v14593_v36, %v7071_v26  ;;  %v7073_v14 = vpop.f32.mrb[101].mxu1  ;;  %v7731_v36 = vadd.f32 %v14671_v20, %v14714_v56  ;;  %v7734_v26 = vadd.f32 %v14671_v20, %v14732_v45 }
 0x64e   : > { %v7074_v23 = vpop.f32.mrb[102].mxu1 }
 0x64f   : > { %v14792_v9 = vadd.f32 %v14598_v46, %v7074_v23  ;;  %v7076_v43 = vpop.f32.mrb[103].mxu1  ;;  %v7729_v46 = vadd.f32 %v14671_v20, %v14706_v39 }
 0x654   : > { %v7079_v25 = vpop.f32.mrb[104].mxu1 }
 0x655   : > { %v14795_v34 = vadd.f32 %v14591_v61, %v7079_v25  ;;  %v7081_v11 = vpop.f32.mrb[105].mxu1 }
 0x656   : > { %v7082_v58 = vpop.f32.mrb[106].mxu1 }
 0x657   : > { %v14798_v4 = vadd.f32 %v14595_v40, %v7082_v58  ;;  %v7084_v37 = vpop.f32.mrb[107].mxu1 }
 0x65c   : > { %v9716_v16 = vpop.f32.mrb[108].mxu1 }
 0x65d   : > { %v8217_v53 = vadd.f32 %v9716_v16, %v14666_v59  ;;  %v8208_v49 = vpop.f32.mrb[109].mxu1  ;;  %v7739_v16 = vadd.f32 %v14671_v20, %v14747_v2  ;;  %v7738_v2 = vadd.f32 %v14671_v20, %v14744_v3 }
 0x65e   : > { %v8209_v18 = vadd.f32 %v14666_v59, %v8208_v49  ;;  %v9717_v61 = vpop.f32.mrb[110].mxu1 }
 0x65f   : > { %v8329_v0 = vadd.f32 %v8217_v53, %v7731_v36  ;;  %v8220_v40 = vadd.f32 %v9717_v61, %v14666_v59  ;;  %v8211_v47 = vpop.f32.mrb[111].mxu1  ;;  %v7737_v53 = vadd.f32 %v14671_v20, %v14741_v10  ;;  %v7740_v61 = vadd.f32 %v14671_v20, %v14750_v17 }
 0x660   : > { %v8327_v56 = vadd.f32 %v8209_v18, %v7729_v46  ;;  %v8212_v28 = vadd.f32 %v14666_v59, %v8211_v47 }
 0x661   : > { %8365 = vst [vmem:[#allocation4 + $0x50] sm:$0xff] %v8329_v0  ;;  %v8330_v52 = vadd.f32 %v8220_v40, %v7732_v7 }
 0x662   : > { %8363 = vst [vmem:[#allocation4 + $0x40] sm:$0xff] %v8327_v56  ;;  %v8328_v39 = vadd.f32 %v8212_v28, %v7730_v57 }
 0x663   : > { %8366 = vst [vmem:[#allocation4 + $0x58] sm:$0xff] %v8330_v52 }
 0x664   : > { %8364 = vst [vmem:[#allocation4 + $0x48] sm:$0xff] %v8328_v39  ;;  %v9720_v51 = vpop.f32.mrb[112].mxu1 }
 0x665   : > { %v8233_v33 = vadd.f32 %v9720_v51, %v14666_v59  ;;  %v8224_v24 = vpop.f32.mrb[113].mxu1 }
 0x666   : > { %v8225_v55 = vadd.f32 %v14666_v59, %v8224_v24  ;;  %v9721_v32 = vpop.f32.mrb[114].mxu1 }
 0x667   : > { %v8333_v35 = vadd.f32 %v8233_v33, %v7735_v13  ;;  %v8236_v30 = vadd.f32 %v9721_v32, %v14666_v59  ;;  %v8227_v5 = vpop.f32.mrb[115].mxu1 }
 0x668   : > { %v8331_v14 = vadd.f32 %v8225_v55, %v7733_v27  ;;  %v8228_v23 = vadd.f32 %v14666_v59, %v8227_v5  ;;  %v7743_v27 = vadd.f32 %v14671_v20, %v14759_v15  ;;  %v7744_v5 = vadd.f32 %v14671_v20, %v14762_v54 }
 0x669   : > { %v8434_v43 = vld [vmem:[#allocation4 + $0x36] ss:$2 sm:$0xff]  ;;  %8369 = vst [vmem:[#allocation4 + $0x70] sm:$0xff] %v8333_v35  ;;  %v8334_v22 = vadd.f32 %v8236_v30, %v7736_v19  ;;  %v8437_v58 = vld [vmem:[#allocation4 + $0x37] ss:$2 sm:$0xff]  ;;  %v7741_v30 = vadd.f32 %v14671_v20, %v14753_v41  ;;  %v7742_v54 = vadd.f32 %v14671_v20, %v14756_v62 }
 0x66a   : > { %v8435_v25 = vadd.f32 %v8434_v43, %v8432_v38  ;;  %8367 = vst [vmem:[#allocation4 + $0x60] sm:$0xff] %v8331_v14  ;;  %v8332_v11 = vadd.f32 %v8228_v23, %v7734_v26 }
 0x66b   : > { %8370 = vst [vmem:[#allocation4 + $0x78] sm:$0xff] %v8334_v22  ;;  %v8463_v7 = vld [vmem:[#allocation4 + $0x48] ss:$2 sm:$0xff]  ;;  %v8465_v0 = vld [vmem:[#allocation4 + $0x49] ss:$2 sm:$0xff] }
 0x66c   : > { %v8438_v48 = vadd.f32 %v8437_v58, %v8435_v25  ;;  %8368 = vst [vmem:[#allocation4 + $0x68] sm:$0xff] %v8332_v11  ;;  %v9724_v37 = vpop.f32.mrb[116].mxu1  ;;  %v8466_v17 = vadd.f32 %v8465_v0, %v8463_v7 }
 0x66d   : > { %v8249_v45 = vadd.f32 %v9724_v37, %v14666_v59  ;;  %v8240_v36 = vpop.f32.mrb[117].mxu1 }
 0x66e   : > { %v8439_v49 = vmul.f32 0.25, %v8438_v48  ;;  %v8241_v46 = vadd.f32 %v14666_v59, %v8240_v36  ;;  %v9725_v18 = vpop.f32.mrb[118].mxu1 }
 0x66f   : > { %v8337_v40 = vadd.f32 %v8249_v45, %v7739_v16  ;;  %v8252_v47 = vadd.f32 %v9725_v18, %v14666_v59  ;;  %v8243_v57 = vpop.f32.mrb[119].mxu1 }
 0x670   : > { %v8441_v56 = vrot.slane %v8439_v49, 7  ;;  %v8335_v28 = vadd.f32 %v8241_v46, %v7737_v53  ;;  %v8244_v10 = vadd.f32 %v14666_v59, %v8243_v57 }
 0x671   : > { %8373 = vst [vmem:[#allocation4 + $0x90] sm:$0xff] %v8337_v40  ;;  %v8338_v52 = vadd.f32 %v8252_v47, %v7740_v61  ;;  %v7747_v40 = vadd.f32 %v14671_v20, %v14771_v8 }
 0x672   : > { %v8443_v39 = vsel %vm321_vm12, 0.0, %v8441_v56  ;;  %v8444_v51 = vsel %vm321_vm12, %v8441_v56, 0.0  ;;  %8371 = vst [vmem:[#allocation4 + $0x80] sm:$0xff] %v8335_v28  ;;  %v8336_v21 = vadd.f32 %v8244_v10, %v7738_v2  ;;  %v7745_v10 = vadd.f32 %v14671_v20, %v14765_v12 }
 0x673   : > { %v9253_v6 = vpack.c.bf16 %v8443_v39, %v8443_v39  ;;  %v9254_v13 = vpack.c.bf16 %v8444_v51, %v8444_v51  ;;  %v8468_v33 = vld [vmem:[#allocation4 + $0x5a] ss:$2 sm:$0xff]  ;;  %8374 = vst [vmem:[#allocation4 + $0x98] sm:$0xff] %v8338_v52  ;;  %v8471_v32 = vld [vmem:[#allocation4 + $0x5b] ss:$2 sm:$0xff] }
 0x674   : > { %v8469_v3 = vadd.f32 %v8468_v33, %v8466_v17  ;;  %8372 = vst [vmem:[#allocation4 + $0x88] sm:$0xff] %v8336_v21  ;;  %v9728_v24 = vpop.f32.mrb[120].mxu1  ;;  %v8497_v14 = vld [vmem:[#allocation4 + $0x6c] ss:$2 sm:$0xff]  ;;  %v8499_v25 = vld [vmem:[#allocation4 + $0x6d] ss:$2 sm:$0xff]  ;;  %v7748_v17 = vadd.f32 %v14671_v20, %v14774_v42 }
 0x675   : > { %v8454_v55 = vrot.slane %v9253_v6, 6  ;;  %v8265_v19 = vadd.f32 %v9728_v24, %v14666_v59  ;;  %v8256_v35 = vpop.f32.mrb[121].mxu1  ;;  %v8456_v22 = vrot.slane %v9254_v13, 6  ;;  %v8500_v49 = vadd.f32 %v8499_v25, %v8497_v14 }
 0x676   : > { %v8472_v38 = vadd.f32 %v8471_v32, %v8469_v3  ;;  %v8257_v23 = vadd.f32 %v14666_v59, %v8256_v35  ;;  %v9729_v15 = vpop.f32.mrb[122].mxu1  ;;  %v7746_v24 = vadd.f32 %v14671_v20, %v14768_v50  ;;  %v7751_v25 = vadd.f32 %v14671_v20, %v14783_v60 }
 0x677   : > { %v8455_v43 = vrot.slane %v8454_v55, 4  ;;  %8460 = vst [vmem:[%s14614_s29 + $0x8] sm:$0xc] %v8454_v55  ;;  %v8341_v11 = vadd.f32 %v8265_v19, %v7743_v27  ;;  %v8268_v41 = vadd.f32 %v9729_v15, %v14666_v59  ;;  %v8259_v58 = vpop.f32.mrb[123].mxu1 }
 0x678   : > { %v8473_v48 = vmul.f32 0.25, %v8472_v38  ;;  %v8339_v37 = vadd.f32 %v8257_v23, %v7741_v30  ;;  %v8260_v16 = vadd.f32 %v14666_v59, %v8259_v58 }
 0x679   : > { %v8457_v45 = vsel %vm14845_vm13, %v8455_v43, %v8456_v22  ;;  %8377 = vst [vmem:[#allocation4 + $0xb0] sm:$0xff] %v8341_v11  ;;  %v8342_v36 = vadd.f32 %v8268_v41, %v7744_v5 }
 0x67a   : > { %8461 = vst [vmem:[%s14614_s29 + $0xc] sm:$0x7] %v8457_v45  ;;  %v8475_v53 = vrot.slane %v8473_v48, 7  ;;  %8375 = vst [vmem:[#allocation4 + $0xa0] sm:$0xff] %v8339_v37  ;;  %v8340_v46 = vadd.f32 %v8260_v16, %v7742_v54  ;;  %v8524_v6 = vld [vmem:[#allocation4 + $0x90] ss:$2 sm:$0xff]  ;;  %v7749_v37 = vadd.f32 %v14671_v20, %v14777_v1 }
 0x67b   : > { %v8502_v18 = vld [vmem:[#allocation4 + $0x7e] ss:$2 sm:$0xff]  ;;  %8378 = vst [vmem:[#allocation4 + $0xb8] sm:$0xff] %v8342_v36  ;;  %v8505_v2 = vld [vmem:[#allocation4 + $0x7f] ss:$2 sm:$0xff] }
 0x67c   : > { %v8477_v61 = vsel %vm321_vm12, 0.0, %v8475_v53  ;;  %v8478_v62 = vsel %vm321_vm12, %v8475_v53, 0.0  ;;  %v8503_v7 = vadd.f32 %v8502_v18, %v8500_v49  ;;  %8376 = vst [vmem:[#allocation4 + $0xa8] sm:$0xff] %v8340_v46  ;;  %v9732_v0 = vpop.f32.mrb[124].mxu1  ;;  %v8526_v8 = vld [vmem:[#allocation4 + $0x91] ss:$2 sm:$0xff]  ;;  %v7752_v53 = vadd.f32 %v14671_v20, %v14786_v31 }
 0x67d   : > { %v9255_v47 = vpack.c.bf16 %v8477_v61, %v8477_v61  ;;  %v9256_v57 = vpack.c.bf16 %v8478_v62, %v8478_v62  ;;  %v8281_v56 = vadd.f32 %v9732_v0, %v14666_v59  ;;  %v8272_v28 = vpop.f32.mrb[125].mxu1  ;;  %v8527_v30 = vadd.f32 %v8526_v8, %v8524_v6 }
 0x67e   : > { %v8506_v52 = vadd.f32 %v8505_v2, %v8503_v7  ;;  %v8273_v39 = vadd.f32 %v14666_v59, %v8272_v28  ;;  %v9733_v51 = vpop.f32.mrb[126].mxu1  ;;  %v7750_v18 = vadd.f32 %v14671_v20, %v14780_v29  ;;  %v7753_v8 = vadd.f32 %v14671_v20, %v14789_v44 }
 0x67f   : > { %v8488_v21 = vrot.slane %v9255_v47, 5  ;;  %v8345_v13 = vadd.f32 %v8281_v56, %v7747_v40  ;;  %v8284_v33 = vadd.f32 %v9733_v51, %v14666_v59  ;;  %v8275_v3 = vpop.f32.mrb[127].mxu1  ;;  %v8490_v19 = vrot.slane %v9256_v57, 5 }
 0x680   : > { %v8507_v27 = vmul.f32 0.25, %v8506_v52  ;;  %v8343_v55 = vadd.f32 %v8273_v39, %v7745_v10  ;;  %v8276_v42 = vadd.f32 %v14666_v59, %v8275_v3  ;;  %v7755_v52 = vadd.f32 %v14671_v20, %v14795_v34 }
 0x681   : > { %v8489_v32 = vrot.slane %v8488_v21, 4  ;;  %8494 = vst [vmem:[%s14614_s29 + $0xc] sm:$0x8] %v8488_v21  ;;  %8381 = vst [vmem:[#allocation4 + $0xd0] sm:$0xff] %v8345_v13  ;;  %v8346_v35 = vadd.f32 %v8284_v33, %v7748_v17 }
 0x682   : > { %v8509_v5 = vrot.slane %v8507_v27, 7  ;;  %8379 = vst [vmem:[#allocation4 + $0xc0] sm:$0xff] %v8343_v55  ;;  %v8344_v50 = vadd.f32 %v8276_v42, %v7746_v24  ;;  %v7756_v24 = vadd.f32 %v14671_v20, %v14798_v4 }
 0x683   : > { %v8491_v38 = vsel %vm14873_vm1, %v8489_v32, %v8490_v19  ;;  %v8529_v14 = vld [vmem:[#allocation4 + $0xa2] ss:$2 sm:$0xff]  ;;  %8382 = vst [vmem:[#allocation4 + $0xd8] sm:$0xff] %v8346_v35  ;;  %v8532_v58 = vld [vmem:[#allocation4 + $0xa3] ss:$2 sm:$0xff]  ;;  %v7754_v32 = vadd.f32 %v14671_v20, %v14792_v9 }
 0x684   : > { %8495 = vst [vmem:[%s14614_s29 + $0x10] sm:$0xf] %v8491_v38  ;;  %v8511_v23 = vsel %vm321_vm12, 0.0, %v8509_v5  ;;  %v8512_v15 = vsel %vm321_vm12, %v8509_v5, 0.0  ;;  %v8530_v43 = vadd.f32 %v8529_v14, %v8527_v30  ;;  %8380 = vst [vmem:[#allocation4 + $0xc8] sm:$0xff] %v8344_v50  ;;  %v9736_v22 = vpop.f32.mrb[128].mxu1 }
 0x685   : > { %v9257_v11 = vpack.c.bf16 %v8511_v23, %v8511_v23  ;;  %v9258_v41 = vpack.c.bf16 %v8512_v15, %v8512_v15  ;;  %v8297_v54 = vadd.f32 %v9736_v22, %v14666_v59  ;;  %v8288_v48 = vpop.f32.mrb[129].mxu1 }
 0x686   : > { %v8533_v16 = vadd.f32 %v8532_v58, %v8530_v43  ;;  %v8289_v45 = vadd.f32 %v14666_v59, %v8288_v48  ;;  %v9737_v36 = vpop.f32.mrb[130].mxu1 }
 0x687   : > { %8521 = vst [vmem:[%s14614_s29 + $0x14] sm:$0xf] %v9257_v11  ;;  %8522 = vst [vmem:[%s14614_s29 + $0x18] sm:$0x1] %v9258_v41  ;;  %v8349_v49 = vadd.f32 %v8297_v54, %v7751_v25  ;;  %v8300_v60 = vadd.f32 %v9737_v36, %v14666_v59  ;;  %v8291_v46 = vpop.f32.mrb[131].mxu1 }
 0x688   : > { %v8534_v61 = vmul.f32 0.25, %v8533_v16  ;;  %v8347_v62 = vadd.f32 %v8289_v45, %v7749_v37  ;;  %v8292_v1 = vadd.f32 %v14666_v59, %v8291_v46 }
 0x689   : > { %v8555_v7 = vld [vmem:[#allocation4 + $0xb4] ss:$2 sm:$0xff]  ;;  %v8557_v0 = vld [vmem:[#allocation4 + $0xb5] ss:$2 sm:$0xff]  ;;  %8385 = vst [vmem:[#allocation4 + $0xf0] sm:$0xff] %v8349_v49  ;;  %v8350_v40 = vadd.f32 %v8300_v60, %v7752_v53 }
 0x68a   : > { %v8536_v47 = vrot.slane %v8534_v61, 7  ;;  %v8558_v57 = vadd.f32 %v8557_v0, %v8555_v7  ;;  %8383 = vst [vmem:[#allocation4 + $0xe0] sm:$0xff] %v8347_v62  ;;  %v8348_v31 = vadd.f32 %v8292_v1, %v7750_v18 }
 0x68b   : > { %v8560_v2 = vld [vmem:[#allocation4 + $0xc6] ss:$2 sm:$0xff]  ;;  %8386 = vst [vmem:[#allocation4 + $0xf8] sm:$0xff] %v8350_v40  ;;  %v8563_v17 = vld [vmem:[#allocation4 + $0xc7] ss:$2 sm:$0xff] }
 0x68c   : > { %v8538_v56 = vsel %vm321_vm12, 0.0, %v8536_v47  ;;  %v8539_v28 = vsel %vm321_vm12, %v8536_v47, 0.0  ;;  %v8561_v10 = vadd.f32 %v8560_v2, %v8558_v57  ;;  %8384 = vst [vmem:[#allocation4 + $0xe8] sm:$0xff] %v8348_v31  ;;  %v9740_v29 = vpop.f32.mrb[132].mxu1 }
 0x68d   : > { %v9259_v39 = vpack.c.bf16 %v8538_v56, %v8538_v56  ;;  %v9260_v51 = vpack.c.bf16 %v8539_v28, %v8539_v28  ;;  %v8313_v21 = vadd.f32 %v9740_v29, %v14666_v59  ;;  %v8304_v6 = vpop.f32.mrb[133].mxu1 }
 0x68e   : > { %v8564_v13 = vadd.f32 %v8563_v17, %v8561_v10  ;;  %v8305_v33 = vadd.f32 %v14666_v59, %v8304_v6  ;;  %v9741_v3 = vpop.f32.mrb[134].mxu1 }
 0x68f   : > { %v8546_v27 = vrot.slane %v9259_v39, 7  ;;  %v8353_v55 = vadd.f32 %v8313_v21, %v7755_v52  ;;  %v8316_v34 = vadd.f32 %v9741_v3, %v14666_v59  ;;  %v8307_v42 = vpop.f32.mrb[135].mxu1  ;;  %v8548_v5 = vrot.slane %v9260_v51, 7 }
 0x690   : > { %v8565_v19 = vmul.f32 0.25, %v8564_v13  ;;  %v8351_v35 = vadd.f32 %v8305_v33, %v7753_v8  ;;  %v8308_v44 = vadd.f32 %v14666_v59, %v8307_v42 }
 0x691   : > { %v8547_v30 = vrot.slane %v8546_v27, 4  ;;  %8552 = vst [vmem:[%s14614_s29 + $0x18] sm:$0xe] %v8546_v27  ;;  %v8586_v50 = vld [vmem:[#allocation4 + $0xd8] ss:$2 sm:$0xff]  ;;  %8389 = vst [vmem:[#allocation4 + $0x110] sm:$0xff] %v8353_v55  ;;  %v8354_v4 = vadd.f32 %v8316_v34, %v7756_v24 }
 0x692   : > { %v8588_v38 = vld [vmem:[#allocation4 + $0xd9] ss:$2 sm:$0xff]  ;;  %v8567_v14 = vrot.slane %v8565_v19, 7  ;;  %8387 = vst [vmem:[#allocation4 + $0x100] sm:$0xff] %v8351_v35  ;;  %v8352_v15 = vadd.f32 %v8308_v44, %v7754_v32 }
 0x693   : > { %v8589_v23 = vadd.f32 %v8588_v38, %v8586_v50  ;;  %v8549_v43 = vsel %vm14717_vm0, %v8547_v30, %v8548_v5  ;;  %v8591_v20 = vld [vmem:[#allocation4 + $0xea] ss:$2 sm:$0xff]  ;;  %8390 = vst [vmem:[#allocation4 + $0x118] sm:$0x3f] %v8354_v4  ;;  %v8594_v41 = vld [vmem:[#allocation4 + $0xeb] ss:$2 sm:$0xff] }
 0x694   : > { %8553 = vst [vmem:[%s14614_s29 + $0x1c] sm:$0x3] %v8549_v43  ;;  %v8569_v59 = vsel %vm321_vm12, 0.0, %v8567_v14  ;;  %v8570_v9 = vsel %vm321_vm12, %v8567_v14, 0.0  ;;  %8388 = vst [vmem:[#allocation4 + $0x108] sm:$0xff] %v8352_v15 }
 0x695   : > { %v8592_v22 = vadd.f32 %v8591_v20, %v8589_v23  ;;  %v9261_v25 = vpack.c.bf16 %v8569_v59, %v8569_v59  ;;  %v9262_v11 = vpack.c.bf16 %v8570_v9, %v8570_v9 }
 0x697   : > { %v8595_v58 = vadd.f32 %v8594_v41, %v8592_v22  ;;  %v8577_v54 = vrot.slane %v9261_v25, 6  ;;  %v8579_v63 = vrot.slane %v9262_v11, 6 }
 0x699   : > { %v8596_v48 = vmul.f32 0.25, %v8595_v58  ;;  %v8578_v37 = vrot.slane %v8577_v54, 4  ;;  %8583 = vst [vmem:[%s14614_s29 + $0x1c] sm:$0xc] %v8577_v54 }
 0x69b   : > { %v8598_v16 = vrot.slane %v8596_v48, 7  ;;  %v8580_v45 = vsel %vm14845_vm13, %v8578_v37, %v8579_v63  ;;  %v8617_v36 = vld [vmem:[#allocation4 + $0xfc] ss:$2 sm:$0xff]  ;;  %v8619_v53 = vld [vmem:[#allocation4 + $0xfd] ss:$2 sm:$0xff] }
 0x69c   : > { %8584 = vst [vmem:[%s14614_s29 + $0x20] sm:$0x7] %v8580_v45  ;;  %v8620_v46 = vadd.f32 %v8619_v53, %v8617_v36  ;;  %v8622_v62 = vld [vmem:[#allocation4 + $0x10e] ss:$2 sm:$0xff]  ;;  %v8625_v0 = vld [vmem:[#allocation4 + $0x10f] ss:$2 sm:$0xff] }
 0x69d   : > { %v8600_v49 = vsel %vm321_vm12, 0.0, %v8598_v16  ;;  %v8601_v60 = vsel %vm321_vm12, %v8598_v16, 0.0 }
 0x69e   : > { %v9263_v18 = vpack.c.bf16 %v8600_v49, %v8600_v49  ;;  %v9264_v61 = vpack.c.bf16 %v8601_v60, %v8601_v60  ;;  %v8623_v1 = vadd.f32 %v8622_v62, %v8620_v46 }
 0x6a0   : > { %v8608_v7 = vrot.slane %v9263_v18, 5  ;;  %v8626_v26 = vadd.f32 %v8625_v0, %v8623_v1  ;;  %v8610_v47 = vrot.slane %v9264_v61, 5 }
 0x6a2   : > { %v8609_v40 = vrot.slane %v8608_v7, 4  ;;  %8614 = vst [vmem:[%s14614_s29 + $0x20] sm:$0x8] %v8608_v7  ;;  %v8627_v57 = vmul.f32 0.25, %v8626_v26 }
 0x6a4   : > { %v8611_v31 = vsel %vm14873_vm1, %v8609_v40, %v8610_v47  ;;  %v8629_v2 = vrot.slane %v8627_v57, 7 }
 0x6a5   : > { %8615 = vst [vmem:[%s14614_s29 + $0x24] sm:$0xf] %v8611_v31 }
 0x6a6   : > { %v8631_v56 = vsel %vm321_vm12, 0.0, %v8629_v2  ;;  %v8632_v28 = vsel %vm321_vm12, %v8629_v2, 0.0 }
 0x6a7   : > { %v9265_v10 = vpack.c.bf16 %v8631_v56, %v8631_v56  ;;  %v9266_v29 = vpack.c.bf16 %v8632_v28, %v8632_v28 }
 0x6a9   : > { %8641 = vst [vmem:[%s14614_s29 + $0x28] sm:$0xf] %v9265_v10  ;;  %8642 = vst [vmem:[%s14614_s29 + $0x2c] sm:$0x1] %v9266_v29 }
 0x6aa PF: > { %s19_s24 = sadd.s32 1, %s10687_s24  }
 0x6ab   : > { %p16_p9 = scmp.ge.s32.totalorder %s19_s24, 4  }
 0x6ad   :  { %18 = sbr.rel (!%p16_p9) target bundleno = 2 (0x2), region = 126 }
 0x6b4   :  { %8664 = vsyncpa [#allocation6], 1 }
 0x6b5   :  { %8666 = vsyncpa [#allocation6 + $0x1], 1 }
 0x6b6   :  { %8667 = vsyncpa [#allocation8], 1 }

</bundles_post_ra>
